<compile_context>
chip_gen: v7x
topology: tpu7x:2x2x1
jax: 0.10.0
libtpu: 0.0.40
codegen_flags: <defaults>
</compile_context>

<pallas_src>
import functools

import jax
import jax.numpy as jnp
from jax.experimental import pallas as pl
from jax.experimental.pallas import tpu as pltpu

LANE = 128  # channel padding target (TPU lane width)


def _cdiv(a, b):
    return -(-a // b)


def _round_up(a, b):
    return _cdiv(a, b) * b


# ----------------------------- Pallas conv kernel ---------------------------

def _conv_tap_kernel(a_ref, h_ref, w_ref, bias_ref, o_ref, band_ref, acc_ref,
                     *, taps, tm):
    """One output tile of a 3x3 conv expressed as flat-offset tap GEMMs.

    a_ref    : (tm, K)    bf16 -- current row-block of the flattened activation.
    h_ref    : (hr, K)    bf16 -- small halo (first hr rows of the next block).
    w_ref    : (Kt, N)    bf16 -- all tap weights concatenated along K.
    bias_ref : (1, N)     f32
    o_ref    : (tm, N)    bf16 -- lane-dense output tile.
    band_ref : (tm+hr, K) bf16 VMEM scratch -- tile + halo staged contiguously.
    acc_ref  : (tm, N)    f32  VMEM scratch accumulator.
    """
    band_ref[0:tm, :] = a_ref[...]
    band_ref[tm:, :] = h_ref[...]
    for t, (off, klen, wrow) in enumerate(taps):        # static unroll
        contrib = jnp.dot(band_ref[off:off + tm, 0:klen],
                          w_ref[wrow:wrow + klen, :],
                          preferred_element_type=jnp.float32)
        if t == 0:
            acc_ref[...] = contrib
        else:
            acc_ref[...] += contrib
    o_ref[...] = jnp.maximum(acc_ref[...] + bias_ref[...], 0.0).astype(o_ref.dtype)


def _conv_tap_gemm(x_flat, w_cat, bias2d, taps, batch, n_mb, tm, hr, ls_pad):
    """x_flat: (batch*ls_pad, K) bf16, w_cat: (Kt, N) bf16, bias2d: (1, N) f32."""
    K = x_flat.shape[-1]
    Kt, N = w_cat.shape
    m_out = batch * n_mb * tm
    rpb = ls_pad // hr          # hr-sized blocks per batch region
    tpb = tm // hr              # hr-sized blocks per tile
    kernel = functools.partial(_conv_tap_kernel, taps=tuple(taps), tm=tm)
    flops = 2 * batch * n_mb * tm * N * sum(k for _, k, _ in taps)
    cost = pl.CostEstimate(
        flops=flops, transcendentals=0,
        bytes_accessed=int(batch * n_mb * (tm + hr) * K * 2
                           + Kt * N * 2 + m_out * N * 2))
    return pl.pallas_call(
        kernel,
        out_shape=jax.ShapeDtypeStruct((m_out, N), jnp.bfloat16),
        grid=(batch, n_mb),
        in_specs=[
            pl.BlockSpec((tm, K), lambda b, m: (b * (n_mb + 1) + m, 0)),   # tile
            pl.BlockSpec((hr, K), lambda b, m: (b * rpb + (m + 1) * tpb, 0)),  # halo
            pl.BlockSpec((Kt, N), lambda b, m: (0, 0)),                    # weights
            pl.BlockSpec((1, N), lambda b, m: (0, 0)),                     # bias
        ],
        out_specs=pl.BlockSpec((tm, N), lambda b, m: (b * n_mb + m, 0)),
        scratch_shapes=[
            pltpu.VMEM((tm + hr, K), jnp.bfloat16),   # band (tile + halo)
            pltpu.VMEM((tm, N), jnp.float32),         # f32 accumulator
        ],
        compiler_params=pltpu.CompilerParams(
            dimension_semantics=("parallel", "parallel")),
        cost_estimate=cost,
    )(x_flat, x_flat, w_cat, bias2d)


# ---------------------- weight packing for the tap GEMMs ---------------------

def _stride1_weights(w, Ws):
    """w: (3,3,Cp,N) -> concat (9*Cp, N) + taps (flat_off, klen, w_row_start)."""
    Cp = w.shape[2]
    w_cat = jnp.concatenate([w[di, dj] for di in range(3) for dj in range(3)],
                            axis=0)
    taps = tuple((di * Ws + dj, Cp, (di * 3 + dj) * Cp)
                 for di in range(3) for dj in range(3))
    return w_cat, taps, 2 * Ws + 2


def _stride2_weights(w, Ws2):
    """Stride-2 as stride-1 taps over a space-to-depth input.

    Channel block order is W-phase-major: block index 2*q + p holds xp[2a+p, 2b+q].
    If Cp is lane-aligned, taps use variable K (4C/2C/4C/C) to skip structurally
    zero phases; otherwise (stem) a uniform K=4*Cp layout with zero weights is used.
    """
    Cp, N = w.shape[2], w.shape[3]
    zeros = jnp.zeros((Cp, N), w.dtype)
    if Cp % LANE == 0:
        w_cat = jnp.concatenate(
            [w[0, 0], w[1, 0], w[0, 1], w[1, 1],      # tap (0,0): K = 4*Cp
             w[0, 2], w[1, 2],                        # tap (0,1): K = 2*Cp
             w[2, 0], zeros, w[2, 1], zeros,          # tap (1,0): K = 4*Cp
             w[2, 2]], axis=0)                        # tap (1,1): K = Cp
        taps = ((0, 4 * Cp, 0),
                (1, 2 * Cp, 4 * Cp),
                (Ws2, 4 * Cp, 6 * Cp),
                (Ws2 + 1, Cp, 10 * Cp))
    else:
        blocks, taps = [], []
        for t, (ta, tb) in enumerate(((0, 0), (0, 1), (1, 0), (1, 1))):
            for q in range(2):
                for p in range(2):
                    di, dj = 2 * ta + p, 2 * tb + q
                    blocks.append(w[di, dj] if (di < 3 and dj < 3) else zeros)
            taps.append((ta * Ws2 + tb, 4 * Cp, t * 4 * Cp))
        w_cat = jnp.concatenate(blocks, axis=0)
        taps = tuple(taps)
    return w_cat, taps, Ws2 + 1


# ------------------- conv layer built on the Pallas kernel -------------------

def _choose_tiles(Lo, max_off, tm_target=1024):
    hr = _round_up(max_off, 8)                       # halo rows, multiple of 8
    mult = max(1, min(tm_target // hr, _cdiv(Lo, hr)))
    return hr, hr * mult                             # tm is a multiple of hr


def conv3x3_bias_relu(x, w, bias, stride, tm_target=1024):
    """3x3 conv (padding=1, given stride) + bias + ReLU; channels pre-padded to 128.

    x: (B, H, W, Cin_pad) bf16, w: (3, 3, Cin_pad, Cout_pad) f32,
    bias: (Cout_pad,) f32.  Returns (B, Ho, Wo, Cout_pad) bf16.
    """
    B, H, W, C = x.shape
    Cout = w.shape[-1]
    Ho = (H - 1) // stride + 1
    Wo = (W - 1) // stride + 1
    if stride == 2:
        Hs = _cdiv(H + 2, 2)
        Ws = _round_up(_cdiv(W + 2, 2), 8)           # flat row stride, 8-aligned
        xp = jnp.pad(x, ((0, 0), (1, 2 * Hs - H - 1), (1, 2 * Ws - W - 1), (0, 0)))
        # space-to-depth: channel block 2*q + p holds xp[2a+p, 2b+q, :]
        x_img = xp.reshape(B, Hs, 2, Ws, 2, C).transpose(0, 1, 3, 4, 2, 5)
        x_img = x_img.reshape(B, Hs, Ws, 4 * C)
        w_cat, taps, max_off = _stride2_weights(w, Ws)
    else:
        Hs = H + 2
        Ws = _round_up(W + 2, 8)
        x_img = jnp.pad(x, ((0, 0), (1, 1), (1, Ws - W - 1), (0, 0)))
        w_cat, taps, max_off = _stride1_weights(w, Ws)
    K = x_img.shape[-1]
    # Output rows span the full padded width Ws (columns >= Wo are junk, sliced
    # off), so every conv tap is a constant flat offset into the flattened image.
    Lo = Ho * Ws
    hr, tm = _choose_tiles(Lo, max_off, tm_target)
    n_mb = _cdiv(Lo, tm)
    ls_pad = (n_mb + 1) * tm        # +tm zero rows: final halo + image tail fit here
    x_flat = x_img.reshape(B, Hs * Ws, K)
    x_flat = jnp.pad(x_flat, ((0, 0), (0, ls_pad - Hs * Ws), (0, 0)))
    x_flat = x_flat.reshape(B * ls_pad, K).astype(jnp.bfloat16)
    y = _conv_tap_gemm(x_flat, w_cat.astype(jnp.bfloat16),
                       bias.reshape(1, Cout).astype(jnp.float32),
                       taps, B, n_mb, tm, hr, ls_pad)
    y = y.reshape(B, n_mb * tm, Cout)[:, :Lo, :]
    y = y.reshape(B, Ho, Ws, Cout)[:, :, :Wo, :]
    return y


# ------------------------- mask resize (per perf review) ---------------------

def mask_nearest_resize(mask, sizes):
    """== F.interpolate(mask[None].float(), size, mode='nearest').bool()[0].

    Exact integer ratios -> strided slice (free); general case -> floor-index gather.
    """
    B, H, W = mask.shape
    outs = []
    for (h, w) in sizes:
        if H % h == 0 and W % w == 0:
            outs.append(mask[:, :: H // h, :: W // w])
        else:
            ri = (jnp.arange(h) * H) // h
            ci = (jnp.arange(w) * W) // w
            outs.append(mask[:, ri][:, :, ci])
    return outs


# ------------------------ synthetic backbone params --------------------------

def init_backbone_params(key, in_ch=3, widths=(8, 8, 16, 32, 64),
                         cpad=LANE, stem_cin_pad=32):
    """Synthetic backbone; weights/bias zero-padded so every conv is lane-dense."""
    params = {}
    chans = [in_ch] + list(widths)
    names = ["stem", "layer1", "layer2", "layer3", "layer4"]
    for i, name in enumerate(names):
        key, kw_, kb_ = jax.random.split(key, 3)
        cin, cout = chans[i], chans[i + 1]
        w = 0.1 * jax.random.normal(kw_, (3, 3, cin, cout), jnp.float32)
        b = 0.01 * jax.random.normal(kb_, (cout,), jnp.float32)
        cin_pad = stem_cin_pad if i == 0 else cpad
        w_pad = jnp.zeros((3, 3, cin_pad, cpad), jnp.float32).at[:, :, :cin, :cout].set(w)
        b_pad = jnp.zeros((cpad,), jnp.float32).at[:cout].set(b)
        params[name] = {"w": w_pad, "b": b_pad, "cout": cout}
    return params


# --------------------------- BackboneBase (Pallas) ---------------------------

class BackboneBasePallas:
    """JAX/Pallas equivalent of BackboneBase.forward.

    - `body` is a synthetic ResNet-like backbone (stem + layer1..layer4, each one
      3x3 conv + ReLU) with IntermediateLayerGetter semantics: the output of
      layer{5 - len(return_interm_indices) + idx} is returned under key
      str(return_interm_indices[idx]).
    - The boolean mask is nearest-resized to every returned feature's spatial
      size (== F.interpolate(..., mode='nearest').bool()).
    - Parameter freezing (requires_grad_) is training-only -> no forward effect.
    - NestedTensor is represented as a (features, mask) tuple.
    """
    # TODO(synk): real ResNet bottleneck blocks are replaced by a single 3x3
    # conv+ReLU per layer (in PyTorch the backbone is injected; synthetic here).
    STRIDES = {"stem": 2, "layer1": 1, "layer2": 2, "layer3": 2, "layer4": 2}
    ORDER = ["stem", "layer1", "layer2", "layer3", "layer4"]

    def __init__(self, params, num_channels, return_interm_indices):
        self.params = params
        self.num_channels = num_channels
        self.return_layers = {}
        for idx, layer_index in enumerate(return_interm_indices):
            self.return_layers[
                "layer{}".format(5 - len(return_interm_indices) + idx)
            ] = "{}".format(layer_index)

    def __call__(self, tensors_nchw, mask):
        # tensors: [B, C, H, W] float32 (NCHW, PyTorch layout); mask: [B, H, W] bool
        assert mask is not None
        x = jnp.transpose(tensors_nchw, (0, 2, 3, 1))        # NHWC for the conv chain
        stem_cin_pad = self.params["stem"]["w"].shape[2]
        x = jnp.pad(x, ((0, 0), (0, 0), (0, 0), (0, stem_cin_pad - x.shape[-1])))
        x = x.astype(jnp.bfloat16)
        feats = {}
        for name in self.ORDER:
            p = self.params[name]
            x = conv3x3_bias_relu(x, p["w"], p["b"], self.STRIDES[name])
            if name in self.return_layers:
                feats[self.return_layers[name]] = (x, p["cout"])
        names = list(feats.keys())
        sizes = [(feats[n][0].shape[1], feats[n][0].shape[2]) for n in names]
        masks = mask_nearest_resize(mask, sizes)
        out = {}
        for n, m in zip(names, masks):
            f, c = feats[n]
            # Strip channel padding and emit NCHW float32 once, outside the conv chain.
            f = jnp.transpose(f[..., :c].astype(jnp.float32), (0, 3, 1, 2))
            out[n] = (f, m)                                   # NestedTensor(x, mask)
        return out


# --------------------------------- driver ------------------------------------

if __name__ == "__main__":
    key = jax.random.PRNGKey(0)
    kp, kx = jax.random.split(key, 2)

    B, C, H, W = 2, 3, 32, 32
    x = jax.random.normal(kx, (B, C, H, W), jnp.float32)

    # Deterministic padding mask (True == padded pixel), DETR-style.
    col = jax.lax.broadcasted_iota(jnp.int32, (B, H, W), 2)
    valid_w = jnp.array([24, 20], dtype=jnp.int32)
    mask = col >= valid_w[:, None, None]

    params = init_backbone_params(kp, in_ch=C)
    model = BackboneBasePallas(
        params, num_channels=[16, 32, 64], return_interm_indices=[1, 2, 3]
    )

    fwd = jax.jit(lambda t, m: model(t, m))
    out = fwd(x, mask)
    for name in sorted(out.keys()):
        feat, m = out[name]
        jax.block_until_ready(feat)
        jax.block_until_ready(m)

    print("KERNEL_OK")
</pallas_src>

<mosaic_0001>
module attributes {stable_mosaic.version = 11 : i64} {
  func.func @_conv_tap_kernel(%arg0: i32, %arg1: i32, %arg2: memref<384x128xbf16, #tpu.memory_space<vmem>>, %arg3: memref<32x128xbf16, #tpu.memory_space<vmem>>, %arg4: memref<512x128xbf16, #tpu.memory_space<vmem>>, %arg5: memref<1x128xf32, #tpu.memory_space<vmem>>, %arg6: memref<384x128xbf16, #tpu.memory_space<vmem>>, %arg7: memref<416x128xbf16, #tpu.memory_space<vmem>>, %arg8: memref<384x128xf32, #tpu.memory_space<vmem>>) attributes {dimension_semantics = [#tpu.dimension_semantics<parallel>, #tpu.dimension_semantics<parallel>], iteration_bounds = array<i64: 2, 1>, scalar_prefetch = 0 : i64, scratch_operands = 2 : i64, tpu.core_type = #tpu.core_type<tc>, window_params = [{transform_indices = @transform_0, window_bounds = array<i64: 384, 128>}, {transform_indices = @transform_1, window_bounds = array<i64: 32, 128>}, {pipeline_mode = #tpu.pipeline_mode<synchronous>, transform_indices = @transform_2, window_bounds = array<i64: 512, 128>}, {pipeline_mode = #tpu.pipeline_mode<synchronous>, transform_indices = @transform_3, window_bounds = array<i64: 1, 128>}, {transform_indices = @transform_4, window_bounds = array<i64: 384, 128>}]} {
    %c0 = arith.constant 0 : index
    %c0_0 = arith.constant 0 : index
    %0 = vector.load %arg2[%c0, %c0_0] : memref<384x128xbf16, #tpu.memory_space<vmem>>, vector<384x128xbf16>
    %c0_1 = arith.constant 0 : index
    %c0_2 = arith.constant 0 : index
    %1 = vector.load %arg7[%c0_1, %c0_2] : memref<416x128xbf16, #tpu.memory_space<vmem>>, vector<384x128xbf16>
    tpu.vector_store %arg7[%c0_1, %c0_2], %0 {strides = array<i32>} : memref<416x128xbf16, #tpu.memory_space<vmem>>, vector<384x128xbf16>,
    %c0_3 = arith.constant 0 : index
    %c0_4 = arith.constant 0 : index
    %2 = vector.load %arg3[%c0_3, %c0_4] : memref<32x128xbf16, #tpu.memory_space<vmem>>, vector<32x128xbf16>
    %c384 = arith.constant 384 : index
    %c0_5 = arith.constant 0 : index
    %3 = vector.load %arg7[%c384, %c0_5] : memref<416x128xbf16, #tpu.memory_space<vmem>>, vector<32x128xbf16>
    tpu.vector_store %arg7[%c384, %c0_5], %2 {strides = array<i32>} : memref<416x128xbf16, #tpu.memory_space<vmem>>, vector<32x128xbf16>,
    %c0_6 = arith.constant 0 : index
    %c0_7 = arith.constant 0 : index
    %4 = vector.load %arg7[%c0_6, %c0_7] : memref<416x128xbf16, #tpu.memory_space<vmem>>, vector<384x128xbf16>
    %c0_8 = arith.constant 0 : index
    %c0_9 = arith.constant 0 : index
    %5 = vector.load %arg4[%c0_8, %c0_9] : memref<512x128xbf16, #tpu.memory_space<vmem>>, vector<128x128xbf16>
    %cst = arith.constant dense<0.000000e+00> : vector<384x128xf32>
    %6 = tpu.matmul %4, %5, %cst {dimension_numbers = #tpu.dot_dimension_numbers<[1], [0], [0], [1], [0, 0, 1, 1], [], []>} : vector<384x128xbf16>, vector<128x128xbf16>, vector<384x128xf32> -> vector<384x128xf32>
    %c0_10 = arith.constant 0 : index
    %c0_11 = arith.constant 0 : index
    %7 = vector.load %arg8[%c0_10, %c0_11] : memref<384x128xf32, #tpu.memory_space<vmem>>, vector<384x128xf32>
    tpu.vector_store %arg8[%c0_10, %c0_11], %6 {strides = array<i32>} : memref<384x128xf32, #tpu.memory_space<vmem>>, vector<384x128xf32>,
    %c1 = arith.constant 1 : index
    %c0_12 = arith.constant 0 : index
    %8 = vector.load %arg7[%c1, %c0_12] : memref<416x128xbf16, #tpu.memory_space<vmem>>, vector<384x128xbf16>
    %c128 = arith.constant 128 : index
    %c0_13 = arith.constant 0 : index
    %9 = vector.load %arg4[%c128, %c0_13] : memref<512x128xbf16, #tpu.memory_space<vmem>>, vector<128x128xbf16>
    %cst_14 = arith.constant dense<0.000000e+00> : vector<384x128xf32>
    %10 = tpu.matmul %8, %9, %cst_14 {dimension_numbers = #tpu.dot_dimension_numbers<[1], [0], [0], [1], [0, 0, 1, 1], [], []>} : vector<384x128xbf16>, vector<128x128xbf16>, vector<384x128xf32> -> vector<384x128xf32>
    %c0_15 = arith.constant 0 : index
    %c0_16 = arith.constant 0 : index
    %11 = vector.load %arg8[%c0_15, %c0_16] : memref<384x128xf32, #tpu.memory_space<vmem>>, vector<384x128xf32>
    %12 = arith.addf %11, %10 : vector<384x128xf32>
    %c0_17 = arith.constant 0 : index
    %c0_18 = arith.constant 0 : index
    %13 = vector.load %arg8[%c0_17, %c0_18] : memref<384x128xf32, #tpu.memory_space<vmem>>, vector<384x128xf32>
    tpu.vector_store %arg8[%c0_17, %c0_18], %12 {strides = array<i32>} : memref<384x128xf32, #tpu.memory_space<vmem>>, vector<384x128xf32>,
    %c24 = arith.constant 24 : index
    %c0_19 = arith.constant 0 : index
    %14 = vector.load %arg7[%c24, %c0_19] : memref<416x128xbf16, #tpu.memory_space<vmem>>, vector<384x128xbf16>
    %c256 = arith.constant 256 : index
    %c0_20 = arith.constant 0 : index
    %15 = vector.load %arg4[%c256, %c0_20] : memref<512x128xbf16, #tpu.memory_space<vmem>>, vector<128x128xbf16>
    %cst_21 = arith.constant dense<0.000000e+00> : vector<384x128xf32>
    %16 = tpu.matmul %14, %15, %cst_21 {dimension_numbers = #tpu.dot_dimension_numbers<[1], [0], [0], [1], [0, 0, 1, 1], [], []>} : vector<384x128xbf16>, vector<128x128xbf16>, vector<384x128xf32> -> vector<384x128xf32>
    %c0_22 = arith.constant 0 : index
    %c0_23 = arith.constant 0 : index
    %17 = vector.load %arg8[%c0_22, %c0_23] : memref<384x128xf32, #tpu.memory_space<vmem>>, vector<384x128xf32>
    %18 = arith.addf %17, %16 : vector<384x128xf32>
    %c0_24 = arith.constant 0 : index
    %c0_25 = arith.constant 0 : index
    %19 = vector.load %arg8[%c0_24, %c0_25] : memref<384x128xf32, #tpu.memory_space<vmem>>, vector<384x128xf32>
    tpu.vector_store %arg8[%c0_24, %c0_25], %18 {strides = array<i32>} : memref<384x128xf32, #tpu.memory_space<vmem>>, vector<384x128xf32>,
    %c25 = arith.constant 25 : index
    %c0_26 = arith.constant 0 : index
    %20 = vector.load %arg7[%c25, %c0_26] : memref<416x128xbf16, #tpu.memory_space<vmem>>, vector<384x128xbf16>
    %c384_27 = arith.constant 384 : index
    %c0_28 = arith.constant 0 : index
    %21 = vector.load %arg4[%c384_27, %c0_28] : memref<512x128xbf16, #tpu.memory_space<vmem>>, vector<128x128xbf16>
    %cst_29 = arith.constant dense<0.000000e+00> : vector<384x128xf32>
    %22 = tpu.matmul %20, %21, %cst_29 {dimension_numbers = #tpu.dot_dimension_numbers<[1], [0], [0], [1], [0, 0, 1, 1], [], []>} : vector<384x128xbf16>, vector<128x128xbf16>, vector<384x128xf32> -> vector<384x128xf32>
    %c0_30 = arith.constant 0 : index
    %c0_31 = arith.constant 0 : index
    %23 = vector.load %arg8[%c0_30, %c0_31] : memref<384x128xf32, #tpu.memory_space<vmem>>, vector<384x128xf32>
    %24 = arith.addf %23, %22 : vector<384x128xf32>
    %c0_32 = arith.constant 0 : index
    %c0_33 = arith.constant 0 : index
    %25 = vector.load %arg8[%c0_32, %c0_33] : memref<384x128xf32, #tpu.memory_space<vmem>>, vector<384x128xf32>
    tpu.vector_store %arg8[%c0_32, %c0_33], %24 {strides = array<i32>} : memref<384x128xf32, #tpu.memory_space<vmem>>, vector<384x128xf32>,
    %c0_34 = arith.constant 0 : index
    %c0_35 = arith.constant 0 : index
    %26 = vector.load %arg8[%c0_34, %c0_35] : memref<384x128xf32, #tpu.memory_space<vmem>>, vector<384x128xf32>
    %c0_36 = arith.constant 0 : index
    %c0_37 = arith.constant 0 : index
    %27 = vector.load %arg5[%c0_36, %c0_37] : memref<1x128xf32, #tpu.memory_space<vmem>>, vector<1x128xf32>
    %28 = vector.broadcast %27 : vector<1x128xf32> to vector<384x128xf32>
    %29 = arith.addf %26, %28 : vector<384x128xf32>
    %cst_38 = arith.constant 0.000000e+00 : f32
    %30 = vector.broadcast %cst_38 : f32 to vector<384x128xf32>
    %31 = arith.maximumf %29, %30 : vector<384x128xf32>
    %32 = arith.truncf %31 : vector<384x128xf32> to vector<384x128xbf16>
    %c0_39 = arith.constant 0 : index
    %c0_40 = arith.constant 0 : index
    %33 = vector.load %arg6[%c0_39, %c0_40] : memref<384x128xbf16, #tpu.memory_space<vmem>>, vector<384x128xbf16>
    tpu.vector_store %arg6[%c0_39, %c0_40], %32 {strides = array<i32>} : memref<384x128xbf16, #tpu.memory_space<vmem>>, vector<384x128xbf16>,
    return
  }
  func.func @transform_0(%arg0: i32, %arg1: i32) -> (i32, i32) {
    %c2_i32 = arith.constant 2 : i32
    %0 = arith.muli %arg0, %c2_i32 : i32
    %1 = arith.addi %0, %arg1 : i32
    %c0_i32 = arith.constant 0 : i32
    %c0_i32_0 = arith.constant 0 : i32
    return %1, %c0_i32 : i32, i32
  }
  func.func @transform_1(%arg0: i32, %arg1: i32) -> (i32, i32) {
    %c24_i32 = arith.constant 24 : i32
    %0 = arith.muli %arg0, %c24_i32 : i32
    %c1_i32 = arith.constant 1 : i32
    %1 = arith.addi %arg1, %c1_i32 : i32
    %c12_i32 = arith.constant 12 : i32
    %2 = arith.muli %1, %c12_i32 : i32
    %3 = arith.addi %0, %2 : i32
    %c0_i32 = arith.constant 0 : i32
    %c0_i32_0 = arith.constant 0 : i32
    return %3, %c0_i32 : i32, i32
  }
  func.func @transform_2(%arg0: i32, %arg1: i32) -> (i32, i32) {
    %c0_i32 = arith.constant 0 : i32
    %c0_i32_0 = arith.constant 0 : i32
    %c0_i32_1 = arith.constant 0 : i32
    return %c0_i32, %c0_i32_0 : i32, i32
  }
  func.func @transform_3(%arg0: i32, %arg1: i32) -> (i32, i32) {
    %c0_i32 = arith.constant 0 : i32
    %c0_i32_0 = arith.constant 0 : i32
    %c0_i32_1 = arith.constant 0 : i32
    return %c0_i32, %c0_i32_0 : i32, i32
  }
  func.func @transform_4(%arg0: i32, %arg1: i32) -> (i32, i32) {
    %c1_i32 = arith.constant 1 : i32
    %0 = arith.muli %arg0, %c1_i32 : i32
    %1 = arith.addi %0, %arg1 : i32
    %c0_i32 = arith.constant 0 : i32
    %c0_i32_0 = arith.constant 0 : i32
    return %1, %c0_i32 : i32, i32
  }
}

module attributes {stable_mosaic.version = 11 : i64} {
  func.func @_conv_tap_kernel(%arg0: i32, %arg1: i32, %arg2: memref<392x128xbf16, #tpu.memory_space<vmem>>, %arg3: memref<56x128xbf16, #tpu.memory_space<vmem>>, %arg4: memref<1152x128xbf16, #tpu.memory_space<vmem>>, %arg5: memref<1x128xf32, #tpu.memory_space<vmem>>, %arg6: memref<392x128xbf16, #tpu.memory_space<vmem>>, %arg7: memref<448x128xbf16, #tpu.memory_space<vmem>>, %arg8: memref<392x128xf32, #tpu.memory_space<vmem>>) attributes {dimension_semantics = [#tpu.dimension_semantics<parallel>, #tpu.dimension_semantics<parallel>], iteration_bounds = array<i64: 2, 1>, scalar_prefetch = 0 : i64, scratch_operands = 2 : i64, tpu.core_type = #tpu.core_type<tc>, window_params = [{transform_indices = @transform_0, window_bounds = array<i64: 392, 128>}, {transform_indices = @transform_1, window_bounds = array<i64: 56, 128>}, {pipeline_mode = #tpu.pipeline_mode<synchronous>, transform_indices = @transform_2, window_bounds = array<i64: 1152, 128>}, {pipeline_mode = #tpu.pipeline_mode<synchronous>, transform_indices = @transform_3, window_bounds = array<i64: 1, 128>}, {transform_indices = @transform_4, window_bounds = array<i64: 392, 128>}]} {
    %c0 = arith.constant 0 : index
    %c0_0 = arith.constant 0 : index
    %0 = vector.load %arg2[%c0, %c0_0] : memref<392x128xbf16, #tpu.memory_space<vmem>>, vector<392x128xbf16>
    %c0_1 = arith.constant 0 : index
    %c0_2 = arith.constant 0 : index
    %1 = vector.load %arg7[%c0_1, %c0_2] : memref<448x128xbf16, #tpu.memory_space<vmem>>, vector<392x128xbf16>
    tpu.vector_store %arg7[%c0_1, %c0_2], %0 {strides = array<i32>} : memref<448x128xbf16, #tpu.memory_space<vmem>>, vector<392x128xbf16>,
    %c0_3 = arith.constant 0 : index
    %c0_4 = arith.constant 0 : index
    %2 = vector.load %arg3[%c0_3, %c0_4] : memref<56x128xbf16, #tpu.memory_space<vmem>>, vector<56x128xbf16>
    %c392 = arith.constant 392 : index
    %c0_5 = arith.constant 0 : index
    %3 = vector.load %arg7[%c392, %c0_5] : memref<448x128xbf16, #tpu.memory_space<vmem>>, vector<56x128xbf16>
    tpu.vector_store %arg7[%c392, %c0_5], %2 {strides = array<i32>} : memref<448x128xbf16, #tpu.memory_space<vmem>>, vector<56x128xbf16>,
    %c0_6 = arith.constant 0 : index
    %c0_7 = arith.constant 0 : index
    %4 = vector.load %arg7[%c0_6, %c0_7] : memref<448x128xbf16, #tpu.memory_space<vmem>>, vector<392x128xbf16>
    %c0_8 = arith.constant 0 : index
    %c0_9 = arith.constant 0 : index
    %5 = vector.load %arg4[%c0_8, %c0_9] : memref<1152x128xbf16, #tpu.memory_space<vmem>>, vector<128x128xbf16>
    %cst = arith.constant dense<0.000000e+00> : vector<392x128xf32>
    %6 = tpu.matmul %4, %5, %cst {dimension_numbers = #tpu.dot_dimension_numbers<[1], [0], [0], [1], [0, 0, 1, 1], [], []>} : vector<392x128xbf16>, vector<128x128xbf16>, vector<392x128xf32> -> vector<392x128xf32>
    %c0_10 = arith.constant 0 : index
    %c0_11 = arith.constant 0 : index
    %7 = vector.load %arg8[%c0_10, %c0_11] : memref<392x128xf32, #tpu.memory_space<vmem>>, vector<392x128xf32>
    tpu.vector_store %arg8[%c0_10, %c0_11], %6 {strides = array<i32>} : memref<392x128xf32, #tpu.memory_space<vmem>>, vector<392x128xf32>,
    %c1 = arith.constant 1 : index
    %c0_12 = arith.constant 0 : index
    %8 = vector.load %arg7[%c1, %c0_12] : memref<448x128xbf16, #tpu.memory_space<vmem>>, vector<392x128xbf16>
    %c128 = arith.constant 128 : index
    %c0_13 = arith.constant 0 : index
    %9 = vector.load %arg4[%c128, %c0_13] : memref<1152x128xbf16, #tpu.memory_space<vmem>>, vector<128x128xbf16>
    %cst_14 = arith.constant dense<0.000000e+00> : vector<392x128xf32>
    %10 = tpu.matmul %8, %9, %cst_14 {dimension_numbers = #tpu.dot_dimension_numbers<[1], [0], [0], [1], [0, 0, 1, 1], [], []>} : vector<392x128xbf16>, vector<128x128xbf16>, vector<392x128xf32> -> vector<392x128xf32>
    %c0_15 = arith.constant 0 : index
    %c0_16 = arith.constant 0 : index
    %11 = vector.load %arg8[%c0_15, %c0_16] : memref<392x128xf32, #tpu.memory_space<vmem>>, vector<392x128xf32>
    %12 = arith.addf %11, %10 : vector<392x128xf32>
    %c0_17 = arith.constant 0 : index
    %c0_18 = arith.constant 0 : index
    %13 = vector.load %arg8[%c0_17, %c0_18] : memref<392x128xf32, #tpu.memory_space<vmem>>, vector<392x128xf32>
    tpu.vector_store %arg8[%c0_17, %c0_18], %12 {strides = array<i32>} : memref<392x128xf32, #tpu.memory_space<vmem>>, vector<392x128xf32>,
    %c2 = arith.constant 2 : index
    %c0_19 = arith.constant 0 : index
    %14 = vector.load %arg7[%c2, %c0_19] : memref<448x128xbf16, #tpu.memory_space<vmem>>, vector<392x128xbf16>
    %c256 = arith.constant 256 : index
    %c0_20 = arith.constant 0 : index
    %15 = vector.load %arg4[%c256, %c0_20] : memref<1152x128xbf16, #tpu.memory_space<vmem>>, vector<128x128xbf16>
    %cst_21 = arith.constant dense<0.000000e+00> : vector<392x128xf32>
    %16 = tpu.matmul %14, %15, %cst_21 {dimension_numbers = #tpu.dot_dimension_numbers<[1], [0], [0], [1], [0, 0, 1, 1], [], []>} : vector<392x128xbf16>, vector<128x128xbf16>, vector<392x128xf32> -> vector<392x128xf32>
    %c0_22 = arith.constant 0 : index
    %c0_23 = arith.constant 0 : index
    %17 = vector.load %arg8[%c0_22, %c0_23] : memref<392x128xf32, #tpu.memory_space<vmem>>, vector<392x128xf32>
    %18 = arith.addf %17, %16 : vector<392x128xf32>
    %c0_24 = arith.constant 0 : index
    %c0_25 = arith.constant 0 : index
    %19 = vector.load %arg8[%c0_24, %c0_25] : memref<392x128xf32, #tpu.memory_space<vmem>>, vector<392x128xf32>
    tpu.vector_store %arg8[%c0_24, %c0_25], %18 {strides = array<i32>} : memref<392x128xf32, #tpu.memory_space<vmem>>, vector<392x128xf32>,
    %c24 = arith.constant 24 : index
    %c0_26 = arith.constant 0 : index
    %20 = vector.load %arg7[%c24, %c0_26] : memref<448x128xbf16, #tpu.memory_space<vmem>>, vector<392x128xbf16>
    %c384 = arith.constant 384 : index
    %c0_27 = arith.constant 0 : index
    %21 = vector.load %arg4[%c384, %c0_27] : memref<1152x128xbf16, #tpu.memory_space<vmem>>, vector<128x128xbf16>
    %cst_28 = arith.constant dense<0.000000e+00> : vector<392x128xf32>
    %22 = tpu.matmul %20, %21, %cst_28 {dimension_numbers = #tpu.dot_dimension_numbers<[1], [0], [0], [1], [0, 0, 1, 1], [], []>} : vector<392x128xbf16>, vector<128x128xbf16>, vector<392x128xf32> -> vector<392x128xf32>
    %c0_29 = arith.constant 0 : index
    %c0_30 = arith.constant 0 : index
    %23 = vector.load %arg8[%c0_29, %c0_30] : memref<392x128xf32, #tpu.memory_space<vmem>>, vector<392x128xf32>
    %24 = arith.addf %23, %22 : vector<392x128xf32>
    %c0_31 = arith.constant 0 : index
    %c0_32 = arith.constant 0 : index
    %25 = vector.load %arg8[%c0_31, %c0_32] : memref<392x128xf32, #tpu.memory_space<vmem>>, vector<392x128xf32>
    tpu.vector_store %arg8[%c0_31, %c0_32], %24 {strides = array<i32>} : memref<392x128xf32, #tpu.memory_space<vmem>>, vector<392x128xf32>,
    %c25 = arith.constant 25 : index
    %c0_33 = arith.constant 0 : index
    %26 = vector.load %arg7[%c25, %c0_33] : memref<448x128xbf16, #tpu.memory_space<vmem>>, vector<392x128xbf16>
    %c512 = arith.constant 512 : index
    %c0_34 = arith.constant 0 : index
    %27 = vector.load %arg4[%c512, %c0_34] : memref<1152x128xbf16, #tpu.memory_space<vmem>>, vector<128x128xbf16>
    %cst_35 = arith.constant dense<0.000000e+00> : vector<392x128xf32>
    %28 = tpu.matmul %26, %27, %cst_35 {dimension_numbers = #tpu.dot_dimension_numbers<[1], [0], [0], [1], [0, 0, 1, 1], [], []>} : vector<392x128xbf16>, vector<128x128xbf16>, vector<392x128xf32> -> vector<392x128xf32>
    %c0_36 = arith.constant 0 : index
    %c0_37 = arith.constant 0 : index
    %29 = vector.load %arg8[%c0_36, %c0_37] : memref<392x128xf32, #tpu.memory_space<vmem>>, vector<392x128xf32>
    %30 = arith.addf %29, %28 : vector<392x128xf32>
    %c0_38 = arith.constant 0 : index
    %c0_39 = arith.constant 0 : index
    %31 = vector.load %arg8[%c0_38, %c0_39] : memref<392x128xf32, #tpu.memory_space<vmem>>, vector<392x128xf32>
    tpu.vector_store %arg8[%c0_38, %c0_39], %30 {strides = array<i32>} : memref<392x128xf32, #tpu.memory_space<vmem>>, vector<392x128xf32>,
    %c26 = arith.constant 26 : index
    %c0_40 = arith.constant 0 : index
    %32 = vector.load %arg7[%c26, %c0_40] : memref<448x128xbf16, #tpu.memory_space<vmem>>, vector<392x128xbf16>
    %c640 = arith.constant 640 : index
    %c0_41 = arith.constant 0 : index
    %33 = vector.load %arg4[%c640, %c0_41] : memref<1152x128xbf16, #tpu.memory_space<vmem>>, vector<128x128xbf16>
    %cst_42 = arith.constant dense<0.000000e+00> : vector<392x128xf32>
    %34 = tpu.matmul %32, %33, %cst_42 {dimension_numbers = #tpu.dot_dimension_numbers<[1], [0], [0], [1], [0, 0, 1, 1], [], []>} : vector<392x128xbf16>, vector<128x128xbf16>, vector<392x128xf32> -> vector<392x128xf32>
    %c0_43 = arith.constant 0 : index
    %c0_44 = arith.constant 0 : index
    %35 = vector.load %arg8[%c0_43, %c0_44] : memref<392x128xf32, #tpu.memory_space<vmem>>, vector<392x128xf32>
    %36 = arith.addf %35, %34 : vector<392x128xf32>
    %c0_45 = arith.constant 0 : index
    %c0_46 = arith.constant 0 : index
    %37 = vector.load %arg8[%c0_45, %c0_46] : memref<392x128xf32, #tpu.memory_space<vmem>>, vector<392x128xf32>
    tpu.vector_store %arg8[%c0_45, %c0_46], %36 {strides = array<i32>} : memref<392x128xf32, #tpu.memory_space<vmem>>, vector<392x128xf32>,
    %c48 = arith.constant 48 : index
    %c0_47 = arith.constant 0 : index
    %38 = vector.load %arg7[%c48, %c0_47] : memref<448x128xbf16, #tpu.memory_space<vmem>>, vector<392x128xbf16>
    %c768 = arith.constant 768 : index
    %c0_48 = arith.constant 0 : index
    %39 = vector.load %arg4[%c768, %c0_48] : memref<1152x128xbf16, #tpu.memory_space<vmem>>, vector<128x128xbf16>
    %cst_49 = arith.constant dense<0.000000e+00> : vector<392x128xf32>
    %40 = tpu.matmul %38, %39, %cst_49 {dimension_numbers = #tpu.dot_dimension_numbers<[1], [0], [0], [1], [0, 0, 1, 1], [], []>} : vector<392x128xbf16>, vector<128x128xbf16>, vector<392x128xf32> -> vector<392x128xf32>
    %c0_50 = arith.constant 0 : index
    %c0_51 = arith.constant 0 : index
    %41 = vector.load %arg8[%c0_50, %c0_51] : memref<392x128xf32, #tpu.memory_space<vmem>>, vector<392x128xf32>
    %42 = arith.addf %41, %40 : vector<392x128xf32>
    %c0_52 = arith.constant 0 : index
    %c0_53 = arith.constant 0 : index
    %43 = vector.load %arg8[%c0_52, %c0_53] : memref<392x128xf32, #tpu.memory_space<vmem>>, vector<392x128xf32>
    tpu.vector_store %arg8[%c0_52, %c0_53], %42 {strides = array<i32>} : memref<392x128xf32, #tpu.memory_space<vmem>>, vector<392x128xf32>,
    %c49 = arith.constant 49 : index
    %c0_54 = arith.constant 0 : index
    %44 = vector.load %arg7[%c49, %c0_54] : memref<448x128xbf16, #tpu.memory_space<vmem>>, vector<392x128xbf16>
    %c896 = arith.constant 896 : index
    %c0_55 = arith.constant 0 : index
    %45 = vector.load %arg4[%c896, %c0_55] : memref<1152x128xbf16, #tpu.memory_space<vmem>>, vector<128x128xbf16>
    %cst_56 = arith.constant dense<0.000000e+00> : vector<392x128xf32>
    %46 = tpu.matmul %44, %45, %cst_56 {dimension_numbers = #tpu.dot_dimension_numbers<[1], [0], [0], [1], [0, 0, 1, 1], [], []>} : vector<392x128xbf16>, vector<128x128xbf16>, vector<392x128xf32> -> vector<392x128xf32>
    %c0_57 = arith.constant 0 : index
    %c0_58 = arith.constant 0 : index
    %47 = vector.load %arg8[%c0_57, %c0_58] : memref<392x128xf32, #tpu.memory_space<vmem>>, vector<392x128xf32>
    %48 = arith.addf %47, %46 : vector<392x128xf32>
    %c0_59 = arith.constant 0 : index
    %c0_60 = arith.constant 0 : index
    %49 = vector.load %arg8[%c0_59, %c0_60] : memref<392x128xf32, #tpu.memory_space<vmem>>, vector<392x128xf32>
    tpu.vector_store %arg8[%c0_59, %c0_60], %48 {strides = array<i32>} : memref<392x128xf32, #tpu.memory_space<vmem>>, vector<392x128xf32>,
    %c50 = arith.constant 50 : index
    %c0_61 = arith.constant 0 : index
    %50 = vector.load %arg7[%c50, %c0_61] : memref<448x128xbf16, #tpu.memory_space<vmem>>, vector<392x128xbf16>
    %c1024 = arith.constant 1024 : index
    %c0_62 = arith.constant 0 : index
    %51 = vector.load %arg4[%c1024, %c0_62] : memref<1152x128xbf16, #tpu.memory_space<vmem>>, vector<128x128xbf16>
    %cst_63 = arith.constant dense<0.000000e+00> : vector<392x128xf32>
    %52 = tpu.matmul %50, %51, %cst_63 {dimension_numbers = #tpu.dot_dimension_numbers<[1], [0], [0], [1], [0, 0, 1, 1], [], []>} : vector<392x128xbf16>, vector<128x128xbf16>, vector<392x128xf32> -> vector<392x128xf32>
    %c0_64 = arith.constant 0 : index
    %c0_65 = arith.constant 0 : index
    %53 = vector.load %arg8[%c0_64, %c0_65] : memref<392x128xf32, #tpu.memory_space<vmem>>, vector<392x128xf32>
    %54 = arith.addf %53, %52 : vector<392x128xf32>
    %c0_66 = arith.constant 0 : index
    %c0_67 = arith.constant 0 : index
    %55 = vector.load %arg8[%c0_66, %c0_67] : memref<392x128xf32, #tpu.memory_space<vmem>>, vector<392x128xf32>
    tpu.vector_store %arg8[%c0_66, %c0_67], %54 {strides = array<i32>} : memref<392x128xf32, #tpu.memory_space<vmem>>, vector<392x128xf32>,
    %c0_68 = arith.constant 0 : index
    %c0_69 = arith.constant 0 : index
    %56 = vector.load %arg8[%c0_68, %c0_69] : memref<392x128xf32, #tpu.memory_space<vmem>>, vector<392x128xf32>
    %c0_70 = arith.constant 0 : index
    %c0_71 = arith.constant 0 : index
    %57 = vector.load %arg5[%c0_70, %c0_71] : memref<1x128xf32, #tpu.memory_space<vmem>>, vector<1x128xf32>
    %58 = vector.broadcast %57 : vector<1x128xf32> to vector<392x128xf32>
    %59 = arith.addf %56, %58 : vector<392x128xf32>
    %cst_72 = arith.constant 0.000000e+00 : f32
    %60 = vector.broadcast %cst_72 : f32 to vector<392x128xf32>
    %61 = arith.maximumf %59, %60 : vector<392x128xf32>
    %62 = arith.truncf %61 : vector<392x128xf32> to vector<392x128xbf16>
    %c0_73 = arith.constant 0 : index
    %c0_74 = arith.constant 0 : index
    %63 = vector.load %arg6[%c0_73, %c0_74] : memref<392x128xbf16, #tpu.memory_space<vmem>>, vector<392x128xbf16>
    tpu.vector_store %arg6[%c0_73, %c0_74], %62 {strides = array<i32>} : memref<392x128xbf16, #tpu.memory_space<vmem>>, vector<392x128xbf16>,
    return
  }
  func.func @transform_0(%arg0: i32, %arg1: i32) -> (i32, i32) {
    %c2_i32 = arith.constant 2 : i32
    %0 = arith.muli %arg0, %c2_i32 : i32
    %1 = arith.addi %0, %arg1 : i32
    %c0_i32 = arith.constant 0 : i32
    %c0_i32_0 = arith.constant 0 : i32
    return %1, %c0_i32 : i32, i32
  }
  func.func @transform_1(%arg0: i32, %arg1: i32) -> (i32, i32) {
    %c14_i32 = arith.constant 14 : i32
    %0 = arith.muli %arg0, %c14_i32 : i32
    %c1_i32 = arith.constant 1 : i32
    %1 = arith.addi %arg1, %c1_i32 : i32
    %c7_i32 = arith.constant 7 : i32
    %2 = arith.muli %1, %c7_i32 : i32
    %3 = arith.addi %0, %2 : i32
    %c0_i32 = arith.constant 0 : i32
    %c0_i32_0 = arith.constant 0 : i32
    return %3, %c0_i32 : i32, i32
  }
  func.func @transform_2(%arg0: i32, %arg1: i32) -> (i32, i32) {
    %c0_i32 = arith.constant 0 : i32
    %c0_i32_0 = arith.constant 0 : i32
    %c0_i32_1 = arith.constant 0 : i32
    return %c0_i32, %c0_i32_0 : i32, i32
  }
  func.func @transform_3(%arg0: i32, %arg1: i32) -> (i32, i32) {
    %c0_i32 = arith.constant 0 : i32
    %c0_i32_0 = arith.constant 0 : i32
    %c0_i32_1 = arith.constant 0 : i32
    return %c0_i32, %c0_i32_0 : i32, i32
  }
  func.func @transform_4(%arg0: i32, %arg1: i32) -> (i32, i32) {
    %c1_i32 = arith.constant 1 : i32
    %0 = arith.muli %arg0, %c1_i32 : i32
    %1 = arith.addi %0, %arg1 : i32
    %c0_i32 = arith.constant 0 : i32
    %c0_i32_0 = arith.constant 0 : i32
    return %1, %c0_i32 : i32, i32
  }
}

module attributes {stable_mosaic.version = 11 : i64} {
  func.func @_conv_tap_kernel(%arg0: i32, %arg1: i32, %arg2: memref<144x512xbf16, #tpu.memory_space<vmem>>, %arg3: memref<24x512xbf16, #tpu.memory_space<vmem>>, %arg4: memref<1408x128xbf16, #tpu.memory_space<vmem>>, %arg5: memref<1x128xf32, #tpu.memory_space<vmem>>, %arg6: memref<144x128xbf16, #tpu.memory_space<vmem>>, %arg7: memref<168x512xbf16, #tpu.memory_space<vmem>>, %arg8: memref<144x128xf32, #tpu.memory_space<vmem>>) attributes {dimension_semantics = [#tpu.dimension_semantics<parallel>, #tpu.dimension_semantics<parallel>], iteration_bounds = array<i64: 2, 1>, scalar_prefetch = 0 : i64, scratch_operands = 2 : i64, tpu.core_type = #tpu.core_type<tc>, window_params = [{transform_indices = @transform_0, window_bounds = array<i64: 144, 512>}, {transform_indices = @transform_1, window_bounds = array<i64: 24, 512>}, {pipeline_mode = #tpu.pipeline_mode<synchronous>, transform_indices = @transform_2, window_bounds = array<i64: 1408, 128>}, {pipeline_mode = #tpu.pipeline_mode<synchronous>, transform_indices = @transform_3, window_bounds = array<i64: 1, 128>}, {transform_indices = @transform_4, window_bounds = array<i64: 144, 128>}]} {
    %c0 = arith.constant 0 : index
    %c0_0 = arith.constant 0 : index
    %0 = vector.load %arg2[%c0, %c0_0] : memref<144x512xbf16, #tpu.memory_space<vmem>>, vector<144x512xbf16>
    %c0_1 = arith.constant 0 : index
    %c0_2 = arith.constant 0 : index
    %1 = vector.load %arg7[%c0_1, %c0_2] : memref<168x512xbf16, #tpu.memory_space<vmem>>, vector<144x512xbf16>
    tpu.vector_store %arg7[%c0_1, %c0_2], %0 {strides = array<i32>} : memref<168x512xbf16, #tpu.memory_space<vmem>>, vector<144x512xbf16>,
    %c0_3 = arith.constant 0 : index
    %c0_4 = arith.constant 0 : index
    %2 = vector.load %arg3[%c0_3, %c0_4] : memref<24x512xbf16, #tpu.memory_space<vmem>>, vector<24x512xbf16>
    %c144 = arith.constant 144 : index
    %c0_5 = arith.constant 0 : index
    %3 = vector.load %arg7[%c144, %c0_5] : memref<168x512xbf16, #tpu.memory_space<vmem>>, vector<24x512xbf16>
    tpu.vector_store %arg7[%c144, %c0_5], %2 {strides = array<i32>} : memref<168x512xbf16, #tpu.memory_space<vmem>>, vector<24x512xbf16>,
    %c0_6 = arith.constant 0 : index
    %c0_7 = arith.constant 0 : index
    %4 = vector.load %arg7[%c0_6, %c0_7] : memref<168x512xbf16, #tpu.memory_space<vmem>>, vector<144x512xbf16>
    %c0_8 = arith.constant 0 : index
    %c0_9 = arith.constant 0 : index
    %5 = vector.load %arg4[%c0_8, %c0_9] : memref<1408x128xbf16, #tpu.memory_space<vmem>>, vector<512x128xbf16>
    %cst = arith.constant dense<0.000000e+00> : vector<144x128xf32>
    %6 = tpu.matmul %4, %5, %cst {dimension_numbers = #tpu.dot_dimension_numbers<[1], [0], [0], [1], [0, 0, 1, 1], [], []>} : vector<144x512xbf16>, vector<512x128xbf16>, vector<144x128xf32> -> vector<144x128xf32>
    %c0_10 = arith.constant 0 : index
    %c0_11 = arith.constant 0 : index
    %7 = vector.load %arg8[%c0_10, %c0_11] : memref<144x128xf32, #tpu.memory_space<vmem>>, vector<144x128xf32>
    tpu.vector_store %arg8[%c0_10, %c0_11], %6 {strides = array<i32>} : memref<144x128xf32, #tpu.memory_space<vmem>>, vector<144x128xf32>,
    %c1 = arith.constant 1 : index
    %c0_12 = arith.constant 0 : index
    %8 = vector.load %arg7[%c1, %c0_12] : memref<168x512xbf16, #tpu.memory_space<vmem>>, vector<144x256xbf16>
    %c512 = arith.constant 512 : index
    %c0_13 = arith.constant 0 : index
    %9 = vector.load %arg4[%c512, %c0_13] : memref<1408x128xbf16, #tpu.memory_space<vmem>>, vector<256x128xbf16>
    %cst_14 = arith.constant dense<0.000000e+00> : vector<144x128xf32>
    %10 = tpu.matmul %8, %9, %cst_14 {dimension_numbers = #tpu.dot_dimension_numbers<[1], [0], [0], [1], [0, 0, 1, 1], [], []>} : vector<144x256xbf16>, vector<256x128xbf16>, vector<144x128xf32> -> vector<144x128xf32>
    %c0_15 = arith.constant 0 : index
    %c0_16 = arith.constant 0 : index
    %11 = vector.load %arg8[%c0_15, %c0_16] : memref<144x128xf32, #tpu.memory_space<vmem>>, vector<144x128xf32>
    %12 = arith.addf %11, %10 : vector<144x128xf32>
    %c0_17 = arith.constant 0 : index
    %c0_18 = arith.constant 0 : index
    %13 = vector.load %arg8[%c0_17, %c0_18] : memref<144x128xf32, #tpu.memory_space<vmem>>, vector<144x128xf32>
    tpu.vector_store %arg8[%c0_17, %c0_18], %12 {strides = array<i32>} : memref<144x128xf32, #tpu.memory_space<vmem>>, vector<144x128xf32>,
    %c16 = arith.constant 16 : index
    %c0_19 = arith.constant 0 : index
    %14 = vector.load %arg7[%c16, %c0_19] : memref<168x512xbf16, #tpu.memory_space<vmem>>, vector<144x512xbf16>
    %c768 = arith.constant 768 : index
    %c0_20 = arith.constant 0 : index
    %15 = vector.load %arg4[%c768, %c0_20] : memref<1408x128xbf16, #tpu.memory_space<vmem>>, vector<512x128xbf16>
    %cst_21 = arith.constant dense<0.000000e+00> : vector<144x128xf32>
    %16 = tpu.matmul %14, %15, %cst_21 {dimension_numbers = #tpu.dot_dimension_numbers<[1], [0], [0], [1], [0, 0, 1, 1], [], []>} : vector<144x512xbf16>, vector<512x128xbf16>, vector<144x128xf32> -> vector<144x128xf32>
    %c0_22 = arith.constant 0 : index
    %c0_23 = arith.constant 0 : index
    %17 = vector.load %arg8[%c0_22, %c0_23] : memref<144x128xf32, #tpu.memory_space<vmem>>, vector<144x128xf32>
    %18 = arith.addf %17, %16 : vector<144x128xf32>
    %c0_24 = arith.constant 0 : index
    %c0_25 = arith.constant 0 : index
    %19 = vector.load %arg8[%c0_24, %c0_25] : memref<144x128xf32, #tpu.memory_space<vmem>>, vector<144x128xf32>
    tpu.vector_store %arg8[%c0_24, %c0_25], %18 {strides = array<i32>} : memref<144x128xf32, #tpu.memory_space<vmem>>, vector<144x128xf32>,
    %c17 = arith.constant 17 : index
    %c0_26 = arith.constant 0 : index
    %20 = vector.load %arg7[%c17, %c0_26] : memref<168x512xbf16, #tpu.memory_space<vmem>>, vector<144x128xbf16>
    %c1280 = arith.constant 1280 : index
    %c0_27 = arith.constant 0 : index
    %21 = vector.load %arg4[%c1280, %c0_27] : memref<1408x128xbf16, #tpu.memory_space<vmem>>, vector<128x128xbf16>
    %cst_28 = arith.constant dense<0.000000e+00> : vector<144x128xf32>
    %22 = tpu.matmul %20, %21, %cst_28 {dimension_numbers = #tpu.dot_dimension_numbers<[1], [0], [0], [1], [0, 0, 1, 1], [], []>} : vector<144x128xbf16>, vector<128x128xbf16>, vector<144x128xf32> -> vector<144x128xf32>
    %c0_29 = arith.constant 0 : index
    %c0_30 = arith.constant 0 : index
    %23 = vector.load %arg8[%c0_29, %c0_30] : memref<144x128xf32, #tpu.memory_space<vmem>>, vector<144x128xf32>
    %24 = arith.addf %23, %22 : vector<144x128xf32>
    %c0_31 = arith.constant 0 : index
    %c0_32 = arith.constant 0 : index
    %25 = vector.load %arg8[%c0_31, %c0_32] : memref<144x128xf32, #tpu.memory_space<vmem>>, vector<144x128xf32>
    tpu.vector_store %arg8[%c0_31, %c0_32], %24 {strides = array<i32>} : memref<144x128xf32, #tpu.memory_space<vmem>>, vector<144x128xf32>,
    %c0_33 = arith.constant 0 : index
    %c0_34 = arith.constant 0 : index
    %26 = vector.load %arg8[%c0_33, %c0_34] : memref<144x128xf32, #tpu.memory_space<vmem>>, vector<144x128xf32>
    %c0_35 = arith.constant 0 : index
    %c0_36 = arith.constant 0 : index
    %27 = vector.load %arg5[%c0_35, %c0_36] : memref<1x128xf32, #tpu.memory_space<vmem>>, vector<1x128xf32>
    %28 = vector.broadcast %27 : vector<1x128xf32> to vector<144x128xf32>
    %29 = arith.addf %26, %28 : vector<144x128xf32>
    %cst_37 = arith.constant 0.000000e+00 : f32
    %30 = vector.broadcast %cst_37 : f32 to vector<144x128xf32>
    %31 = arith.maximumf %29, %30 : vector<144x128xf32>
    %32 = arith.truncf %31 : vector<144x128xf32> to vector<144x128xbf16>
    %c0_38 = arith.constant 0 : index
    %c0_39 = arith.constant 0 : index
    %33 = vector.load %arg6[%c0_38, %c0_39] : memref<144x128xbf16, #tpu.memory_space<vmem>>, vector<144x128xbf16>
    tpu.vector_store %arg6[%c0_38, %c0_39], %32 {strides = array<i32>} : memref<144x128xbf16, #tpu.memory_space<vmem>>, vector<144x128xbf16>,
    return
  }
  func.func @transform_0(%arg0: i32, %arg1: i32) -> (i32, i32) {
    %c2_i32 = arith.constant 2 : i32
    %0 = arith.muli %arg0, %c2_i32 : i32
    %1 = arith.addi %0, %arg1 : i32
    %c0_i32 = arith.constant 0 : i32
    %c0_i32_0 = arith.constant 0 : i32
    return %1, %c0_i32 : i32, i32
  }
  func.func @transform_1(%arg0: i32, %arg1: i32) -> (i32, i32) {
    %c12_i32 = arith.constant 12 : i32
    %0 = arith.muli %arg0, %c12_i32 : i32
    %c1_i32 = arith.constant 1 : i32
    %1 = arith.addi %arg1, %c1_i32 : i32
    %c6_i32 = arith.constant 6 : i32
    %2 = arith.muli %1, %c6_i32 : i32
    %3 = arith.addi %0, %2 : i32
    %c0_i32 = arith.constant 0 : i32
    %c0_i32_0 = arith.constant 0 : i32
    return %3, %c0_i32 : i32, i32
  }
  func.func @transform_2(%arg0: i32, %arg1: i32) -> (i32, i32) {
    %c0_i32 = arith.constant 0 : i32
    %c0_i32_0 = arith.constant 0 : i32
    %c0_i32_1 = arith.constant 0 : i32
    return %c0_i32, %c0_i32_0 : i32, i32
  }
  func.func @transform_3(%arg0: i32, %arg1: i32) -> (i32, i32) {
    %c0_i32 = arith.constant 0 : i32
    %c0_i32_0 = arith.constant 0 : i32
    %c0_i32_1 = arith.constant 0 : i32
    return %c0_i32, %c0_i32_0 : i32, i32
  }
  func.func @transform_4(%arg0: i32, %arg1: i32) -> (i32, i32) {
    %c1_i32 = arith.constant 1 : i32
    %0 = arith.muli %arg0, %c1_i32 : i32
    %1 = arith.addi %0, %arg1 : i32
    %c0_i32 = arith.constant 0 : i32
    %c0_i32_0 = arith.constant 0 : i32
    return %1, %c0_i32 : i32, i32
  }
}

module attributes {stable_mosaic.version = 11 : i64} {
  func.func @_conv_tap_kernel(%arg0: i32, %arg1: i32, %arg2: memref<32x512xbf16, #tpu.memory_space<vmem>>, %arg3: memref<16x512xbf16, #tpu.memory_space<vmem>>, %arg4: memref<1408x128xbf16, #tpu.memory_space<vmem>>, %arg5: memref<1x128xf32, #tpu.memory_space<vmem>>, %arg6: memref<32x128xbf16, #tpu.memory_space<vmem>>, %arg7: memref<48x512xbf16, #tpu.memory_space<vmem>>, %arg8: memref<32x128xf32, #tpu.memory_space<vmem>>) attributes {dimension_semantics = [#tpu.dimension_semantics<parallel>, #tpu.dimension_semantics<parallel>], iteration_bounds = array<i64: 2, 1>, scalar_prefetch = 0 : i64, scratch_operands = 2 : i64, tpu.core_type = #tpu.core_type<tc>, window_params = [{transform_indices = @transform_0, window_bounds = array<i64: 32, 512>}, {transform_indices = @transform_1, window_bounds = array<i64: 16, 512>}, {pipeline_mode = #tpu.pipeline_mode<synchronous>, transform_indices = @transform_2, window_bounds = array<i64: 1408, 128>}, {pipeline_mode = #tpu.pipeline_mode<synchronous>, transform_indices = @transform_3, window_bounds = array<i64: 1, 128>}, {transform_indices = @transform_4, window_bounds = array<i64: 32, 128>}]} {
    %c0 = arith.constant 0 : index
    %c0_0 = arith.constant 0 : index
    %0 = vector.load %arg2[%c0, %c0_0] : memref<32x512xbf16, #tpu.memory_space<vmem>>, vector<32x512xbf16>
    %c0_1 = arith.constant 0 : index
    %c0_2 = arith.constant 0 : index
    %1 = vector.load %arg7[%c0_1, %c0_2] : memref<48x512xbf16, #tpu.memory_space<vmem>>, vector<32x512xbf16>
    tpu.vector_store %arg7[%c0_1, %c0_2], %0 {strides = array<i32>} : memref<48x512xbf16, #tpu.memory_space<vmem>>, vector<32x512xbf16>,
    %c0_3 = arith.constant 0 : index
    %c0_4 = arith.constant 0 : index
    %2 = vector.load %arg3[%c0_3, %c0_4] : memref<16x512xbf16, #tpu.memory_space<vmem>>, vector<16x512xbf16>
    %c32 = arith.constant 32 : index
    %c0_5 = arith.constant 0 : index
    %3 = vector.load %arg7[%c32, %c0_5] : memref<48x512xbf16, #tpu.memory_space<vmem>>, vector<16x512xbf16>
    tpu.vector_store %arg7[%c32, %c0_5], %2 {strides = array<i32>} : memref<48x512xbf16, #tpu.memory_space<vmem>>, vector<16x512xbf16>,
    %c0_6 = arith.constant 0 : index
    %c0_7 = arith.constant 0 : index
    %4 = vector.load %arg7[%c0_6, %c0_7] : memref<48x512xbf16, #tpu.memory_space<vmem>>, vector<32x512xbf16>
    %c0_8 = arith.constant 0 : index
    %c0_9 = arith.constant 0 : index
    %5 = vector.load %arg4[%c0_8, %c0_9] : memref<1408x128xbf16, #tpu.memory_space<vmem>>, vector<512x128xbf16>
    %cst = arith.constant dense<0.000000e+00> : vector<32x128xf32>
    %6 = tpu.matmul %4, %5, %cst {dimension_numbers = #tpu.dot_dimension_numbers<[1], [0], [0], [1], [0, 0, 1, 1], [], []>} : vector<32x512xbf16>, vector<512x128xbf16>, vector<32x128xf32> -> vector<32x128xf32>
    %c0_10 = arith.constant 0 : index
    %c0_11 = arith.constant 0 : index
    %7 = vector.load %arg8[%c0_10, %c0_11] : memref<32x128xf32, #tpu.memory_space<vmem>>, vector<32x128xf32>
    tpu.vector_store %arg8[%c0_10, %c0_11], %6 {strides = array<i32>} : memref<32x128xf32, #tpu.memory_space<vmem>>, vector<32x128xf32>,
    %c1 = arith.constant 1 : index
    %c0_12 = arith.constant 0 : index
    %8 = vector.load %arg7[%c1, %c0_12] : memref<48x512xbf16, #tpu.memory_space<vmem>>, vector<32x256xbf16>
    %c512 = arith.constant 512 : index
    %c0_13 = arith.constant 0 : index
    %9 = vector.load %arg4[%c512, %c0_13] : memref<1408x128xbf16, #tpu.memory_space<vmem>>, vector<256x128xbf16>
    %cst_14 = arith.constant dense<0.000000e+00> : vector<32x128xf32>
    %10 = tpu.matmul %8, %9, %cst_14 {dimension_numbers = #tpu.dot_dimension_numbers<[1], [0], [0], [1], [0, 0, 1, 1], [], []>} : vector<32x256xbf16>, vector<256x128xbf16>, vector<32x128xf32> -> vector<32x128xf32>
    %c0_15 = arith.constant 0 : index
    %c0_16 = arith.constant 0 : index
    %11 = vector.load %arg8[%c0_15, %c0_16] : memref<32x128xf32, #tpu.memory_space<vmem>>, vector<32x128xf32>
    %12 = arith.addf %11, %10 : vector<32x128xf32>
    %c0_17 = arith.constant 0 : index
    %c0_18 = arith.constant 0 : index
    %13 = vector.load %arg8[%c0_17, %c0_18] : memref<32x128xf32, #tpu.memory_space<vmem>>, vector<32x128xf32>
    tpu.vector_store %arg8[%c0_17, %c0_18], %12 {strides = array<i32>} : memref<32x128xf32, #tpu.memory_space<vmem>>, vector<32x128xf32>,
    %c8 = arith.constant 8 : index
    %c0_19 = arith.constant 0 : index
    %14 = vector.load %arg7[%c8, %c0_19] : memref<48x512xbf16, #tpu.memory_space<vmem>>, vector<32x512xbf16>
    %c768 = arith.constant 768 : index
    %c0_20 = arith.constant 0 : index
    %15 = vector.load %arg4[%c768, %c0_20] : memref<1408x128xbf16, #tpu.memory_space<vmem>>, vector<512x128xbf16>
    %cst_21 = arith.constant dense<0.000000e+00> : vector<32x128xf32>
    %16 = tpu.matmul %14, %15, %cst_21 {dimension_numbers = #tpu.dot_dimension_numbers<[1], [0], [0], [1], [0, 0, 1, 1], [], []>} : vector<32x512xbf16>, vector<512x128xbf16>, vector<32x128xf32> -> vector<32x128xf32>
    %c0_22 = arith.constant 0 : index
    %c0_23 = arith.constant 0 : index
    %17 = vector.load %arg8[%c0_22, %c0_23] : memref<32x128xf32, #tpu.memory_space<vmem>>, vector<32x128xf32>
    %18 = arith.addf %17, %16 : vector<32x128xf32>
    %c0_24 = arith.constant 0 : index
    %c0_25 = arith.constant 0 : index
    %19 = vector.load %arg8[%c0_24, %c0_25] : memref<32x128xf32, #tpu.memory_space<vmem>>, vector<32x128xf32>
    tpu.vector_store %arg8[%c0_24, %c0_25], %18 {strides = array<i32>} : memref<32x128xf32, #tpu.memory_space<vmem>>, vector<32x128xf32>,
    %c9 = arith.constant 9 : index
    %c0_26 = arith.constant 0 : index
    %20 = vector.load %arg7[%c9, %c0_26] : memref<48x512xbf16, #tpu.memory_space<vmem>>, vector<32x128xbf16>
    %c1280 = arith.constant 1280 : index
    %c0_27 = arith.constant 0 : index
    %21 = vector.load %arg4[%c1280, %c0_27] : memref<1408x128xbf16, #tpu.memory_space<vmem>>, vector<128x128xbf16>
    %cst_28 = arith.constant dense<0.000000e+00> : vector<32x128xf32>
    %22 = tpu.matmul %20, %21, %cst_28 {dimension_numbers = #tpu.dot_dimension_numbers<[1], [0], [0], [1], [0, 0, 1, 1], [], []>} : vector<32x128xbf16>, vector<128x128xbf16>, vector<32x128xf32> -> vector<32x128xf32>
    %c0_29 = arith.constant 0 : index
    %c0_30 = arith.constant 0 : index
    %23 = vector.load %arg8[%c0_29, %c0_30] : memref<32x128xf32, #tpu.memory_space<vmem>>, vector<32x128xf32>
    %24 = arith.addf %23, %22 : vector<32x128xf32>
    %c0_31 = arith.constant 0 : index
    %c0_32 = arith.constant 0 : index
    %25 = vector.load %arg8[%c0_31, %c0_32] : memref<32x128xf32, #tpu.memory_space<vmem>>, vector<32x128xf32>
    tpu.vector_store %arg8[%c0_31, %c0_32], %24 {strides = array<i32>} : memref<32x128xf32, #tpu.memory_space<vmem>>, vector<32x128xf32>,
    %c0_33 = arith.constant 0 : index
    %c0_34 = arith.constant 0 : index
    %26 = vector.load %arg8[%c0_33, %c0_34] : memref<32x128xf32, #tpu.memory_space<vmem>>, vector<32x128xf32>
    %c0_35 = arith.constant 0 : index
    %c0_36 = arith.constant 0 : index
    %27 = vector.load %arg5[%c0_35, %c0_36] : memref<1x128xf32, #tpu.memory_space<vmem>>, vector<1x128xf32>
    %28 = vector.broadcast %27 : vector<1x128xf32> to vector<32x128xf32>
    %29 = arith.addf %26, %28 : vector<32x128xf32>
    %cst_37 = arith.constant 0.000000e+00 : f32
    %30 = vector.broadcast %cst_37 : f32 to vector<32x128xf32>
    %31 = arith.maximumf %29, %30 : vector<32x128xf32>
    %32 = arith.truncf %31 : vector<32x128xf32> to vector<32x128xbf16>
    %c0_38 = arith.constant 0 : index
    %c0_39 = arith.constant 0 : index
    %33 = vector.load %arg6[%c0_38, %c0_39] : memref<32x128xbf16, #tpu.memory_space<vmem>>, vector<32x128xbf16>
    tpu.vector_store %arg6[%c0_38, %c0_39], %32 {strides = array<i32>} : memref<32x128xbf16, #tpu.memory_space<vmem>>, vector<32x128xbf16>,
    return
  }
  func.func @transform_0(%arg0: i32, %arg1: i32) -> (i32, i32) {
    %c2_i32 = arith.constant 2 : i32
    %0 = arith.muli %arg0, %c2_i32 : i32
    %1 = arith.addi %0, %arg1 : i32
    %c0_i32 = arith.constant 0 : i32
    %c0_i32_0 = arith.constant 0 : i32
    return %1, %c0_i32 : i32, i32
  }
  func.func @transform_1(%arg0: i32, %arg1: i32) -> (i32, i32) {
    %c4_i32 = arith.constant 4 : i32
    %0 = arith.muli %arg0, %c4_i32 : i32
    %c1_i32 = arith.constant 1 : i32
    %1 = arith.addi %arg1, %c1_i32 : i32
    %c2_i32 = arith.constant 2 : i32
    %2 = arith.muli %1, %c2_i32 : i32
    %3 = arith.addi %0, %2 : i32
    %c0_i32 = arith.constant 0 : i32
    %c0_i32_0 = arith.constant 0 : i32
    return %3, %c0_i32 : i32, i32
  }
  func.func @transform_2(%arg0: i32, %arg1: i32) -> (i32, i32) {
    %c0_i32 = arith.constant 0 : i32
    %c0_i32_0 = arith.constant 0 : i32
    %c0_i32_1 = arith.constant 0 : i32
    return %c0_i32, %c0_i32_0 : i32, i32
  }
  func.func @transform_3(%arg0: i32, %arg1: i32) -> (i32, i32) {
    %c0_i32 = arith.constant 0 : i32
    %c0_i32_0 = arith.constant 0 : i32
    %c0_i32_1 = arith.constant 0 : i32
    return %c0_i32, %c0_i32_0 : i32, i32
  }
  func.func @transform_4(%arg0: i32, %arg1: i32) -> (i32, i32) {
    %c1_i32 = arith.constant 1 : i32
    %0 = arith.muli %arg0, %c1_i32 : i32
    %1 = arith.addi %0, %arg1 : i32
    %c0_i32 = arith.constant 0 : i32
    %c0_i32_0 = arith.constant 0 : i32
    return %1, %c0_i32 : i32, i32
  }
}

module attributes {stable_mosaic.version = 11 : i64} {
  func.func @_conv_tap_kernel(%arg0: i32, %arg1: i32, %arg2: memref<16x512xbf16, #tpu.memory_space<vmem>>, %arg3: memref<16x512xbf16, #tpu.memory_space<vmem>>, %arg4: memref<1408x128xbf16, #tpu.memory_space<vmem>>, %arg5: memref<1x128xf32, #tpu.memory_space<vmem>>, %arg6: memref<16x128xbf16, #tpu.memory_space<vmem>>, %arg7: memref<32x512xbf16, #tpu.memory_space<vmem>>, %arg8: memref<16x128xf32, #tpu.memory_space<vmem>>) attributes {dimension_semantics = [#tpu.dimension_semantics<parallel>, #tpu.dimension_semantics<parallel>], iteration_bounds = array<i64: 2, 1>, scalar_prefetch = 0 : i64, scratch_operands = 2 : i64, tpu.core_type = #tpu.core_type<tc>, window_params = [{transform_indices = @transform_0, window_bounds = array<i64: 16, 512>}, {transform_indices = @transform_1, window_bounds = array<i64: 16, 512>}, {pipeline_mode = #tpu.pipeline_mode<synchronous>, transform_indices = @transform_2, window_bounds = array<i64: 1408, 128>}, {pipeline_mode = #tpu.pipeline_mode<synchronous>, transform_indices = @transform_3, window_bounds = array<i64: 1, 128>}, {transform_indices = @transform_4, window_bounds = array<i64: 16, 128>}]} {
    %c0 = arith.constant 0 : index
    %c0_0 = arith.constant 0 : index
    %0 = vector.load %arg2[%c0, %c0_0] : memref<16x512xbf16, #tpu.memory_space<vmem>>, vector<16x512xbf16>
    %c0_1 = arith.constant 0 : index
    %c0_2 = arith.constant 0 : index
    %1 = vector.load %arg7[%c0_1, %c0_2] : memref<32x512xbf16, #tpu.memory_space<vmem>>, vector<16x512xbf16>
    tpu.vector_store %arg7[%c0_1, %c0_2], %0 {strides = array<i32>} : memref<32x512xbf16, #tpu.memory_space<vmem>>, vector<16x512xbf16>,
    %c0_3 = arith.constant 0 : index
    %c0_4 = arith.constant 0 : index
    %2 = vector.load %arg3[%c0_3, %c0_4] : memref<16x512xbf16, #tpu.memory_space<vmem>>, vector<16x512xbf16>
    %c16 = arith.constant 16 : index
    %c0_5 = arith.constant 0 : index
    %3 = vector.load %arg7[%c16, %c0_5] : memref<32x512xbf16, #tpu.memory_space<vmem>>, vector<16x512xbf16>
    tpu.vector_store %arg7[%c16, %c0_5], %2 {strides = array<i32>} : memref<32x512xbf16, #tpu.memory_space<vmem>>, vector<16x512xbf16>,
    %c0_6 = arith.constant 0 : index
    %c0_7 = arith.constant 0 : index
    %4 = vector.load %arg7[%c0_6, %c0_7] : memref<32x512xbf16, #tpu.memory_space<vmem>>, vector<16x512xbf16>
    %c0_8 = arith.constant 0 : index
    %c0_9 = arith.constant 0 : index
    %5 = vector.load %arg4[%c0_8, %c0_9] : memref<1408x128xbf16, #tpu.memory_space<vmem>>, vector<512x128xbf16>
    %cst = arith.constant dense<0.000000e+00> : vector<16x128xf32>
    %6 = tpu.matmul %4, %5, %cst {dimension_numbers = #tpu.dot_dimension_numbers<[1], [0], [0], [1], [0, 0, 1, 1], [], []>} : vector<16x512xbf16>, vector<512x128xbf16>, vector<16x128xf32> -> vector<16x128xf32>
    %c0_10 = arith.constant 0 : index
    %c0_11 = arith.constant 0 : index
    %7 = vector.load %arg8[%c0_10, %c0_11] : memref<16x128xf32, #tpu.memory_space<vmem>>, vector<16x128xf32>
    tpu.vector_store %arg8[%c0_10, %c0_11], %6 {strides = array<i32>} : memref<16x128xf32, #tpu.memory_space<vmem>>, vector<16x128xf32>,
    %c1 = arith.constant 1 : index
    %c0_12 = arith.constant 0 : index
    %8 = vector.load %arg7[%c1, %c0_12] : memref<32x512xbf16, #tpu.memory_space<vmem>>, vector<16x256xbf16>
    %c512 = arith.constant 512 : index
    %c0_13 = arith.constant 0 : index
    %9 = vector.load %arg4[%c512, %c0_13] : memref<1408x128xbf16, #tpu.memory_space<vmem>>, vector<256x128xbf16>
    %cst_14 = arith.constant dense<0.000000e+00> : vector<16x128xf32>
    %10 = tpu.matmul %8, %9, %cst_14 {dimension_numbers = #tpu.dot_dimension_numbers<[1], [0], [0], [1], [0, 0, 1, 1], [], []>} : vector<16x256xbf16>, vector<256x128xbf16>, vector<16x128xf32> -> vector<16x128xf32>
    %c0_15 = arith.constant 0 : index
    %c0_16 = arith.constant 0 : index
    %11 = vector.load %arg8[%c0_15, %c0_16] : memref<16x128xf32, #tpu.memory_space<vmem>>, vector<16x128xf32>
    %12 = arith.addf %11, %10 : vector<16x128xf32>
    %c0_17 = arith.constant 0 : index
    %c0_18 = arith.constant 0 : index
    %13 = vector.load %arg8[%c0_17, %c0_18] : memref<16x128xf32, #tpu.memory_space<vmem>>, vector<16x128xf32>
    tpu.vector_store %arg8[%c0_17, %c0_18], %12 {strides = array<i32>} : memref<16x128xf32, #tpu.memory_space<vmem>>, vector<16x128xf32>,
    %c8 = arith.constant 8 : index
    %c0_19 = arith.constant 0 : index
    %14 = vector.load %arg7[%c8, %c0_19] : memref<32x512xbf16, #tpu.memory_space<vmem>>, vector<16x512xbf16>
    %c768 = arith.constant 768 : index
    %c0_20 = arith.constant 0 : index
    %15 = vector.load %arg4[%c768, %c0_20] : memref<1408x128xbf16, #tpu.memory_space<vmem>>, vector<512x128xbf16>
    %cst_21 = arith.constant dense<0.000000e+00> : vector<16x128xf32>
    %16 = tpu.matmul %14, %15, %cst_21 {dimension_numbers = #tpu.dot_dimension_numbers<[1], [0], [0], [1], [0, 0, 1, 1], [], []>} : vector<16x512xbf16>, vector<512x128xbf16>, vector<16x128xf32> -> vector<16x128xf32>
    %c0_22 = arith.constant 0 : index
    %c0_23 = arith.constant 0 : index
    %17 = vector.load %arg8[%c0_22, %c0_23] : memref<16x128xf32, #tpu.memory_space<vmem>>, vector<16x128xf32>
    %18 = arith.addf %17, %16 : vector<16x128xf32>
    %c0_24 = arith.constant 0 : index
    %c0_25 = arith.constant 0 : index
    %19 = vector.load %arg8[%c0_24, %c0_25] : memref<16x128xf32, #tpu.memory_space<vmem>>, vector<16x128xf32>
    tpu.vector_store %arg8[%c0_24, %c0_25], %18 {strides = array<i32>} : memref<16x128xf32, #tpu.memory_space<vmem>>, vector<16x128xf32>,
    %c9 = arith.constant 9 : index
    %c0_26 = arith.constant 0 : index
    %20 = vector.load %arg7[%c9, %c0_26] : memref<32x512xbf16, #tpu.memory_space<vmem>>, vector<16x128xbf16>
    %c1280 = arith.constant 1280 : index
    %c0_27 = arith.constant 0 : index
    %21 = vector.load %arg4[%c1280, %c0_27] : memref<1408x128xbf16, #tpu.memory_space<vmem>>, vector<128x128xbf16>
    %cst_28 = arith.constant dense<0.000000e+00> : vector<16x128xf32>
    %22 = tpu.matmul %20, %21, %cst_28 {dimension_numbers = #tpu.dot_dimension_numbers<[1], [0], [0], [1], [0, 0, 1, 1], [], []>} : vector<16x128xbf16>, vector<128x128xbf16>, vector<16x128xf32> -> vector<16x128xf32>
    %c0_29 = arith.constant 0 : index
    %c0_30 = arith.constant 0 : index
    %23 = vector.load %arg8[%c0_29, %c0_30] : memref<16x128xf32, #tpu.memory_space<vmem>>, vector<16x128xf32>
    %24 = arith.addf %23, %22 : vector<16x128xf32>
    %c0_31 = arith.constant 0 : index
    %c0_32 = arith.constant 0 : index
    %25 = vector.load %arg8[%c0_31, %c0_32] : memref<16x128xf32, #tpu.memory_space<vmem>>, vector<16x128xf32>
    tpu.vector_store %arg8[%c0_31, %c0_32], %24 {strides = array<i32>} : memref<16x128xf32, #tpu.memory_space<vmem>>, vector<16x128xf32>,
    %c0_33 = arith.constant 0 : index
    %c0_34 = arith.constant 0 : index
    %26 = vector.load %arg8[%c0_33, %c0_34] : memref<16x128xf32, #tpu.memory_space<vmem>>, vector<16x128xf32>
    %c0_35 = arith.constant 0 : index
    %c0_36 = arith.constant 0 : index
    %27 = vector.load %arg5[%c0_35, %c0_36] : memref<1x128xf32, #tpu.memory_space<vmem>>, vector<1x128xf32>
    %28 = vector.broadcast %27 : vector<1x128xf32> to vector<16x128xf32>
    %29 = arith.addf %26, %28 : vector<16x128xf32>
    %cst_37 = arith.constant 0.000000e+00 : f32
    %30 = vector.broadcast %cst_37 : f32 to vector<16x128xf32>
    %31 = arith.maximumf %29, %30 : vector<16x128xf32>
    %32 = arith.truncf %31 : vector<16x128xf32> to vector<16x128xbf16>
    %c0_38 = arith.constant 0 : index
    %c0_39 = arith.constant 0 : index
    %33 = vector.load %arg6[%c0_38, %c0_39] : memref<16x128xbf16, #tpu.memory_space<vmem>>, vector<16x128xbf16>
    tpu.vector_store %arg6[%c0_38, %c0_39], %32 {strides = array<i32>} : memref<16x128xbf16, #tpu.memory_space<vmem>>, vector<16x128xbf16>,
    return
  }
  func.func @transform_0(%arg0: i32, %arg1: i32) -> (i32, i32) {
    %c2_i32 = arith.constant 2 : i32
    %0 = arith.muli %arg0, %c2_i32 : i32
    %1 = arith.addi %0, %arg1 : i32
    %c0_i32 = arith.constant 0 : i32
    %c0_i32_0 = arith.constant 0 : i32
    return %1, %c0_i32 : i32, i32
  }
  func.func @transform_1(%arg0: i32, %arg1: i32) -> (i32, i32) {
    %c2_i32 = arith.constant 2 : i32
    %0 = arith.muli %arg0, %c2_i32 : i32
    %c1_i32 = arith.constant 1 : i32
    %1 = arith.addi %arg1, %c1_i32 : i32
    %c1_i32_0 = arith.constant 1 : i32
    %2 = arith.muli %1, %c1_i32_0 : i32
    %3 = arith.addi %0, %2 : i32
    %c0_i32 = arith.constant 0 : i32
    %c0_i32_1 = arith.constant 0 : i32
    return %3, %c0_i32 : i32, i32
  }
  func.func @transform_2(%arg0: i32, %arg1: i32) -> (i32, i32) {
    %c0_i32 = arith.constant 0 : i32
    %c0_i32_0 = arith.constant 0 : i32
    %c0_i32_1 = arith.constant 0 : i32
    return %c0_i32, %c0_i32_0 : i32, i32
  }
  func.func @transform_3(%arg0: i32, %arg1: i32) -> (i32, i32) {
    %c0_i32 = arith.constant 0 : i32
    %c0_i32_0 = arith.constant 0 : i32
    %c0_i32_1 = arith.constant 0 : i32
    return %c0_i32, %c0_i32_0 : i32, i32
  }
  func.func @transform_4(%arg0: i32, %arg1: i32) -> (i32, i32) {
    %c1_i32 = arith.constant 1 : i32
    %0 = arith.muli %arg0, %c1_i32 : i32
    %1 = arith.addi %0, %arg1 : i32
    %c0_i32 = arith.constant 0 : i32
    %c0_i32_0 = arith.constant 0 : i32
    return %1, %c0_i32 : i32, i32
  }
}

</mosaic_0001>

<bundles_post_ra>
// kernel: _lambda_.5
= control target key start
LH: loop header
LB: loop body
LE: loop exit
PB: predicated region body
PF: predicated region fallthrough
CT: control target
= control target key end

     0   :  { %s4267_s15 = smov 0   ;;  %s4269_s16 = smov 0   ;;  %s4940_s0 = inlined_call_operand.vmem [shape: bf16[1536,128], index: 0, kind: input, shape index: {}, may-alias: {0,1}]   ;;  %s4941_s1 = inlined_call_operand.vmem [shape: bf16[1536,128], index: 1, kind: input, shape index: {}, may-alias: {0,1}]   ;;  %s4942_s2 = inlined_call_operand.vmem [shape: bf16[512,128], index: 2, kind: input, shape index: {}]   ;;  %s4943_s3 = inlined_call_operand.vmem [shape: f32[1,128], index: 3, kind: input, shape index: {}]   ;;  %s4944_s4 = inlined_call_operand.vmem [shape: bf16[768,128], index: 4, kind: output, shape index: {}]  }
   0x1   :  { %s4271_s17 = smov 0  }
   0x2 LB: > { %s26_s18 = sadd.s32 1, %s4236_s16  ;;  %p3298_p0 = scmp.ge.s32.totalorder %s4240_s17, 1  ;;  %s4240_s17 = sphi %s4271_s17, %s14_s17   ;;  %s4236_s16 = sphi %s4269_s16, %s4973_s16   ;;  %s4232_s15 = sphi %s4267_s15, %s4972_s15  }
   0x3   : > { %p28_p1 = scmp.ge.s32.totalorder %s26_s18, 2  ;;  %p212_p2 = scmp.lt.s32.totalorder %s4240_s17, 3 }
   0x5   : > { %s4975_s18 = smov (%p28_p1, %s26_s18), 0  ;;  %p213_p3 = pnand %p3298_p0, %p212_p2 }
   0x7   : > { %216 = sbr.rel (%p213_p3) target bundleno = 456 (0x1c8), region = 36 }
   0xe   : > { %v4160_v0 = vld [vmem:[%s4942_s2] sm:$0xff]   ;;  %s4291_s21 = smul.u32 96, %s4232_s15  ;;  %v4162_v2 = vld [vmem:[%s4942_s2 + $0x8] sm:$0xff]   ;;  %v4164_v4 = vld [vmem:[%s4942_s2 + $0x10] sm:$0xff]   ;;  %vm1623_vm0 = vcmask 1043456  }
   0xf   : > { %v4161_v1 = vld [vmem:[%s4942_s2 + $0x80] sm:$0xff]   ;;  %3736 = vmatprep.subr.bf16.mxu1 %v4160_v0  ;;  %v4163_v3 = vld [vmem:[%s4942_s2 + $0x88] sm:$0xff]   ;;  %v4165_v5 = vld [vmem:[%s4942_s2 + $0x90] sm:$0xff]   ;;  %vm919_vm1 = vsmask.f32 7424 }
  0x10   : > { %3864 = vmatprep.subr.bf16.mxu0 %v4161_v1  ;;  %3737 = vmatpush3.bf16.msra.mxu1 %v4160_v0  ;;  %p253_p4 = scmp.lt.s32.totalorder %s4291_s21, 191  ;;  %v4166_v6 = vld [vmem:[%s4942_s2 + $0x18] sm:$0xff]   ;;  %v4168_v8 = vld [vmem:[%s4942_s2 + $0x20] sm:$0xff]   ;;  %v4170_v10 = vld [vmem:[%s4942_s2 + $0x28] sm:$0xff]   ;;  %s3415_s28 = sadd.s32 48, %s4291_s21 }
  0x11   : > { %3865 = vmatpush3.bf16.msra.mxu0 %v4161_v1  ;;  %3738 = vmatprep.subr.bf16.mxu1 %v4162_v2  ;;  %v4167_v7 = vld [vmem:[%s4942_s2 + $0x98] sm:$0xff]   ;;  %v4169_v9 = vld [vmem:[%s4942_s2 + $0xa0] sm:$0xff]   ;;  %v4171_v11 = vld [vmem:[%s4942_s2 + $0xa8] sm:$0xff]   ;;  %p265_p5 = scmp.lt.s32.totalorder %s3415_s28, 191  ;;  %vm2155_vm2 = vsmask.f32 3328 }
  0x12   : > { %3866 = vmatprep.subr.bf16.mxu0 %v4163_v3  ;;  %s254_s8 = scalar_select %p253_p4, %s4291_s21, 191  ;;  %v4172_v15 = vld [vmem:[%s4942_s2 + $0x30] sm:$0xff]   ;;  %v4174_v18 = vld [vmem:[%s4942_s2 + $0x38] sm:$0xff]   ;;  %v4179_v26 = vld [vmem:[%s4942_s2 + $0x40] sm:$0xff]  }
  0x13   : > { %v4173_v17 = vld [vmem:[%s4942_s2 + $0xb0] sm:$0xff]   ;;  %s4977_s28 = smov (!%p265_p5, %s3415_s28), 191  ;;  %v4175_v22 = vld [vmem:[%s4942_s2 + $0xb8] sm:$0xff]   ;;  %v4181_v30 = vld [vmem:[%s4942_s2 + $0xc0] sm:$0xff]   ;;  %s275_s21 = smul.u32 48, %s4232_s15 }
  0x14   : > { %3739 = vmatpush3.bf16.msra.mxu1 %v4162_v2  ;;  %s3301_s13 = sshll.u32 %s254_s8, 2  ;;  %v4184_v38 = vld [vmem:[%s4942_s2 + $0x48] sm:$0xff]   ;;  %s3303_s23 = sshll.u32 %s4977_s28, 2  ;;  %v4189_v47 = vld [vmem:[%s4942_s2 + $0x50] sm:$0xff]   ;;  %v4194_v58 = vld [vmem:[%s4942_s2 + $0x58] sm:$0xff]  }
  0x15   : > { %3867 = vmatpush3.bf16.msra.mxu0 %v4163_v3  ;;  %3740 = vmatprep.subr.bf16.mxu1 %v4164_v4  ;;  %s4331_s27 = scalar_lea.vmem %s4940_s0, %s3301_s13  ;;  %v4185_v41 = vld [vmem:[%s4942_s2 + $0xc8] sm:$0xff]   ;;  %v4191_v50 = vld [vmem:[%s4942_s2 + $0xd0] sm:$0xff]   ;;  %v4195_v0 = vld [vmem:[%s4942_s2 + $0xd8] sm:$0xff]   ;;  %s268_s29 = scalar_lea.vmem %s4941_s1, %s3303_s23 }
  0x16   : > { %3868 = vmatprep.subr.bf16.mxu0 %v4165_v5  ;;  %v4176_v12 = vld [vmem:[%s4331_s27] sm:$0xff]   ;;  %v4336_v13 = vld [vmem:[%s4331_s27 + $0x8] sm:$0xff]   ;;  %v4339_v14 = vld [vmem:[%s4331_s27 + $0x10] sm:$0xff]   ;;  %p276_p6 = scmp.lt.s32.totalorder %s275_s21, 95 }
  0x17   : > { %3752 = vmatprep.mubr.bf16.mxu1 %v4176_v12  ;;  %476 = vst [vmem:[#allocation2 + $0x8] sm:$0xff] %v4336_v13  ;;  %v4346_v16 = vld [vmem:[%s4331_s27 + $0x18] sm:$0xff]   ;;  %v4355_v19 = vld [vmem:[%s4331_s27 + $0x20] sm:$0xff]   ;;  %v923_v20 = vshll.u32 %v4176_v12, 16  ;;  %v4358_v21 = vld [vmem:[%s4331_s27 + $0x28] sm:$0xff]   ;;  %v921_v23 = vshrl.u32 %v4176_v12, 16 }
  0x18   : > { %3741 = vmatpush3.bf16.msra.mxu1 %v4164_v4  ;;  %v1625_v24 = vrot.slane %v4339_v14, 4  ;;  %v1627_v25 = vrot.slane %v4346_v16, 4  ;;  %v4371_v27 = vld [vmem:[%s4331_s27 + $0x30] sm:$0xff]   ;;  %v4377_v32 = vld [vmem:[%s4331_s27 + $0x38] sm:$0xff]   ;;  %v4380_v33 = vld [vmem:[%s4331_s27 + $0x40] sm:$0xff]   ;;  %v928_v34 = vshll.u32 %v4336_v13, 16 }
  0x19   : > { %3869 = vmatpush3.bf16.msra.mxu0 %v4165_v5  ;;  %3742 = vmatprep.subr.bf16.mxu1 %v4166_v6  ;;  %v925_v28 = vrot.slane %v923_v20, 1  ;;  %v1629_v36 = vrot.slane %v4355_v19, 4  ;;  %v4386_v37 = vld [vmem:[%s4331_s27 + $0x48] sm:$0xff]   ;;  %v4396_v42 = vld [vmem:[%s4331_s27 + $0x50] sm:$0xff]   ;;  %v4401_v45 = vld [vmem:[%s4331_s27 + $0x58] sm:$0xff]   ;;  %v1631_v46 = vrot.slane %v4358_v21, 4 }
  0x1a   : > { %3870 = vmatprep.subr.bf16.mxu0 %v4167_v7  ;;  %v1628_v40 = vsel %vm1623_vm0, %v1625_v24, %v1627_v25  ;;  %v930_v43 = vrot.slane %v928_v34, 1  ;;  %v1633_v49 = vrot.slane %v4371_v27, 4  ;;  %v1635_v51 = vrot.slane %v4377_v32, 4  ;;  %v4418_v52 = vld [vmem:[%s4331_s27 + $0x60] sm:$0xff]   ;;  %v4422_v54 = vld [vmem:[%s4331_s27 + $0x68] sm:$0xff]   ;;  %v4426_v56 = vld [vmem:[%s4331_s27 + $0x70] sm:$0xff]  }
  0x1b   : > { %v926_v39 = vor.u32 %v925_v28, %v921_v23  ;;  %v1630_v44 = vsel %vm1623_vm0, %v1627_v25, %v1629_v36  ;;  %v1637_v53 = vrot.slane %v4380_v33, 4  ;;  %v1639_v55 = vrot.slane %v4386_v37, 4  ;;  %v4436_v62 = vld [vmem:[%s4331_s27 + $0x78] sm:$0xff]   ;;  %v4445_v1 = vld [vmem:[%s4331_s27 + $0x80] sm:$0xff]   ;;  %v4449_v3 = vld [vmem:[%s4331_s27 + $0x88] sm:$0xff]   ;;  %s4979_s21 = smov (!%p276_p6, %s275_s21), 95 }
  0x1c   : > { %3743 = vmatpush3.bf16.msra.mxu1 %v4166_v6  ;;  %v1632_v57 = vsel %vm1623_vm0, %v1629_v36, %v1631_v46  ;;  %v932_v59 = vshrl.u32 %v4336_v13, 16  ;;  %v1634_v60 = vsel %vm1623_vm0, %v1631_v46, %v1633_v49  ;;  %v1641_v61 = vrot.slane %v4396_v42, 4  ;;  %v4199_v6 = vld [vmem:[%s4942_s2 + $0x60] sm:$0xff]   ;;  %v4209_v25 = vld [vmem:[%s4942_s2 + $0x70] sm:$0xff]   ;;  %s3304_s15 = sshll.u32 %s4979_s21, 2 }
  0x1d   : > { %3871 = vmatpush3.bf16.msra.mxu0 %v4167_v7  ;;  %3744 = vmatprep.subr.bf16.mxu1 %v4168_v8  ;;  %v4409_v48 = vsel %vm919_vm1, %v926_v39, %v930_v43  ;;  %v1643_v63 = vrot.slane %v4401_v45, 4  ;;  %v2165_v2 = vshrl.u32 %v4339_v14, 16  ;;  %v2168_v4 = vshll.u32 %v4339_v14, 16  ;;  %v4498_v34 = vld [vmem:[%s4331_s27 + $0xb0] sm:$0xff]   ;;  %s4861_s9 = scalar_lea.vmem %s4944_s4, %s3304_s15 }
  0x1e   : > { %3872 = vmatprep.subr.bf16.mxu0 %v4169_v9  ;;  %v1557_v29 = vld [vmem:[#allocation2 + $0x8] sm:$0xf0]  ;;  %v1645_v5 = vrot.slane %v4418_v52, 4  ;;  %v934_v7 = vor.u32 %v932_v59, %v930_v43  ;;  %v1651_v23 = vrot.slane %v4436_v62, 4  ;;  %v2174_v28 = vshrl.u32 %v4346_v16, 16  ;;  %v4214_v43 = vld [vmem:[%s4942_s2 + $0x78] sm:$0xff]  }
  0x1f   : > { %v1624_v31 = vrot.slane %v1557_v29, 4  ;;  %v938_v12 = vrot.slane %v2168_v4, 1  ;;  %v2167_v20 = vrot.slane %v2165_v2, 4  ;;  %v4211_v29 = vld [vmem:[%s4942_s2 + $0xf0] sm:$0xff]   ;;  %v2177_v36 = vshll.u32 %v4346_v16, 16 }
  0x20   : > { %3745 = vmatpush3.bf16.msra.mxu1 %v4168_v8  ;;  %v1647_v8 = vrot.slane %v4422_v54, 4  ;;  %v2176_v39 = vrot.slane %v2174_v28, 4  ;;  %v1644_v46 = vsel %vm1623_vm0, %v1641_v61, %v1643_v63 }
  0x21   : > { %3873 = vmatpush3.bf16.msra.mxu0 %v4169_v9  ;;  %3746 = vmatprep.subr.bf16.mxu1 %v4170_v10  ;;  %v1626_v35 = vsel %vm1623_vm0, %v1624_v31, %v1625_v24  ;;  %v4201_v9 = vld [vmem:[%s4942_s2 + $0xe0] sm:$0xff]   ;;  %v4205_v24 = vld [vmem:[%s4942_s2 + $0xe8] sm:$0xff]   ;;  %v1653_v31 = vrot.slane %v4445_v1, 4  ;;  %v946_v59 = vrot.slane %v2177_v36, 1 }
  0x22   : > { %3874 = vmatprep.subr.bf16.mxu0 %v4171_v11  ;;  %3880 = vmatprep.mubr.bf16.mxu0 %v1626_v35  ;;  %v4501_v35 = vld [vmem:[%s4331_s27 + $0xb8] sm:$0xff]  }
  0x24   : > { %3747 = vmatpush3.bf16.msra.mxu1 %v4170_v10  ;;  %v4204_v10 = vld [vmem:[%s4942_s2 + $0x68] sm:$0xff]  }
  0x25   : > { %3875 = vmatpush3.bf16.msra.mxu0 %v4171_v11  ;;  %3748 = vmatprep.subr.bf16.mxu1 %v4172_v15  ;;  %v4464_v11 = vld [vmem:[%s4331_s27 + $0x90] sm:$0xff]  }
  0x26   : > { %3876 = vmatprep.subr.bf16.mxu0 %v4173_v17 }
  0x28   : > { %3749 = vmatpush3.bf16.msra.mxu1 %v4172_v15  ;;  %v4469_v15 = vld [vmem:[%s4331_s27 + $0x98] sm:$0xff]  }
  0x29   : > { %3877 = vmatpush3.bf16.msra.mxu0 %v4173_v17  ;;  %3750 = vmatprep.subr.bf16.mxu1 %v4174_v18  ;;  %v1638_v17 = vsel %vm1623_vm0, %v1635_v51, %v1637_v53 }
  0x2a   : > { %3878 = vmatprep.subr.bf16.mxu0 %v4175_v22 }
  0x2c   : > { %3751 = vmatpush3.bf16.msra.mxu1 %v4174_v18  ;;  %v4475_v18 = vld [vmem:[%s4331_s27 + $0xa0] sm:$0xff]  }
  0x2d   : > { %3879 = vmatpush3.bf16.msra.mxu0 %v4175_v22  ;;  %3800 = vmatprep.subr.bf16.mxu1 %v4179_v26  ;;  %v4478_v22 = vsel %vm919_vm1, %v934_v7, %v938_v12 }
  0x2e   : > { %3928 = vmatprep.subr.bf16.mxu0 %v4181_v30 }
  0x2f   : > { %3753 = vmatmul.mubr.bf16.vlgmr.msra.gmra.mrb[0].mxu1 %v4336_v13  ;;  %v1636_v13 = vsel %vm1623_vm0, %v1633_v49, %v1635_v51  ;;  %v4530_v49 = vld [vmem:[%s268_s29] sm:$0xff]   ;;  %v2179_v51 = vrot.slane %v2177_v36, 5 }
  0x30   : > { %3881 = vmatmul.mubr.bf16.vlgmr.msra.gmra.mrb[0].mxu0 %v1628_v40  ;;  %3801 = vmatpush3.bf16.msra.mxu1 %v4179_v26  ;;  %v4490_v26 = vld [vmem:[%s4331_s27 + $0xa8] sm:$0xff]   ;;  %v1640_v40 = vsel %vm1623_vm0, %v1637_v53, %v1639_v55  ;;  %v4536_v53 = vsel %vm1623_vm0, %v1645_v5, %v1647_v8  ;;  %515 = vst [vmem:[#allocation2 + $0xc0] sm:$0xff] %v4530_v49 }
  0x31   : > { %3929 = vmatpush3.bf16.msra.mxu0 %v4181_v30  ;;  %3756 = vmatprep.mubr.bf16.mxu1 %v4339_v14  ;;  %v1649_v14 = vrot.slane %v4426_v56, 4  ;;  %v2170_v30 = vrot.slane %v2168_v4, 5  ;;  %v2183_v4 = vshrl.u32 %v4355_v19, 16 }
  0x32   : > { %3884 = vmatprep.mubr.bf16.mxu0 %v1630_v44  ;;  %3802 = vmatprep.subr.bf16.mxu1 %v4184_v38  ;;  %v942_v44 = vor.u32 %v2165_v2, %v938_v12 }
  0x33   : > { %3930 = vmatprep.subr.bf16.mxu0 %v4185_v41  ;;  %v2185_v12 = vrot.slane %v2183_v4, 4 }
  0x34   : > { %3803 = vmatpush3.bf16.msra.mxu1 %v4184_v38  ;;  %v1655_v38 = vrot.slane %v4449_v3, 4  ;;  %v4554_v2 = vsel %vm919_vm1, %v942_v44, %v946_v59 }
  0x35   : > { %3931 = vmatpush3.bf16.msra.mxu0 %v4185_v41  ;;  %3804 = vmatprep.subr.bf16.mxu1 %v4189_v47  ;;  %v1657_v41 = vrot.slane %v4464_v11, 4 }
  0x36   : > { %3932 = vmatprep.subr.bf16.mxu0 %v4191_v50  ;;  %v4559_v7 = vsel %vm1623_vm0, %v1653_v31, %v1655_v38 }
  0x37   : > { %3757 = vmatmul.mubr.bf16.gmra.mrb[4].mxu1 %v4346_v16  ;;  %v1642_v16 = vsel %vm1623_vm0, %v1639_v55, %v1641_v61  ;;  %v4539_v55 = vsel %vm1623_vm0, %v1647_v8, %v1649_v14  ;;  %v4549_v61 = vsel %vm1623_vm0, %v1651_v23, %v1653_v31  ;;  %v4562_v8 = vsel %vm1623_vm0, %v1655_v38, %v1657_v41 }
  0x38   : > { %3885 = vmatmul.mubr.bf16.gmra.mrb[4].mxu0 %v1632_v57  ;;  %3760 = vmatprep.mubr.bf16.mxu1 %v4355_v19  ;;  %v4215_v57 = vld [vmem:[%s4942_s2 + $0xf8] sm:$0xff]  }
  0x39   : > { %3888 = vmatprep.mubr.bf16.mxu0 %v1634_v60  ;;  %3805 = vmatpush3.bf16.msra.mxu1 %v4189_v47  ;;  %v4528_v47 = vsel %vm1623_vm0, %v1643_v63, %v1645_v5  ;;  %v4546_v60 = vsel %vm1623_vm0, %v1649_v14, %v1651_v23  ;;  %v1659_v63 = vrot.slane %v4469_v15, 4  ;;  %v2186_v5 = vshll.u32 %v4355_v19, 16 }
  0x3a   : > { %3933 = vmatpush3.bf16.msra.mxu0 %v4191_v50  ;;  %3806 = vmatprep.subr.bf16.mxu1 %v4194_v58  ;;  %v4532_v50 = vor.u32 %v2170_v30, %v2167_v20  ;;  %v2192_v19 = vshrl.u32 %v4358_v21, 16  ;;  %v2195_v20 = vshll.u32 %v4358_v21, 16  ;;  %v2201_v23 = vshrl.u32 %v4371_v27, 16 }
  0x3b   : > { %3934 = vmatprep.subr.bf16.mxu0 %v4195_v0  ;;  %v954_v14 = vrot.slane %v2186_v5, 1 }
  0x3c   : > { %v2197_v36 = vrot.slane %v2195_v20, 5  ;;  %v962_v38 = vrot.slane %v2195_v20, 1  ;;  %v2228_v20 = vshrl.u32 %v4386_v37, 16 }
  0x3d   : > { %3807 = vmatpush3.bf16.msra.mxu1 %v4194_v58  ;;  %v4217_v58 = vld [vmem:[%s268_s29 + $0x8] sm:$0xff]   ;;  %v958_v30 = vor.u32 %v2183_v4, %v954_v14 }
  0x3e   : > { %3935 = vmatpush3.bf16.msra.mxu0 %v4195_v0  ;;  %3808 = vmatprep.subr.bf16.mxu1 %v4199_v6  ;;  %v2180_v0 = vor.u32 %v2179_v51, %v2176_v39  ;;  %516 = vst [vmem:[#allocation2 + $0xc8] sm:$0xff] %v4217_v58  ;;  %v966_v44 = vor.u32 %v2192_v19, %v962_v38  ;;  %v2213_v51 = vshll.u32 %v4377_v32, 16 }
  0x3f   : > { %3761 = vmatmul.mubr.bf16.gmra.mrb[8].mxu1 %v4358_v21  ;;  %3936 = vmatprep.subr.bf16.mxu0 %v4201_v9  ;;  %v2203_v21 = vrot.slane %v2201_v23, 4 }
  0x40   : > { %3889 = vmatmul.mubr.bf16.gmra.mrb[8].mxu0 %v1636_v13  ;;  %3764 = vmatprep.mubr.bf16.mxu1 %v4371_v27  ;;  %v2188_v13 = vrot.slane %v2186_v5, 5  ;;  %v2215_v4 = vrot.slane %v2213_v51, 5  ;;  %v978_v5 = vrot.slane %v2213_v51, 1 }
  0x41   : > { %3892 = vmatprep.mubr.bf16.mxu0 %v1638_v17  ;;  %3809 = vmatpush3.bf16.msra.mxu1 %v4199_v6  ;;  %v950_v6 = vor.u32 %v2174_v28, %v946_v59  ;;  %v4571_v17 = vsel %vm1623_vm0, %v1657_v41, %v1659_v63 }
  0x42   : > { %3937 = vmatpush3.bf16.msra.mxu0 %v4201_v9  ;;  %3810 = vmatprep.subr.bf16.mxu1 %v4204_v10  ;;  %v4945_v9 = vrot.slane %v4475_v18, 4 }
  0x43   : > { %3938 = vmatprep.subr.bf16.mxu0 %v4205_v24  ;;  %v4577_v28 = vsel %vm919_vm1, %v950_v6, %v954_v14  ;;  %v2318_v6 = vshrl.u32 %v4469_v15, 16 }
  0x44   : > { %v4582_v31 = vsel %vm1623_vm0, %v1659_v63, %v4945_v9  ;;  %v2321_v9 = vshll.u32 %v4469_v15, 16 }
  0x45   : > { %3811 = vmatpush3.bf16.msra.mxu1 %v4204_v10  ;;  %v4567_v10 = vsel %vm2155_vm2, %v4532_v50, %v2180_v0 }
  0x46   : > { %3939 = vmatpush3.bf16.msra.mxu0 %v4205_v24  ;;  %3812 = vmatprep.subr.bf16.mxu1 %v4209_v25  ;;  %v2204_v24 = vshll.u32 %v4371_v27, 16 }
  0x47   : > { %3765 = vmatmul.mubr.bf16.gmra.mrb[12].mxu1 %v4377_v32  ;;  %3940 = vmatprep.subr.bf16.mxu0 %v4211_v29 }
  0x48   : > { %3893 = vmatmul.mubr.bf16.gmra.mrb[12].mxu0 %v1640_v40  ;;  %3768 = vmatprep.mubr.bf16.mxu1 %v4380_v33  ;;  %v2206_v39 = vrot.slane %v2204_v24, 5  ;;  %v970_v40 = vrot.slane %v2204_v24, 1 }
  0x49   : > { %3896 = vmatprep.mubr.bf16.mxu0 %v1642_v16  ;;  %3813 = vmatpush3.bf16.msra.mxu1 %v4209_v25  ;;  %v2189_v25 = vor.u32 %v2188_v13, %v2185_v12  ;;  %v2210_v16 = vshrl.u32 %v4377_v32, 16  ;;  %v2219_v32 = vshrl.u32 %v4380_v33, 16 }
  0x4a   : > { %3941 = vmatpush3.bf16.msra.mxu0 %v4211_v29  ;;  %3814 = vmatprep.subr.bf16.mxu1 %v4214_v43  ;;  %v2194_v29 = vrot.slane %v2192_v19, 4  ;;  %v2207_v58 = vor.u32 %v2206_v39, %v2203_v21  ;;  %v974_v63 = vor.u32 %v2201_v23, %v970_v40 }
  0x4b   : > { %3942 = vmatprep.subr.bf16.mxu0 %v4215_v57  ;;  %v4586_v27 = vsel %vm2155_vm2, %v2180_v0, %v2189_v25  ;;  %v2212_v59 = vrot.slane %v2210_v16, 4  ;;  %v982_v19 = vor.u32 %v2210_v16, %v978_v5  ;;  %v2221_v23 = vrot.slane %v2219_v32, 4 }
  0x4c   : > { %v2198_v41 = vor.u32 %v2197_v36, %v2194_v29  ;;  %v4609_v14 = vsel %vm919_vm1, %v974_v63, %v978_v5  ;;  %v2231_v29 = vshll.u32 %v4386_v37, 16  ;;  %v2230_v36 = vrot.slane %v2228_v20, 4 }
  0x4d   : > { %3815 = vmatpush3.bf16.msra.mxu1 %v4214_v43  ;;  %v4591_v43 = vsel %vm919_vm1, %v958_v30, %v962_v38  ;;  %v2216_v13 = vor.u32 %v2215_v4, %v2212_v59  ;;  %v2237_v38 = vshrl.u32 %v4396_v42, 16  ;;  %v2246_v59 = vshrl.u32 %v4401_v45, 16 }
  0x4e   : > { %3943 = vmatpush3.bf16.msra.mxu0 %v4215_v57  ;;  %v4597_v0 = vsel %vm2155_vm2, %v2189_v25, %v2198_v41  ;;  %v4604_v12 = vsel %vm2155_vm2, %v2198_v41, %v2207_v58  ;;  %v2249_v63 = vshll.u32 %v4401_v45, 16 }
  0x4f   : > { %3769 = vmatmul.mubr.bf16.gmra.mrb[16].mxu1 %v4386_v37  ;;  %v4614_v30 = vsel %vm2155_vm2, %v2207_v58, %v2216_v13  ;;  %v994_v37 = vrot.slane %v2231_v29, 1  ;;  %v2239_v41 = vrot.slane %v2237_v38, 4 }
  0x50   : > { %3897 = vmatmul.mubr.bf16.gmra.mrb[16].mxu0 %v1644_v46  ;;  %3772 = vmatprep.mubr.bf16.mxu1 %v4396_v42  ;;  %v4600_v46 = vsel %vm919_vm1, %v966_v44, %v970_v40  ;;  %v2233_v40 = vrot.slane %v2231_v29, 5 }
  0x51   : > { %3900 = vmatprep.mubr.bf16.mxu0 %v4528_v47  ;;  %v2222_v47 = vshll.u32 %v4380_v33, 16  ;;  %v2240_v33 = vshll.u32 %v4396_v42, 16  ;;  %v998_v5 = vor.u32 %v2228_v20, %v994_v37 }
  0x52   : > { %v2234_v58 = vor.u32 %v2233_v40, %v2230_v36 }
  0x53   : > { %v2224_v24 = vrot.slane %v2222_v47, 5  ;;  %v986_v25 = vrot.slane %v2222_v47, 1  ;;  %v2242_v44 = vrot.slane %v2240_v33, 5  ;;  %v1002_v51 = vrot.slane %v2240_v33, 1 }
  0x55   : > { %v2225_v21 = vor.u32 %v2224_v24, %v2221_v23  ;;  %v4620_v39 = vsel %vm919_vm1, %v982_v19, %v986_v25  ;;  %v990_v16 = vor.u32 %v2219_v32, %v986_v25  ;;  %v1006_v32 = vor.u32 %v2237_v38, %v1002_v51 }
  0x56   : > { %v2248_v19 = vrot.slane %v2246_v59, 4  ;;  %v2251_v23 = vrot.slane %v2249_v63, 5  ;;  %v4640_v24 = vsel %vm919_vm1, %v998_v5, %v1002_v51  ;;  %v2258_v25 = vshll.u32 %v4418_v52, 16 }
  0x57   : > { %3773 = vmatmul.mubr.bf16.gmra.mrb[20].mxu1 %v4401_v45  ;;  %v4626_v42 = vsel %vm2155_vm2, %v2216_v13, %v2225_v21  ;;  %v4631_v4 = vsel %vm919_vm1, %v990_v16, %v994_v37  ;;  %v4634_v47 = vsel %vm2155_vm2, %v2225_v21, %v2234_v58  ;;  %v2255_v45 = vshrl.u32 %v4418_v52, 16 }
  0x58   : > { %3901 = vmatmul.mubr.bf16.gmra.mrb[20].mxu0 %v4536_v53  ;;  %3776 = vmatprep.mubr.bf16.mxu1 %v4418_v52  ;;  %v2243_v53 = vor.u32 %v2242_v44, %v2239_v41  ;;  %v2252_v29 = vor.u32 %v2251_v23, %v2248_v19  ;;  %v2264_v38 = vshrl.u32 %v4422_v54, 16  ;;  %v2260_v21 = vrot.slane %v2258_v25, 5 }
  0x59   : > { %3904 = vmatprep.mubr.bf16.mxu0 %v4539_v55  ;;  %v1010_v55 = vrot.slane %v2249_v63, 1  ;;  %v2257_v33 = vrot.slane %v2255_v45, 4  ;;  %v1018_v40 = vrot.slane %v2258_v25, 1  ;;  %v2267_v16 = vshll.u32 %v4422_v54, 16 }
  0x5a   : > { %v4637_v13 = vsel %vm2155_vm2, %v2234_v58, %v2243_v53  ;;  %v4651_v37 = vsel %vm2155_vm2, %v2243_v53, %v2252_v29  ;;  %v2266_v41 = vrot.slane %v2264_v38, 4  ;;  %v2273_v52 = vshrl.u32 %v4426_v56, 16 }
  0x5b   : > { %v4645_v20 = vsel %vm919_vm1, %v1006_v32, %v1010_v55  ;;  %v1014_v36 = vor.u32 %v2246_v59, %v1010_v55  ;;  %v2276_v44 = vshll.u32 %v4426_v56, 16  ;;  %v2261_v51 = vor.u32 %v2260_v21, %v2257_v33 }
  0x5c   : > { %v2269_v59 = vrot.slane %v2267_v16, 5  ;;  %v1022_v63 = vor.u32 %v2255_v45, %v1018_v40  ;;  %v2275_v53 = vrot.slane %v2273_v52, 4 }
  0x5d   : > { %v4658_v58 = vsel %vm919_vm1, %v1014_v36, %v1018_v40  ;;  %v2278_v5 = vrot.slane %v2276_v44, 5  ;;  %v1034_v32 = vrot.slane %v2276_v44, 1  ;;  %v4662_v19 = vsel %vm2155_vm2, %v2252_v29, %v2261_v51 }
  0x5e   : > { %v2270_v23 = vor.u32 %v2269_v59, %v2266_v41  ;;  %v2291_v41 = vshrl.u32 %v4445_v1, 16  ;;  %v2294_v44 = vshll.u32 %v4445_v1, 16 }
  0x5f   : > { %3777 = vmatmul.mubr.bf16.gmra.mrb[24].mxu1 %v4422_v54  ;;  %v1026_v54 = vrot.slane %v2267_v16, 1  ;;  %v2279_v25 = vor.u32 %v2278_v5, %v2275_v53  ;;  %v1038_v45 = vor.u32 %v2273_v52, %v1034_v32  ;;  %v2303_v5 = vshll.u32 %v4449_v3, 16 }
  0x60   : > { %3905 = vmatmul.mubr.bf16.gmra.mrb[24].mxu0 %v4546_v60  ;;  %3780 = vmatprep.mubr.bf16.mxu1 %v4426_v56  ;;  %v2282_v60 = vshrl.u32 %v4436_v62, 16  ;;  %v2285_v56 = vshll.u32 %v4436_v62, 16  ;;  %v1050_v53 = vrot.slane %v2294_v44, 1 }
  0x61   : > { %3908 = vmatprep.mubr.bf16.mxu0 %v4549_v61  ;;  %v4667_v55 = vsel %vm919_vm1, %v1022_v63, %v1026_v54  ;;  %v1030_v36 = vor.u32 %v2264_v38, %v1026_v54  ;;  %v4670_v61 = vsel %vm2155_vm2, %v2261_v51, %v2270_v23  ;;  %v4673_v29 = vsel %vm2155_vm2, %v2270_v23, %v2279_v25 }
  0x62   : > { %v2284_v33 = vrot.slane %v2282_v60, 4  ;;  %v2287_v21 = vrot.slane %v2285_v56, 5  ;;  %v1042_v40 = vrot.slane %v2285_v56, 1  ;;  %v2300_v51 = vshrl.u32 %v4449_v3, 16 }
  0x63   : > { %v4676_v16 = vsel %vm919_vm1, %v1030_v36, %v1034_v32  ;;  %v2293_v63 = vrot.slane %v2291_v41, 4  ;;  %v2296_v54 = vrot.slane %v2294_v44, 5  ;;  %v2309_v56 = vshrl.u32 %v4464_v11, 16 }
  0x64   : > { %v2288_v59 = vor.u32 %v2287_v21, %v2284_v33  ;;  %v4681_v38 = vsel %vm919_vm1, %v1038_v45, %v1042_v40  ;;  %v1046_v52 = vor.u32 %v2282_v60, %v1042_v40  ;;  %v2302_v23 = vrot.slane %v2300_v51, 4 }
  0x65   : > { %v2312_v60 = vshll.u32 %v4464_v11, 16  ;;  %v2305_v45 = vrot.slane %v2303_v5, 5  ;;  %v1054_v33 = vor.u32 %v2291_v41, %v1050_v53  ;;  %v1058_v21 = vrot.slane %v2303_v5, 1 }
  0x66   : > { %v4689_v32 = vsel %vm2155_vm2, %v2279_v25, %v2288_v59  ;;  %v4695_v36 = vsel %vm919_vm1, %v1046_v52, %v1050_v53  ;;  %v2320_v53 = vrot.slane %v2318_v6, 4  ;;  %v2323_v5 = vrot.slane %v2321_v9, 5 }
  0x67   : > { %3781 = vmatmul.mubr.bf16.gmra.mrb[28].mxu1 %v4436_v62  ;;  %v2297_v62 = vor.u32 %v2296_v54, %v2293_v63  ;;  %v2314_v40 = vrot.slane %v2312_v60, 5  ;;  %v2306_v44 = vor.u32 %v2305_v45, %v2302_v23  ;;  %v1062_v52 = vor.u32 %v2300_v51, %v1058_v21 }
  0x68   : > { %3909 = vmatmul.mubr.bf16.gmra.mrb[28].mxu0 %v4559_v7  ;;  %3784 = vmatprep.mubr.bf16.mxu1 %v4445_v1  ;;  %v2311_v7 = vrot.slane %v2309_v56, 4  ;;  %v1066_v1 = vrot.slane %v2312_v60, 1  ;;  %v1074_v60 = vrot.slane %v2321_v9, 1  ;;  %v2327_v45 = vshrl.u32 %v4475_v18, 16 }
  0x69   : > { %3912 = vmatprep.mubr.bf16.mxu0 %v4562_v8  ;;  %v4698_v25 = vsel %vm2155_vm2, %v2288_v59, %v2297_v62  ;;  %v4703_v8 = vsel %vm919_vm1, %v1054_v33, %v1058_v21  ;;  %v4706_v41 = vsel %vm2155_vm2, %v2297_v62, %v2306_v44  ;;  %v2330_v33 = vshll.u32 %v4475_v18, 16 }
  0x6a   : > { %v2315_v63 = vor.u32 %v2314_v40, %v2311_v7  ;;  %v1070_v54 = vor.u32 %v2309_v56, %v1066_v1  ;;  %v4712_v23 = vsel %vm919_vm1, %v1062_v52, %v1066_v1  ;;  %v2324_v51 = vor.u32 %v2323_v5, %v2320_v53 }
  0x6b   : > { %v1078_v62 = vor.u32 %v2318_v6, %v1074_v60  ;;  %v2336_v21 = vshrl.u32 %v4490_v26, 16  ;;  %v2329_v9 = vrot.slane %v2327_v45, 4  ;;  %v2332_v7 = vrot.slane %v2330_v33, 5 }
  0x6c   : > { %v4709_v59 = vsel %vm2155_vm2, %v2306_v44, %v2315_v63  ;;  %v4718_v56 = vsel %vm919_vm1, %v1070_v54, %v1074_v60  ;;  %v1082_v40 = vrot.slane %v2330_v33, 1  ;;  %v2339_v1 = vshll.u32 %v4490_v26, 16 }
  0x6d   : > { %4949 = vst [vmem:[#allocation4_spill] sm:$0xff] %v4718_v56  ;;  %v2338_v44 = vrot.slane %v2336_v21, 4  ;;  %v4946_v52 = vshrl.u32 %v4498_v34, 16  ;;  %v2348_v6 = vshll.u32 %v4498_v34, 16  ;;  %v2333_v54 = vor.u32 %v2332_v7, %v2329_v9 }
  0x6e   : > { %v1086_v53 = vor.u32 %v2327_v45, %v1082_v40  ;;  %v1090_v5 = vrot.slane %v2339_v1, 1  ;;  %v4947_v56 = vshrl.u32 %v4501_v35, 16  ;;  %v4953_v7 = vrot.slane %v4475_v18, 4 }
  0x6f   : > { %3785 = vmatmul.mubr.bf16.gmra.mrb[32].mxu1 %v4449_v3  ;;  %v4726_v3 = vsel %vm2155_vm2, %v2315_v63, %v2324_v51  ;;  %v2347_v60 = vrot.slane %v4946_v52, 4  ;;  %v2350_v33 = vrot.slane %v2348_v6, 5  ;;  %v4738_v63 = vsel %vm2155_vm2, %v2324_v51, %v2333_v54 }
  0x70   : > { %3913 = vmatmul.mubr.bf16.gmra.mrb[32].mxu0 %v4571_v17  ;;  %3788 = vmatprep.mubr.bf16.mxu1 %v4464_v11  ;;  %v4731_v17 = vsel %vm919_vm1, %v1078_v62, %v1082_v40  ;;  %v2341_v11 = vrot.slane %v2339_v1, 5  ;;  %v4952_v62 = vrot.slane %v4490_v26, 4  ;;  %v4748_v40 = vsel %vm919_vm1, %v1086_v53, %v1090_v5  ;;  %v2114_v53 = vld [vmem:[#allocation2 + $0x8] sm:$0xf0] }
  0x71   : > { %3916 = vmatprep.mubr.bf16.mxu0 %v4582_v31  ;;  %4950 = vst [vmem:[#allocation5_spill] sm:$0xff] %v4731_v17  ;;  %v4735_v31 = vrot.slane %v2348_v6, 1  ;;  %4954 = vst [vmem:[#allocation7_spill] sm:$0xff] %v4748_v40  ;;  %v2351_v1 = vor.u32 %v2350_v33, %v2347_v60  ;;  %v1094_v6 = vor.u32 %v2336_v21, %v1090_v5  ;;  %v4955_v52 = vrot.slane %v4498_v34, 4 }
  0x72   : > { %v2342_v57 = vor.u32 %v2341_v11, %v2338_v44  ;;  %v1664_v45 = vsel %vm1623_vm0, %v4953_v7, %v4952_v62  ;;  %v4956_v51 = vmov %v4952_v62  ;;  %v2356_v9 = vrot.slane %v4947_v56, 4  ;;  %v2138_v7 = vld [vmem:[#allocation2 + $0xc8] sm:$0x1f] }
  0x73   : > { %4951 = vst [vmem:[#allocation6_spill] sm:$0xff] %v4735_v31  ;;  %v1666_v44 = vsel %vm1623_vm0, %v4956_v51, %v4955_v52  ;;  %v4958_v17 = vshll.u32 %v4501_v35, 16  ;;  %v4768_v5 = vsel %vm919_vm1, %v1094_v6, %v4735_v31  ;;  %v2363_v52 = vshrl.u32 %v4530_v49, 16 }
  0x74   : > { %v4756_v11 = vsel %vm2155_vm2, %v2333_v54, %v2342_v57  ;;  %v4764_v21 = vsel %vm2155_vm2, %v2342_v57, %v2351_v1  ;;  %4960 = vst [vmem:[#allocation10_spill] sm:$0xff] %v4768_v5  ;;  %v2366_v54 = vshll.u32 %v4530_v49, 16  ;;  %v2372_v51 = vshrl.u32 %v2138_v7, 16 }
  0x75   : > { %4957 = vst [vmem:[#allocation8_spill] sm:$0xff] %v4756_v11  ;;  %v2359_v62 = vrot.slane %v4958_v17, 5  ;;  %4959 = vst [vmem:[#allocation9_spill] sm:$0xff] %v4764_v21  ;;  %v1667_v17 = vrot.slane %v4501_v35, 4  ;;  %v2375_v57 = vshll.u32 %v2138_v7, 16  ;;  %v1669_v56 = vrot.slane %v4530_v49, 4 }
  0x76   : > { %v2368_v33 = vrot.slane %v2366_v54, 5  ;;  %v2157_v21 = vshrl.u32 %v2114_v53, 16  ;;  %v2160_v6 = vshll.u32 %v2114_v53, 16  ;;  %v2374_v40 = vrot.slane %v2372_v51, 4  ;;  %v1581_v7 = vld [vmem:[#allocation2 + $0xc8] sm:$0xf] }
  0x77   : > { %3789 = vmatmul.mubr.bf16.gmra.mrb[36].mxu1 %v4469_v15  ;;  %v2360_v60 = vor.u32 %v2359_v62, %v2356_v9  ;;  %v2365_v15 = vrot.slane %v2363_v52, 4  ;;  %v1670_v62 = vsel %vm1623_vm0, %v1667_v17, %v1669_v56  ;;  %v1671_v53 = vrot.slane %v1581_v7, 4 }
  0x78   : > { %3917 = vmatmul.mubr.bf16.gmra.mrb[36].mxu0 %v1664_v45  ;;  %3792 = vmatprep.mubr.bf16.mxu1 %v4475_v18  ;;  %v2377_v45 = vrot.slane %v2375_v57, 5  ;;  %v4961_v18 = vrot.slane %v4498_v34, 4  ;;  %v2159_v49 = vrot.slane %v2157_v21, 4  ;;  %v2162_v52 = vrot.slane %v2160_v6, 5 }
  0x79   : > { %3920 = vmatprep.mubr.bf16.mxu0 %v1666_v44  ;;  %v4776_v5 = vsel %vm2155_vm2, %v2351_v1, %v2360_v60  ;;  %v2369_v31 = vor.u32 %v2368_v33, %v2365_v15 }
  0x7a   : > { %v1668_v11 = vsel %vm1623_vm0, %v4961_v18, %v1667_v17  ;;  %v2378_v44 = vor.u32 %v2377_v45, %v2374_v40  ;;  %v2163_v54 = vor.u32 %v2162_v52, %v2159_v49 }
  0x7b   : > { %v4782_v9 = vsel %vm2155_vm2, %v2360_v60, %v2369_v31  ;;  %v1672_v60 = vsel %vm1623_vm0, %v1669_v56, %v1671_v53 }
  0x7c   : > { %v4787_v1 = vsel %vm2155_vm2, %v2369_v31, %v2378_v44  ;;  %v2172_v40 = vsel %vm2155_vm2, %v2163_v54, %v4532_v50  ;;  %v4965_v50 = vld [vmem:[#allocation7_spill] sm:$0xff] }
  0x7f   : > { %3793 = vmatmul.mubr.bf16.gmra.mrb[40].mxu1 %v4490_v26  ;;  %v4964_v26 = vld [vmem:[#allocation8_spill] sm:$0xff] }
  0x80   : > { %3921 = vmatmul.mubr.bf16.gmra.mrb[40].mxu0 %v1668_v11  ;;  %3796 = vmatprep.mubr.bf16.mxu1 %v4498_v34 }
  0x81   : > { %3924 = vmatprep.mubr.bf16.mxu0 %v1670_v62 }
  0x87   : > { %3797 = vmatmul.mubr.bf16.gmra.mrb[44].mxu1 %v4501_v35 }
  0x88   : > { %3925 = vmatmul.mubr.bf16.gmra.mrb[44].mxu0 %v1672_v60  ;;  %3816 = vmatprep.mubr.bf16.mxu1 %v4409_v48  ;;  %v4962_v48 = vld [vmem:[#allocation4_spill] sm:$0xff] }
  0x89   : > { %3944 = vmatprep.mubr.bf16.mxu0 %v2172_v40 }
  0x8f   : > { %3817 = vmatmul.mubr.bf16.vlgmr.msra.gmra.mrb[0].mxu1 %v4478_v22  ;;  %v4963_v22 = vld [vmem:[#allocation5_spill] sm:$0xff] }
  0x90   : > { %3945 = vmatmul.mubr.bf16.vlgmr.msra.gmra.mrb[0].mxu0 %v4567_v10  ;;  %3820 = vmatprep.mubr.bf16.mxu1 %v4554_v2  ;;  %v4966_v2 = vld [vmem:[#allocation9_spill] sm:$0xff]  ;;  %v4967_v10 = vld [vmem:[#allocation6_spill] sm:$0xff] }
  0x91   : > { %3948 = vmatprep.mubr.bf16.mxu0 %v4586_v27 }
  0x97   : > { %3821 = vmatmul.mubr.bf16.gmra.mrb[4].mxu1 %v4577_v28  ;;  %v4968_v28 = vshrl.u32 %v4498_v34, 16 }
  0x98   : > { %3949 = vmatmul.mubr.bf16.gmra.mrb[4].mxu0 %v4597_v0  ;;  %3824 = vmatprep.mubr.bf16.mxu1 %v4591_v43  ;;  %v4969_v43 = vshll.u32 %v4501_v35, 16 }
  0x99   : > { %3952 = vmatprep.mubr.bf16.mxu0 %v4604_v12  ;;  %v1102_v27 = vor.u32 %v4968_v28, %v4967_v10 }
  0x9a   : > { %v1106_v0 = vrot.slane %v4969_v43, 1 }
  0x9f   : > { %3825 = vmatmul.mubr.bf16.gmra.mrb[8].mxu1 %v4600_v46  ;;  %v902_v46 = vld [vmem:[#allocation2 + $0xc0] sm:$0x1] }
  0xa0   : > { %3953 = vmatmul.mubr.bf16.gmra.mrb[8].mxu0 %v4614_v30  ;;  %3828 = vmatprep.mubr.bf16.mxu1 %v4609_v14  ;;  %v1112_v12 = vshll.u32 %v902_v46, 16  ;;  %v1107_v14 = vsel %vm919_vm1, %v1102_v27, %v1106_v0  ;;  %v4970_v30 = vld [vmem:[#allocation10_spill] sm:$0xff] }
  0xa1   : > { %3956 = vmatprep.mubr.bf16.mxu0 %v4626_v42 }
  0xa7   : > { %3829 = vmatmul.mubr.bf16.gmra.mrb[12].mxu1 %v4620_v39  ;;  %v4971_v39 = vshrl.u32 %v4501_v35, 16 }
  0xa8   : > { %3957 = vmatmul.mubr.bf16.gmra.mrb[12].mxu0 %v4634_v47  ;;  %3832 = vmatprep.mubr.bf16.mxu1 %v4631_v4  ;;  %v1114_v4 = vrot.slane %v1112_v12, 1 }
  0xa9   : > { %3960 = vmatprep.mubr.bf16.mxu0 %v4637_v13  ;;  %v1110_v42 = vor.u32 %v4971_v39, %v1106_v0 }
  0xab   : > { %v1115_v34 = vsel %vm919_vm1, %v1110_v42, %v1114_v4 }
  0xaf   : > { %3833 = vmatmul.mubr.bf16.gmra.mrb[16].mxu1 %v4640_v24  ;;  %v4852_v24 = vld [vmem:[%s4943_s3] ss:$0 sm:$0xff] }
  0xb0   : > { %3961 = vmatmul.mubr.bf16.gmra.mrb[16].mxu0 %v4651_v37  ;;  %3836 = vmatprep.mubr.bf16.mxu1 %v4645_v20 }
  0xb1   : > { %3964 = vmatprep.mubr.bf16.mxu0 %v4662_v19 }
  0xb7   : > { %3837 = vmatmul.mubr.bf16.gmra.mrb[20].mxu1 %v4658_v58 }
  0xb8   : > { %3965 = vmatmul.mubr.bf16.gmra.mrb[20].mxu0 %v4670_v61  ;;  %3840 = vmatprep.mubr.bf16.mxu1 %v4667_v55 }
  0xb9   : > { %3968 = vmatprep.mubr.bf16.mxu0 %v4673_v29 }
  0xbf   : > { %3841 = vmatmul.mubr.bf16.gmra.mrb[24].mxu1 %v4676_v16 }
  0xc0   : > { %3969 = vmatmul.mubr.bf16.gmra.mrb[24].mxu0 %v4689_v32  ;;  %3844 = vmatprep.mubr.bf16.mxu1 %v4681_v38 }
  0xc1   : > { %3972 = vmatprep.mubr.bf16.mxu0 %v4698_v25 }
  0xc7   : > { %3845 = vmatmul.mubr.bf16.gmra.mrb[28].mxu1 %v4695_v36 }
  0xc8   : > { %3973 = vmatmul.mubr.bf16.gmra.mrb[28].mxu0 %v4706_v41  ;;  %3848 = vmatprep.mubr.bf16.mxu1 %v4703_v8 }
  0xc9   : > { %3976 = vmatprep.mubr.bf16.mxu0 %v4709_v59 }
  0xcf   : > { %3849 = vmatmul.mubr.bf16.gmra.mrb[32].mxu1 %v4712_v23 }
  0xd0   : > { %3977 = vmatmul.mubr.bf16.gmra.mrb[32].mxu0 %v4726_v3  ;;  %3852 = vmatprep.mubr.bf16.mxu1 %v4962_v48 }
  0xd1   : > { %3980 = vmatprep.mubr.bf16.mxu0 %v4738_v63 }
  0xd7   : > { %3853 = vmatmul.mubr.bf16.gmra.mrb[36].mxu1 %v4963_v22 }
  0xd8   : > { %3981 = vmatmul.mubr.bf16.gmra.mrb[36].mxu0 %v4964_v26  ;;  %3856 = vmatprep.mubr.bf16.mxu1 %v4965_v50 }
  0xd9   : > { %3984 = vmatprep.mubr.bf16.mxu0 %v4966_v2 }
  0xdf   : > { %3857 = vmatmul.mubr.bf16.gmra.mrb[40].mxu1 %v4970_v30 }
  0xe0   : > { %3985 = vmatmul.mubr.bf16.gmra.mrb[40].mxu0 %v4776_v5  ;;  %3860 = vmatprep.mubr.bf16.mxu1 %v1107_v14 }
  0xe1   : > { %3988 = vmatprep.mubr.bf16.mxu0 %v4782_v9 }
  0xe7   : > { %3861 = vmatmul.mubr.bf16.gmra.mrb[44].mxu1 %v1115_v34 }
  0xe8   : > { %3989 = vmatmul.mubr.bf16.gmra.mrb[44].mxu0 %v4787_v1 }
 0x162   : > { %v3818_v47 = vpop.f32.mrb[0].mxu1 }
 0x163   : > { %v3946_v13 = vpop.f32.mrb[0].mxu0  ;;  %v1222_v20 = vpop.f32.mrb[1].mxu1 }
 0x164   : > { %v3992_v35 = vadd.f32 %v3946_v13, %v3818_v47  ;;  %v2486_v37 = vpop.f32.mrb[1].mxu0  ;;  %v3819_v58 = vpop.f32.mrb[2].mxu1 }
 0x165   : > { %v3993_v19 = vadd.f32 %v2486_v37, %v1222_v20  ;;  %v3947_v55 = vpop.f32.mrb[2].mxu0  ;;  %v1225_v61 = vpop.f32.mrb[3].mxu1 }
 0x166   : > { %v2878_v29 = vadd.f32 %v3992_v35, %v4852_v24  ;;  %v3994_v16 = vadd.f32 %v3947_v55, %v3819_v58  ;;  %v2489_v38 = vpop.f32.mrb[3].mxu0 }
 0x167   : > { %v2876_v32 = vadd.f32 %v3993_v19, %v4852_v24  ;;  %v3995_v36 = vadd.f32 %v2489_v38, %v1225_v61 }
 0x168   : > { %v2879_v25 = vadd.f32 %v3994_v16, %v4852_v24  ;;  %v2926_v41 = vmax.f32 %v2878_v29, 0.0 }
 0x169   : > { %v2877_v8 = vadd.f32 %v3995_v36, %v4852_v24  ;;  %v2924_v56 = vmax.f32 %v2876_v32, 0.0 }
 0x16a   : > { %v2927_v59 = vmax.f32 %v2879_v25, 0.0  ;;  %v3822_v23 = vpop.f32.mrb[4].mxu1 }
 0x16b   : > { %v2925_v3 = vmax.f32 %v2877_v8, 0.0  ;;  %v3950_v31 = vpop.f32.mrb[4].mxu0  ;;  %v1238_v63 = vpop.f32.mrb[5].mxu1 }
 0x16c   : > { %v3472_v11 = vpack.c.bf16 %v2927_v59, %v2926_v41  ;;  %v3996_v21 = vadd.f32 %v3950_v31, %v3822_v23  ;;  %v2502_v5 = vpop.f32.mrb[5].mxu0  ;;  %v3823_v17 = vpop.f32.mrb[6].mxu1 }
 0x16d   : > { %v3467_v15 = vpack.c.bf16 %v2925_v3, %v2924_v56  ;;  %v3997_v33 = vadd.f32 %v2502_v5, %v1238_v63  ;;  %v3951_v51 = vpop.f32.mrb[6].mxu0  ;;  %v1241_v57 = vpop.f32.mrb[7].mxu1 }
 0x16e   : > { %3585 = vst [vmem:[%s4861_s9 + $0x8] sm:$0xff] %v3472_v11   ;;  %v2882_v6 = vadd.f32 %v3996_v21, %v4852_v24  ;;  %v3998_v45 = vadd.f32 %v3951_v51, %v3823_v17  ;;  %v2505_v18 = vpop.f32.mrb[7].mxu0 }
 0x16f   : > { %3468 = vst [vmem:[%s4861_s9] sm:$0xff] %v3467_v15   ;;  %v2880_v9 = vadd.f32 %v3997_v33, %v4852_v24  ;;  %v3999_v44 = vadd.f32 %v2505_v18, %v1241_v57 }
 0x170   : > { %v2883_v62 = vadd.f32 %v3998_v45, %v4852_v24  ;;  %v2930_v49 = vmax.f32 %v2882_v6, 0.0 }
 0x171   : > { %v2881_v7 = vadd.f32 %v3999_v44, %v4852_v24  ;;  %v2928_v53 = vmax.f32 %v2880_v9, 0.0 }
 0x172   : > { %v2931_v52 = vmax.f32 %v2883_v62, 0.0  ;;  %v3826_v1 = vpop.f32.mrb[8].mxu1 }
 0x173   : > { %v2929_v54 = vmax.f32 %v2881_v7, 0.0  ;;  %v3954_v60 = vpop.f32.mrb[8].mxu0  ;;  %v1254_v40 = vpop.f32.mrb[9].mxu1 }
 0x174   : > { %v3482_v48 = vpack.c.bf16 %v2931_v52, %v2930_v49  ;;  %v4000_v22 = vadd.f32 %v3954_v60, %v3826_v1  ;;  %v2518_v26 = vpop.f32.mrb[9].mxu0  ;;  %v3827_v50 = vpop.f32.mrb[10].mxu1 }
 0x175   : > { %v3477_v2 = vpack.c.bf16 %v2929_v54, %v2928_v53  ;;  %v4001_v10 = vadd.f32 %v2518_v26, %v1254_v40  ;;  %v3955_v28 = vpop.f32.mrb[10].mxu0  ;;  %v1257_v27 = vpop.f32.mrb[11].mxu1 }
 0x176   : > { %3587 = vst [vmem:[%s4861_s9 + $0x18] sm:$0xff] %v3482_v48   ;;  %v2886_v43 = vadd.f32 %v4000_v22, %v4852_v24  ;;  %v4002_v0 = vadd.f32 %v3955_v28, %v3827_v50  ;;  %v2521_v46 = vpop.f32.mrb[11].mxu0 }
 0x177   : > { %3586 = vst [vmem:[%s4861_s9 + $0x10] sm:$0xff] %v3477_v2   ;;  %v2884_v12 = vadd.f32 %v4001_v10, %v4852_v24  ;;  %v4003_v14 = vadd.f32 %v2521_v46, %v1257_v27 }
 0x178   : > { %v2887_v30 = vadd.f32 %v4002_v0, %v4852_v24  ;;  %v2934_v42 = vmax.f32 %v2886_v43, 0.0 }
 0x179   : > { %v2885_v39 = vadd.f32 %v4003_v14, %v4852_v24  ;;  %v2932_v47 = vmax.f32 %v2884_v12, 0.0 }
 0x17a   : > { %v2935_v4 = vmax.f32 %v2887_v30, 0.0  ;;  %v3830_v34 = vpop.f32.mrb[12].mxu1 }
 0x17b   : > { %v2933_v13 = vmax.f32 %v2885_v39, 0.0  ;;  %v3958_v20 = vpop.f32.mrb[12].mxu0  ;;  %v1270_v35 = vpop.f32.mrb[13].mxu1 }
 0x17c   : > { %v3492_v37 = vpack.c.bf16 %v2935_v4, %v2934_v42  ;;  %v4004_v58 = vadd.f32 %v3958_v20, %v3830_v34  ;;  %v2534_v19 = vpop.f32.mrb[13].mxu0  ;;  %v3831_v55 = vpop.f32.mrb[14].mxu1 }
 0x17d   : > { %v3487_v61 = vpack.c.bf16 %v2933_v13, %v2932_v47  ;;  %v4005_v29 = vadd.f32 %v2534_v19, %v1270_v35  ;;  %v3959_v16 = vpop.f32.mrb[14].mxu0  ;;  %v1273_v38 = vpop.f32.mrb[15].mxu1 }
 0x17e   : > { %3589 = vst [vmem:[%s4861_s9 + $0x28] sm:$0xff] %v3492_v37   ;;  %v2890_v32 = vadd.f32 %v4004_v58, %v4852_v24  ;;  %v4006_v36 = vadd.f32 %v3959_v16, %v3831_v55  ;;  %v2537_v25 = vpop.f32.mrb[15].mxu0 }
 0x17f   : > { %3588 = vst [vmem:[%s4861_s9 + $0x20] sm:$0xff] %v3487_v61   ;;  %v2888_v8 = vadd.f32 %v4005_v29, %v4852_v24  ;;  %v4007_v41 = vadd.f32 %v2537_v25, %v1273_v38 }
 0x180   : > { %v2891_v59 = vadd.f32 %v4006_v36, %v4852_v24  ;;  %v2938_v56 = vmax.f32 %v2890_v32, 0.0 }
 0x181   : > { %v2889_v23 = vadd.f32 %v4007_v41, %v4852_v24  ;;  %v2936_v63 = vmax.f32 %v2888_v8, 0.0 }
 0x182   : > { %v2939_v3 = vmax.f32 %v2891_v59, 0.0  ;;  %v3834_v31 = vpop.f32.mrb[16].mxu1 }
 0x183   : > { %v2937_v11 = vmax.f32 %v2889_v23, 0.0  ;;  %v3962_v21 = vpop.f32.mrb[16].mxu0  ;;  %v1286_v5 = vpop.f32.mrb[17].mxu1 }
 0x184   : > { %v3502_v17 = vpack.c.bf16 %v2939_v3, %v2938_v56  ;;  %v4008_v15 = vadd.f32 %v3962_v21, %v3834_v31  ;;  %v2550_v33 = vpop.f32.mrb[17].mxu0  ;;  %v3835_v51 = vpop.f32.mrb[18].mxu1 }
 0x185   : > { %v3497_v57 = vpack.c.bf16 %v2937_v11, %v2936_v63  ;;  %v4009_v6 = vadd.f32 %v2550_v33, %v1286_v5  ;;  %v3963_v45 = vpop.f32.mrb[18].mxu0  ;;  %v1289_v18 = vpop.f32.mrb[19].mxu1 }
 0x186   : > { %3591 = vst [vmem:[%s4861_s9 + $0x38] sm:$0xff] %v3502_v17   ;;  %v2894_v9 = vadd.f32 %v4008_v15, %v4852_v24  ;;  %v4010_v44 = vadd.f32 %v3963_v45, %v3835_v51  ;;  %v2553_v62 = vpop.f32.mrb[19].mxu0 }
 0x187   : > { %3590 = vst [vmem:[%s4861_s9 + $0x30] sm:$0xff] %v3497_v57   ;;  %v2892_v7 = vadd.f32 %v4009_v6, %v4852_v24  ;;  %v4011_v49 = vadd.f32 %v2553_v62, %v1289_v18 }
 0x188   : > { %v2895_v52 = vadd.f32 %v4010_v44, %v4852_v24  ;;  %v2942_v53 = vmax.f32 %v2894_v9, 0.0 }
 0x189   : > { %v2893_v1 = vadd.f32 %v4011_v49, %v4852_v24  ;;  %v2940_v40 = vmax.f32 %v2892_v7, 0.0 }
 0x18a   : > { %v2943_v54 = vmax.f32 %v2895_v52, 0.0  ;;  %v3838_v60 = vpop.f32.mrb[20].mxu1 }
 0x18b   : > { %v2941_v48 = vmax.f32 %v2893_v1, 0.0  ;;  %v3966_v22 = vpop.f32.mrb[20].mxu0  ;;  %v1302_v26 = vpop.f32.mrb[21].mxu1 }
 0x18c   : > { %v3512_v50 = vpack.c.bf16 %v2943_v54, %v2942_v53  ;;  %v4012_v2 = vadd.f32 %v3966_v22, %v3838_v60  ;;  %v2566_v10 = vpop.f32.mrb[21].mxu0  ;;  %v3839_v28 = vpop.f32.mrb[22].mxu1 }
 0x18d   : > { %v3507_v27 = vpack.c.bf16 %v2941_v48, %v2940_v40  ;;  %v4013_v43 = vadd.f32 %v2566_v10, %v1302_v26  ;;  %v3967_v0 = vpop.f32.mrb[22].mxu0  ;;  %v1305_v46 = vpop.f32.mrb[23].mxu1 }
 0x18e   : > { %3593 = vst [vmem:[%s4861_s9 + $0x48] sm:$0xff] %v3512_v50   ;;  %v2898_v12 = vadd.f32 %v4012_v2, %v4852_v24  ;;  %v4014_v14 = vadd.f32 %v3967_v0, %v3839_v28  ;;  %v2569_v30 = vpop.f32.mrb[23].mxu0 }
 0x18f   : > { %3592 = vst [vmem:[%s4861_s9 + $0x40] sm:$0xff] %v3507_v27   ;;  %v2896_v39 = vadd.f32 %v4013_v43, %v4852_v24  ;;  %v4015_v42 = vadd.f32 %v2569_v30, %v1305_v46 }
 0x190   : > { %v2899_v4 = vadd.f32 %v4014_v14, %v4852_v24  ;;  %v2946_v47 = vmax.f32 %v2898_v12, 0.0 }
 0x191   : > { %v2897_v34 = vadd.f32 %v4015_v42, %v4852_v24  ;;  %v2944_v35 = vmax.f32 %v2896_v39, 0.0 }
 0x192   : > { %v2947_v13 = vmax.f32 %v2899_v4, 0.0  ;;  %v3842_v20 = vpop.f32.mrb[24].mxu1 }
 0x193   : > { %v2945_v37 = vmax.f32 %v2897_v34, 0.0  ;;  %v3970_v58 = vpop.f32.mrb[24].mxu0  ;;  %v1318_v19 = vpop.f32.mrb[25].mxu1 }
 0x194   : > { %v3522_v55 = vpack.c.bf16 %v2947_v13, %v2946_v47  ;;  %v4016_v61 = vadd.f32 %v3970_v58, %v3842_v20  ;;  %v2582_v29 = vpop.f32.mrb[25].mxu0  ;;  %v3843_v16 = vpop.f32.mrb[26].mxu1 }
 0x195   : > { %v3517_v38 = vpack.c.bf16 %v2945_v37, %v2944_v35  ;;  %v4017_v32 = vadd.f32 %v2582_v29, %v1318_v19  ;;  %v3971_v36 = vpop.f32.mrb[26].mxu0  ;;  %v1321_v25 = vpop.f32.mrb[27].mxu1 }
 0x196   : > { %3595 = vst [vmem:[%s4861_s9 + $0x58] sm:$0xff] %v3522_v55   ;;  %v2902_v8 = vadd.f32 %v4016_v61, %v4852_v24  ;;  %v4018_v41 = vadd.f32 %v3971_v36, %v3843_v16  ;;  %v2585_v59 = vpop.f32.mrb[27].mxu0 }
 0x197   : > { %3594 = vst [vmem:[%s4861_s9 + $0x50] sm:$0xff] %v3517_v38   ;;  %v2900_v23 = vadd.f32 %v4017_v32, %v4852_v24  ;;  %v4019_v56 = vadd.f32 %v2585_v59, %v1321_v25 }
 0x198   : > { %v2903_v3 = vadd.f32 %v4018_v41, %v4852_v24  ;;  %v2950_v63 = vmax.f32 %v2902_v8, 0.0 }
 0x199   : > { %v2901_v31 = vadd.f32 %v4019_v56, %v4852_v24  ;;  %v2948_v5 = vmax.f32 %v2900_v23, 0.0 }
 0x19a   : > { %v2951_v11 = vmax.f32 %v2903_v3, 0.0  ;;  %v3846_v21 = vpop.f32.mrb[28].mxu1 }
 0x19b   : > { %v2949_v17 = vmax.f32 %v2901_v31, 0.0  ;;  %v3974_v15 = vpop.f32.mrb[28].mxu0  ;;  %v1334_v33 = vpop.f32.mrb[29].mxu1 }
 0x19c   : > { %v3532_v51 = vpack.c.bf16 %v2951_v11, %v2950_v63  ;;  %v4020_v57 = vadd.f32 %v3974_v15, %v3846_v21  ;;  %v2598_v6 = vpop.f32.mrb[29].mxu0  ;;  %v3847_v45 = vpop.f32.mrb[30].mxu1 }
 0x19d   : > { %v3527_v18 = vpack.c.bf16 %v2949_v17, %v2948_v5  ;;  %v4021_v9 = vadd.f32 %v2598_v6, %v1334_v33  ;;  %v3975_v44 = vpop.f32.mrb[30].mxu0  ;;  %v1337_v62 = vpop.f32.mrb[31].mxu1 }
 0x19e   : > { %3597 = vst [vmem:[%s4861_s9 + $0x68] sm:$0xff] %v3532_v51   ;;  %v2906_v7 = vadd.f32 %v4020_v57, %v4852_v24  ;;  %v4022_v49 = vadd.f32 %v3975_v44, %v3847_v45  ;;  %v2601_v52 = vpop.f32.mrb[31].mxu0 }
 0x19f   : > { %3596 = vst [vmem:[%s4861_s9 + $0x60] sm:$0xff] %v3527_v18   ;;  %v2904_v1 = vadd.f32 %v4021_v9, %v4852_v24  ;;  %v4023_v53 = vadd.f32 %v2601_v52, %v1337_v62 }
 0x1a0   : > { %v2907_v54 = vadd.f32 %v4022_v49, %v4852_v24  ;;  %v2954_v40 = vmax.f32 %v2906_v7, 0.0 }
 0x1a1   : > { %v2905_v60 = vadd.f32 %v4023_v53, %v4852_v24  ;;  %v2952_v26 = vmax.f32 %v2904_v1, 0.0 }
 0x1a2   : > { %v2955_v48 = vmax.f32 %v2907_v54, 0.0  ;;  %v3850_v22 = vpop.f32.mrb[32].mxu1 }
 0x1a3   : > { %v2953_v50 = vmax.f32 %v2905_v60, 0.0  ;;  %v3978_v2 = vpop.f32.mrb[32].mxu0  ;;  %v1350_v10 = vpop.f32.mrb[33].mxu1 }
 0x1a4   : > { %v3542_v28 = vpack.c.bf16 %v2955_v48, %v2954_v40  ;;  %v4024_v27 = vadd.f32 %v3978_v2, %v3850_v22  ;;  %v2614_v43 = vpop.f32.mrb[33].mxu0  ;;  %v3851_v0 = vpop.f32.mrb[34].mxu1 }
 0x1a5   : > { %v3537_v46 = vpack.c.bf16 %v2953_v50, %v2952_v26  ;;  %v4025_v12 = vadd.f32 %v2614_v43, %v1350_v10  ;;  %v3979_v14 = vpop.f32.mrb[34].mxu0  ;;  %v1353_v30 = vpop.f32.mrb[35].mxu1 }
 0x1a6   : > { %3599 = vst [vmem:[%s4861_s9 + $0x78] sm:$0xff] %v3542_v28   ;;  %v2910_v39 = vadd.f32 %v4024_v27, %v4852_v24  ;;  %v4026_v42 = vadd.f32 %v3979_v14, %v3851_v0  ;;  %v2617_v4 = vpop.f32.mrb[35].mxu0 }
 0x1a7   : > { %3598 = vst [vmem:[%s4861_s9 + $0x70] sm:$0xff] %v3537_v46   ;;  %v2908_v34 = vadd.f32 %v4025_v12, %v4852_v24  ;;  %v4027_v47 = vadd.f32 %v2617_v4, %v1353_v30 }
 0x1a8   : > { %v2911_v13 = vadd.f32 %v4026_v42, %v4852_v24  ;;  %v2958_v35 = vmax.f32 %v2910_v39, 0.0 }
 0x1a9   : > { %v2909_v20 = vadd.f32 %v4027_v47, %v4852_v24  ;;  %v2956_v19 = vmax.f32 %v2908_v34, 0.0 }
 0x1aa   : > { %v2959_v37 = vmax.f32 %v2911_v13, 0.0  ;;  %v3854_v58 = vpop.f32.mrb[36].mxu1 }
 0x1ab   : > { %v2957_v55 = vmax.f32 %v2909_v20, 0.0  ;;  %v3982_v61 = vpop.f32.mrb[36].mxu0  ;;  %v1366_v29 = vpop.f32.mrb[37].mxu1 }
 0x1ac   : > { %v3552_v16 = vpack.c.bf16 %v2959_v37, %v2958_v35  ;;  %v4028_v38 = vadd.f32 %v3982_v61, %v3854_v58  ;;  %v2630_v32 = vpop.f32.mrb[37].mxu0  ;;  %v3855_v36 = vpop.f32.mrb[38].mxu1 }
 0x1ad   : > { %v3547_v25 = vpack.c.bf16 %v2957_v55, %v2956_v19  ;;  %v4029_v8 = vadd.f32 %v2630_v32, %v1366_v29  ;;  %v3983_v41 = vpop.f32.mrb[38].mxu0  ;;  %v1369_v59 = vpop.f32.mrb[39].mxu1 }
 0x1ae   : > { %3601 = vst [vmem:[%s4861_s9 + $0x88] sm:$0xff] %v3552_v16   ;;  %v2914_v23 = vadd.f32 %v4028_v38, %v4852_v24  ;;  %v4030_v56 = vadd.f32 %v3983_v41, %v3855_v36  ;;  %v2633_v3 = vpop.f32.mrb[39].mxu0 }
 0x1af   : > { %3600 = vst [vmem:[%s4861_s9 + $0x80] sm:$0xff] %v3547_v25   ;;  %v2912_v31 = vadd.f32 %v4029_v8, %v4852_v24  ;;  %v4031_v63 = vadd.f32 %v2633_v3, %v1369_v59 }
 0x1b0   : > { %v2915_v11 = vadd.f32 %v4030_v56, %v4852_v24  ;;  %v2962_v5 = vmax.f32 %v2914_v23, 0.0 }
 0x1b1   : > { %v2913_v21 = vadd.f32 %v4031_v63, %v4852_v24  ;;  %v2960_v33 = vmax.f32 %v2912_v31, 0.0 }
 0x1b2   : > { %v2963_v17 = vmax.f32 %v2915_v11, 0.0  ;;  %v3858_v15 = vpop.f32.mrb[40].mxu1 }
 0x1b3   : > { %v2961_v51 = vmax.f32 %v2913_v21, 0.0  ;;  %v3986_v57 = vpop.f32.mrb[40].mxu0  ;;  %v1382_v6 = vpop.f32.mrb[41].mxu1 }
 0x1b4   : > { %v3562_v45 = vpack.c.bf16 %v2963_v17, %v2962_v5  ;;  %v4032_v18 = vadd.f32 %v3986_v57, %v3858_v15  ;;  %v2646_v9 = vpop.f32.mrb[41].mxu0  ;;  %v3859_v44 = vpop.f32.mrb[42].mxu1 }
 0x1b5   : > { %v3557_v62 = vpack.c.bf16 %v2961_v51, %v2960_v33  ;;  %v4033_v7 = vadd.f32 %v2646_v9, %v1382_v6  ;;  %v3987_v49 = vpop.f32.mrb[42].mxu0  ;;  %v1385_v52 = vpop.f32.mrb[43].mxu1 }
 0x1b6   : > { %3603 = vst [vmem:[%s4861_s9 + $0x98] sm:$0xff] %v3562_v45   ;;  %v2918_v1 = vadd.f32 %v4032_v18, %v4852_v24  ;;  %v4034_v53 = vadd.f32 %v3987_v49, %v3859_v44  ;;  %v2649_v54 = vpop.f32.mrb[43].mxu0 }
 0x1b7   : > { %3602 = vst [vmem:[%s4861_s9 + $0x90] sm:$0xff] %v3557_v62   ;;  %v2916_v60 = vadd.f32 %v4033_v7, %v4852_v24  ;;  %v4035_v40 = vadd.f32 %v2649_v54, %v1385_v52 }
 0x1b8   : > { %v2919_v48 = vadd.f32 %v4034_v53, %v4852_v24  ;;  %v2966_v26 = vmax.f32 %v2918_v1, 0.0 }
 0x1b9   : > { %v2917_v22 = vadd.f32 %v4035_v40, %v4852_v24  ;;  %v2964_v10 = vmax.f32 %v2916_v60, 0.0 }
 0x1ba   : > { %v2967_v50 = vmax.f32 %v2919_v48, 0.0  ;;  %v3862_v2 = vpop.f32.mrb[44].mxu1 }
 0x1bb   : > { %v2965_v28 = vmax.f32 %v2917_v22, 0.0  ;;  %v3990_v27 = vpop.f32.mrb[44].mxu0  ;;  %v1398_v43 = vpop.f32.mrb[45].mxu1 }
 0x1bc   : > { %v3572_v0 = vpack.c.bf16 %v2967_v50, %v2966_v26  ;;  %v4036_v46 = vadd.f32 %v3990_v27, %v3862_v2  ;;  %v2662_v12 = vpop.f32.mrb[45].mxu0  ;;  %v3863_v14 = vpop.f32.mrb[46].mxu1 }
 0x1bd   : > { %v3567_v30 = vpack.c.bf16 %v2965_v28, %v2964_v10  ;;  %v4037_v39 = vadd.f32 %v2662_v12, %v1398_v43  ;;  %v3991_v42 = vpop.f32.mrb[46].mxu0  ;;  %v1401_v4 = vpop.f32.mrb[47].mxu1 }
 0x1be   : > { %3605 = vst [vmem:[%s4861_s9 + $0xa8] sm:$0xff] %v3572_v0   ;;  %v2922_v34 = vadd.f32 %v4036_v46, %v4852_v24  ;;  %v4038_v47 = vadd.f32 %v3991_v42, %v3863_v14  ;;  %v2665_v13 = vpop.f32.mrb[47].mxu0 }
 0x1bf   : > { %3604 = vst [vmem:[%s4861_s9 + $0xa0] sm:$0xff] %v3567_v30   ;;  %v2920_v20 = vadd.f32 %v4037_v39, %v4852_v24  ;;  %v4039_v35 = vadd.f32 %v2665_v13, %v1401_v4 }
 0x1c0   : > { %v2923_v37 = vadd.f32 %v4038_v47, %v4852_v24  ;;  %v2970_v19 = vmax.f32 %v2922_v34, 0.0 }
 0x1c1   : > { %v2921_v58 = vadd.f32 %v4039_v35, %v4852_v24  ;;  %v2968_v61 = vmax.f32 %v2920_v20, 0.0 }
 0x1c2   : > { %v2971_v55 = vmax.f32 %v2923_v37, 0.0 }
 0x1c3   : > { %v2969_v29 = vmax.f32 %v2921_v58, 0.0 }
 0x1c4   : > { %v3582_v16 = vpack.c.bf16 %v2971_v55, %v2970_v19 }
 0x1c5   : > { %v3577_v38 = vpack.c.bf16 %v2969_v29, %v2968_v61 }
 0x1c6   : > { %3607 = vst [vmem:[%s4861_s9 + $0xb8] sm:$0xff] %v3582_v16  }
 0x1c7   : > { %3606 = vst [vmem:[%s4861_s9 + $0xb0] sm:$0xff] %v3577_v38  }
 0x1c8 PF: > { %s14_s17 = sadd.s32 1, %s4240_s17   ;;  %s4972_s15 = smov %s4236_s16 }
 0x1c9   : > { %p11_p7 = scmp.ge.s32.totalorder %s14_s17, 4   ;;  %s4973_s16 = smov %s4975_s18 }
 0x1cb   :  { %13 = sbr.rel (!%p11_p7) target bundleno = 2 (0x2), region = 69 }

// kernel: _lambda_.6
= control target key start
LH: loop header
LB: loop body
LE: loop exit
PB: predicated region body
PF: predicated region fallthrough
CT: control target
= control target key end

     0   :  { %s8143_s15 = smov 0   ;;  %s8145_s16 = smov 0   ;;  %s10146_s0 = inlined_call_operand.vmem [shape: bf16[1568,128], index: 0, kind: input, shape index: {}, may-alias: {0,1}]   ;;  %s10147_s1 = inlined_call_operand.vmem [shape: bf16[1568,128], index: 1, kind: input, shape index: {}, may-alias: {0,1}]   ;;  %s10148_s2 = inlined_call_operand.vmem [shape: bf16[1152,128], index: 2, kind: input, shape index: {}]   ;;  %s10149_s3 = inlined_call_operand.vmem [shape: f32[1,128], index: 3, kind: input, shape index: {}]   ;;  %s10150_s4 = inlined_call_operand.vmem [shape: bf16[784,128], index: 4, kind: output, shape index: {}]  }
   0x1   :  { %s8147_s17 = smov 0  }
   0x2 LB: > { %s26_s18 = sadd.s32 1, %s8110_s16  ;;  %p6246_p0 = scmp.ge.s32.totalorder %s8114_s17, 1  ;;  %s8114_s17 = sphi %s8147_s17, %s14_s17   ;;  %s8110_s16 = sphi %s8145_s16, %s10213_s16   ;;  %s8106_s15 = sphi %s8143_s15, %s10212_s15  }
   0x3   : > { %p28_p1 = scmp.ge.s32.totalorder %s26_s18, 2  ;;  %p212_p2 = scmp.lt.s32.totalorder %s8114_s17, 3 }
   0x5   : > { %s10215_s18 = smov (%p28_p1, %s26_s18), 0  ;;  %p213_p3 = pnand %p6246_p0, %p212_p2 }
   0x7   : > { %216 = sbr.rel (%p213_p3) target bundleno = 1164 (0x48c), region = 36 }
   0xe   : > { %v7980_v0 = vld [vmem:[%s10148_s2] sm:$0xff]   ;;  %v10151_v1 = vmov 0.0   ;;  %v7981_v2 = vld [vmem:[%s10148_s2 + $0x8] sm:$0xff]   ;;  %s6248_s23 = smul.u32 98, %s8106_s15  ;;  %vm8117_vm0 = vmmov 0   ;;  %v7982_v3 = vld [vmem:[%s10148_s2 + $0x10] sm:$0xff]  }
   0xf   : > { %6894 = vmatprep.subr.bf16.mxu0 %v10151_v1  ;;  %7938 = vmatprep.subr.bf16.mxu1 %v10151_v1  ;;  %v7983_v4 = vld [vmem:[%s10148_s2 + $0x18] sm:$0xff]   ;;  %v7984_v9 = vld [vmem:[%s10148_s2 + $0x20] sm:$0xff]   ;;  %v7985_v12 = vld [vmem:[%s10148_s2 + $0x28] sm:$0xff]   ;;  %vm1667_vm1 = vcmask 1046528   ;;  %vm949_vm2 = vsmask.f32 7424 }
  0x10   : > { %6895 = vmatpush3.bf16.msra.mxu0 %v7980_v0  ;;  %7946 = vmatpush3.bf16.msra.mxu1 %v7980_v0  ;;  %p253_p4 = scmp.lt.s32.totalorder %s6248_s23, 195  ;;  %v7986_v15 = vld [vmem:[%s10148_s2 + $0x30] sm:$0xff]   ;;  %v7987_v23 = vld [vmem:[%s10148_s2 + $0x38] sm:$0xff]   ;;  %v7990_v27 = vld [vmem:[%s10148_s2 + $0x80] sm:$0xff]   ;;  %s260_s9 = smul.u32 14, %s8106_s15  ;;  %vm2235_vm3 = vcmask 1043456  }
  0x11   : > { %6896 = vmatprep.subr.bf16.mxu0 %v10151_v1  ;;  %7939 = vmatprep.subr.bf16.mxu1 %v10151_v1  ;;  %v7991_v29 = vld [vmem:[%s10148_s2 + $0x40] sm:$0xff]   ;;  %v7994_v37 = vld [vmem:[%s10148_s2 + $0x88] sm:$0xff]   ;;  %v8000_v50 = vld [vmem:[%s10148_s2 + $0x90] sm:$0xff]   ;;  %vm2779_vm4 = vsmask.f32 3328  ;;  %vm3529_vm5 = vcmask 1042432  }
  0x12   : > { %6910 = vmatprep.mubr.msk.bf16.mxu0 %vm8117_vm0, %v10151_v1  ;;  %6962 = vmatprep.mubr.msk.bf16.mxu1 %vm8117_vm0, %v10151_v1  ;;  %s10217_s23 = smov (!%p253_p4, %s6248_s23), 195  ;;  %v7997_v40 = vld [vmem:[%s10148_s2 + $0x48] sm:$0xff]   ;;  %v8001_v51 = vld [vmem:[%s10148_s2 + $0x50] sm:$0xff]   ;;  %v8006_v61 = vld [vmem:[%s10148_s2 + $0x98] sm:$0xff]   ;;  %s263_s10 = sadd.s32 7, %s260_s9 }
  0x13   : > { %s6249_s26 = sshll.u32 %s10217_s23, 2  ;;  %v8007_v62 = vld [vmem:[%s10148_s2 + $0x58] sm:$0xff]   ;;  %s264_s11 = smul.u32 7, %s263_s10 }
  0x14   : > { %6897 = vmatpush3.bf16.msra.mxu0 %v7981_v2  ;;  %7947 = vmatpush3.bf16.msra.mxu1 %v7981_v2  ;;  %s8189_s5 = scalar_lea.vmem %s10146_s0, %s6249_s26 }
  0x15   : > { %6898 = vmatprep.subr.bf16.mxu0 %v10151_v1  ;;  %7940 = vmatprep.subr.bf16.mxu1 %v10151_v1  ;;  %v8192_v5 = vld [vmem:[%s8189_s5] sm:$0xff]   ;;  %v8197_v6 = vld [vmem:[%s8189_s5 + $0x68] sm:$0xff]   ;;  %v8205_v8 = vld [vmem:[%s8189_s5 + $0x70] sm:$0xff]   ;;  %p265_p5 = scmp.lt.s32.totalorder %s264_s11, 195 }
  0x16   : > { %480 = vst [vmem:[#allocation2] sm:$0xff] %v8192_v5  ;;  %v8201_v7 = vld [vmem:[%s8189_s5 + $0x8] sm:$0xff]   ;;  %493 = vst [vmem:[#allocation2 + $0x68] sm:$0xff] %v8197_v6  ;;  %v8215_v10 = vld [vmem:[%s8189_s5 + $0x10] sm:$0xff]   ;;  %v953_v24 = vshll.u32 %v8192_v5, 16  ;;  %v951_v31 = vshrl.u32 %v8192_v5, 16 }
  0x17   : > { %481 = vst [vmem:[#allocation2 + $0x8] sm:$0xff] %v8201_v7  ;;  %494 = vst [vmem:[#allocation2 + $0x70] sm:$0xff] %v8205_v8  ;;  %v8218_v11 = vld [vmem:[%s8189_s5 + $0x78] sm:$0xff]   ;;  %v8231_v14 = vld [vmem:[%s8189_s5 + $0x80] sm:$0xff]   ;;  %v1669_v17 = vrot.slane %v8201_v7, 1  ;;  %v1671_v19 = vrot.slane %v8215_v10, 1 }
  0x18   : > { %6899 = vmatpush3.bf16.msra.mxu0 %v7982_v3  ;;  %7948 = vmatpush3.bf16.msra.mxu1 %v7982_v3  ;;  %482 = vst [vmem:[#allocation2 + $0x10] sm:$0xff] %v8215_v10  ;;  %495 = vst [vmem:[#allocation2 + $0x78] sm:$0xff] %v8218_v11  ;;  %v8226_v13 = vld [vmem:[%s8189_s5 + $0x18] sm:$0xff]   ;;  %v8239_v16 = vld [vmem:[%s8189_s5 + $0x20] sm:$0xff]   ;;  %v958_v25 = vshll.u32 %v8201_v7, 16  ;;  %v8288_v33 = vrot.slane %v953_v24, 1 }
  0x19   : > { %6900 = vmatprep.subr.bf16.mxu0 %v10151_v1  ;;  %7941 = vmatprep.subr.bf16.mxu1 %v10151_v1  ;;  %483 = vst [vmem:[#allocation2 + $0x18] sm:$0xff] %v8226_v13  ;;  %496 = vst [vmem:[#allocation2 + $0x80] sm:$0xff] %v8231_v14  ;;  %v8245_v18 = vld [vmem:[%s8189_s5 + $0x88] sm:$0xff]   ;;  %v8254_v21 = vld [vmem:[%s8189_s5 + $0x90] sm:$0xff]   ;;  %v8259_v22 = vsel %vm1667_vm1, %v1669_v17, %v1671_v19  ;;  %v1673_v26 = vrot.slane %v8226_v13, 1  ;;  %v966_v34 = vshll.u32 %v8215_v10, 16 }
  0x1a   : > { %484 = vst [vmem:[#allocation2 + $0x20] sm:$0xff] %v8239_v16  ;;  %v8250_v20 = vld [vmem:[%s8189_s5 + $0x28] sm:$0xff]   ;;  %497 = vst [vmem:[#allocation2 + $0x88] sm:$0xff] %v8245_v18  ;;  %v8275_v28 = vld [vmem:[%s8189_s5 + $0x30] sm:$0xff]   ;;  %v8294_v35 = vrot.slane %v958_v25, 1  ;;  %v1675_v36 = vrot.slane %v8239_v16, 1 }
  0x1b   : > { %485 = vst [vmem:[#allocation2 + $0x28] sm:$0xff] %v8250_v20  ;;  %498 = vst [vmem:[#allocation2 + $0x90] sm:$0xff] %v8254_v21  ;;  %v8281_v30 = vld [vmem:[%s8189_s5 + $0x98] sm:$0xff]   ;;  %v8285_v32 = vsel %vm1667_vm1, %v1671_v19, %v1673_v26  ;;  %v974_v39 = vshll.u32 %v8226_v13, 16  ;;  %v8310_v41 = vld [vmem:[%s8189_s5 + $0xa0] sm:$0xff]   ;;  %v962_v42 = vshrl.u32 %v8201_v7, 16  ;;  %v956_v19 = vor.u32 %v8288_v33, %v951_v31 }
  0x1c   : > { %6901 = vmatpush3.bf16.msra.mxu0 %v7983_v4  ;;  %7949 = vmatpush3.bf16.msra.mxu1 %v7983_v4  ;;  %486 = vst [vmem:[#allocation2 + $0x30] sm:$0xff] %v8275_v28  ;;  %499 = vst [vmem:[#allocation2 + $0x98] sm:$0xff] %v8281_v30  ;;  %v8301_v38 = vld [vmem:[%s8189_s5 + $0x38] sm:$0xff]   ;;  %v8314_v43 = vsel %vm1667_vm1, %v1673_v26, %v1675_v36  ;;  %v8320_v44 = vld [vmem:[%s8189_s5 + $0x40] sm:$0xff]   ;;  %v8322_v45 = vrot.slane %v966_v34, 1  ;;  %v982_v47 = vshll.u32 %v8239_v16, 16 }
  0x1d   : > { %6902 = vmatprep.subr.bf16.mxu0 %v10151_v1  ;;  %7942 = vmatprep.subr.bf16.mxu1 %v10151_v1  ;;  %487 = vst [vmem:[#allocation2 + $0x38] sm:$0xff] %v8301_v38  ;;  %500 = vst [vmem:[#allocation2 + $0xa0] sm:$0xff] %v8310_v41  ;;  %v8328_v46 = vld [vmem:[%s8189_s5 + $0xa8] sm:$0xff]   ;;  %v970_v48 = vshrl.u32 %v8215_v10, 16  ;;  %v8335_v49 = vrot.slane %v974_v39, 1  ;;  %v978_v52 = vshrl.u32 %v8226_v13, 16 }
  0x1e   : > { %488 = vst [vmem:[#allocation2 + $0x40] sm:$0xff] %v8320_v44  ;;  %501 = vst [vmem:[#allocation2 + $0xa8] sm:$0xff] %v8328_v46  ;;  %v990_v53 = vshll.u32 %v8250_v20, 16  ;;  %v8347_v54 = vld [vmem:[%s8189_s5 + $0x48] sm:$0xff]   ;;  %v1677_v55 = vrot.slane %v8250_v20, 1  ;;  %v8352_v56 = vld [vmem:[%s8189_s5 + $0xb0] sm:$0xff]  }
  0x1f   : > { %v984_v57 = vrot.slane %v982_v47, 1  ;;  %489 = vst [vmem:[#allocation2 + $0x48] sm:$0xff] %v8347_v54  ;;  %v986_v58 = vshrl.u32 %v8239_v16, 16  ;;  %v998_v59 = vshll.u32 %v8275_v28, 16  ;;  %502 = vst [vmem:[#allocation2 + $0xb0] sm:$0xff] %v8352_v56  ;;  %v994_v0 = vshrl.u32 %v8250_v20, 16 }
  0x20   : > { %6903 = vmatpush3.bf16.msra.mxu0 %v7984_v9  ;;  %7950 = vmatpush3.bf16.msra.mxu1 %v7984_v9  ;;  %v8361_v60 = vsel %vm1667_vm1, %v1675_v36, %v1677_v55  ;;  %v992_v63 = vrot.slane %v990_v53, 1  ;;  %v8378_v2 = vld [vmem:[%s8189_s5 + $0x50] sm:$0xff]   ;;  %v1002_v3 = vshrl.u32 %v8275_v28, 16  ;;  %v8382_v4 = vld [vmem:[%s8189_s5 + $0xb8] sm:$0xff]   ;;  %v972_v24 = vor.u32 %v970_v48, %v8322_v45  ;;  %v8011_v25 = vld [vmem:[%s10148_s2 + $0x60] sm:$0xff]   ;;  %s10219_s11 = smov (!%p265_p5, %s264_s11), 195 }
  0x21   : > { %6904 = vmatprep.subr.bf16.mxu0 %v10151_v1  ;;  %7943 = vmatprep.subr.bf16.mxu1 %v10151_v1  ;;  %490 = vst [vmem:[#allocation2 + $0x50] sm:$0xff] %v8378_v2  ;;  %v1000_v9 = vrot.slane %v998_v59, 1  ;;  %503 = vst [vmem:[#allocation2 + $0xb8] sm:$0xff] %v8382_v4  ;;  %v980_v26 = vor.u32 %v978_v52, %v8335_v49  ;;  %v1679_v33 = vrot.slane %v8275_v28, 1  ;;  %v8410_v34 = vld [vmem:[%s8189_s5 + $0x60] sm:$0xff]   ;;  %v1010_v48 = vshrl.u32 %v8301_v38, 16 }
  0x22   : > { %v8416_v36 = vsel %vm949_vm2, %v956_v19, %v8294_v35  ;;  %v8424_v39 = vsel %vm949_vm2, %v972_v24, %v8335_v49  ;;  %492 = vst [vmem:[#allocation2 + $0x60] sm:$0xff] %v8410_v34  ;;  %v1014_v49 = vshll.u32 %v8320_v44, 16  ;;  %v8021_v52 = vld [vmem:[%s10148_s2 + $0xb0] sm:$0xff]   ;;  %v8026_v59 = vld [vmem:[%s10148_s2 + $0x78] sm:$0xff]   ;;  %s6250_s12 = sshll.u32 %s10219_s11, 2  ;;  %v1026_v24 = vshrl.u32 %v8347_v54, 16 }
  0x23   : > { %v8452_v47 = vsel %vm1667_vm1, %v1677_v55, %v1679_v33  ;;  %v1681_v55 = vrot.slane %v8301_v38, 1  ;;  %s8639_s14 = scalar_lea.vmem %s10147_s1, %s6250_s12 }
  0x24   : > { %6905 = vmatpush3.bf16.msra.mxu0 %v7985_v12  ;;  %7951 = vmatpush3.bf16.msra.mxu1 %v7985_v12  ;;  %v8010_v12 = vld [vmem:[%s10148_s2 + $0xa0] sm:$0xff]   ;;  %v8464_v53 = vrot.slane %v1014_v49, 1  ;;  %v8081_v49 = vld [vmem:[#allocation2 + $0x68] sm:$0xff] }
  0x25   : > { %6906 = vmatprep.subr.bf16.mxu0 %v10151_v1  ;;  %7944 = vmatprep.subr.bf16.mxu1 %v10151_v1 }
  0x28   : > { %6907 = vmatpush3.bf16.msra.mxu0 %v7986_v15  ;;  %7952 = vmatpush3.bf16.msra.mxu1 %v7986_v15  ;;  %v8025_v15 = vld [vmem:[%s8189_s5 + $0xc0] ss:$0 sps:$4 sm:$0xff]  }
  0x29   : > { %6908 = vmatprep.subr.bf16.mxu0 %v10151_v1  ;;  %7945 = vmatprep.subr.bf16.mxu1 %v10151_v1  ;;  %504 = vst [vmem:[#allocation2 + $0xc0] sm:$0xf] %v8025_v15 }
  0x2c   : > { %6909 = vmatpush3.bf16.msra.mxu0 %v7987_v23  ;;  %7953 = vmatpush3.bf16.msra.mxu1 %v7987_v23  ;;  %v964_v23 = vor.u32 %v962_v42, %v8294_v35  ;;  %v8017_v42 = vld [vmem:[%s10148_s2 + $0x68] sm:$0xff]  }
  0x2d   : > { %7126 = vmatprep.subr.bf16.mxu0 %v10151_v1  ;;  %7010 = vmatprep.subr.bf16.mxu1 %v10151_v1 }
  0x2f   : > { %6911 = vmatmul.mubr.bf16.vlgmr.msra.gmra.mrb[0].mxu0 %v8192_v5  ;;  %6963 = vmatmul.mubr.bf16.vlgmr.msra.gmra.mrb[0].mxu1 %v8197_v6  ;;  %v1006_v6 = vshll.u32 %v8301_v38, 16  ;;  %v1004_v5 = vor.u32 %v1002_v3, %v1000_v9  ;;  %v8041_v3 = vld [vmem:[%s10148_s2 + $0xf0] sm:$0xff]  }
  0x30   : > { %7127 = vmatpush3.bf16.msra.mxu0 %v7990_v27  ;;  %6914 = vmatprep.mubr.msk.bf16.mxu0 %vm8117_vm0, %v10151_v1  ;;  %v988_v27 = vor.u32 %v986_v58, %v984_v57  ;;  %v8474_v58 = vsel %vm1667_vm1, %v1679_v33, %v1681_v55  ;;  %v1034_v33 = vshrl.u32 %v8378_v2, 16 }
  0x31   : > { %6966 = vmatprep.mubr.msk.bf16.mxu1 %vm8117_vm0, %v10151_v1  ;;  %7011 = vmatpush3.bf16.msra.mxu1 %v7991_v29  ;;  %v996_v29 = vor.u32 %v994_v0, %v992_v63  ;;  %v1008_v31 = vrot.slane %v1006_v6, 1  ;;  %v8040_v0 = vld [vmem:[%s10148_s2 + $0x128] sm:$0xff]   ;;  %v1022_v6 = vshll.u32 %v8347_v54, 16 }
  0x32   : > { %7128 = vmatprep.subr.bf16.mxu0 %v10151_v1  ;;  %7012 = vmatprep.subr.bf16.mxu1 %v10151_v1  ;;  %v8438_v35 = vsel %vm949_vm2, %v988_v27, %v992_v63  ;;  %v8038_v63 = vld [vmem:[%s10148_s2 + $0x120] sm:$0xff]  }
  0x33   : > { %v1024_v19 = vrot.slane %v1022_v6, 1 }
  0x34   : > { %7129 = vmatpush3.bf16.msra.mxu0 %v7994_v37  ;;  %v8420_v37 = vsel %vm949_vm2, %v964_v23, %v8322_v45  ;;  %v8447_v45 = vsel %vm949_vm2, %v1004_v5, %v1008_v31 }
  0x35   : > { %7013 = vmatpush3.bf16.msra.mxu1 %v7997_v40  ;;  %7130 = vmatprep.subr.bf16.mxu0 %v10151_v1  ;;  %v8441_v40 = vsel %vm949_vm2, %v996_v29, %v1000_v9  ;;  %v8043_v9 = vld [vmem:[%s10148_s2 + $0xf8] sm:$0xff]   ;;  %v1685_v29 = vrot.slane %v8347_v54, 1 }
  0x36   : > { %7014 = vmatprep.subr.bf16.mxu1 %v10151_v1 }
  0x37   : > { %6915 = vmatmul.mubr.bf16.gmra.mrb[4].mxu0 %v8201_v7  ;;  %6967 = vmatmul.mubr.bf16.gmra.mrb[4].mxu1 %v8205_v8  ;;  %v8389_v8 = vld [vmem:[%s8189_s5 + $0x58] sm:$0xff]   ;;  %v8032_v7 = vld [vmem:[%s10148_s2 + $0x108] sm:$0xff]  }
  0x38   : > { %6918 = vmatprep.mubr.msk.bf16.mxu0 %vm8117_vm0, %v10151_v1  ;;  %6970 = vmatprep.mubr.msk.bf16.mxu1 %vm8117_vm0, %v10151_v1  ;;  %491 = vst [vmem:[#allocation2 + $0x58] sm:$0xff] %v8389_v8 }
  0x39   : > { %7131 = vmatpush3.bf16.msra.mxu0 %v8000_v50  ;;  %7015 = vmatpush3.bf16.msra.mxu1 %v8001_v51  ;;  %v1012_v50 = vor.u32 %v1010_v48, %v1008_v31  ;;  %v8020_v51 = vld [vmem:[%s10148_s2 + $0x70] sm:$0xff]   ;;  %v1050_v48 = vshrl.u32 %v8410_v34, 16 }
  0x3a   : > { %7132 = vmatprep.subr.bf16.mxu0 %v10151_v1  ;;  %7016 = vmatprep.subr.bf16.mxu1 %v10151_v1 }
  0x3d   : > { %7133 = vmatpush3.bf16.msra.mxu0 %v8006_v61  ;;  %7017 = vmatpush3.bf16.msra.mxu1 %v8007_v62  ;;  %v8027_v61 = vld [vmem:[%s10148_s2 + $0xb8] sm:$0xff]  }
  0x3e   : > { %7134 = vmatprep.subr.bf16.mxu0 %v10151_v1  ;;  %7018 = vmatprep.subr.bf16.mxu1 %v10151_v1  ;;  %v8036_v62 = vld [vmem:[%s10148_s2 + $0x118] sm:$0xff]  }
  0x3f   : > { %6919 = vmatmul.mubr.bf16.gmra.mrb[8].mxu0 %v8215_v10  ;;  %6971 = vmatmul.mubr.bf16.gmra.mrb[8].mxu1 %v8218_v11  ;;  %v8016_v10 = vld [vmem:[%s10148_s2 + $0xa8] sm:$0xff]   ;;  %v8435_v11 = vsel %vm949_vm2, %v980_v26, %v984_v57  ;;  %v8471_v57 = vsel %vm949_vm2, %v1012_v50, %v8464_v53  ;;  %v1028_v26 = vor.u32 %v1026_v24, %v1024_v19  ;;  %v1054_v50 = vshll.u32 %v8081_v49, 16 }
  0x40   : > { %6922 = vmatprep.mubr.msk.bf16.mxu0 %vm8117_vm0, %v10151_v1  ;;  %6974 = vmatprep.mubr.msk.bf16.mxu1 %vm8117_vm0, %v10151_v1 }
  0x41   : > { %7135 = vmatpush3.bf16.msra.mxu0 %v8010_v12  ;;  %7019 = vmatpush3.bf16.msra.mxu1 %v8011_v25  ;;  %v8045_v12 = vld [vmem:[%s10148_s2 + $0x138] sm:$0xff]   ;;  %v1030_v25 = vshll.u32 %v8378_v2, 16 }
  0x42   : > { %7136 = vmatprep.subr.bf16.mxu0 %v10151_v1  ;;  %7020 = vmatprep.subr.bf16.mxu1 %v10151_v1 }
  0x43   : > { %v1032_v27 = vrot.slane %v1030_v25, 1 }
  0x45   : > { %7137 = vmatpush3.bf16.msra.mxu0 %v8016_v10  ;;  %7021 = vmatpush3.bf16.msra.mxu1 %v8017_v42  ;;  %v1033_v5 = vsel %vm949_vm2, %v1028_v26, %v1032_v27 }
  0x46   : > { %7022 = vmatprep.subr.bf16.mxu1 %v10151_v1  ;;  %7138 = vmatprep.subr.bf16.mxu0 %v10151_v1 }
  0x47   : > { %6923 = vmatmul.mubr.bf16.gmra.mrb[12].mxu0 %v8226_v13  ;;  %6975 = vmatmul.mubr.bf16.gmra.mrb[12].mxu1 %v8231_v14  ;;  %v1683_v13 = vrot.slane %v8320_v44, 1 }
  0x48   : > { %6926 = vmatprep.mubr.msk.bf16.mxu0 %vm8117_vm0, %v10151_v1  ;;  %6978 = vmatprep.mubr.msk.bf16.mxu1 %vm8117_vm0, %v10151_v1 }
  0x49   : > { %7023 = vmatpush3.bf16.msra.mxu1 %v8020_v51  ;;  %7139 = vmatpush3.bf16.msra.mxu0 %v8021_v52  ;;  %v8496_v14 = vsel %vm1667_vm1, %v1681_v55, %v1683_v13  ;;  %v1686_v31 = vsel %vm1667_vm1, %v1683_v13, %v1685_v29  ;;  %v1056_v52 = vrot.slane %v1054_v50, 1 }
  0x4a   : > { %7024 = vmatprep.subr.bf16.mxu1 %v10151_v1  ;;  %7140 = vmatprep.subr.bf16.mxu0 %v10151_v1 }
  0x4d   : > { %7025 = vmatpush3.bf16.msra.mxu1 %v8026_v59  ;;  %7141 = vmatpush3.bf16.msra.mxu0 %v8027_v61 }
  0x4e   : > { %7242 = vmatprep.subr.bf16.mxu1 %v10151_v1  ;;  %7358 = vmatprep.subr.bf16.mxu0 %v10151_v1 }
  0x4f   : > { %6927 = vmatmul.mubr.bf16.gmra.mrb[16].mxu0 %v8239_v16  ;;  %6979 = vmatmul.mubr.bf16.gmra.mrb[16].mxu1 %v8245_v18  ;;  %v562_v16 = vld [vmem:[#allocation2 + $0xc0] sm:$0xf] }
  0x50   : > { %6930 = vmatprep.mubr.msk.bf16.mxu0 %vm8117_vm0, %v10151_v1  ;;  %6982 = vmatprep.mubr.msk.bf16.mxu1 %vm8117_vm0, %v10151_v1  ;;  %v8029_v18 = vld [vmem:[%s10148_s2 + $0xc0] sm:$0xff]  }
  0x57   : > { %6931 = vmatmul.mubr.bf16.gmra.mrb[20].mxu0 %v8250_v20  ;;  %6983 = vmatmul.mubr.bf16.gmra.mrb[20].mxu1 %v8254_v21  ;;  %v1601_v20 = vld [vmem:[#allocation2] sm:$0xfe] }
  0x58   : > { %6934 = vmatprep.mubr.msk.bf16.mxu0 %vm8117_vm0, %v10151_v1  ;;  %6986 = vmatprep.mubr.msk.bf16.mxu1 %vm8117_vm0, %v10151_v1  ;;  %v1668_v21 = vrot.slane %v1601_v20, 1  ;;  %v8083_v20 = vld [vmem:[#allocation2 + $0x78] sm:$0xff] }
  0x5f   : > { %6935 = vmatmul.mubr.bf16.gmra.mrb[24].mxu0 %v8275_v28  ;;  %6987 = vmatmul.mubr.bf16.gmra.mrb[24].mxu1 %v8281_v30  ;;  %v8031_v28 = vld [vmem:[%s10148_s2 + $0xc8] sm:$0xff]   ;;  %v1670_v30 = vsel %vm1667_vm1, %v1668_v21, %v1669_v17  ;;  %v8035_v17 = vld [vmem:[%s10148_s2 + $0xd8] sm:$0xff]   ;;  %v1070_v21 = vshll.u32 %v8083_v20, 16 }
  0x60   : > { %6938 = vmatprep.mubr.msk.bf16.mxu0 %vm8117_vm0, %v10151_v1  ;;  %6990 = vmatprep.mubr.msk.bf16.mxu1 %vm8117_vm0, %v10151_v1 }
  0x67   : > { %6939 = vmatmul.mubr.bf16.gmra.mrb[28].mxu0 %v8301_v38  ;;  %6991 = vmatmul.mubr.bf16.gmra.mrb[28].mxu1 %v8310_v41  ;;  %v8030_v38 = vld [vmem:[%s10148_s2 + $0x100] sm:$0xff]   ;;  %v8033_v41 = vld [vmem:[%s10148_s2 + $0xd0] sm:$0xff]  }
  0x68   : > { %6942 = vmatprep.mubr.msk.bf16.mxu0 %vm8117_vm0, %v10151_v1  ;;  %6994 = vmatprep.mubr.msk.bf16.mxu1 %vm8117_vm0, %v10151_v1 }
  0x6f   : > { %6943 = vmatmul.mubr.bf16.gmra.mrb[32].mxu0 %v8320_v44  ;;  %6995 = vmatmul.mubr.bf16.gmra.mrb[32].mxu1 %v8328_v46  ;;  %v8034_v46 = vld [vmem:[%s10148_s2 + $0x110] sm:$0xff]  }
  0x70   : > { %6946 = vmatprep.mubr.msk.bf16.mxu0 %vm8117_vm0, %v10151_v1  ;;  %6998 = vmatprep.mubr.msk.bf16.mxu1 %vm8117_vm0, %v10151_v1 }
  0x77   : > { %6947 = vmatmul.mubr.bf16.gmra.mrb[36].mxu0 %v8347_v54  ;;  %6999 = vmatmul.mubr.bf16.gmra.mrb[36].mxu1 %v8352_v56  ;;  %v8037_v56 = vld [vmem:[%s10148_s2 + $0xe0] sm:$0xff]  }
  0x78   : > { %6950 = vmatprep.mubr.msk.bf16.mxu0 %vm8117_vm0, %v10151_v1  ;;  %7002 = vmatprep.mubr.msk.bf16.mxu1 %vm8117_vm0, %v10151_v1 }
  0x7f   : > { %6951 = vmatmul.mubr.bf16.gmra.mrb[40].mxu0 %v8378_v2  ;;  %7003 = vmatmul.mubr.bf16.gmra.mrb[40].mxu1 %v8382_v4 }
  0x80   : > { %6954 = vmatprep.mubr.msk.bf16.mxu0 %vm8117_vm0, %v10151_v1  ;;  %7006 = vmatprep.mubr.msk.bf16.mxu1 %vm8117_vm0, %v10151_v1 }
  0x87   : > { %6955 = vmatmul.mubr.bf16.gmra.mrb[44].mxu0 %v8389_v8  ;;  %7007 = vmatmul.mubr.bf16.gmra.mrb[44].mxu1 %v562_v16 }
  0x88   : > { %6958 = vmatprep.mubr.msk.bf16.mxu0 %vm8117_vm0, %v10151_v1  ;;  %7026 = vmatprep.mubr.msk.bf16.mxu1 %vm8117_vm0, %v10151_v1 }
  0x8f   : > { %6959 = vmatmul.mubr.bf16.gmra.mrb[48].mxu0 %v8410_v34  ;;  %7027 = vmatmul.mubr.bf16.vlgmr.msra.gmra.mrb[48].mxu1 %v8416_v36  ;;  %v1038_v36 = vshll.u32 %v8389_v8, 16 }
  0x90   : > { %7030 = vmatprep.mubr.msk.bf16.mxu1 %vm8117_vm0, %v10151_v1  ;;  %7142 = vmatprep.mubr.msk.bf16.mxu0 %vm8117_vm0, %v10151_v1 }
  0x91   : > { %7243 = vmatpush3.bf16.msra.mxu1 %v8029_v18  ;;  %v1040_v54 = vrot.slane %v1038_v36, 1 }
  0x92   : > { %7244 = vmatprep.subr.bf16.mxu1 %v10151_v1 }
  0x95   : > { %7245 = vmatpush3.bf16.msra.mxu1 %v8031_v28 }
  0x96   : > { %7246 = vmatprep.subr.bf16.mxu1 %v10151_v1 }
  0x97   : > { %7031 = vmatmul.mubr.bf16.gmra.mrb[52].mxu1 %v8420_v37  ;;  %7143 = vmatmul.mubr.bf16.vlgmr.msra.gmra.mrb[52].mxu0 %v1670_v30  ;;  %v1036_v37 = vor.u32 %v1034_v33, %v1032_v27  ;;  %v1072_v30 = vrot.slane %v1070_v21, 1 }
  0x98   : > { %7359 = vmatpush3.bf16.msra.mxu0 %v8030_v38  ;;  %7034 = vmatprep.mubr.msk.bf16.mxu1 %vm8117_vm0, %v10151_v1 }
  0x99   : > { %7146 = vmatprep.mubr.msk.bf16.mxu0 %vm8117_vm0, %v10151_v1  ;;  %7360 = vmatprep.subr.bf16.mxu0 %v10151_v1 }
  0x9a   : > { %7247 = vmatpush3.bf16.msra.mxu1 %v8033_v41 }
  0x9b   : > { %7248 = vmatprep.subr.bf16.mxu1 %v10151_v1 }
  0x9c   : > { %7361 = vmatpush3.bf16.msra.mxu0 %v8032_v7 }
  0x9d   : > { %7362 = vmatprep.subr.bf16.mxu0 %v10151_v1 }
  0x9e   : > { %7249 = vmatpush3.bf16.msra.mxu1 %v8035_v17  ;;  %v1074_v17 = vshrl.u32 %v8083_v20, 16 }
  0x9f   : > { %7035 = vmatmul.mubr.bf16.gmra.mrb[56].mxu1 %v8424_v39  ;;  %7147 = vmatmul.mubr.bf16.gmra.mrb[56].mxu0 %v8259_v22  ;;  %v8039_v22 = vld [vmem:[%s10148_s2 + $0xe8] sm:$0xff]   ;;  %v1687_v39 = vrot.slane %v8378_v2, 1  ;;  %v1689_v2 = vrot.slane %v8389_v8, 1 }
  0xa0   : > { %7038 = vmatprep.mubr.msk.bf16.mxu1 %vm8117_vm0, %v10151_v1  ;;  %7150 = vmatprep.mubr.msk.bf16.mxu0 %vm8117_vm0, %v10151_v1 }
  0xa1   : > { %7363 = vmatpush3.bf16.msra.mxu0 %v8034_v46  ;;  %7250 = vmatprep.subr.bf16.mxu1 %v10151_v1  ;;  %v1688_v10 = vsel %vm1667_vm1, %v1685_v29, %v1687_v39  ;;  %v8084_v46 = vld [vmem:[#allocation2 + $0x80] sm:$0xff] }
  0xa2   : > { %7364 = vmatprep.subr.bf16.mxu0 %v10151_v1  ;;  %7251 = vmatpush3.bf16.msra.mxu1 %v8037_v56  ;;  %v1078_v56 = vshll.u32 %v8084_v46, 16  ;;  %v1699_v29 = vrot.slane %v8084_v46, 1 }
  0xa3   : > { %7252 = vmatprep.subr.bf16.mxu1 %v10151_v1 }
  0xa5   : > { %7365 = vmatpush3.bf16.msra.mxu0 %v8036_v62  ;;  %v1076_v62 = vor.u32 %v1074_v17, %v1072_v30 }
  0xa6   : > { %7366 = vmatprep.subr.bf16.mxu0 %v10151_v1  ;;  %7253 = vmatpush3.bf16.msra.mxu1 %v8039_v22  ;;  %v1080_v22 = vrot.slane %v1078_v56, 1 }
  0xa7   : > { %7039 = vmatmul.mubr.bf16.gmra.mrb[60].mxu1 %v8435_v11  ;;  %7151 = vmatmul.mubr.bf16.gmra.mrb[60].mxu0 %v8285_v32  ;;  %v8042_v32 = vld [vmem:[%s10148_s2 + $0x130] sm:$0xff]   ;;  %v1042_v11 = vshrl.u32 %v8389_v8, 16  ;;  %v1691_v8 = vrot.slane %v8410_v34, 1 }
  0xa8   : > { %7042 = vmatprep.mubr.msk.bf16.mxu1 %vm8117_vm0, %v10151_v1  ;;  %7154 = vmatprep.mubr.msk.bf16.mxu0 %vm8117_vm0, %v10151_v1  ;;  %v1081_v6 = vsel %vm949_vm2, %v1076_v62, %v1080_v22 }
  0xa9   : > { %7367 = vmatpush3.bf16.msra.mxu0 %v8038_v63  ;;  %7254 = vmatprep.subr.bf16.mxu1 %v10151_v1  ;;  %v1692_v55 = vsel %vm1667_vm1, %v1689_v2, %v1691_v8  ;;  %v1697_v63 = vrot.slane %v8083_v20, 1 }
  0xaa   : > { %7368 = vmatprep.subr.bf16.mxu0 %v10151_v1  ;;  %7255 = vmatpush3.bf16.msra.mxu1 %v8041_v3 }
  0xab   : > { %7256 = vmatprep.subr.bf16.mxu1 %v10151_v1 }
  0xad   : > { %7369 = vmatpush3.bf16.msra.mxu0 %v8040_v0 }
  0xae   : > { %7370 = vmatprep.subr.bf16.mxu0 %v10151_v1  ;;  %7257 = vmatpush3.bf16.msra.mxu1 %v8043_v9 }
  0xaf   : > { %7043 = vmatmul.mubr.bf16.gmra.mrb[64].mxu1 %v8438_v35  ;;  %7155 = vmatmul.mubr.bf16.gmra.mrb[64].mxu0 %v8314_v43  ;;  %v8044_v43 = vld [vmem:[%s8639_s14] ss:$0 sps:$4 sm:$0xff]   ;;  %v1046_v35 = vshll.u32 %v8410_v34, 16 }
  0xb0   : > { %7046 = vmatprep.mubr.msk.bf16.mxu1 %vm8117_vm0, %v10151_v1  ;;  %7158 = vmatprep.mubr.msk.bf16.mxu0 %vm8117_vm0, %v10151_v1  ;;  %534 = vst [vmem:[#allocation2 + $0xc0] sm:$0xf0] %v8044_v43 }
  0xb1   : > { %7371 = vmatpush3.bf16.msra.mxu0 %v8042_v32  ;;  %7474 = vmatprep.subr.bf16.mxu1 %v10151_v1  ;;  %v1048_v42 = vrot.slane %v1046_v35, 1 }
  0xb2   : > { %7372 = vmatprep.subr.bf16.mxu0 %v10151_v1 }
  0xb3   : > { %v1052_v51 = vor.u32 %v1050_v48, %v1048_v42 }
  0xb5   : > { %7373 = vmatpush3.bf16.msra.mxu0 %v8045_v12 }
  0xb6   : > { %7590 = vmatprep.subr.bf16.mxu0 %v10151_v1 }
  0xb7   : > { %7047 = vmatmul.mubr.bf16.gmra.mrb[68].mxu1 %v8441_v40  ;;  %7159 = vmatmul.mubr.bf16.gmra.mrb[68].mxu0 %v8361_v60  ;;  %v1018_v60 = vshrl.u32 %v8320_v44, 16  ;;  %v1041_v44 = vsel %vm949_vm2, %v1036_v37, %v1040_v54  ;;  %v1044_v40 = vor.u32 %v1042_v11, %v1040_v54  ;;  %v8086_v11 = vld [vmem:[#allocation2 + $0x90] sm:$0xff] }
  0xb8   : > { %7050 = vmatprep.mubr.msk.bf16.mxu1 %vm8117_vm0, %v10151_v1  ;;  %7162 = vmatprep.mubr.msk.bf16.mxu0 %vm8117_vm0, %v10151_v1  ;;  %v1094_v35 = vshll.u32 %v8086_v11, 16 }
  0xb9   : > { %v1020_v15 = vor.u32 %v1018_v60, %v8464_v53  ;;  %v1057_v53 = vsel %vm949_vm2, %v1052_v51, %v1056_v52 }
  0xbb   : > { %v1025_v23 = vsel %vm949_vm2, %v1020_v15, %v1024_v19  ;;  %v1082_v15 = vshrl.u32 %v8084_v46, 16  ;;  %v8085_v19 = vld [vmem:[#allocation2 + $0x88] sm:$0xff]  ;;  %v8088_v46 = vld [vmem:[#allocation2 + $0xa0] sm:$0xff] }
  0xbc   : > { %v1110_v56 = vshll.u32 %v8088_v46, 16 }
  0xbd   : > { %v1084_v26 = vor.u32 %v1082_v15, %v1080_v22 }
  0xbf   : > { %7051 = vmatmul.mubr.bf16.gmra.mrb[72].mxu1 %v8447_v45  ;;  %7163 = vmatmul.mubr.bf16.gmra.mrb[72].mxu0 %v8452_v47  ;;  %v1049_v45 = vsel %vm949_vm2, %v1044_v40, %v1048_v42  ;;  %v1690_v47 = vsel %vm1667_vm1, %v1687_v39, %v1689_v2  ;;  %v1700_v39 = vsel %vm1667_vm1, %v1697_v63, %v1699_v29 }
  0xc0   : > { %7054 = vmatprep.mubr.msk.bf16.mxu1 %vm8117_vm0, %v10151_v1  ;;  %7166 = vmatprep.mubr.msk.bf16.mxu0 %vm8117_vm0, %v10151_v1 }
  0xc7   : > { %7055 = vmatmul.mubr.bf16.gmra.mrb[76].mxu1 %v8471_v57  ;;  %7167 = vmatmul.mubr.bf16.gmra.mrb[76].mxu0 %v8474_v58  ;;  %v1058_v57 = vshrl.u32 %v8081_v49, 16  ;;  %v8082_v58 = vld [vmem:[#allocation2 + $0x70] sm:$0xff] }
  0xc8   : > { %7058 = vmatprep.mubr.msk.bf16.mxu1 %vm8117_vm0, %v10151_v1  ;;  %7170 = vmatprep.mubr.msk.bf16.mxu0 %vm8117_vm0, %v10151_v1  ;;  %v1062_v59 = vshll.u32 %v8082_v58, 16  ;;  %v1066_v18 = vshrl.u32 %v8082_v58, 16  ;;  %v1695_v38 = vrot.slane %v8082_v58, 1  ;;  %v8087_v58 = vld [vmem:[#allocation2 + $0x98] sm:$0xff] }
  0xc9   : > { %v1060_v61 = vor.u32 %v1058_v57, %v1056_v52  ;;  %v1098_v57 = vshrl.u32 %v8086_v11, 16  ;;  %v1106_v17 = vshrl.u32 %v8087_v58, 16 }
  0xca   : > { %v1064_v13 = vrot.slane %v1062_v59, 1  ;;  %v1698_v9 = vsel %vm1667_vm1, %v1695_v38, %v1697_v63  ;;  %v1102_v59 = vshll.u32 %v8087_v58, 16 }
  0xcc   : > { %v1065_v34 = vsel %vm949_vm2, %v1060_v61, %v1064_v13  ;;  %v1068_v28 = vor.u32 %v1066_v18, %v1064_v13 }
  0xce   : > { %v1073_v41 = vsel %vm949_vm2, %v1068_v28, %v1072_v30 }
  0xcf   : > { %7059 = vmatmul.mubr.bf16.gmra.mrb[80].mxu1 %v1025_v23  ;;  %7171 = vmatmul.mubr.bf16.gmra.mrb[80].mxu0 %v8496_v14  ;;  %v1693_v14 = vrot.slane %v8081_v49, 1  ;;  %v1086_v23 = vshll.u32 %v8085_v19, 16 }
  0xd0   : > { %7062 = vmatprep.mubr.msk.bf16.mxu1 %vm8117_vm0, %v10151_v1  ;;  %7174 = vmatprep.mubr.msk.bf16.mxu0 %vm8117_vm0, %v10151_v1 }
  0xd1   : > { %v1694_v16 = vsel %vm1667_vm1, %v1691_v8, %v1693_v14  ;;  %v1696_v7 = vsel %vm1667_vm1, %v1693_v14, %v1695_v38  ;;  %v1088_v27 = vrot.slane %v1086_v23, 1 }
  0xd3   : > { %v1089_v54 = vsel %vm949_vm2, %v1084_v26, %v1088_v27 }
  0xd7   : > { %7063 = vmatmul.mubr.bf16.gmra.mrb[84].mxu1 %v1033_v5  ;;  %7175 = vmatmul.mubr.bf16.gmra.mrb[84].mxu0 %v1686_v31 }
  0xd8   : > { %7066 = vmatprep.mubr.msk.bf16.mxu1 %vm8117_vm0, %v10151_v1  ;;  %7178 = vmatprep.mubr.msk.bf16.mxu0 %vm8117_vm0, %v10151_v1 }
  0xdf   : > { %7067 = vmatmul.mubr.bf16.gmra.mrb[88].mxu1 %v1041_v44  ;;  %7179 = vmatmul.mubr.bf16.gmra.mrb[88].mxu0 %v1688_v10  ;;  %v1090_v10 = vshrl.u32 %v8085_v19, 16 }
  0xe0   : > { %7070 = vmatprep.mubr.msk.bf16.mxu1 %vm8117_vm0, %v10151_v1  ;;  %7182 = vmatprep.mubr.msk.bf16.mxu0 %vm8117_vm0, %v10151_v1 }
  0xe1   : > { %v1092_v2 = vor.u32 %v1090_v10, %v1088_v27  ;;  %v1114_v27 = vshrl.u32 %v8088_v46, 16 }
  0xe7   : > { %7071 = vmatmul.mubr.bf16.gmra.mrb[92].mxu1 %v1049_v45  ;;  %7183 = vmatmul.mubr.bf16.gmra.mrb[92].mxu0 %v1690_v47  ;;  %v1096_v45 = vrot.slane %v1094_v35, 1  ;;  %v1701_v47 = vrot.slane %v8085_v19, 1 }
  0xe8   : > { %7074 = vmatprep.mubr.msk.bf16.mxu1 %vm8117_vm0, %v10151_v1  ;;  %7186 = vmatprep.mubr.msk.bf16.mxu0 %vm8117_vm0, %v10151_v1 }
  0xe9   : > { %v1097_v8 = vsel %vm949_vm2, %v1092_v2, %v1096_v45  ;;  %v1100_v14 = vor.u32 %v1098_v57, %v1096_v45 }
  0xef   : > { %7075 = vmatmul.mubr.bf16.gmra.mrb[96].mxu1 %v1057_v53  ;;  %7187 = vmatmul.mubr.bf16.gmra.mrb[96].mxu0 %v1692_v55  ;;  %v1702_v53 = vsel %vm1667_vm1, %v1699_v29, %v1701_v47  ;;  %v8089_v29 = vld [vmem:[#allocation2 + $0xa8] sm:$0xff] }
  0xf0   : > { %7078 = vmatprep.mubr.msk.bf16.mxu1 %vm8117_vm0, %v10151_v1  ;;  %7190 = vmatprep.mubr.msk.bf16.mxu0 %vm8117_vm0, %v10151_v1 }
  0xf7   : > { %7079 = vmatmul.mubr.bf16.gmra.mrb[100].mxu1 %v1065_v34  ;;  %7191 = vmatmul.mubr.bf16.gmra.mrb[100].mxu0 %v1694_v16  ;;  %v1104_v34 = vrot.slane %v1102_v59, 1  ;;  %v1703_v16 = vrot.slane %v8086_v11, 1  ;;  %v1707_v11 = vrot.slane %v8088_v46, 1 }
  0xf8   : > { %7082 = vmatprep.mubr.msk.bf16.mxu1 %vm8117_vm0, %v10151_v1  ;;  %7194 = vmatprep.mubr.msk.bf16.mxu0 %vm8117_vm0, %v10151_v1 }
  0xf9   : > { %v1105_v38 = vsel %vm949_vm2, %v1100_v14, %v1104_v34  ;;  %v1108_v63 = vor.u32 %v1106_v17, %v1104_v34  ;;  %v1709_v14 = vrot.slane %v8089_v29, 1 }
  0xfb   : > { %v1710_v17 = vsel %vm1667_vm1, %v1707_v11, %v1709_v14 }
  0xff   : > { %7083 = vmatmul.mubr.bf16.gmra.mrb[104].mxu1 %v1073_v41  ;;  %7195 = vmatmul.mubr.bf16.gmra.mrb[104].mxu0 %v1696_v7  ;;  %v1704_v41 = vsel %vm1667_vm1, %v1701_v47, %v1703_v16 }
 0x100   : > { %7086 = vmatprep.mubr.msk.bf16.mxu1 %vm8117_vm0, %v10151_v1  ;;  %7198 = vmatprep.mubr.msk.bf16.mxu0 %vm8117_vm0, %v10151_v1 }
 0x102   : > { %v8724_v0 = vpop.f32.mrb[0].mxu0  ;;  %v8726_v3 = vpop.f32.mrb[0].mxu1 }
 0x103   : > { %v6912_v32 = vpop.f32.mrb[1].mxu0  ;;  %v6964_v43 = vpop.f32.mrb[1].mxu1 }
 0x104   : > { %v8728_v60 = vpop.f32.mrb[2].mxu0  ;;  %v8732_v12 = vpop.f32.mrb[2].mxu1  ;;  %v1112_v32 = vrot.slane %v1110_v56, 1  ;;  %v1705_v43 = vrot.slane %v8087_v58, 1 }
 0x105   : > { %v6913_v24 = vpop.f32.mrb[3].mxu0  ;;  %v6965_v25 = vpop.f32.mrb[3].mxu1 }
 0x106   : > { %v1113_v24 = vsel %vm949_vm2, %v1108_v63, %v1112_v32  ;;  %v1706_v25 = vsel %vm1667_vm1, %v1703_v16, %v1705_v43 }
 0x107   : > { %7087 = vmatmul.mubr.bf16.gmra.mrb[108].mxu1 %v1081_v6  ;;  %7199 = vmatmul.mubr.bf16.gmra.mrb[108].mxu0 %v1698_v9 }
 0x108   : > { %7090 = vmatprep.mubr.msk.bf16.mxu1 %vm8117_vm0, %v10151_v1  ;;  %7202 = vmatprep.mubr.msk.bf16.mxu0 %vm8117_vm0, %v10151_v1 }
 0x10a   : > { %v8738_v5 = vpop.f32.mrb[4].mxu0  ;;  %v8740_v31 = vpop.f32.mrb[4].mxu1 }
 0x10b   : > { %v6916_v33 = vpop.f32.mrb[5].mxu0  ;;  %v6968_v36 = vpop.f32.mrb[5].mxu1 }
 0x10c   : > { %v8742_v37 = vpop.f32.mrb[6].mxu0  ;;  %v8746_v44 = vpop.f32.mrb[6].mxu1  ;;  %v1118_v33 = vshll.u32 %v8089_v29, 16 }
 0x10d   : > { %v6917_v40 = vpop.f32.mrb[7].mxu0  ;;  %v6969_v42 = vpop.f32.mrb[7].mxu1 }
 0x10e   : > { %v1120_v10 = vrot.slane %v1118_v33, 1 }
 0x10f   : > { %7091 = vmatmul.mubr.bf16.gmra.mrb[112].mxu1 %v1089_v54  ;;  %7203 = vmatmul.mubr.bf16.gmra.mrb[112].mxu0 %v1700_v39  ;;  %v1116_v39 = vor.u32 %v1114_v27, %v1112_v32 }
 0x110   : > { %7094 = vmatprep.mubr.msk.bf16.mxu1 %vm8117_vm0, %v10151_v1  ;;  %7206 = vmatprep.mubr.msk.bf16.mxu0 %vm8117_vm0, %v10151_v1 }
 0x111   : > { %v1121_v47 = vsel %vm949_vm2, %v1116_v39, %v1120_v10  ;;  %v8091_v39 = vld [vmem:[#allocation2 + $0xb8] sm:$0xff] }
 0x112   : > { %v8752_v48 = vpop.f32.mrb[8].mxu0  ;;  %v8754_v49 = vpop.f32.mrb[8].mxu1 }
 0x113   : > { %v6920_v50 = vpop.f32.mrb[9].mxu0  ;;  %v6972_v51 = vpop.f32.mrb[9].mxu1 }
 0x114   : > { %v8756_v52 = vpop.f32.mrb[10].mxu0  ;;  %v8760_v55 = vpop.f32.mrb[10].mxu1  ;;  %v1708_v50 = vsel %vm1667_vm1, %v1705_v43, %v1707_v11 }
 0x115   : > { %v6921_v61 = vpop.f32.mrb[11].mxu0  ;;  %v6973_v13 = vpop.f32.mrb[11].mxu1 }
 0x117   : > { %7095 = vmatmul.mubr.bf16.gmra.mrb[116].mxu1 %v1097_v8  ;;  %7207 = vmatmul.mubr.bf16.gmra.mrb[116].mxu0 %v1702_v53  ;;  %v1122_v8 = vshrl.u32 %v8089_v29, 16  ;;  %v8090_v53 = vld [vmem:[#allocation2 + $0xb0] sm:$0xff] }
 0x118   : > { %7098 = vmatprep.mubr.msk.bf16.mxu1 %vm8117_vm0, %v10151_v1  ;;  %7210 = vmatprep.mubr.msk.bf16.mxu0 %vm8117_vm0, %v10151_v1  ;;  %v1126_v57 = vshll.u32 %v8090_v53, 16  ;;  %v1130_v56 = vshrl.u32 %v8090_v53, 16 }
 0x119   : > { %v1124_v61 = vor.u32 %v1122_v8, %v1120_v10  ;;  %v1138_v10 = vshrl.u32 %v8091_v39, 16  ;;  %v1713_v8 = vrot.slane %v8091_v39, 1 }
 0x11a   : > { %v8766_v18 = vpop.f32.mrb[12].mxu0  ;;  %v8768_v20 = vpop.f32.mrb[12].mxu1  ;;  %v1128_v13 = vrot.slane %v1126_v57, 1 }
 0x11b   : > { %v6924_v21 = vpop.f32.mrb[13].mxu0  ;;  %v6976_v28 = vpop.f32.mrb[13].mxu1 }
 0x11c   : > { %v8770_v30 = vpop.f32.mrb[14].mxu0  ;;  %v8774_v7 = vpop.f32.mrb[14].mxu1  ;;  %v1132_v32 = vor.u32 %v1130_v56, %v1128_v13 }
 0x11d   : > { %v6925_v62 = vpop.f32.mrb[15].mxu0  ;;  %v6977_v22 = vpop.f32.mrb[15].mxu1 }
 0x11e   : > { %v1134_v62 = vshll.u32 %v8382_v4, 16 }
 0x11f   : > { %7099 = vmatmul.mubr.bf16.gmra.mrb[120].mxu1 %v1105_v38  ;;  %7211 = vmatmul.mubr.bf16.gmra.mrb[120].mxu0 %v1704_v41  ;;  %v1129_v41 = vsel %vm949_vm2, %v1124_v61, %v1128_v13 }
 0x120   : > { %7102 = vmatprep.mubr.msk.bf16.mxu1 %vm8117_vm0, %v10151_v1  ;;  %7214 = vmatprep.mubr.msk.bf16.mxu0 %vm8117_vm0, %v10151_v1  ;;  %v1136_v43 = vrot.slane %v1134_v62, 1 }
 0x122   : > { %v8780_v6 = vpop.f32.mrb[16].mxu0  ;;  %v8782_v9 = vpop.f32.mrb[16].mxu1  ;;  %v1137_v33 = vsel %vm949_vm2, %v1132_v32, %v1136_v43 }
 0x123   : > { %v6928_v15 = vpop.f32.mrb[17].mxu0  ;;  %v6980_v19 = vpop.f32.mrb[17].mxu1 }
 0x124   : > { %v8784_v23 = vpop.f32.mrb[18].mxu0  ;;  %v8788_v26 = vpop.f32.mrb[18].mxu1  ;;  %v1711_v15 = vrot.slane %v8090_v53, 1  ;;  %v932_v19 = vld [vmem:[#allocation2 + $0xc0] sm:$0x1f] }
 0x125   : > { %v6929_v36 = vpop.f32.mrb[19].mxu0  ;;  %v6981_v54 = vpop.f32.mrb[19].mxu1  ;;  %v1142_v11 = vshll.u32 %v932_v19, 16  ;;  %v1146_v56 = vshrl.u32 %v932_v19, 16  ;;  %v2169_v19 = vld [vmem:[#allocation2 + $0x8] sm:$0xf0] }
 0x126   : > { %v1712_v36 = vsel %vm1667_vm1, %v1709_v14, %v1711_v15  ;;  %v1714_v14 = vsel %vm1667_vm1, %v1711_v15, %v1713_v8 }
 0x127   : > { %7103 = vmatmul.mubr.bf16.gmra.mrb[124].mxu1 %v1113_v24  ;;  %7215 = vmatmul.mubr.bf16.gmra.mrb[124].mxu0 %v1706_v25 }
 0x128   : > { %7106 = vmatprep.mubr.msk.bf16.mxu1 %vm8117_vm0, %v10151_v1  ;;  %7218 = vmatprep.mubr.msk.bf16.mxu0 %vm8117_vm0, %v10151_v1 }
 0x12a   : > { %v8794_v35 = vpop.f32.mrb[20].mxu0  ;;  %v8796_v40 = vpop.f32.mrb[20].mxu1 }
 0x12b   : > { %v6932_v42 = vpop.f32.mrb[21].mxu0  ;;  %v6984_v2 = vpop.f32.mrb[21].mxu1 }
 0x12c   : > { %v8798_v45 = vpop.f32.mrb[22].mxu0  ;;  %v8802_v51 = vpop.f32.mrb[22].mxu1 }
 0x12d   : > { %v6933_v58 = vpop.f32.mrb[23].mxu0  ;;  %v6985_v59 = vpop.f32.mrb[23].mxu1 }
 0x12f   : > { %7107 = vmatmul.mubr.bf16.gmra.mrb[128].mxu1 %v1121_v47  ;;  %7219 = vmatmul.mubr.bf16.gmra.mrb[128].mxu0 %v1708_v50  ;;  %v1140_v47 = vor.u32 %v1138_v10, %v1136_v43  ;;  %v1144_v50 = vrot.slane %v1142_v11, 1  ;;  %v2170_v11 = vld [vmem:[#allocation2 + $0x10] sm:$0xff] }
 0x130   : > { %7110 = vmatprep.mubr.msk.bf16.mxu1 %vm8117_vm0, %v10151_v1  ;;  %7222 = vmatprep.mubr.msk.bf16.mxu0 %vm8117_vm0, %v10151_v1 }
 0x131   : > { %v1145_v13 = vsel %vm949_vm2, %v1140_v47, %v1144_v50  ;;  %v1148_v15 = vor.u32 %v1146_v56, %v1144_v50  ;;  %v2237_v47 = vrot.slane %v2170_v11, 4 }
 0x132   : > { %v8808_v34 = vpop.f32.mrb[24].mxu0  ;;  %v8810_v16 = vpop.f32.mrb[24].mxu1 }
 0x133   : > { %v6936_v21 = vpop.f32.mrb[25].mxu0  ;;  %v6988_v28 = vpop.f32.mrb[25].mxu1 }
 0x134   : > { %v8812_v38 = vpop.f32.mrb[26].mxu0  ;;  %v8816_v46 = vpop.f32.mrb[26].mxu1 }
 0x135   : > { %v6937_v22 = vpop.f32.mrb[27].mxu0  ;;  %v6989_v63 = vpop.f32.mrb[27].mxu1 }
 0x137   : > { %7111 = vmatmul.mubr.bf16.gmra.mrb[132].mxu1 %v1129_v41  ;;  %7223 = vmatmul.mubr.bf16.gmra.mrb[132].mxu0 %v1710_v17  ;;  %v1625_v17 = vld [vmem:[#allocation2 + $0xc0] sm:$0x1f] }
 0x138   : > { %7114 = vmatprep.mubr.msk.bf16.mxu1 %vm8117_vm0, %v10151_v1  ;;  %7226 = vmatprep.mubr.msk.bf16.mxu0 %vm8117_vm0, %v10151_v1  ;;  %v1715_v62 = vrot.slane %v1625_v17, 1 }
 0x13a   : > { %v8823_v24 = vpop.f32.mrb[28].mxu0  ;;  %v8825_v25 = vpop.f32.mrb[28].mxu1 }
 0x13b   : > { %10153 = vst [vmem:[#allocation4_spill] sm:$0xff] %v8825_v25  ;;  %v6940_v27 = vpop.f32.mrb[29].mxu0  ;;  %v6992_v4 = vpop.f32.mrb[29].mxu1 }
 0x13c   : > { %v8827_v29 = vpop.f32.mrb[30].mxu0  ;;  %v8831_v54 = vpop.f32.mrb[30].mxu1  ;;  %v1716_v4 = vsel %vm1667_vm1, %v1713_v8, %v1715_v62  ;;  %v2789_v8 = vshrl.u32 %v2170_v11, 16 }
 0x13d   : > { %10154 = vst [vmem:[#allocation5_spill] sm:$0xff] %v8831_v54  ;;  %v6941_v42 = vpop.f32.mrb[31].mxu0  ;;  %v6993_v2 = vpop.f32.mrb[31].mxu1 }
 0x13e   : > { %v2236_v42 = vrot.slane %v2169_v19, 4 }
 0x13f   : > { %7115 = vmatmul.mubr.bf16.gmra.mrb[136].mxu1 %v1137_v33  ;;  %7227 = vmatmul.mubr.bf16.gmra.mrb[136].mxu0 %v1712_v36  ;;  %v2737_v36 = vld [vmem:[#allocation2 + $0x8] sm:$0xf0] }
 0x140   : > { %7118 = vmatprep.mubr.msk.bf16.mxu1 %vm8117_vm0, %v10151_v1  ;;  %7230 = vmatprep.mubr.msk.bf16.mxu0 %vm8117_vm0, %v10151_v1  ;;  %v2781_v2 = vshrl.u32 %v2737_v36, 16  ;;  %v2784_v50 = vshll.u32 %v2737_v36, 16  ;;  %v2238_v56 = vsel %vm2235_vm3, %v2236_v42, %v2237_v47 }
 0x142   : > { %v8837_v53 = vpop.f32.mrb[32].mxu0  ;;  %v8839_v57 = vpop.f32.mrb[32].mxu1 }
 0x143   : > { %10155 = vst [vmem:[#allocation6_spill] sm:$0xff] %v8839_v57  ;;  %v6944_v58 = vpop.f32.mrb[33].mxu0  ;;  %v6996_v59 = vpop.f32.mrb[33].mxu1  ;;  %v8924_v57 = vld [vmem:[#allocation2 + $0x28] sm:$0xff] }
 0x144   : > { %v8841_v61 = vpop.f32.mrb[34].mxu0  ;;  %v8845_v21 = vpop.f32.mrb[34].mxu1  ;;  %v2792_v58 = vshll.u32 %v2170_v11, 16 }
 0x145   : > { %10156 = vst [vmem:[#allocation7_spill] sm:$0xff] %v8845_v21  ;;  %v6945_v28 = vpop.f32.mrb[35].mxu0  ;;  %v6997_v41 = vpop.f32.mrb[35].mxu1 }
 0x146   : > { %v2783_v41 = vrot.slane %v2781_v2, 4  ;;  %v2794_v19 = vrot.slane %v2792_v58, 5  ;;  %v8048_v58 = vld [vmem:[%s10148_s2 + $0x148] sm:$0xff]  }
 0x147   : > { %7119 = vmatmul.mubr.bf16.gmra.mrb[140].mxu1 %v1145_v13  ;;  %7231 = vmatmul.mubr.bf16.gmra.mrb[140].mxu0 %v1714_v14 }
 0x148   : > { %7122 = vmatprep.mubr.msk.bf16.mxu1 %vm8117_vm0, %v10151_v1  ;;  %7234 = vmatprep.mubr.msk.bf16.mxu0 %vm8117_vm0, %v10151_v1 }
 0x14a   : > { %v8851_v22 = vpop.f32.mrb[36].mxu0  ;;  %v8853_v63 = vpop.f32.mrb[36].mxu1 }
 0x14b   : > { %10157 = vst [vmem:[#allocation8_spill] sm:$0xff] %v8853_v63  ;;  %v6948_v32 = vpop.f32.mrb[37].mxu0  ;;  %v7000_v43 = vpop.f32.mrb[37].mxu1 }
 0x14c   : > { %v8855_v27 = vpop.f32.mrb[38].mxu0  ;;  %v8858_v33 = vpop.f32.mrb[38].mxu1  ;;  %v2171_v43 = vld [vmem:[#allocation2 + $0x18] sm:$0xff] }
 0x14d   : > { %10158 = vst [vmem:[#allocation9_spill] sm:$0xff] %v8858_v33  ;;  %v6949_v39 = vpop.f32.mrb[39].mxu0  ;;  %v7001_v10 = vpop.f32.mrb[39].mxu1  ;;  %v2239_v11 = vrot.slane %v2171_v43, 4 }
 0x14e   : > { %v8046_v10 = vld [vmem:[%s10148_s2 + $0x140] sm:$0xff]  }
 0x14f   : > { %7123 = vmatmul.mubr.bf16.gmra.mrb[144].mxu1 %v1148_v15  ;;  %7235 = vmatmul.mubr.bf16.gmra.mrb[144].mxu0 %v1716_v4  ;;  %v2786_v15 = vrot.slane %v2784_v50, 5  ;;  %v2791_v4 = vrot.slane %v2789_v8, 4  ;;  %v2798_v50 = vshrl.u32 %v2171_v43, 16  ;;  %v2801_v8 = vshll.u32 %v2171_v43, 16 }
 0x150   : > { %7238 = vmatprep.mubr.msk.bf16.mxu0 %vm8117_vm0, %v10151_v1  ;;  %7258 = vmatprep.mubr.msk.bf16.mxu1 %vm8117_vm0, %v10151_v1 }
 0x151   : > { %v2787_v42 = vor.u32 %v2786_v15, %v2783_v41  ;;  %v2795_v2 = vor.u32 %v2794_v19, %v2791_v4  ;;  %v2240_v41 = vsel %vm2235_vm3, %v2237_v47, %v2239_v11  ;;  %v8047_v4 = vld [vmem:[%s10148_s2 + $0x180] sm:$0xff]   ;;  %v2800_v19 = vrot.slane %v2798_v50, 4  ;;  %v8050_v47 = vld [vmem:[%s10148_s2 + $0x150] sm:$0xff]  }
 0x152   : > { %v8864_v59 = vpop.f32.mrb[40].mxu0  ;;  %v8866_v13 = vpop.f32.mrb[40].mxu1 }
 0x153   : > { %10159 = vst [vmem:[#allocation10_spill] sm:$0xff] %v8866_v13  ;;  %v6952_v14 = vpop.f32.mrb[41].mxu0  ;;  %v7004_v28 = vpop.f32.mrb[41].mxu1  ;;  %v2796_v43 = vsel %vm2779_vm4, %v2787_v42, %v2795_v2 }
 0x154   : > { %v8868_v17 = vpop.f32.mrb[42].mxu0  ;;  %v8871_v32 = vpop.f32.mrb[42].mxu1 }
 0x155   : > { %10160 = vst [vmem:[#allocation11_spill] sm:$0xff] %v8871_v32  ;;  %v6953_v36 = vpop.f32.mrb[43].mxu0  ;;  %v7005_v39 = vpop.f32.mrb[43].mxu1 }
 0x156   : > { %v2803_v39 = vrot.slane %v2801_v8, 5 }
 0x157   : > { %7239 = vmatmul.mubr.bf16.gmra.mrb[148].mxu0 %v1715_v62  ;;  %7259 = vmatmul.mubr.bf16.vlgmr.msra.gmra.mrb[148].mxu1 %v2238_v56 }
 0x158   : > { %7262 = vmatprep.mubr.msk.bf16.mxu1 %vm8117_vm0, %v10151_v1  ;;  %7374 = vmatprep.mubr.msk.bf16.mxu0 %vm8117_vm0, %v10151_v1  ;;  %v2804_v50 = vor.u32 %v2803_v39, %v2800_v19 }
 0x159   : > { %7475 = vmatpush3.bf16.msra.mxu1 %v8046_v10 }
 0x15a   : > { %v8883_v14 = vpop.f32.mrb[44].mxu0  ;;  %v8885_v62 = vpop.f32.mrb[44].mxu1  ;;  %7476 = vmatprep.subr.bf16.mxu1 %v10151_v1 }
 0x15b   : > { %10161 = vst [vmem:[#allocation12_spill] sm:$0xff] %v8885_v62  ;;  %v6956_v28 = vpop.f32.mrb[45].mxu0  ;;  %v7008_v56 = vpop.f32.mrb[45].mxu1  ;;  %v8895_v62 = vld [vmem:[#allocation2 + $0x20] sm:$0xff] }
 0x15c   : > { %v8888_v36 = vpop.f32.mrb[46].mxu0  ;;  %v856_v15 = vpop.f32.mrb[46].mxu1  ;;  %v2241_v42 = vrot.slane %v8895_v62, 4  ;;  %v2810_v8 = vshll.u32 %v8895_v62, 16 }
 0x15d   : > { %v6957_v10 = vpop.f32.mrb[47].mxu0  ;;  %v7009_v32 = vpop.f32.mrb[47].mxu1  ;;  %7477 = vmatpush3.bf16.msra.mxu1 %v8048_v58  ;;  %v8049_v58 = vld [vmem:[%s10148_s2 + $0x188] sm:$0xff]  }
 0x15e   : > { %7478 = vmatprep.subr.bf16.mxu1 %v10151_v1  ;;  %v2807_v32 = vshrl.u32 %v8895_v62, 16  ;;  %v2242_v39 = vsel %vm2235_vm3, %v2239_v11, %v2241_v42  ;;  %v2805_v10 = vsel %vm2779_vm4, %v2795_v2, %v2804_v50  ;;  %v2812_v33 = vrot.slane %v2810_v8, 5  ;;  %v8054_v11 = vld [vmem:[%s10148_s2 + $0x160] sm:$0xff]  }
 0x15f   : > { %7263 = vmatmul.mubr.bf16.gmra.mrb[152].mxu1 %v2240_v41  ;;  %7375 = vmatmul.mubr.bf16.vlgmr.msra.gmra.mrb[152].mxu0 %v2796_v43  ;;  %v8052_v41 = vld [vmem:[%s10148_s2 + $0x158] sm:$0xff]   ;;  %v2819_v2 = vshll.u32 %v8924_v57, 16 }
 0x160   : > { %7591 = vmatpush3.bf16.msra.mxu0 %v8047_v4  ;;  %7266 = vmatprep.mubr.msk.bf16.mxu1 %vm8117_vm0, %v10151_v1  ;;  %v2809_v13 = vrot.slane %v2807_v32, 4  ;;  %v8053_v32 = vld [vmem:[%s10148_s2 + $0x198] sm:$0xff]  }
 0x161   : > { %7378 = vmatprep.mubr.msk.bf16.mxu0 %vm8117_vm0, %v10151_v1  ;;  %7592 = vmatprep.subr.bf16.mxu0 %v10151_v1 }
 0x162   : > { %v8912_v28 = vpop.f32.mrb[48].mxu0  ;;  %v1256_v56 = vpop.f32.mrb[48].mxu1  ;;  %7479 = vmatpush3.bf16.msra.mxu1 %v8050_v47 }
 0x163   : > { %v1503_v43 = vadd.f32 %v1256_v56, %v8724_v0  ;;  %v6960_v62 = vpop.f32.mrb[49].mxu0  ;;  %v7028_v15 = vpop.f32.mrb[49].mxu1  ;;  %7480 = vmatprep.subr.bf16.mxu1 %v10151_v1  ;;  %v8051_v0 = vld [vmem:[%s10148_s2 + $0x190] sm:$0xff]  }
 0x164   : > { %v8919_v4 = vpop.f32.mrb[50].mxu0  ;;  %v1259_v19 = vpop.f32.mrb[50].mxu1  ;;  %7593 = vmatpush3.bf16.msra.mxu0 %v8049_v58 }
 0x165   : > { %v1504_v47 = vadd.f32 %v1259_v19, %v8728_v60  ;;  %v6961_v63 = vpop.f32.mrb[51].mxu0  ;;  %v7029_v21 = vpop.f32.mrb[51].mxu1  ;;  %7594 = vmatprep.subr.bf16.mxu0 %v10151_v1  ;;  %v2243_v60 = vrot.slane %v8924_v57, 4 }
 0x166   : > { %7481 = vmatpush3.bf16.msra.mxu1 %v8052_v41  ;;  %v2813_v21 = vor.u32 %v2812_v33, %v2809_v13  ;;  %v2816_v63 = vshrl.u32 %v8924_v57, 16  ;;  %v8056_v33 = vld [vmem:[%s10148_s2 + $0x168] sm:$0xff]  }
 0x167   : > { %7267 = vmatmul.mubr.bf16.gmra.mrb[156].mxu1 %v2242_v39  ;;  %7379 = vmatmul.mubr.bf16.gmra.mrb[156].mxu0 %v2805_v10  ;;  %v2244_v19 = vsel %vm2235_vm3, %v2241_v42, %v2243_v60 }
 0x168   : > { %7270 = vmatprep.mubr.msk.bf16.mxu1 %vm8117_vm0, %v10151_v1  ;;  %7382 = vmatprep.mubr.msk.bf16.mxu0 %vm8117_vm0, %v10151_v1  ;;  %v2814_v39 = vsel %vm2779_vm4, %v2804_v50, %v2813_v21  ;;  %v2818_v10 = vrot.slane %v2816_v63, 4 }
 0x169   : > { %7595 = vmatpush3.bf16.msra.mxu0 %v8051_v0  ;;  %7482 = vmatprep.subr.bf16.mxu1 %v10151_v1  ;;  %v2821_v0 = vrot.slane %v2819_v2, 5 }
 0x16a   : > { %v1264_v8 = vpop.f32.mrb[52].mxu1  ;;  %v1824_v58 = vpop.f32.mrb[52].mxu0  ;;  %7596 = vmatprep.subr.bf16.mxu0 %v10151_v1  ;;  %7483 = vmatpush3.bf16.msra.mxu1 %v8054_v11 }
 0x16b   : > { %v1505_v13 = vadd.f32 %v1264_v8, %v8738_v5  ;;  %v8949_v56 = vadd.f32 %v1824_v58, %v1503_v43  ;;  %v7032_v57 = vpop.f32.mrb[53].mxu1  ;;  %v7144_v41 = vpop.f32.mrb[53].mxu0  ;;  %7484 = vmatprep.subr.bf16.mxu1 %v10151_v1  ;;  %v2174_v43 = vld [vmem:[#allocation2 + $0x30] sm:$0xff]  ;;  %v8055_v8 = vld [vmem:[%s10148_s2 + $0x1a0] sm:$0xff]  }
 0x16c   : > { %v1267_v62 = vpop.f32.mrb[54].mxu1  ;;  %v1827_v15 = vpop.f32.mrb[54].mxu0  ;;  %v2825_v42 = vshrl.u32 %v2174_v43, 16  ;;  %v2828_v50 = vshll.u32 %v2174_v43, 16 }
 0x16d   : > { %v1506_v11 = vadd.f32 %v1267_v62, %v8742_v37  ;;  %v8955_v54 = vadd.f32 %v1827_v15, %v1504_v47  ;;  %v7145_v25 = vpop.f32.mrb[55].mxu0  ;;  %v7033_v5 = vpop.f32.mrb[55].mxu1  ;;  %7597 = vmatpush3.bf16.msra.mxu0 %v8053_v32  ;;  %v2245_v37 = vrot.slane %v2174_v43, 4  ;;  %v8057_v47 = vld [vmem:[%s10148_s2 + $0x1a8] sm:$0xff]  }
 0x16e   : > { %7598 = vmatprep.subr.bf16.mxu0 %v10151_v1  ;;  %7485 = vmatpush3.bf16.msra.mxu1 %v8056_v33  ;;  %v2822_v25 = vor.u32 %v2821_v0, %v2818_v10  ;;  %v2830_v10 = vrot.slane %v2828_v50, 5 }
 0x16f   : > { %7271 = vmatmul.mubr.bf16.gmra.mrb[160].mxu1 %v2244_v19  ;;  %7383 = vmatmul.mubr.bf16.gmra.mrb[160].mxu0 %v2814_v39  ;;  %v2246_v15 = vsel %vm2235_vm3, %v2243_v60, %v2245_v37  ;;  %v2827_v39 = vrot.slane %v2825_v42, 4  ;;  %v8059_v60 = vld [vmem:[%s10148_s2 + $0x1b0] sm:$0xff]  }
 0x170   : > { %7274 = vmatprep.mubr.msk.bf16.mxu1 %vm8117_vm0, %v10151_v1  ;;  %7386 = vmatprep.mubr.msk.bf16.mxu0 %vm8117_vm0, %v10151_v1  ;;  %v2823_v19 = vsel %vm2779_vm4, %v2813_v21, %v2822_v25 }
 0x171   : > { %7599 = vmatpush3.bf16.msra.mxu0 %v8055_v8  ;;  %7486 = vmatprep.subr.bf16.mxu1 %v10151_v1  ;;  %v2831_v21 = vor.u32 %v2830_v10, %v2827_v39 }
 0x172   : > { %v1272_v63 = vpop.f32.mrb[56].mxu1  ;;  %v1832_v2 = vpop.f32.mrb[56].mxu0  ;;  %7600 = vmatprep.subr.bf16.mxu0 %v10151_v1  ;;  %v2175_v1 = vld [vmem:[#allocation2 + $0x38] sm:$0xff] }
 0x173   : > { %v1507_v32 = vadd.f32 %v1272_v63, %v8752_v48  ;;  %v8971_v58 = vadd.f32 %v1832_v2, %v1505_v13  ;;  %v7036_v33 = vpop.f32.mrb[57].mxu1  ;;  %v7148_v57 = vpop.f32.mrb[57].mxu0  ;;  %v8058_v48 = vld [vmem:[%s10148_s2 + $0x170] sm:$0xff]   ;;  %v10162_v13 = vmov 0.0   ;;  %v2837_v42 = vshll.u32 %v2175_v1, 16 }
 0x174   : > { %v1275_v41 = vpop.f32.mrb[58].mxu1  ;;  %v1835_v62 = vpop.f32.mrb[58].mxu0  ;;  %7487 = vmatpush3.bf16.msra.mxu1 %v8058_v48 }
 0x175   : > { %v1508_v0 = vadd.f32 %v1275_v41, %v8756_v52  ;;  %v8976_v5 = vadd.f32 %v1835_v62, %v1506_v11  ;;  %v7149_v43 = vpop.f32.mrb[59].mxu0  ;;  %v7037_v8 = vpop.f32.mrb[59].mxu1  ;;  %7601 = vmatpush3.bf16.msra.mxu0 %v8057_v47  ;;  %v2247_v52 = vrot.slane %v2175_v1, 4  ;;  %v2834_v11 = vshrl.u32 %v2175_v1, 16  ;;  %7488 = vmatprep.subr.bf16.mxu1 %v10162_v13 }
 0x176   : > { %7602 = vmatprep.subr.bf16.mxu0 %v10162_v13  ;;  %v2832_v1 = vsel %vm2779_vm4, %v2822_v25, %v2831_v21  ;;  %v2839_v39 = vrot.slane %v2837_v42, 5 }
 0x177   : > { %7275 = vmatmul.mubr.bf16.gmra.mrb[164].mxu1 %v2246_v15  ;;  %7387 = vmatmul.mubr.bf16.gmra.mrb[164].mxu0 %v2823_v19  ;;  %v2248_v15 = vsel %vm2235_vm3, %v2245_v37, %v2247_v52  ;;  %v2836_v19 = vrot.slane %v2834_v11, 4 }
 0x178   : > { %7278 = vmatprep.mubr.msk.bf16.mxu1 %vm8117_vm0, %v10162_v13  ;;  %7390 = vmatprep.mubr.msk.bf16.mxu0 %vm8117_vm0, %v10162_v13 }
 0x179   : > { %7603 = vmatpush3.bf16.msra.mxu0 %v8059_v60  ;;  %v2176_v60 = vld [vmem:[#allocation2 + $0x40] sm:$0xff]  ;;  %v2840_v37 = vor.u32 %v2839_v39, %v2836_v19 }
 0x17a   : > { %v1280_v50 = vpop.f32.mrb[60].mxu1  ;;  %v1840_v47 = vpop.f32.mrb[60].mxu0  ;;  %7604 = vmatprep.subr.bf16.mxu0 %v10162_v13  ;;  %v2843_v25 = vshrl.u32 %v2176_v60, 16 }
 0x17b   : > { %v1509_v63 = vadd.f32 %v1280_v50, %v8766_v18  ;;  %v8992_v2 = vadd.f32 %v1840_v47, %v1507_v32  ;;  %v7040_v33 = vpop.f32.mrb[61].mxu1  ;;  %v7152_v57 = vpop.f32.mrb[61].mxu0  ;;  %v2249_v18 = vrot.slane %v2176_v60, 4  ;;  %v2846_v32 = vshll.u32 %v2176_v60, 16 }
 0x17c   : > { %v1283_v41 = vpop.f32.mrb[62].mxu1  ;;  %v1843_v62 = vpop.f32.mrb[62].mxu0 }
 0x17d   : > { %v1510_v10 = vadd.f32 %v1283_v41, %v8770_v30  ;;  %v8997_v43 = vadd.f32 %v1843_v62, %v1508_v0  ;;  %v7153_v8 = vpop.f32.mrb[63].mxu0  ;;  %v7041_v48 = vpop.f32.mrb[63].mxu1  ;;  %v2250_v41 = vsel %vm2235_vm3, %v2247_v52, %v2249_v18  ;;  %v2841_v62 = vsel %vm2779_vm4, %v2831_v21, %v2840_v37 }
 0x17f   : > { %7279 = vmatmul.mubr.bf16.gmra.mrb[168].mxu1 %v2248_v15  ;;  %7391 = vmatmul.mubr.bf16.gmra.mrb[168].mxu0 %v2832_v1  ;;  %v2845_v15 = vrot.slane %v2843_v25, 4  ;;  %v2848_v1 = vrot.slane %v2846_v32, 5 }
 0x180   : > { %7282 = vmatprep.mubr.msk.bf16.mxu1 %vm8117_vm0, %v10162_v13  ;;  %7394 = vmatprep.mubr.msk.bf16.mxu0 %vm8117_vm0, %v10162_v13 }
 0x181   : > { %v2849_v21 = vor.u32 %v2848_v1, %v2845_v15 }
 0x182   : > { %v1288_v11 = vpop.f32.mrb[64].mxu1  ;;  %v1848_v42 = vpop.f32.mrb[64].mxu0 }
 0x183   : > { %v1511_v30 = vadd.f32 %v1288_v11, %v8780_v6  ;;  %v9004_v0 = vadd.f32 %v1848_v42, %v1509_v63  ;;  %v7044_v50 = vpop.f32.mrb[65].mxu1  ;;  %v7156_v47 = vpop.f32.mrb[65].mxu0  ;;  %v2177_v6 = vld [vmem:[#allocation2 + $0x48] sm:$0xff] }
 0x184   : > { %v1291_v33 = vpop.f32.mrb[66].mxu1  ;;  %v1851_v57 = vpop.f32.mrb[66].mxu0  ;;  %v2251_v52 = vrot.slane %v2177_v6, 4  ;;  %v2852_v63 = vshrl.u32 %v2177_v6, 16  ;;  %v2855_v60 = vshll.u32 %v2177_v6, 16  ;;  %v8060_v6 = vld [vmem:[%s10148_s2 + $0x178] sm:$0xff]  }
 0x185   : > { %v1512_v19 = vadd.f32 %v1291_v33, %v8784_v23  ;;  %v9009_v39 = vadd.f32 %v1851_v57, %v1510_v10  ;;  %v7157_v8 = vpop.f32.mrb[67].mxu0  ;;  %v7045_v48 = vpop.f32.mrb[67].mxu1  ;;  %v9016_v23 = vld [vmem:[%s8639_s14 + $0x4] sm:$0xff]   ;;  %7489 = vmatpush3.bf16.msra.mxu1 %v8060_v6 }
 0x186   : > { %v2252_v57 = vsel %vm2235_vm3, %v2249_v18, %v2251_v52  ;;  %v2857_v15 = vrot.slane %v2855_v60, 5  ;;  %535 = vst [vmem:[#allocation2 + $0xc8] sm:$0xff] %v9016_v23  ;;  %v2178_v48 = vld [vmem:[#allocation2 + $0x50] sm:$0xff]  ;;  %v8062_v18 = vld [vmem:[%s10148_s2 + $0x1b8] sm:$0xff]   ;;  %7706 = vmatprep.subr.bf16.mxu1 %v10162_v13 }
 0x187   : > { %7283 = vmatmul.mubr.bf16.gmra.mrb[172].mxu1 %v2250_v41  ;;  %7395 = vmatmul.mubr.bf16.gmra.mrb[172].mxu0 %v2841_v62  ;;  %v2850_v41 = vsel %vm2779_vm4, %v2840_v37, %v2849_v21  ;;  %v2854_v62 = vrot.slane %v2852_v63, 4  ;;  %v2864_v63 = vshll.u32 %v2178_v48, 16  ;;  %v8063_v60 = vld [vmem:[%s8639_s14 + $0xc] sm:$0xff]  }
 0x188   : > { %7286 = vmatprep.mubr.msk.bf16.mxu1 %vm8117_vm0, %v10162_v13  ;;  %7398 = vmatprep.mubr.msk.bf16.mxu0 %vm8117_vm0, %v10162_v13  ;;  %536 = vst [vmem:[#allocation2 + $0xd0] sm:$0xff] %v8063_v60 }
 0x189   : > { %v2858_v37 = vor.u32 %v2857_v15, %v2854_v62  ;;  %7605 = vmatpush3.bf16.msra.mxu0 %v8062_v18 }
 0x18a   : > { %v1296_v25 = vpop.f32.mrb[68].mxu1  ;;  %v1856_v32 = vpop.f32.mrb[68].mxu0  ;;  %7822 = vmatprep.subr.bf16.mxu0 %v10162_v13 }
 0x18b   : > { %v1513_v10 = vadd.f32 %v1296_v25, %v8794_v35  ;;  %v9019_v11 = vadd.f32 %v1856_v32, %v1511_v30  ;;  %v7048_v42 = vpop.f32.mrb[69].mxu1  ;;  %v7160_v50 = vpop.f32.mrb[69].mxu0  ;;  %v2859_v15 = vsel %vm2779_vm4, %v2849_v21, %v2858_v37 }
 0x18c   : > { %v1299_v47 = vpop.f32.mrb[70].mxu1  ;;  %v1859_v33 = vpop.f32.mrb[70].mxu0 }
 0x18d   : > { %v1514_v1 = vadd.f32 %v1299_v47, %v8798_v45  ;;  %v9025_v8 = vadd.f32 %v1859_v33, %v1512_v19  ;;  %v7161_v35 = vpop.f32.mrb[71].mxu0  ;;  %v7049_v30 = vpop.f32.mrb[71].mxu1  ;;  %v2253_v45 = vrot.slane %v2178_v48, 4  ;;  %v2861_v19 = vshrl.u32 %v2178_v48, 16 }
 0x18e   : > { %v2866_v30 = vrot.slane %v2864_v63, 5 }
 0x18f   : > { %10163 = vst [vmem:[#allocation13_spill] sm:$0xff] %v9025_v8  ;;  %7287 = vmatmul.mubr.bf16.gmra.mrb[176].mxu1 %v2252_v57  ;;  %7399 = vmatmul.mubr.bf16.gmra.mrb[176].mxu0 %v2850_v41  ;;  %v2254_v62 = vsel %vm2235_vm3, %v2251_v52, %v2253_v45  ;;  %v2863_v35 = vrot.slane %v2861_v19, 4  ;;  %v2179_v8 = vld [vmem:[#allocation2 + $0x58] sm:$0xff] }
 0x190   : > { %7290 = vmatprep.mubr.msk.bf16.mxu1 %vm8117_vm0, %v10162_v13  ;;  %7402 = vmatprep.mubr.msk.bf16.mxu0 %vm8117_vm0, %v10162_v13  ;;  %v2870_v21 = vshrl.u32 %v2179_v8, 16 }
 0x191   : > { %v2867_v52 = vor.u32 %v2866_v30, %v2863_v35 }
 0x192   : > { %v1304_v25 = vpop.f32.mrb[72].mxu1  ;;  %v1864_v32 = vpop.f32.mrb[72].mxu0 }
 0x193   : > { %v1515_v42 = vadd.f32 %v1304_v25, %v8808_v34  ;;  %v9041_v50 = vadd.f32 %v1864_v32, %v1513_v10  ;;  %v7052_v47 = vpop.f32.mrb[73].mxu1  ;;  %v7164_v33 = vpop.f32.mrb[73].mxu0  ;;  %v2255_v34 = vrot.slane %v2179_v8, 4  ;;  %v2873_v10 = vshll.u32 %v2179_v8, 16 }
 0x194   : > { %v1307_v57 = vpop.f32.mrb[74].mxu1  ;;  %v1867_v41 = vpop.f32.mrb[74].mxu0 }
 0x195   : > { %v1516_v48 = vadd.f32 %v1307_v57, %v8812_v38  ;;  %v9046_v6 = vadd.f32 %v1867_v41, %v1514_v1  ;;  %v7165_v18 = vpop.f32.mrb[75].mxu0  ;;  %v7053_v60 = vpop.f32.mrb[75].mxu1  ;;  %v2256_v57 = vsel %vm2235_vm3, %v2253_v45, %v2255_v34  ;;  %v2868_v41 = vsel %vm2779_vm4, %v2858_v37, %v2867_v52 }
 0x196   : > { %v2180_v60 = vld [vmem:[#allocation2 + $0x60] sm:$0xff] }
 0x197   : > { %7291 = vmatmul.mubr.bf16.gmra.mrb[180].mxu1 %v2254_v62  ;;  %7403 = vmatmul.mubr.bf16.gmra.mrb[180].mxu0 %v2859_v15  ;;  %v2872_v62 = vrot.slane %v2870_v21, 4  ;;  %v2875_v15 = vrot.slane %v2873_v10, 5  ;;  %v2879_v37 = vshrl.u32 %v2180_v60, 16 }
 0x198   : > { %7294 = vmatprep.mubr.msk.bf16.mxu1 %vm8117_vm0, %v10162_v13  ;;  %7406 = vmatprep.mubr.msk.bf16.mxu0 %vm8117_vm0, %v10162_v13 }
 0x199   : > { %v2876_v45 = vor.u32 %v2875_v15, %v2872_v62 }
 0x19a   : > { %v1312_v19 = vpop.f32.mrb[76].mxu1  ;;  %v1872_v63 = vpop.f32.mrb[76].mxu0 }
 0x19b   : > { %v1517_v38 = vadd.f32 %v1312_v19, %v8823_v24  ;;  %v9053_v1 = vadd.f32 %v1872_v63, %v1515_v42  ;;  %v7056_v25 = vpop.f32.mrb[77].mxu1  ;;  %v7168_v32 = vpop.f32.mrb[77].mxu0  ;;  %v2257_v24 = vrot.slane %v2180_v60, 4  ;;  %v2882_v42 = vshll.u32 %v2180_v60, 16  ;;  %v2181_v60 = vld [vmem:[#allocation2 + $0x68] sm:$0xff] }
 0x19c   : > { %v1315_v47 = vpop.f32.mrb[78].mxu1  ;;  %v1875_v33 = vpop.f32.mrb[78].mxu0 }
 0x19d   : > { %v1518_v35 = vadd.f32 %v1315_v47, %v8827_v29  ;;  %v9058_v30 = vadd.f32 %v1875_v33, %v1516_v48  ;;  %v7169_v8 = vpop.f32.mrb[79].mxu0  ;;  %v7057_v18 = vpop.f32.mrb[79].mxu1  ;;  %v2258_v47 = vsel %vm2235_vm3, %v2255_v34, %v2257_v24  ;;  %v2877_v33 = vsel %vm2779_vm4, %v2867_v52, %v2876_v45 }
 0x19e   : > { %v2888_v52 = vshrl.u32 %v2181_v60, 16 }
 0x19f   : > { %7295 = vmatmul.mubr.bf16.gmra.mrb[184].mxu1 %v2256_v57  ;;  %7407 = vmatmul.mubr.bf16.gmra.mrb[184].mxu0 %v2868_v41  ;;  %v2881_v57 = vrot.slane %v2879_v37, 4  ;;  %v2884_v41 = vrot.slane %v2882_v42, 5 }
 0x1a0   : > { %7298 = vmatprep.mubr.msk.bf16.mxu1 %vm8117_vm0, %v10162_v13  ;;  %7410 = vmatprep.mubr.msk.bf16.mxu0 %vm8117_vm0, %v10162_v13 }
 0x1a1   : > { %v2885_v34 = vor.u32 %v2884_v41, %v2881_v57 }
 0x1a2   : > { %v1320_v21 = vpop.f32.mrb[80].mxu1  ;;  %v1880_v10 = vpop.f32.mrb[80].mxu0 }
 0x1a3   : > { %v1519_v29 = vadd.f32 %v1320_v21, %v8837_v53  ;;  %v9065_v48 = vadd.f32 %v1880_v10, %v1517_v38  ;;  %v7060_v19 = vpop.f32.mrb[81].mxu1  ;;  %v7172_v63 = vpop.f32.mrb[81].mxu0  ;;  %v2259_v53 = vrot.slane %v2181_v60, 4  ;;  %v2891_v38 = vshll.u32 %v2181_v60, 16  ;;  %v2182_v60 = vld [vmem:[#allocation2 + $0x70] sm:$0xff] }
 0x1a4   : > { %v1323_v25 = vpop.f32.mrb[82].mxu1  ;;  %v1883_v32 = vpop.f32.mrb[82].mxu0 }
 0x1a5   : > { %v1520_v62 = vadd.f32 %v1323_v25, %v8841_v61  ;;  %v9070_v15 = vadd.f32 %v1883_v32, %v1518_v35  ;;  %v7173_v8 = vpop.f32.mrb[83].mxu0  ;;  %v7061_v18 = vpop.f32.mrb[83].mxu1  ;;  %v2260_v25 = vsel %vm2235_vm3, %v2257_v24, %v2259_v53  ;;  %v2886_v32 = vsel %vm2779_vm4, %v2876_v45, %v2885_v34 }
 0x1a6   : > { %v2897_v45 = vshrl.u32 %v2182_v60, 16 }
 0x1a7   : > { %7299 = vmatmul.mubr.bf16.gmra.mrb[188].mxu1 %v2258_v47  ;;  %7411 = vmatmul.mubr.bf16.gmra.mrb[188].mxu0 %v2877_v33  ;;  %v2890_v47 = vrot.slane %v2888_v52, 4  ;;  %v2893_v33 = vrot.slane %v2891_v38, 5 }
 0x1a8   : > { %7302 = vmatprep.mubr.msk.bf16.mxu1 %vm8117_vm0, %v10162_v13  ;;  %7414 = vmatprep.mubr.msk.bf16.mxu0 %vm8117_vm0, %v10162_v13 }
 0x1a9   : > { %v2894_v24 = vor.u32 %v2893_v33, %v2890_v47 }
 0x1aa   : > { %v1328_v37 = vpop.f32.mrb[84].mxu1  ;;  %v1888_v42 = vpop.f32.mrb[84].mxu0 }
 0x1ab   : > { %v1521_v61 = vadd.f32 %v1328_v37, %v8851_v22  ;;  %v9077_v35 = vadd.f32 %v1888_v42, %v1519_v29  ;;  %v7064_v21 = vpop.f32.mrb[85].mxu1  ;;  %v7176_v10 = vpop.f32.mrb[85].mxu0  ;;  %v2261_v22 = vrot.slane %v2182_v60, 4  ;;  %v2900_v29 = vshll.u32 %v2182_v60, 16  ;;  %v2183_v60 = vld [vmem:[#allocation2 + $0x78] sm:$0xff] }
 0x1ac   : > { %v1331_v19 = vpop.f32.mrb[86].mxu1  ;;  %v1891_v63 = vpop.f32.mrb[86].mxu0 }
 0x1ad   : > { %v1522_v57 = vadd.f32 %v1331_v19, %v8855_v27  ;;  %v9082_v41 = vadd.f32 %v1891_v63, %v1520_v62  ;;  %v7177_v8 = vpop.f32.mrb[87].mxu0  ;;  %v7065_v18 = vpop.f32.mrb[87].mxu1  ;;  %v2262_v19 = vsel %vm2235_vm3, %v2259_v53, %v2261_v22  ;;  %v2895_v63 = vsel %vm2779_vm4, %v2885_v34, %v2894_v24 }
 0x1ae   : > { %v2906_v34 = vshrl.u32 %v2183_v60, 16 }
 0x1af   : > { %7303 = vmatmul.mubr.bf16.gmra.mrb[192].mxu1 %v2260_v25  ;;  %7415 = vmatmul.mubr.bf16.gmra.mrb[192].mxu0 %v2886_v32  ;;  %v2899_v25 = vrot.slane %v2897_v45, 4  ;;  %v2902_v32 = vrot.slane %v2900_v29, 5 }
 0x1b0   : > { %7306 = vmatprep.mubr.msk.bf16.mxu1 %vm8117_vm0, %v10162_v13  ;;  %7418 = vmatprep.mubr.msk.bf16.mxu0 %vm8117_vm0, %v10162_v13 }
 0x1b1   : > { %v2903_v53 = vor.u32 %v2902_v32, %v2899_v25 }
 0x1b2   : > { %v1336_v52 = vpop.f32.mrb[88].mxu1  ;;  %v1896_v38 = vpop.f32.mrb[88].mxu0 }
 0x1b3   : > { %v1523_v27 = vadd.f32 %v1336_v52, %v8864_v59  ;;  %v9089_v62 = vadd.f32 %v1896_v38, %v1521_v61  ;;  %v7068_v37 = vpop.f32.mrb[89].mxu1  ;;  %v7180_v42 = vpop.f32.mrb[89].mxu0  ;;  %v2263_v59 = vrot.slane %v2183_v60, 4  ;;  %v2909_v61 = vshll.u32 %v2183_v60, 16  ;;  %v2184_v60 = vld [vmem:[#allocation2 + $0x80] sm:$0xff] }
 0x1b4   : > { %v1339_v21 = vpop.f32.mrb[90].mxu1  ;;  %v1899_v10 = vpop.f32.mrb[90].mxu0 }
 0x1b5   : > { %v1524_v47 = vadd.f32 %v1339_v21, %v8868_v17  ;;  %v9094_v33 = vadd.f32 %v1899_v10, %v1522_v57  ;;  %v7181_v8 = vpop.f32.mrb[91].mxu0  ;;  %v7069_v18 = vpop.f32.mrb[91].mxu1  ;;  %v2264_v21 = vsel %vm2235_vm3, %v2261_v22, %v2263_v59  ;;  %v2904_v10 = vsel %vm2779_vm4, %v2894_v24, %v2903_v53 }
 0x1b6   : > { %v2915_v24 = vshrl.u32 %v2184_v60, 16 }
 0x1b7   : > { %7307 = vmatmul.mubr.bf16.gmra.mrb[196].mxu1 %v2262_v19  ;;  %7419 = vmatmul.mubr.bf16.gmra.mrb[196].mxu0 %v2895_v63  ;;  %v2908_v19 = vrot.slane %v2906_v34, 4  ;;  %v2911_v63 = vrot.slane %v2909_v61, 5 }
 0x1b8   : > { %7310 = vmatprep.mubr.msk.bf16.mxu1 %vm8117_vm0, %v10162_v13  ;;  %7422 = vmatprep.mubr.msk.bf16.mxu0 %vm8117_vm0, %v10162_v13 }
 0x1b9   : > { %v2912_v22 = vor.u32 %v2911_v63, %v2908_v19 }
 0x1ba   : > { %v1344_v45 = vpop.f32.mrb[92].mxu1  ;;  %v1904_v29 = vpop.f32.mrb[92].mxu0 }
 0x1bb   : > { %v1525_v17 = vadd.f32 %v1344_v45, %v8883_v14  ;;  %v9101_v57 = vadd.f32 %v1904_v29, %v1523_v27  ;;  %v7072_v52 = vpop.f32.mrb[93].mxu1  ;;  %v7184_v38 = vpop.f32.mrb[93].mxu0  ;;  %v2265_v14 = vrot.slane %v2184_v60, 4  ;;  %v2918_v27 = vshll.u32 %v2184_v60, 16 }
 0x1bc   : > { %v1347_v37 = vpop.f32.mrb[94].mxu1  ;;  %v1907_v42 = vpop.f32.mrb[94].mxu0 }
 0x1bd   : > { %v1526_v25 = vadd.f32 %v1347_v37, %v8888_v36  ;;  %v9106_v32 = vadd.f32 %v1907_v42, %v1524_v47  ;;  %v7185_v8 = vpop.f32.mrb[95].mxu0  ;;  %v7073_v18 = vpop.f32.mrb[95].mxu1  ;;  %v2266_v37 = vsel %vm2235_vm3, %v2263_v59, %v2265_v14  ;;  %v2913_v42 = vsel %vm2779_vm4, %v2903_v53, %v2912_v22 }
 0x1be   : > { %v2185_v18 = vld [vmem:[#allocation2 + $0x88] sm:$0xff] }
 0x1bf   : > { %7311 = vmatmul.mubr.bf16.gmra.mrb[200].mxu1 %v2264_v21  ;;  %7423 = vmatmul.mubr.bf16.gmra.mrb[200].mxu0 %v2904_v10  ;;  %v2917_v21 = vrot.slane %v2915_v24, 4  ;;  %v2920_v10 = vrot.slane %v2918_v27, 5  ;;  %v2924_v53 = vshrl.u32 %v2185_v18, 16 }
 0x1c0   : > { %7314 = vmatprep.mubr.msk.bf16.mxu1 %vm8117_vm0, %v10162_v13  ;;  %7426 = vmatprep.mubr.msk.bf16.mxu0 %vm8117_vm0, %v10162_v13 }
 0x1c1   : > { %v2921_v59 = vor.u32 %v2920_v10, %v2917_v21 }
 0x1c2   : > { %v1352_v34 = vpop.f32.mrb[96].mxu1  ;;  %v1912_v61 = vpop.f32.mrb[96].mxu0 }
 0x1c3   : > { %v1527_v36 = vadd.f32 %v1352_v34, %v8912_v28  ;;  %v7076_v47 = vpop.f32.mrb[97].mxu1  ;;  %v7188_v45 = vpop.f32.mrb[97].mxu0  ;;  %v9113_v29 = vadd.f32 %v1912_v61, %v1525_v17  ;;  %v2267_v28 = vrot.slane %v2185_v18, 4  ;;  %v2927_v17 = vshll.u32 %v2185_v18, 16 }
 0x1c4   : > { %v1355_v52 = vpop.f32.mrb[98].mxu1  ;;  %v1915_v38 = vpop.f32.mrb[98].mxu0 }
 0x1c5   : > { %v1528_v19 = vadd.f32 %v1355_v52, %v8919_v4  ;;  %v7189_v63 = vpop.f32.mrb[99].mxu0  ;;  %v7077_v8 = vpop.f32.mrb[99].mxu1  ;;  %v9118_v60 = vadd.f32 %v1915_v38, %v1526_v25  ;;  %v2268_v52 = vsel %vm2235_vm3, %v2265_v14, %v2267_v28  ;;  %v2922_v38 = vsel %vm2779_vm4, %v2912_v22, %v2921_v59 }
 0x1c6   : > { %v2186_v8 = vld [vmem:[#allocation2 + $0x90] sm:$0xff] }
 0x1c7   : > { %7315 = vmatmul.mubr.bf16.gmra.mrb[204].mxu1 %v2266_v37  ;;  %7427 = vmatmul.mubr.bf16.gmra.mrb[204].mxu0 %v2913_v42  ;;  %v2926_v37 = vrot.slane %v2924_v53, 4  ;;  %v2929_v42 = vrot.slane %v2927_v17, 5  ;;  %v2933_v22 = vshrl.u32 %v2186_v8, 16 }
 0x1c8   : > { %7318 = vmatprep.mubr.msk.bf16.mxu1 %vm8117_vm0, %v10162_v13  ;;  %7430 = vmatprep.mubr.msk.bf16.mxu0 %vm8117_vm0, %v10162_v13 }
 0x1c9   : > { %v2930_v14 = vor.u32 %v2929_v42, %v2926_v37 }
 0x1ca   : > { %v1360_v24 = vpop.f32.mrb[100].mxu1  ;;  %v1920_v27 = vpop.f32.mrb[100].mxu0 }
 0x1cb   : > { %v1529_v4 = vadd.f32 %v1360_v24, %v8726_v3  ;;  %v7080_v34 = vpop.f32.mrb[101].mxu1  ;;  %v7192_v61 = vpop.f32.mrb[101].mxu0  ;;  %v9125_v25 = vadd.f32 %v1920_v27, %v1527_v36  ;;  %v2269_v3 = vrot.slane %v2186_v8, 4  ;;  %v2936_v36 = vshll.u32 %v2186_v8, 16 }
 0x1cc   : > { %v1363_v47 = vpop.f32.mrb[102].mxu1  ;;  %v1923_v45 = vpop.f32.mrb[102].mxu0 }
 0x1cd   : > { %v1530_v21 = vadd.f32 %v1363_v47, %v8732_v12  ;;  %v7193_v10 = vpop.f32.mrb[103].mxu0  ;;  %v7081_v63 = vpop.f32.mrb[103].mxu1  ;;  %v9130_v18 = vadd.f32 %v1923_v45, %v1528_v19  ;;  %v2270_v47 = vsel %vm2235_vm3, %v2267_v28, %v2269_v3  ;;  %v2931_v45 = vsel %vm2779_vm4, %v2921_v59, %v2930_v14 }
 0x1ce   : > { %v2187_v63 = vld [vmem:[#allocation2 + $0x98] sm:$0xff] }
 0x1cf   : > { %7319 = vmatmul.mubr.bf16.gmra.mrb[208].mxu1 %v2268_v52  ;;  %7431 = vmatmul.mubr.bf16.gmra.mrb[208].mxu0 %v2922_v38  ;;  %v2935_v52 = vrot.slane %v2933_v22, 4  ;;  %v2938_v38 = vrot.slane %v2936_v36, 5  ;;  %v2942_v59 = vshrl.u32 %v2187_v63, 16 }
 0x1d0   : > { %7322 = vmatprep.mubr.msk.bf16.mxu1 %vm8117_vm0, %v10162_v13  ;;  %7434 = vmatprep.mubr.msk.bf16.mxu0 %vm8117_vm0, %v10162_v13 }
 0x1d1   : > { %v2939_v28 = vor.u32 %v2938_v38, %v2935_v52 }
 0x1d2   : > { %v1368_v53 = vpop.f32.mrb[104].mxu1  ;;  %v1928_v17 = vpop.f32.mrb[104].mxu0 }
 0x1d3   : > { %v1531_v12 = vadd.f32 %v1368_v53, %v8740_v31  ;;  %v7084_v24 = vpop.f32.mrb[105].mxu1  ;;  %v7196_v27 = vpop.f32.mrb[105].mxu0  ;;  %v9137_v19 = vadd.f32 %v1928_v17, %v1529_v4  ;;  %v2271_v31 = vrot.slane %v2187_v63, 4  ;;  %v2945_v4 = vshll.u32 %v2187_v63, 16 }
 0x1d4   : > { %v1371_v34 = vpop.f32.mrb[106].mxu1  ;;  %v1931_v61 = vpop.f32.mrb[106].mxu0 }
 0x1d5   : > { %v1532_v37 = vadd.f32 %v1371_v34, %v8746_v44  ;;  %v7197_v42 = vpop.f32.mrb[107].mxu0  ;;  %v7085_v10 = vpop.f32.mrb[107].mxu1  ;;  %v9142_v8 = vadd.f32 %v1931_v61, %v1530_v21  ;;  %v2272_v34 = vsel %vm2235_vm3, %v2269_v3, %v2271_v31  ;;  %v2940_v61 = vsel %vm2779_vm4, %v2930_v14, %v2939_v28 }
 0x1d6   : > { %v2188_v10 = vld [vmem:[#allocation2 + $0xa0] sm:$0xff] }
 0x1d7   : > { %7323 = vmatmul.mubr.bf16.gmra.mrb[212].mxu1 %v2270_v47  ;;  %7435 = vmatmul.mubr.bf16.gmra.mrb[212].mxu0 %v2931_v45  ;;  %v2944_v47 = vrot.slane %v2942_v59, 4  ;;  %v2947_v45 = vrot.slane %v2945_v4, 5  ;;  %v2951_v14 = vshrl.u32 %v2188_v10, 16 }
 0x1d8   : > { %7326 = vmatprep.mubr.msk.bf16.mxu1 %vm8117_vm0, %v10162_v13  ;;  %7438 = vmatprep.mubr.msk.bf16.mxu0 %vm8117_vm0, %v10162_v13 }
 0x1d9   : > { %v2948_v3 = vor.u32 %v2947_v45, %v2944_v47 }
 0x1da   : > { %v1376_v22 = vpop.f32.mrb[108].mxu1  ;;  %v1936_v36 = vpop.f32.mrb[108].mxu0 }
 0x1db   : > { %v1533_v44 = vadd.f32 %v1376_v22, %v8754_v49  ;;  %v7088_v53 = vpop.f32.mrb[109].mxu1  ;;  %v7200_v17 = vpop.f32.mrb[109].mxu0  ;;  %v9149_v21 = vadd.f32 %v1936_v36, %v1531_v12  ;;  %v2273_v49 = vrot.slane %v2188_v10, 4  ;;  %v2954_v12 = vshll.u32 %v2188_v10, 16 }
 0x1dc   : > { %v1379_v24 = vpop.f32.mrb[110].mxu1  ;;  %v1939_v27 = vpop.f32.mrb[110].mxu0 }
 0x1dd   : > { %v1534_v52 = vadd.f32 %v1379_v24, %v8760_v55  ;;  %v7201_v38 = vpop.f32.mrb[111].mxu0  ;;  %v7089_v42 = vpop.f32.mrb[111].mxu1  ;;  %v9154_v63 = vadd.f32 %v1939_v27, %v1532_v37  ;;  %v2274_v24 = vsel %vm2235_vm3, %v2271_v31, %v2273_v49  ;;  %v2949_v27 = vsel %vm2779_vm4, %v2939_v28, %v2948_v3 }
 0x1de   : > { %v2189_v42 = vld [vmem:[#allocation2 + $0xa8] sm:$0xff] }
 0x1df   : > { %7327 = vmatmul.mubr.bf16.gmra.mrb[216].mxu1 %v2272_v34  ;;  %7439 = vmatmul.mubr.bf16.gmra.mrb[216].mxu0 %v2940_v61  ;;  %v2953_v34 = vrot.slane %v2951_v14, 4  ;;  %v2956_v61 = vrot.slane %v2954_v12, 5  ;;  %v2960_v28 = vshrl.u32 %v2189_v42, 16 }
 0x1e0   : > { %7330 = vmatprep.mubr.msk.bf16.mxu1 %vm8117_vm0, %v10162_v13  ;;  %7442 = vmatprep.mubr.msk.bf16.mxu0 %vm8117_vm0, %v10162_v13 }
 0x1e1   : > { %v2957_v31 = vor.u32 %v2956_v61, %v2953_v34 }
 0x1e2   : > { %v1384_v59 = vpop.f32.mrb[112].mxu1  ;;  %v1944_v4 = vpop.f32.mrb[112].mxu0 }
 0x1e3   : > { %v1535_v55 = vadd.f32 %v1384_v59, %v8768_v20  ;;  %v7092_v22 = vpop.f32.mrb[113].mxu1  ;;  %v7204_v36 = vpop.f32.mrb[113].mxu0  ;;  %v9161_v37 = vadd.f32 %v1944_v4, %v1533_v44  ;;  %v2275_v20 = vrot.slane %v2189_v42, 4  ;;  %v2963_v44 = vshll.u32 %v2189_v42, 16 }
 0x1e4   : > { %v1387_v53 = vpop.f32.mrb[114].mxu1  ;;  %v1947_v17 = vpop.f32.mrb[114].mxu0 }
 0x1e5   : > { %v1536_v47 = vadd.f32 %v1387_v53, %v8774_v7  ;;  %v7205_v45 = vpop.f32.mrb[115].mxu0  ;;  %v7093_v38 = vpop.f32.mrb[115].mxu1  ;;  %v9166_v10 = vadd.f32 %v1947_v17, %v1534_v52  ;;  %v2276_v53 = vsel %vm2235_vm3, %v2273_v49, %v2275_v20  ;;  %v2958_v17 = vsel %vm2779_vm4, %v2948_v3, %v2957_v31 }
 0x1e6   : > { %v2190_v38 = vld [vmem:[#allocation2 + $0xb0] sm:$0xff] }
 0x1e7   : > { %7331 = vmatmul.mubr.bf16.gmra.mrb[220].mxu1 %v2274_v24  ;;  %7443 = vmatmul.mubr.bf16.gmra.mrb[220].mxu0 %v2949_v27  ;;  %v2962_v24 = vrot.slane %v2960_v28, 4  ;;  %v2965_v27 = vrot.slane %v2963_v44, 5  ;;  %v2969_v3 = vshrl.u32 %v2190_v38, 16 }
 0x1e8   : > { %7334 = vmatprep.mubr.msk.bf16.mxu1 %vm8117_vm0, %v10162_v13  ;;  %7446 = vmatprep.mubr.msk.bf16.mxu0 %vm8117_vm0, %v10162_v13 }
 0x1e9   : > { %v2966_v49 = vor.u32 %v2965_v27, %v2962_v24 }
 0x1ea   : > { %v1392_v14 = vpop.f32.mrb[116].mxu1  ;;  %v1952_v12 = vpop.f32.mrb[116].mxu0 }
 0x1eb   : > { %v1537_v7 = vadd.f32 %v1392_v14, %v8782_v9  ;;  %v7096_v59 = vpop.f32.mrb[117].mxu1  ;;  %v7208_v4 = vpop.f32.mrb[117].mxu0  ;;  %v9173_v52 = vadd.f32 %v1952_v12, %v1535_v55  ;;  %v2277_v9 = vrot.slane %v2190_v38, 4  ;;  %v2972_v55 = vshll.u32 %v2190_v38, 16 }
 0x1ec   : > { %v1395_v22 = vpop.f32.mrb[118].mxu1  ;;  %v1955_v36 = vpop.f32.mrb[118].mxu0 }
 0x1ed   : > { %v1538_v34 = vadd.f32 %v1395_v22, %v8788_v26  ;;  %v7209_v61 = vpop.f32.mrb[119].mxu0  ;;  %v7097_v45 = vpop.f32.mrb[119].mxu1  ;;  %v9178_v42 = vadd.f32 %v1955_v36, %v1536_v47  ;;  %v2278_v22 = vsel %vm2235_vm3, %v2275_v20, %v2277_v9  ;;  %v2967_v36 = vsel %vm2779_vm4, %v2957_v31, %v2966_v49 }
 0x1ee   : > { %v2191_v45 = vld [vmem:[#allocation2 + $0xb8] sm:$0xff] }
 0x1ef   : > { %7335 = vmatmul.mubr.bf16.gmra.mrb[224].mxu1 %v2276_v53  ;;  %7447 = vmatmul.mubr.bf16.gmra.mrb[224].mxu0 %v2958_v17  ;;  %v2971_v53 = vrot.slane %v2969_v3, 4  ;;  %v2974_v17 = vrot.slane %v2972_v55, 5  ;;  %v2978_v31 = vshrl.u32 %v2191_v45, 16 }
 0x1f0   : > { %7338 = vmatprep.mubr.msk.bf16.mxu1 %vm8117_vm0, %v10162_v13  ;;  %7450 = vmatprep.mubr.msk.bf16.mxu0 %vm8117_vm0, %v10162_v13 }
 0x1f1   : > { %v2975_v20 = vor.u32 %v2974_v17, %v2971_v53 }
 0x1f2   : > { %v1400_v28 = vpop.f32.mrb[120].mxu1  ;;  %v1960_v44 = vpop.f32.mrb[120].mxu0 }
 0x1f3   : > { %v1539_v26 = vadd.f32 %v1400_v28, %v8796_v40  ;;  %v7100_v14 = vpop.f32.mrb[121].mxu1  ;;  %v7212_v12 = vpop.f32.mrb[121].mxu0  ;;  %v9185_v47 = vadd.f32 %v1960_v44, %v1537_v7  ;;  %v2279_v40 = vrot.slane %v2191_v45, 4  ;;  %v2981_v7 = vshll.u32 %v2191_v45, 16 }
 0x1f4   : > { %v1403_v59 = vpop.f32.mrb[122].mxu1  ;;  %v1963_v4 = vpop.f32.mrb[122].mxu0 }
 0x1f5   : > { %v1540_v24 = vadd.f32 %v1403_v59, %v8802_v51  ;;  %v7213_v27 = vpop.f32.mrb[123].mxu0  ;;  %v7101_v61 = vpop.f32.mrb[123].mxu1  ;;  %v9190_v38 = vadd.f32 %v1963_v4, %v1538_v34  ;;  %v2280_v59 = vsel %vm2235_vm3, %v2277_v9, %v2279_v40  ;;  %v2976_v4 = vsel %vm2779_vm4, %v2966_v49, %v2975_v20 }
 0x1f6   : > { %v2192_v61 = vld [vmem:[#allocation2 + $0xc0] sm:$0xff] }
 0x1f7   : > { %7339 = vmatmul.mubr.bf16.gmra.mrb[228].mxu1 %v2278_v22  ;;  %7451 = vmatmul.mubr.bf16.gmra.mrb[228].mxu0 %v2967_v36  ;;  %v2980_v22 = vrot.slane %v2978_v31, 4  ;;  %v2983_v36 = vrot.slane %v2981_v7, 5  ;;  %v2987_v49 = vshrl.u32 %v2192_v61, 16 }
 0x1f8   : > { %7342 = vmatprep.mubr.msk.bf16.mxu1 %vm8117_vm0, %v10162_v13  ;;  %7454 = vmatprep.mubr.msk.bf16.mxu0 %vm8117_vm0, %v10162_v13 }
 0x1f9   : > { %v2984_v9 = vor.u32 %v2983_v36, %v2980_v22 }
 0x1fa   : > { %v1408_v3 = vpop.f32.mrb[124].mxu1  ;;  %v1968_v55 = vpop.f32.mrb[124].mxu0 }
 0x1fb   : > { %v1541_v51 = vadd.f32 %v1408_v3, %v8810_v16  ;;  %v7104_v28 = vpop.f32.mrb[125].mxu1  ;;  %v7216_v44 = vpop.f32.mrb[125].mxu0  ;;  %v9197_v34 = vadd.f32 %v1968_v55, %v1539_v26  ;;  %v2281_v16 = vrot.slane %v2192_v61, 4  ;;  %v2990_v26 = vshll.u32 %v2192_v61, 16 }
 0x1fc   : > { %v1411_v14 = vpop.f32.mrb[126].mxu1  ;;  %v1971_v12 = vpop.f32.mrb[126].mxu0 }
 0x1fd   : > { %v1542_v53 = vadd.f32 %v1411_v14, %v8816_v46  ;;  %v7217_v17 = vpop.f32.mrb[127].mxu0  ;;  %v7105_v27 = vpop.f32.mrb[127].mxu1  ;;  %v9202_v45 = vadd.f32 %v1971_v12, %v1540_v24  ;;  %v10165_v46 = vld [vmem:[#allocation4_spill] sm:$0xff]  ;;  %v2282_v12 = vsel %vm2235_vm3, %v2279_v40, %v2281_v16  ;;  %v2283_v40 = vrot.slane %v9016_v23, 4 }
 0x1fe   : > { %v2992_v17 = vrot.slane %v2990_v26, 5  ;;  %v10166_v27 = vld [vmem:[#allocation5_spill] sm:$0xff] }
 0x1ff   : > { %10164 = vst [vmem:[#allocation14_spill] sm:$0xff] %v9202_v45  ;;  %7343 = vmatmul.mubr.bf16.gmra.mrb[232].mxu1 %v2280_v59  ;;  %7455 = vmatmul.mubr.bf16.gmra.mrb[232].mxu0 %v2976_v4  ;;  %v2985_v59 = vsel %vm2779_vm4, %v2975_v20, %v2984_v9  ;;  %v2989_v4 = vrot.slane %v2987_v49, 4  ;;  %v2996_v20 = vshrl.u32 %v9016_v23, 16  ;;  %v2999_v49 = vshll.u32 %v9016_v23, 16 }
 0x200   : > { %7346 = vmatprep.mubr.msk.bf16.mxu1 %vm8117_vm0, %v10162_v13  ;;  %7458 = vmatprep.mubr.msk.bf16.mxu0 %vm8117_vm0, %v10162_v13 }
 0x202   : > { %v1416_v31 = vpop.f32.mrb[128].mxu1  ;;  %v1976_v7 = vpop.f32.mrb[128].mxu0 }
 0x203   : > { %v1543_v3 = vadd.f32 %v1416_v31, %v10165_v46  ;;  %v7108_v55 = vpop.f32.mrb[129].mxu1  ;;  %v7220_v28 = vpop.f32.mrb[129].mxu0  ;;  %v9209_v24 = vadd.f32 %v1976_v7, %v1541_v51  ;;  %v2993_v51 = vor.u32 %v2992_v17, %v2989_v4  ;;  %v10168_v7 = vld [vmem:[#allocation6_spill] sm:$0xff]  ;;  %v3001_v4 = vrot.slane %v2999_v49, 5  ;;  %v10169_v17 = vld [vmem:[#allocation7_spill] sm:$0xff] }
 0x204   : > { %v1419_v44 = vpop.f32.mrb[130].mxu1  ;;  %v1979_v14 = vpop.f32.mrb[130].mxu0 }
 0x205   : > { %v1544_v22 = vadd.f32 %v1419_v44, %v10166_v27  ;;  %v7221_v36 = vpop.f32.mrb[131].mxu0  ;;  %v7109_v61 = vpop.f32.mrb[131].mxu1  ;;  %v9214_v45 = vadd.f32 %v1979_v14, %v1542_v53  ;;  %v2998_v27 = vrot.slane %v2996_v20, 4  ;;  %v10170_v20 = vld [vmem:[#allocation8_spill] sm:$0xff] }
 0x207   : > { %10167 = vst [vmem:[#allocation4_spill] sm:$0xff] %v9214_v45  ;;  %7347 = vmatmul.mubr.bf16.gmra.mrb[236].mxu1 %v2282_v12  ;;  %7459 = vmatmul.mubr.bf16.gmra.mrb[236].mxu0 %v2985_v59  ;;  %v2284_v12 = vsel %vm2235_vm3, %v2281_v16, %v2283_v40  ;;  %v2994_v59 = vsel %vm2779_vm4, %v2984_v9, %v2993_v51  ;;  %v2762_v16 = vld [vmem:[#allocation2 + $0xd0] sm:$0x1] }
 0x208   : > { %7350 = vmatprep.mubr.msk.bf16.mxu1 %vm8117_vm0, %v10162_v13  ;;  %7462 = vmatprep.mubr.msk.bf16.mxu0 %vm8117_vm0, %v10162_v13 }
 0x20a   : > { %v1424_v26 = vpop.f32.mrb[132].mxu1  ;;  %v1984_v31 = vpop.f32.mrb[132].mxu0 }
 0x20b   : > { %v1545_v53 = vadd.f32 %v1424_v26, %v10168_v7  ;;  %v7112_v46 = vpop.f32.mrb[133].mxu1  ;;  %v7224_v55 = vpop.f32.mrb[133].mxu0  ;;  %v9224_v28 = vadd.f32 %v1984_v31, %v1543_v3  ;;  %v3002_v3 = vor.u32 %v3001_v4, %v2998_v27  ;;  %v3462_v27 = vld [vmem:[#allocation2 + $0x10] sm:$0xff] }
 0x20c   : > { %v1427_v44 = vpop.f32.mrb[134].mxu1  ;;  %v1987_v14 = vpop.f32.mrb[134].mxu0 }
 0x20d   : > { %v1546_v36 = vadd.f32 %v1427_v44, %v10169_v17  ;;  %v7225_v61 = vpop.f32.mrb[135].mxu0  ;;  %v7113_v23 = vpop.f32.mrb[135].mxu1  ;;  %v9229_v45 = vadd.f32 %v1987_v14, %v1544_v22  ;;  %v3003_v44 = vsel %vm2779_vm4, %v2993_v51, %v3002_v3  ;;  %v3005_v14 = vshll.u32 %v2762_v16, 16 }
 0x20e   : > { %v3461_v23 = vld [vmem:[#allocation2 + $0x8] sm:$0xe0]  ;;  %v3531_v51 = vrot.slane %v3462_v27, 5  ;;  %v8064_v27 = vld [vmem:[%s10148_s2 + $0x1c0] sm:$0xff]  }
 0x20f   : > { %7351 = vmatmul.mubr.bf16.gmra.mrb[240].mxu1 %v2284_v12  ;;  %7463 = vmatmul.mubr.bf16.gmra.mrb[240].mxu0 %v2994_v59  ;;  %v10171_v12 = vld [vmem:[#allocation9_spill] sm:$0xff] }
 0x210   : > { %7354 = vmatprep.mubr.msk.bf16.mxu1 %vm8117_vm0, %v10162_v13  ;;  %7466 = vmatprep.mubr.msk.bf16.mxu0 %vm8117_vm0, %v10162_v13 }
 0x212   : > { %v1432_v26 = vpop.f32.mrb[136].mxu1  ;;  %v1992_v9 = vpop.f32.mrb[136].mxu0 }
 0x213   : > { %v1547_v49 = vadd.f32 %v1432_v26, %v10170_v20  ;;  %v7116_v31 = vpop.f32.mrb[137].mxu1  ;;  %v7228_v7 = vpop.f32.mrb[137].mxu0  ;;  %v9236_v46 = vadd.f32 %v1992_v9, %v1545_v53  ;;  %v3007_v53 = vrot.slane %v3005_v14, 5  ;;  %v3530_v26 = vrot.slane %v3461_v23, 5  ;;  %v10173_v20 = vld [vmem:[#allocation10_spill] sm:$0xff] }
 0x214   : > { %v1435_v22 = vpop.f32.mrb[138].mxu1  ;;  %v1995_v55 = vpop.f32.mrb[138].mxu0 }
 0x215   : > { %v1548_v59 = vadd.f32 %v1435_v22, %v10171_v12  ;;  %v7229_v17 = vpop.f32.mrb[139].mxu0  ;;  %v7117_v61 = vpop.f32.mrb[139].mxu1  ;;  %v9240_v4 = vadd.f32 %v1995_v55, %v1546_v36  ;;  %v3532_v12 = vsel %vm3529_vm5, %v3530_v26, %v3531_v51 }
 0x216   : > { %v10174_v17 = vld [vmem:[#allocation11_spill] sm:$0xff] }
 0x217   : > { %10172 = vst [vmem:[#allocation5_spill] sm:$0xff] %v9240_v4  ;;  %7355 = vmatmul.mubr.bf16.gmra.mrb[244].mxu1 %v2283_v40  ;;  %7467 = vmatmul.mubr.bf16.gmra.mrb[244].mxu0 %v3003_v44  ;;  %v3008_v44 = vsel %vm2779_vm4, %v3002_v3, %v3007_v53  ;;  %v3463_v4 = vld [vmem:[#allocation2 + $0x18] sm:$0xff] }
 0x218   : > { %7470 = vmatprep.mubr.msk.bf16.mxu0 %vm8117_vm0, %v10162_v13  ;;  %7490 = vmatprep.mubr.msk.bf16.mxu1 %vm8117_vm0, %v10162_v13  ;;  %v3533_v3 = vrot.slane %v3463_v4, 5 }
 0x21a   : > { %v1440_v16 = vpop.f32.mrb[140].mxu1  ;;  %v2000_v9 = vpop.f32.mrb[140].mxu0 }
 0x21b   : > { %v1549_v31 = vadd.f32 %v1440_v16, %v10173_v20  ;;  %v7120_v7 = vpop.f32.mrb[141].mxu1  ;;  %v7232_v22 = vpop.f32.mrb[141].mxu0  ;;  %v9247_v36 = vadd.f32 %v2000_v9, %v1547_v49  ;;  %v8066_v49 = vld [vmem:[%s10148_s2 + $0x1c8] sm:$0xff]  }
 0x21c   : > { %v1443_v40 = vpop.f32.mrb[142].mxu1  ;;  %v2003_v55 = vpop.f32.mrb[142].mxu0 }
 0x21d   : > { %v1550_v61 = vadd.f32 %v1443_v40, %v10174_v17  ;;  %v7233_v14 = vpop.f32.mrb[143].mxu0  ;;  %v7121_v23 = vpop.f32.mrb[143].mxu1  ;;  %v9255_v16 = vadd.f32 %v2003_v55, %v1548_v59  ;;  %v10175_v59 = vld [vmem:[#allocation12_spill] sm:$0xff]  ;;  %v3534_v55 = vsel %vm3529_vm5, %v3531_v51, %v3533_v3 }
 0x21e   : > { %v3464_v14 = vld [vmem:[#allocation2 + $0x20] sm:$0xff] }
 0x21f   : > { %7471 = vmatmul.mubr.bf16.gmra.mrb[248].mxu0 %v3008_v44  ;;  %7491 = vmatmul.mubr.bf16.vlgmr.msra.gmra.mrb[248].mxu1 %v3532_v12  ;;  %v8065_v12 = vld [vmem:[%s10148_s2 + $0x200] sm:$0xff]   ;;  %v3535_v51 = vrot.slane %v3464_v14, 5 }
 0x220   : > { %7494 = vmatprep.mubr.msk.bf16.mxu1 %vm8117_vm0, %v10162_v13  ;;  %7606 = vmatprep.mubr.msk.bf16.mxu0 %vm8117_vm0, %v10162_v13 }
 0x221   : > { %7707 = vmatpush3.bf16.msra.mxu1 %v8064_v27 }
 0x222   : > { %v1448_v53 = vpop.f32.mrb[144].mxu1  ;;  %v2008_v26 = vpop.f32.mrb[144].mxu0  ;;  %7708 = vmatprep.subr.bf16.mxu1 %v10162_v13 }
 0x223   : > { %v1551_v9 = vadd.f32 %v1448_v53, %v10175_v59  ;;  %v7236_v20 = vpop.f32.mrb[145].mxu0  ;;  %v7124_v7 = vpop.f32.mrb[145].mxu1  ;;  %v9266_v22 = vadd.f32 %v2008_v26, %v1549_v31  ;;  %v8068_v31 = vld [vmem:[%s10148_s2 + $0x1d0] sm:$0xff]   ;;  %v8067_v53 = vld [vmem:[%s10148_s2 + $0x208] sm:$0xff]  }
 0x224   : > { %v2011_v40 = vpop.f32.mrb[146].mxu0  ;;  %v1451_v44 = vpop.f32.mrb[146].mxu1 }
 0x225   : > { %v7237_v17 = vpop.f32.mrb[147].mxu0  ;;  %v7125_v23 = vpop.f32.mrb[147].mxu1  ;;  %7709 = vmatpush3.bf16.msra.mxu1 %v8066_v49  ;;  %v9272_v27 = vadd.f32 %v2011_v40, %v1550_v61  ;;  %v3536_v40 = vsel %vm3529_vm5, %v3533_v3, %v3535_v51  ;;  %v8071_v3 = vld [vmem:[%s10148_s2 + $0x218] sm:$0xff]  }
 0x226   : > { %7710 = vmatprep.subr.bf16.mxu1 %v10162_v13 }
 0x227   : > { %7495 = vmatmul.mubr.bf16.gmra.mrb[252].mxu1 %v3534_v55  ;;  %7607 = vmatmul.mubr.bf16.vlgmr.msra.gmra.mrb[252].mxu0 %v3463_v4  ;;  %v8070_v4 = vld [vmem:[%s10148_s2 + $0x1d8] sm:$0xff]  }
 0x228   : > { %7823 = vmatpush3.bf16.msra.mxu0 %v8065_v12  ;;  %7498 = vmatprep.mubr.msk.bf16.mxu1 %vm8117_vm0, %v10162_v13 }
 0x229   : > { %7610 = vmatprep.mubr.msk.bf16.mxu0 %vm8117_vm0, %v10162_v13  ;;  %7824 = vmatprep.subr.bf16.mxu0 %v10162_v13 }
 0x22a   : > { %v2016_v61 = vpop.f32.mrb[148].mxu0  ;;  %v2392_v49 = vpop.f32.mrb[148].mxu1  ;;  %7711 = vmatpush3.bf16.msra.mxu1 %v8068_v31  ;;  %v3465_v31 = vld [vmem:[#allocation2 + $0x28] sm:$0xff] }
 0x22b   : > { %v2639_v26 = vadd.f32 %v2392_v49, %v8949_v56  ;;  %v7240_v59 = vpop.f32.mrb[149].mxu0  ;;  %v7260_v20 = vpop.f32.mrb[149].mxu1  ;;  %7712 = vmatprep.subr.bf16.mxu1 %v10162_v13  ;;  %v9291_v7 = vadd.f32 %v2016_v61, %v1551_v9  ;;  %v8069_v56 = vld [vmem:[%s10148_s2 + $0x210] sm:$0xff]   ;;  %v8072_v9 = vld [vmem:[%s10148_s2 + $0x1e0] sm:$0xff]  }
 0x22c   : > { %v2019_v55 = vpop.f32.mrb[150].mxu0  ;;  %v2395_v44 = vpop.f32.mrb[150].mxu1  ;;  %7825 = vmatpush3.bf16.msra.mxu0 %v8067_v53 }
 0x22d   : > { %v2640_v12 = vadd.f32 %v2395_v44, %v8955_v54  ;;  %v7241_v17 = vpop.f32.mrb[151].mxu0  ;;  %v7261_v23 = vpop.f32.mrb[151].mxu1  ;;  %7826 = vmatprep.subr.bf16.mxu0 %v10162_v13  ;;  %v3537_v54 = vrot.slane %v3465_v31, 5 }
 0x22e   : > { %7713 = vmatpush3.bf16.msra.mxu1 %v8070_v4 }
 0x22f   : > { %7499 = vmatmul.mubr.bf16.gmra.mrb[0].mxu1 %v3536_v40  ;;  %7611 = vmatmul.mubr.bf16.gmra.mrb[0].mxu0 %v3464_v14  ;;  %v8074_v14 = vld [vmem:[%s10148_s2 + $0x1e8] sm:$0xff]   ;;  %v3538_v44 = vsel %vm3529_vm5, %v3535_v51, %v3537_v54 }
 0x230   : > { %7502 = vmatprep.mubr.msk.bf16.mxu1 %vm8117_vm0, %v10162_v13  ;;  %7614 = vmatprep.mubr.msk.bf16.mxu0 %vm8117_vm0, %v10162_v13  ;;  %v8075_v51 = vld [vmem:[%s10148_s2 + $0x228] sm:$0xff]  }
 0x231   : > { %7827 = vmatpush3.bf16.msra.mxu0 %v8069_v56  ;;  %7714 = vmatprep.subr.bf16.mxu1 %v10162_v13 }
 0x232   : > { %v2400_v53 = vpop.f32.mrb[152].mxu1  ;;  %v3116_v61 = vpop.f32.mrb[152].mxu0  ;;  %7828 = vmatprep.subr.bf16.mxu0 %v10162_v13  ;;  %7715 = vmatpush3.bf16.msra.mxu1 %v8072_v9  ;;  %v3466_v9 = vld [vmem:[#allocation2 + $0x30] sm:$0xff] }
 0x233   : > { %v2641_v49 = vadd.f32 %v2400_v53, %v8971_v58  ;;  %v7264_v4 = vpop.f32.mrb[153].mxu1  ;;  %v7376_v59 = vpop.f32.mrb[153].mxu0  ;;  %7716 = vmatprep.subr.bf16.mxu1 %v10162_v13  ;;  %v9316_v20 = vadd.f32 %v3116_v61, %v2639_v26  ;;  %v8073_v58 = vld [vmem:[%s10148_s2 + $0x220] sm:$0xff]  }
 0x234   : > { %v2403_v40 = vpop.f32.mrb[154].mxu1  ;;  %v3119_v55 = vpop.f32.mrb[154].mxu0 }
 0x235   : > { %v2642_v17 = vadd.f32 %v2403_v40, %v8976_v5  ;;  %v7377_v23 = vpop.f32.mrb[155].mxu0  ;;  %v7265_v56 = vpop.f32.mrb[155].mxu1  ;;  %7829 = vmatpush3.bf16.msra.mxu0 %v8071_v3  ;;  %v9323_v53 = vadd.f32 %v3119_v55, %v2640_v12  ;;  %v3539_v5 = vrot.slane %v3466_v9, 5 }
 0x236   : > { %7830 = vmatprep.subr.bf16.mxu0 %v10162_v13  ;;  %7717 = vmatpush3.bf16.msra.mxu1 %v8074_v14  ;;  %v3467_v56 = vld [vmem:[#allocation2 + $0x38] sm:$0xff] }
 0x237   : > { %7503 = vmatmul.mubr.bf16.gmra.mrb[4].mxu1 %v3538_v44  ;;  %7615 = vmatmul.mubr.bf16.gmra.mrb[4].mxu0 %v3465_v31  ;;  %v3540_v40 = vsel %vm3529_vm5, %v3537_v54, %v3539_v5 }
 0x238   : > { %7506 = vmatprep.mubr.msk.bf16.mxu1 %vm8117_vm0, %v10162_v13  ;;  %7618 = vmatprep.mubr.msk.bf16.mxu0 %vm8117_vm0, %v10162_v13 }
 0x239   : > { %7831 = vmatpush3.bf16.msra.mxu0 %v8073_v58  ;;  %7718 = vmatprep.subr.bf16.mxu1 %v10162_v13  ;;  %v8076_v58 = vld [vmem:[%s10148_s2 + $0x1f0] sm:$0xff]  }
 0x23a   : > { %v2408_v26 = vpop.f32.mrb[156].mxu1  ;;  %v3124_v12 = vpop.f32.mrb[156].mxu0  ;;  %7832 = vmatprep.subr.bf16.mxu0 %v10162_v13  ;;  %7719 = vmatpush3.bf16.msra.mxu1 %v8076_v58 }
 0x23b   : > { %v2643_v31 = vadd.f32 %v2408_v26, %v8992_v2  ;;  %v7268_v3 = vpop.f32.mrb[157].mxu1  ;;  %v7380_v61 = vpop.f32.mrb[157].mxu0  ;;  %v9336_v14 = vadd.f32 %v3124_v12, %v2641_v49  ;;  %v8077_v2 = vld [vmem:[%s10148_s2 + $0x230] sm:$0xff]   ;;  %7720 = vmatprep.subr.bf16.mxu1 %v10162_v13 }
 0x23c   : > { %v2411_v4 = vpop.f32.mrb[158].mxu1  ;;  %v3127_v59 = vpop.f32.mrb[158].mxu0 }
 0x23d   : > { %v2644_v55 = vadd.f32 %v2411_v4, %v8997_v43  ;;  %v7381_v44 = vpop.f32.mrb[159].mxu0  ;;  %v7269_v23 = vpop.f32.mrb[159].mxu1  ;;  %7833 = vmatpush3.bf16.msra.mxu0 %v8075_v51  ;;  %v9346_v49 = vadd.f32 %v3127_v59, %v2642_v17  ;;  %v3541_v43 = vrot.slane %v3467_v56, 5 }
 0x23e   : > { %7834 = vmatprep.subr.bf16.mxu0 %v10162_v13  ;;  %v3468_v23 = vld [vmem:[#allocation2 + $0x40] sm:$0xff] }
 0x23f   : > { %7507 = vmatmul.mubr.bf16.gmra.mrb[8].mxu1 %v3540_v40  ;;  %7619 = vmatmul.mubr.bf16.gmra.mrb[8].mxu0 %v3466_v9  ;;  %v3542_v4 = vsel %vm3529_vm5, %v3539_v5, %v3541_v43 }
 0x240   : > { %7510 = vmatprep.mubr.msk.bf16.mxu1 %vm8117_vm0, %v10162_v13  ;;  %7622 = vmatprep.mubr.msk.bf16.mxu0 %vm8117_vm0, %v10162_v13 }
 0x241   : > { %7835 = vmatpush3.bf16.msra.mxu0 %v8077_v2 }
 0x242   : > { %v2416_v54 = vpop.f32.mrb[160].mxu1  ;;  %v3132_v51 = vpop.f32.mrb[160].mxu0  ;;  %7836 = vmatprep.subr.bf16.mxu0 %v10162_v13 }
 0x243   : > { %v2645_v17 = vadd.f32 %v2416_v54, %v9004_v0  ;;  %v7272_v26 = vpop.f32.mrb[161].mxu1  ;;  %v7384_v12 = vpop.f32.mrb[161].mxu0  ;;  %v9356_v9 = vadd.f32 %v3132_v51, %v2643_v31  ;;  %v3543_v0 = vrot.slane %v3468_v23, 5 }
 0x244   : > { %v2419_v3 = vpop.f32.mrb[162].mxu1  ;;  %v3135_v61 = vpop.f32.mrb[162].mxu0 }
 0x245   : > { %v2646_v59 = vadd.f32 %v2419_v3, %v9009_v39  ;;  %v7385_v40 = vpop.f32.mrb[163].mxu0  ;;  %v7273_v44 = vpop.f32.mrb[163].mxu1  ;;  %v9360_v58 = vadd.f32 %v3135_v61, %v2644_v55  ;;  %v3544_v12 = vsel %vm3529_vm5, %v3541_v43, %v3543_v0 }
 0x246   : > { %v3469_v40 = vld [vmem:[#allocation2 + $0x48] sm:$0xff] }
 0x247   : > { %7511 = vmatmul.mubr.bf16.gmra.mrb[12].mxu1 %v3542_v4  ;;  %7623 = vmatmul.mubr.bf16.gmra.mrb[12].mxu0 %v3467_v56  ;;  %v10176_v56 = vld [vmem:[#allocation13_spill] sm:$0xff] }
 0x248   : > { %7514 = vmatprep.mubr.msk.bf16.mxu1 %vm8117_vm0, %v10162_v13  ;;  %7626 = vmatprep.mubr.msk.bf16.mxu0 %vm8117_vm0, %v10162_v13 }
 0x24a   : > { %v2424_v31 = vpop.f32.mrb[164].mxu1  ;;  %v3140_v2 = vpop.f32.mrb[164].mxu0 }
 0x24b   : > { %v2647_v5 = vadd.f32 %v2424_v31, %v9019_v11  ;;  %v7276_v54 = vpop.f32.mrb[165].mxu1  ;;  %v7388_v39 = vpop.f32.mrb[165].mxu0  ;;  %v9367_v51 = vadd.f32 %v3140_v2, %v2645_v17  ;;  %v3545_v11 = vrot.slane %v3469_v40, 5 }
 0x24c   : > { %v2427_v26 = vpop.f32.mrb[166].mxu1  ;;  %v3143_v55 = vpop.f32.mrb[166].mxu0 }
 0x24d   : > { %v2648_v3 = vadd.f32 %v2427_v26, %v10176_v56  ;;  %v7389_v61 = vpop.f32.mrb[167].mxu0  ;;  %v7277_v4 = vpop.f32.mrb[167].mxu1  ;;  %v9371_v44 = vadd.f32 %v3143_v55, %v2646_v59  ;;  %v3546_v55 = vsel %vm3529_vm5, %v3543_v0, %v3545_v11 }
 0x24e   : > { %v3470_v61 = vld [vmem:[#allocation2 + $0x50] sm:$0xff]  ;;  %v8078_v4 = vld [vmem:[%s10148_s2 + $0x1f8] sm:$0xff]  }
 0x24f   : > { %10177 = vst [vmem:[#allocation6_spill] sm:$0xff] %v9371_v44  ;;  %7515 = vmatmul.mubr.bf16.gmra.mrb[16].mxu1 %v3544_v12  ;;  %7627 = vmatmul.mubr.bf16.gmra.mrb[16].mxu0 %v3468_v23 }
 0x250   : > { %7518 = vmatprep.mubr.msk.bf16.mxu1 %vm8117_vm0, %v10162_v13  ;;  %7630 = vmatprep.mubr.msk.bf16.mxu0 %vm8117_vm0, %v10162_v13 }
 0x251   : > { %7721 = vmatpush3.bf16.msra.mxu1 %v8078_v4 }
 0x252   : > { %v2432_v17 = vpop.f32.mrb[168].mxu1  ;;  %v3148_v31 = vpop.f32.mrb[168].mxu0 }
 0x253   : > { %v2649_v43 = vadd.f32 %v2432_v17, %v9041_v50  ;;  %v7280_v2 = vpop.f32.mrb[169].mxu1  ;;  %v7392_v54 = vpop.f32.mrb[169].mxu0  ;;  %v9378_v39 = vadd.f32 %v3148_v31, %v2647_v5  ;;  %v8079_v50 = vld [vmem:[%s10148_s2 + $0x238] sm:$0xff]  }
 0x254   : > { %v2435_v26 = vpop.f32.mrb[170].mxu1  ;;  %v3151_v59 = vpop.f32.mrb[170].mxu0  ;;  %7837 = vmatpush3.bf16.msra.mxu0 %v8079_v50 }
 0x255   : > { %v2650_v23 = vadd.f32 %v2435_v26, %v9046_v6  ;;  %v7393_v12 = vpop.f32.mrb[171].mxu0  ;;  %v7281_v56 = vpop.f32.mrb[171].mxu1  ;;  %v9385_v44 = vadd.f32 %v3151_v59, %v2648_v3  ;;  %v3547_v6 = vrot.slane %v3470_v61, 5 }
 0x256   : > { %v3471_v56 = vld [vmem:[#allocation2 + $0x58] sm:$0xff] }
 0x257   : > { %10178 = vst [vmem:[#allocation7_spill] sm:$0xff] %v9385_v44  ;;  %7519 = vmatmul.mubr.bf16.gmra.mrb[20].mxu1 %v3546_v55  ;;  %7631 = vmatmul.mubr.bf16.gmra.mrb[20].mxu0 %v3469_v40  ;;  %v3548_v26 = vsel %vm3529_vm5, %v3545_v11, %v3547_v6  ;;  %v8080_v44 = vld [vmem:[%s8639_s14 + $0x14] sm:$0xff]   ;;  %s275_s14 = smul.u32 49, %s8106_s15 }
 0x258   : > { %7522 = vmatprep.mubr.msk.bf16.mxu1 %vm8117_vm0, %v10162_v13  ;;  %7634 = vmatprep.mubr.msk.bf16.mxu0 %vm8117_vm0, %v10162_v13  ;;  %537 = vst [vmem:[#allocation2 + $0xd8] sm:$0xff] %v8080_v44 }
 0x259   : > { %p276_p6 = scmp.lt.s32.totalorder %s275_s14, 97 }
 0x25a   : > { %v2440_v0 = vpop.f32.mrb[172].mxu1  ;;  %v3156_v5 = vpop.f32.mrb[172].mxu0 }
 0x25b   : > { %v2651_v3 = vadd.f32 %v2440_v0, %v9053_v1  ;;  %v7284_v17 = vpop.f32.mrb[173].mxu1  ;;  %v7396_v40 = vpop.f32.mrb[173].mxu0  ;;  %v9395_v31 = vadd.f32 %v3156_v5, %v2649_v43  ;;  %v3549_v1 = vrot.slane %v3471_v56, 5  ;;  %s10221_s14 = smov (!%p276_p6, %s275_s14), 97 }
 0x25c   : > { %v2443_v2 = vpop.f32.mrb[174].mxu1  ;;  %v3159_v54 = vpop.f32.mrb[174].mxu0  ;;  %s6251_s15 = sshll.u32 %s10221_s14, 2 }
 0x25d   : > { %v2652_v59 = vadd.f32 %v2443_v2, %v9058_v30  ;;  %v7397_v55 = vpop.f32.mrb[175].mxu0  ;;  %v7285_v12 = vpop.f32.mrb[175].mxu1  ;;  %v9400_v4 = vadd.f32 %v3159_v54, %v2650_v23  ;;  %v3472_v54 = vld [vmem:[#allocation2 + $0x60] sm:$0xff]  ;;  %s10018_s28 = scalar_lea.vmem %s10150_s4, %s6251_s15 }
 0x25f   : > { %7523 = vmatmul.mubr.bf16.gmra.mrb[24].mxu1 %v3548_v26  ;;  %7635 = vmatmul.mubr.bf16.gmra.mrb[24].mxu0 %v3470_v61  ;;  %v3550_v61 = vsel %vm3529_vm5, %v3547_v6, %v3549_v1 }
 0x260   : > { %7526 = vmatprep.mubr.msk.bf16.mxu1 %vm8117_vm0, %v10162_v13  ;;  %7638 = vmatprep.mubr.msk.bf16.mxu0 %vm8117_vm0, %v10162_v13 }
 0x262   : > { %v2448_v43 = vpop.f32.mrb[176].mxu1  ;;  %v3164_v11 = vpop.f32.mrb[176].mxu0 }
 0x263   : > { %v2653_v30 = vadd.f32 %v2448_v43, %v9065_v48  ;;  %v7288_v50 = vpop.f32.mrb[177].mxu1  ;;  %v7400_v0 = vpop.f32.mrb[177].mxu0  ;;  %v9407_v5 = vadd.f32 %v3164_v11, %v2651_v3  ;;  %v3551_v48 = vrot.slane %v3472_v54, 5 }
 0x264   : > { %v2451_v23 = vpop.f32.mrb[178].mxu1  ;;  %v3167_v17 = vpop.f32.mrb[178].mxu0 }
 0x265   : > { %v2654_v44 = vadd.f32 %v2451_v23, %v9070_v15  ;;  %v7401_v40 = vpop.f32.mrb[179].mxu0  ;;  %v7289_v2 = vpop.f32.mrb[179].mxu1  ;;  %v9411_v26 = vadd.f32 %v3167_v17, %v2652_v59  ;;  %v3552_v50 = vsel %vm3529_vm5, %v3549_v1, %v3551_v48  ;;  %v3473_v17 = vld [vmem:[#allocation2 + $0x68] sm:$0xff] }
 0x267   : > { %7527 = vmatmul.mubr.bf16.gmra.mrb[28].mxu1 %v3550_v61  ;;  %7639 = vmatmul.mubr.bf16.gmra.mrb[28].mxu0 %v3471_v56 }
 0x268   : > { %7530 = vmatprep.mubr.msk.bf16.mxu1 %vm8117_vm0, %v10162_v13  ;;  %7642 = vmatprep.mubr.msk.bf16.mxu0 %vm8117_vm0, %v10162_v13 }
 0x26a   : > { %v2456_v3 = vpop.f32.mrb[180].mxu1  ;;  %v3172_v55 = vpop.f32.mrb[180].mxu0 }
 0x26b   : > { %v2655_v6 = vadd.f32 %v2456_v3, %v9077_v35  ;;  %v7292_v12 = vpop.f32.mrb[181].mxu1  ;;  %v7404_v15 = vpop.f32.mrb[181].mxu0  ;;  %v9418_v43 = vadd.f32 %v3172_v55, %v2653_v30  ;;  %v3553_v35 = vrot.slane %v3473_v17, 5 }
 0x26c   : > { %v2459_v11 = vpop.f32.mrb[182].mxu1  ;;  %v3175_v59 = vpop.f32.mrb[182].mxu0 }
 0x26d   : > { %v2656_v56 = vadd.f32 %v2459_v11, %v9082_v41  ;;  %v7405_v0 = vpop.f32.mrb[183].mxu0  ;;  %v7293_v23 = vpop.f32.mrb[183].mxu1  ;;  %v9422_v61 = vadd.f32 %v3175_v59, %v2654_v44  ;;  %v3554_v12 = vsel %vm3529_vm5, %v3551_v48, %v3553_v35  ;;  %v3474_v59 = vld [vmem:[#allocation2 + $0x70] sm:$0xff] }
 0x26f   : > { %7531 = vmatmul.mubr.bf16.gmra.mrb[32].mxu1 %v3552_v50  ;;  %7643 = vmatmul.mubr.bf16.gmra.mrb[32].mxu0 %v3472_v54 }
 0x270   : > { %7534 = vmatprep.mubr.msk.bf16.mxu1 %vm8117_vm0, %v10162_v13  ;;  %7646 = vmatprep.mubr.msk.bf16.mxu0 %vm8117_vm0, %v10162_v13 }
 0x272   : > { %v2464_v30 = vpop.f32.mrb[184].mxu1  ;;  %v3180_v40 = vpop.f32.mrb[184].mxu0 }
 0x273   : > { %v2657_v1 = vadd.f32 %v2464_v30, %v9089_v62  ;;  %v7296_v2 = vpop.f32.mrb[185].mxu1  ;;  %v7408_v41 = vpop.f32.mrb[185].mxu0  ;;  %v9429_v3 = vadd.f32 %v3180_v40, %v2655_v6  ;;  %v3555_v62 = vrot.slane %v3474_v59, 5 }
 0x274   : > { %v2467_v55 = vpop.f32.mrb[186].mxu1  ;;  %v3183_v44 = vpop.f32.mrb[186].mxu0 }
 0x275   : > { %v2658_v54 = vadd.f32 %v2467_v55, %v9094_v33  ;;  %v7409_v15 = vpop.f32.mrb[187].mxu0  ;;  %v7297_v11 = vpop.f32.mrb[187].mxu1  ;;  %v9433_v50 = vadd.f32 %v3183_v44, %v2656_v56  ;;  %v3556_v2 = vsel %vm3529_vm5, %v3553_v35, %v3555_v62  ;;  %v3475_v44 = vld [vmem:[#allocation2 + $0x78] sm:$0xff] }
 0x277   : > { %7535 = vmatmul.mubr.bf16.gmra.mrb[36].mxu1 %v3554_v12  ;;  %7647 = vmatmul.mubr.bf16.gmra.mrb[36].mxu0 %v3473_v17 }
 0x278   : > { %7538 = vmatprep.mubr.msk.bf16.mxu1 %vm8117_vm0, %v10162_v13  ;;  %7650 = vmatprep.mubr.msk.bf16.mxu0 %vm8117_vm0, %v10162_v13 }
 0x27a   : > { %v2472_v6 = vpop.f32.mrb[188].mxu1  ;;  %v3188_v0 = vpop.f32.mrb[188].mxu0 }
 0x27b   : > { %v2659_v48 = vadd.f32 %v2472_v6, %v9101_v57  ;;  %v7300_v23 = vpop.f32.mrb[189].mxu1  ;;  %v7412_v33 = vpop.f32.mrb[189].mxu0  ;;  %v9440_v30 = vadd.f32 %v3188_v0, %v2657_v1  ;;  %v3557_v57 = vrot.slane %v3475_v44, 5 }
 0x27c   : > { %v2475_v40 = vpop.f32.mrb[190].mxu1  ;;  %v3191_v56 = vpop.f32.mrb[190].mxu0 }
 0x27d   : > { %v2660_v17 = vadd.f32 %v2475_v40, %v9106_v32  ;;  %v7413_v41 = vpop.f32.mrb[191].mxu0  ;;  %v7301_v55 = vpop.f32.mrb[191].mxu1  ;;  %v9444_v12 = vadd.f32 %v3191_v56, %v2658_v54  ;;  %v3558_v23 = vsel %vm3529_vm5, %v3555_v62, %v3557_v57  ;;  %v3476_v56 = vld [vmem:[#allocation2 + $0x80] sm:$0xff] }
 0x27f   : > { %7539 = vmatmul.mubr.bf16.gmra.mrb[40].mxu1 %v3556_v2  ;;  %7651 = vmatmul.mubr.bf16.gmra.mrb[40].mxu0 %v3474_v59 }
 0x280   : > { %7542 = vmatprep.mubr.msk.bf16.mxu1 %vm8117_vm0, %v10162_v13  ;;  %7654 = vmatprep.mubr.msk.bf16.mxu0 %vm8117_vm0, %v10162_v13 }
 0x282   : > { %v2480_v1 = vpop.f32.mrb[192].mxu1  ;;  %v3196_v15 = vpop.f32.mrb[192].mxu0 }
 0x283   : > { %v2661_v35 = vadd.f32 %v2480_v1, %v9113_v29  ;;  %v7304_v11 = vpop.f32.mrb[193].mxu1  ;;  %v7416_v32 = vpop.f32.mrb[193].mxu0  ;;  %v9451_v6 = vadd.f32 %v3196_v15, %v2659_v48  ;;  %v3559_v29 = vrot.slane %v3476_v56, 5 }
 0x284   : > { %v2483_v0 = vpop.f32.mrb[194].mxu1  ;;  %v3199_v54 = vpop.f32.mrb[194].mxu0 }
 0x285   : > { %v2662_v59 = vadd.f32 %v2483_v0, %v9118_v60  ;;  %v7417_v33 = vpop.f32.mrb[195].mxu0  ;;  %v7305_v40 = vpop.f32.mrb[195].mxu1  ;;  %v9455_v2 = vadd.f32 %v3199_v54, %v2660_v17  ;;  %v3560_v11 = vsel %vm3529_vm5, %v3557_v57, %v3559_v29 }
 0x287   : > { %7543 = vmatmul.mubr.bf16.gmra.mrb[44].mxu1 %v3558_v23  ;;  %7655 = vmatmul.mubr.bf16.gmra.mrb[44].mxu0 %v3475_v44  ;;  %v3477_v23 = vld [vmem:[#allocation2 + $0x88] sm:$0xff] }
 0x288   : > { %7546 = vmatprep.mubr.msk.bf16.mxu1 %vm8117_vm0, %v10162_v13  ;;  %7658 = vmatprep.mubr.msk.bf16.mxu0 %vm8117_vm0, %v10162_v13 }
 0x28a   : > { %v2488_v48 = vpop.f32.mrb[196].mxu1  ;;  %v3204_v41 = vpop.f32.mrb[196].mxu0 }
 0x28b   : > { %v2663_v62 = vadd.f32 %v2488_v48, %v9125_v25  ;;  %v9462_v55 = vadd.f32 %v3204_v41, %v2661_v35  ;;  %v7308_v60 = vpop.f32.mrb[197].mxu1  ;;  %v7420_v1 = vpop.f32.mrb[197].mxu0  ;;  %v3561_v25 = vrot.slane %v3477_v23, 5 }
 0x28c   : > { %v2491_v15 = vpop.f32.mrb[198].mxu1  ;;  %v3207_v17 = vpop.f32.mrb[198].mxu0 }
 0x28d   : > { %v2664_v44 = vadd.f32 %v2491_v15, %v9130_v18  ;;  %v9466_v32 = vadd.f32 %v3207_v17, %v2662_v59  ;;  %v7421_v0 = vpop.f32.mrb[199].mxu0  ;;  %v7309_v54 = vpop.f32.mrb[199].mxu1  ;;  %v3562_v60 = vsel %vm3529_vm5, %v3559_v29, %v3561_v25 }
 0x28f   : > { %7547 = vmatmul.mubr.bf16.gmra.mrb[48].mxu1 %v3560_v11  ;;  %7659 = vmatmul.mubr.bf16.gmra.mrb[48].mxu0 %v3476_v56  ;;  %v3478_v11 = vld [vmem:[#allocation2 + $0x90] sm:$0xff] }
 0x290   : > { %7550 = vmatprep.mubr.msk.bf16.mxu1 %vm8117_vm0, %v10162_v13  ;;  %7662 = vmatprep.mubr.msk.bf16.mxu0 %vm8117_vm0, %v10162_v13 }
 0x292   : > { %v2496_v35 = vpop.f32.mrb[200].mxu1  ;;  %v3212_v33 = vpop.f32.mrb[200].mxu0 }
 0x293   : > { %v2665_v57 = vadd.f32 %v2496_v35, %v9137_v19  ;;  %v9473_v40 = vadd.f32 %v3212_v33, %v2663_v62  ;;  %v7312_v18 = vpop.f32.mrb[201].mxu1  ;;  %v7424_v59 = vpop.f32.mrb[201].mxu0  ;;  %v3563_v19 = vrot.slane %v3478_v11, 5 }
 0x294   : > { %v2499_v48 = vpop.f32.mrb[202].mxu1  ;;  %v3215_v41 = vpop.f32.mrb[202].mxu0 }
 0x295   : > { %v2666_v56 = vadd.f32 %v2499_v48, %v9142_v8  ;;  %v9477_v1 = vadd.f32 %v3215_v41, %v2664_v44  ;;  %v7425_v15 = vpop.f32.mrb[203].mxu0  ;;  %v7313_v17 = vpop.f32.mrb[203].mxu1  ;;  %v3564_v18 = vsel %vm3529_vm5, %v3561_v25, %v3563_v19 }
 0x297   : > { %7551 = vmatmul.mubr.bf16.gmra.mrb[52].mxu1 %v3562_v60  ;;  %7663 = vmatmul.mubr.bf16.gmra.mrb[52].mxu0 %v3477_v23  ;;  %v3479_v60 = vld [vmem:[#allocation2 + $0x98] sm:$0xff] }
 0x298   : > { %7554 = vmatprep.mubr.msk.bf16.mxu1 %vm8117_vm0, %v10162_v13  ;;  %7666 = vmatprep.mubr.msk.bf16.mxu0 %vm8117_vm0, %v10162_v13 }
 0x29a   : > { %v2504_v62 = vpop.f32.mrb[204].mxu1  ;;  %v3220_v0 = vpop.f32.mrb[204].mxu0 }
 0x29b   : > { %v2667_v29 = vadd.f32 %v2504_v62, %v9149_v21  ;;  %v9484_v54 = vadd.f32 %v3220_v0, %v2665_v57  ;;  %v7316_v8 = vpop.f32.mrb[205].mxu1  ;;  %v7428_v44 = vpop.f32.mrb[205].mxu0  ;;  %v3565_v21 = vrot.slane %v3479_v60, 5 }
 0x29c   : > { %v2507_v35 = vpop.f32.mrb[206].mxu1  ;;  %v3223_v33 = vpop.f32.mrb[206].mxu0 }
 0x29d   : > { %v2668_v23 = vadd.f32 %v2507_v35, %v9154_v63  ;;  %v9488_v59 = vadd.f32 %v3223_v33, %v2666_v56  ;;  %v7429_v48 = vpop.f32.mrb[207].mxu0  ;;  %v7317_v41 = vpop.f32.mrb[207].mxu1  ;;  %v3566_v8 = vsel %vm3529_vm5, %v3563_v19, %v3565_v21 }
 0x29f   : > { %7555 = vmatmul.mubr.bf16.gmra.mrb[56].mxu1 %v3564_v18  ;;  %7667 = vmatmul.mubr.bf16.gmra.mrb[56].mxu0 %v3478_v11  ;;  %v3480_v18 = vld [vmem:[#allocation2 + $0xa0] sm:$0xff] }
 0x2a0   : > { %7558 = vmatprep.mubr.msk.bf16.mxu1 %vm8117_vm0, %v10162_v13  ;;  %7670 = vmatprep.mubr.msk.bf16.mxu0 %vm8117_vm0, %v10162_v13 }
 0x2a2   : > { %v2512_v57 = vpop.f32.mrb[208].mxu1  ;;  %v3228_v15 = vpop.f32.mrb[208].mxu0 }
 0x2a3   : > { %v2669_v25 = vadd.f32 %v2512_v57, %v9161_v37  ;;  %v9495_v17 = vadd.f32 %v3228_v15, %v2667_v29  ;;  %v7320_v63 = vpop.f32.mrb[209].mxu1  ;;  %v7432_v56 = vpop.f32.mrb[209].mxu0  ;;  %v3567_v37 = vrot.slane %v3480_v18, 5 }
 0x2a4   : > { %v2515_v62 = vpop.f32.mrb[210].mxu1  ;;  %v3231_v0 = vpop.f32.mrb[210].mxu0 }
 0x2a5   : > { %v2670_v11 = vadd.f32 %v2515_v62, %v9166_v10  ;;  %v9499_v44 = vadd.f32 %v3231_v0, %v2668_v23  ;;  %v7433_v35 = vpop.f32.mrb[211].mxu0  ;;  %v7321_v33 = vpop.f32.mrb[211].mxu1  ;;  %v3568_v63 = vsel %vm3529_vm5, %v3565_v21, %v3567_v37 }
 0x2a7   : > { %7559 = vmatmul.mubr.bf16.gmra.mrb[60].mxu1 %v3566_v8  ;;  %7671 = vmatmul.mubr.bf16.gmra.mrb[60].mxu0 %v3479_v60  ;;  %v3481_v8 = vld [vmem:[#allocation2 + $0xa8] sm:$0xff] }
 0x2a8   : > { %7562 = vmatprep.mubr.msk.bf16.mxu1 %vm8117_vm0, %v10162_v13  ;;  %7674 = vmatprep.mubr.msk.bf16.mxu0 %vm8117_vm0, %v10162_v13 }
 0x2aa   : > { %v2520_v29 = vpop.f32.mrb[212].mxu1  ;;  %v3236_v48 = vpop.f32.mrb[212].mxu0 }
 0x2ab   : > { %v2671_v19 = vadd.f32 %v2520_v29, %v9173_v52  ;;  %v9506_v41 = vadd.f32 %v3236_v48, %v2669_v25  ;;  %v7324_v10 = vpop.f32.mrb[213].mxu1  ;;  %v7436_v23 = vpop.f32.mrb[213].mxu0  ;;  %v3569_v52 = vrot.slane %v3481_v8, 5 }
 0x2ac   : > { %v2523_v57 = vpop.f32.mrb[214].mxu1  ;;  %v3239_v15 = vpop.f32.mrb[214].mxu0 }
 0x2ad   : > { %v2672_v60 = vadd.f32 %v2523_v57, %v9178_v42  ;;  %v9510_v56 = vadd.f32 %v3239_v15, %v2670_v11  ;;  %v7437_v62 = vpop.f32.mrb[215].mxu0  ;;  %v7325_v0 = vpop.f32.mrb[215].mxu1  ;;  %v3570_v10 = vsel %vm3529_vm5, %v3567_v37, %v3569_v52 }
 0x2af   : > { %7563 = vmatmul.mubr.bf16.gmra.mrb[64].mxu1 %v3568_v63  ;;  %7675 = vmatmul.mubr.bf16.gmra.mrb[64].mxu0 %v3480_v18  ;;  %v3482_v63 = vld [vmem:[#allocation2 + $0xb0] sm:$0xff] }
 0x2b0   : > { %7566 = vmatprep.mubr.msk.bf16.mxu1 %vm8117_vm0, %v10162_v13  ;;  %7678 = vmatprep.mubr.msk.bf16.mxu0 %vm8117_vm0, %v10162_v13 }
 0x2b2   : > { %v2528_v25 = vpop.f32.mrb[216].mxu1  ;;  %v3244_v35 = vpop.f32.mrb[216].mxu0 }
 0x2b3   : > { %v2673_v21 = vadd.f32 %v2528_v25, %v9185_v47  ;;  %v9517_v33 = vadd.f32 %v3244_v35, %v2671_v19  ;;  %v7328_v42 = vpop.f32.mrb[217].mxu1  ;;  %v7440_v11 = vpop.f32.mrb[217].mxu0  ;;  %v3571_v47 = vrot.slane %v3482_v63, 5 }
 0x2b4   : > { %v2531_v29 = vpop.f32.mrb[218].mxu1  ;;  %v3247_v48 = vpop.f32.mrb[218].mxu0 }
 0x2b5   : > { %v2674_v18 = vadd.f32 %v2531_v29, %v9190_v38  ;;  %v9521_v23 = vadd.f32 %v3247_v48, %v2672_v60  ;;  %v7441_v57 = vpop.f32.mrb[219].mxu0  ;;  %v7329_v15 = vpop.f32.mrb[219].mxu1  ;;  %v3572_v42 = vsel %vm3529_vm5, %v3569_v52, %v3571_v47 }
 0x2b6   : > { %v3483_v57 = vld [vmem:[#allocation2 + $0xb8] sm:$0xff] }
 0x2b7   : > { %7567 = vmatmul.mubr.bf16.gmra.mrb[68].mxu1 %v3570_v10  ;;  %7679 = vmatmul.mubr.bf16.gmra.mrb[68].mxu0 %v3481_v8  ;;  %v10179_v8 = vld [vmem:[#allocation14_spill] sm:$0xff] }
 0x2b8   : > { %7570 = vmatprep.mubr.msk.bf16.mxu1 %vm8117_vm0, %v10162_v13  ;;  %7682 = vmatprep.mubr.msk.bf16.mxu0 %vm8117_vm0, %v10162_v13 }
 0x2ba   : > { %v2536_v19 = vpop.f32.mrb[220].mxu1  ;;  %v3252_v62 = vpop.f32.mrb[220].mxu0 }
 0x2bb   : > { %v2675_v37 = vadd.f32 %v2536_v19, %v9197_v34  ;;  %v9528_v0 = vadd.f32 %v3252_v62, %v2673_v21  ;;  %v7332_v38 = vpop.f32.mrb[221].mxu1  ;;  %v7444_v60 = vpop.f32.mrb[221].mxu0  ;;  %v3573_v34 = vrot.slane %v3483_v57, 5 }
 0x2bc   : > { %v2539_v25 = vpop.f32.mrb[222].mxu1  ;;  %v3255_v35 = vpop.f32.mrb[222].mxu0 }
 0x2bd   : > { %v2676_v11 = vadd.f32 %v2539_v25, %v10179_v8  ;;  %v9532_v29 = vadd.f32 %v3255_v35, %v2674_v18  ;;  %v7445_v48 = vpop.f32.mrb[223].mxu0  ;;  %v7333_v10 = vpop.f32.mrb[223].mxu1  ;;  %v3574_v25 = vsel %vm3529_vm5, %v3571_v47, %v3573_v34 }
 0x2be   : > { %v3484_v10 = vld [vmem:[#allocation2 + $0xc0] sm:$0xff] }
 0x2bf   : > { %7571 = vmatmul.mubr.bf16.gmra.mrb[72].mxu1 %v3572_v42  ;;  %7683 = vmatmul.mubr.bf16.gmra.mrb[72].mxu0 %v3482_v63  ;;  %v10181_v63 = vld [vmem:[#allocation4_spill] sm:$0xff] }
 0x2c0   : > { %7574 = vmatprep.mubr.msk.bf16.mxu1 %vm8117_vm0, %v10162_v13  ;;  %7686 = vmatprep.mubr.msk.bf16.mxu0 %vm8117_vm0, %v10162_v13 }
 0x2c2   : > { %v2544_v21 = vpop.f32.mrb[224].mxu1  ;;  %v3260_v15 = vpop.f32.mrb[224].mxu0 }
 0x2c3   : > { %v2677_v52 = vadd.f32 %v2544_v21, %v9209_v24  ;;  %v9539_v19 = vadd.f32 %v3260_v15, %v2675_v37  ;;  %v7336_v18 = vpop.f32.mrb[225].mxu1  ;;  %v7448_v62 = vpop.f32.mrb[225].mxu0  ;;  %v3575_v24 = vrot.slane %v3484_v10, 5 }
 0x2c4   : > { %v2547_v38 = vpop.f32.mrb[226].mxu1  ;;  %v3263_v60 = vpop.f32.mrb[226].mxu0 }
 0x2c5   : > { %10180 = vst [vmem:[#allocation8_spill] sm:$0xff] %v9539_v19  ;;  %v2678_v35 = vadd.f32 %v2547_v38, %v10181_v63  ;;  %v9543_v42 = vadd.f32 %v3263_v60, %v2676_v11  ;;  %v7449_v8 = vpop.f32.mrb[227].mxu0  ;;  %v7337_v48 = vpop.f32.mrb[227].mxu1  ;;  %v3576_v60 = vsel %vm3529_vm5, %v3573_v34, %v3575_v24 }
 0x2c6   : > { %v3485_v48 = vld [vmem:[#allocation2 + $0xc8] sm:$0xff] }
 0x2c7   : > { %10182 = vst [vmem:[#allocation9_spill] sm:$0xff] %v9543_v42  ;;  %7575 = vmatmul.mubr.bf16.gmra.mrb[76].mxu1 %v3574_v25  ;;  %7687 = vmatmul.mubr.bf16.gmra.mrb[76].mxu0 %v3483_v57 }
 0x2c8   : > { %7578 = vmatprep.mubr.msk.bf16.mxu1 %vm8117_vm0, %v10162_v13  ;;  %7690 = vmatprep.mubr.msk.bf16.mxu0 %vm8117_vm0, %v10162_v13 }
 0x2ca   : > { %v2552_v37 = vpop.f32.mrb[228].mxu1  ;;  %v3268_v21 = vpop.f32.mrb[228].mxu0 }
 0x2cb   : > { %v2679_v47 = vadd.f32 %v2552_v37, %v9224_v28  ;;  %v9550_v15 = vadd.f32 %v3268_v21, %v2677_v52  ;;  %v7340_v11 = vpop.f32.mrb[229].mxu1  ;;  %v7452_v18 = vpop.f32.mrb[229].mxu0  ;;  %v3577_v28 = vrot.slane %v3485_v48, 5 }
 0x2cc   : > { %v2555_v62 = vpop.f32.mrb[230].mxu1  ;;  %v3271_v38 = vpop.f32.mrb[230].mxu0 }
 0x2cd   : > { %10183 = vst [vmem:[#allocation10_spill] sm:$0xff] %v9550_v15  ;;  %v2680_v57 = vadd.f32 %v2555_v62, %v9229_v45  ;;  %v9554_v25 = vadd.f32 %v3271_v38, %v2678_v35  ;;  %v7453_v63 = vpop.f32.mrb[231].mxu0  ;;  %v7341_v8 = vpop.f32.mrb[231].mxu1  ;;  %v3578_v62 = vsel %vm3529_vm5, %v3575_v24, %v3577_v28  ;;  %v4501_v15 = vld [vmem:[#allocation2 + $0x18] sm:$0xff] }
 0x2cf   : > { %10184 = vst [vmem:[#allocation11_spill] sm:$0xff] %v9554_v25  ;;  %7579 = vmatmul.mubr.bf16.gmra.mrb[80].mxu1 %v3576_v60  ;;  %7691 = vmatmul.mubr.bf16.gmra.mrb[80].mxu0 %v3484_v10  ;;  %v10186_v10 = vld [vmem:[#allocation5_spill] sm:$0xff]  ;;  %v3486_v25 = vld [vmem:[#allocation2 + $0xd0] sm:$0x1] }
 0x2d0   : > { %7582 = vmatprep.mubr.msk.bf16.mxu1 %vm8117_vm0, %v10162_v13  ;;  %7694 = vmatprep.mubr.msk.bf16.mxu0 %vm8117_vm0, %v10162_v13 }
 0x2d2   : > { %v2560_v52 = vpop.f32.mrb[232].mxu1  ;;  %v3276_v37 = vpop.f32.mrb[232].mxu0 }
 0x2d3   : > { %v2681_v34 = vadd.f32 %v2560_v52, %v9236_v46  ;;  %v9561_v21 = vadd.f32 %v3276_v37, %v2679_v47  ;;  %v7344_v45 = vpop.f32.mrb[233].mxu1  ;;  %v7456_v35 = vpop.f32.mrb[233].mxu0  ;;  %v3579_v46 = vrot.slane %v3486_v25, 5  ;;  %v4545_v47 = vshll.u32 %v4501_v15, 16  ;;  %v9571_v52 = vld [vmem:[#allocation2 + $0x20] sm:$0xff] }
 0x2d4   : > { %v2563_v11 = vpop.f32.mrb[234].mxu1  ;;  %v3279_v18 = vpop.f32.mrb[234].mxu0  ;;  %v4550_v25 = vshll.u32 %v9571_v52, 16 }
 0x2d5   : > { %10185 = vst [vmem:[#allocation12_spill] sm:$0xff] %v9561_v21  ;;  %v2682_v38 = vadd.f32 %v2563_v11, %v10186_v10  ;;  %v9565_v60 = vadd.f32 %v3279_v18, %v2680_v57  ;;  %v7457_v63 = vpop.f32.mrb[235].mxu0  ;;  %v7345_v8 = vpop.f32.mrb[235].mxu1  ;;  %v4056_v10 = vld [vmem:[#allocation2 + $0xd0] sm:$0xff] }
 0x2d6   : > { %v4543_v63 = vshrl.u32 %v4501_v15, 16  ;;  %v4547_v8 = vrot.slane %v4545_v47, 1  ;;  %v9585_v15 = vld [vmem:[#allocation2 + $0x28] sm:$0xff] }
 0x2d7   : > { %10187 = vst [vmem:[#allocation13_spill] sm:$0xff] %v9565_v60  ;;  %7583 = vmatmul.mubr.bf16.gmra.mrb[84].mxu1 %v3578_v62  ;;  %7695 = vmatmul.mubr.bf16.gmra.mrb[84].mxu0 %v3485_v48  ;;  %v3580_v62 = vsel %vm3529_vm5, %v3577_v28, %v3579_v46  ;;  %v4552_v28 = vrot.slane %v4550_v25, 1 }
 0x2d8   : > { %7586 = vmatprep.mubr.msk.bf16.mxu1 %vm8117_vm0, %v10162_v13  ;;  %7698 = vmatprep.mubr.msk.bf16.mxu0 %vm8117_vm0, %v10162_v13 }
 0x2da   : > { %v2568_v24 = vpop.f32.mrb[236].mxu1  ;;  %v3284_v37 = vpop.f32.mrb[236].mxu0 }
 0x2db   : > { %v2683_v57 = vadd.f32 %v2568_v24, %v9247_v36  ;;  %v9574_v45 = vadd.f32 %v3284_v37, %v2681_v34  ;;  %v7348_v35 = vpop.f32.mrb[237].mxu1  ;;  %v7460_v11 = vpop.f32.mrb[237].mxu0  ;;  %v4548_v36 = vor.u32 %v4547_v8, %v4543_v63  ;;  %v4057_v37 = vld [vmem:[#allocation2 + $0xd8] sm:$0xf] }
 0x2dc   : > { %v2571_v18 = vpop.f32.mrb[238].mxu1  ;;  %v3287_v48 = vpop.f32.mrb[238].mxu0  ;;  %v4554_v11 = vshrl.u32 %v9571_v52, 16 }
 0x2dd   : > { %v2684_v60 = vadd.f32 %v2571_v18, %v9255_v16  ;;  %v9579_v21 = vadd.f32 %v3287_v48, %v2682_v38  ;;  %v7461_v42 = vpop.f32.mrb[239].mxu0  ;;  %v7349_v19 = vpop.f32.mrb[239].mxu1  ;;  %v4553_v35 = vsel %vm949_vm2, %v4548_v36, %v4552_v28  ;;  %v4558_v18 = vshll.u32 %v9585_v15, 16 }
 0x2de   : > { %v5260_v36 = vrot.slane %v9571_v52, 1 }
 0x2df   : > { %7587 = vmatmul.mubr.bf16.gmra.mrb[88].mxu1 %v3580_v62  ;;  %7699 = vmatmul.mubr.bf16.gmra.mrb[88].mxu0 %v4056_v10  ;;  %v4560_v8 = vrot.slane %v4558_v18, 1 }
 0x2e0   : > { %7702 = vmatprep.mubr.msk.bf16.mxu0 %vm8117_vm0, %v10162_v13  ;;  %7722 = vmatprep.mubr.msk.bf16.mxu1 %vm8117_vm0, %v10162_v13 }
 0x2e2   : > { %v2576_v34 = vpop.f32.mrb[240].mxu1  ;;  %v3292_v46 = vpop.f32.mrb[240].mxu0 }
 0x2e3   : > { %v2685_v16 = vadd.f32 %v2576_v34, %v9266_v22  ;;  %v9588_v38 = vadd.f32 %v3292_v46, %v2683_v57  ;;  %v7352_v42 = vpop.f32.mrb[241].mxu1  ;;  %v7464_v19 = vpop.f32.mrb[241].mxu0  ;;  %v5193_v22 = vld [vmem:[#allocation2 + $0x18] sm:$0xfe]  ;;  %v4556_v57 = vor.u32 %v4554_v11, %v4552_v28  ;;  %v9601_v34 = vld [vmem:[#allocation2 + $0x30] sm:$0xff]  ;;  %v4562_v11 = vshrl.u32 %v9585_v15, 16 }
 0x2e4   : > { %v2579_v47 = vpop.f32.mrb[242].mxu1  ;;  %v3295_v24 = vpop.f32.mrb[242].mxu0  ;;  %v5259_v25 = vrot.slane %v5193_v22, 1  ;;  %v4566_v52 = vshll.u32 %v9601_v34, 16  ;;  %v5262_v22 = vrot.slane %v9585_v15, 1 }
 0x2e5   : > { %v2686_v48 = vadd.f32 %v2579_v47, %v9272_v27  ;;  %v9594_v62 = vadd.f32 %v3295_v24, %v2684_v60  ;;  %v7465_v10 = vpop.f32.mrb[243].mxu0  ;;  %v7353_v63 = vpop.f32.mrb[243].mxu1 }
 0x2e7   : > { %7703 = vmatmul.mubr.bf16.gmra.mrb[92].mxu0 %v4057_v37  ;;  %7723 = vmatmul.mubr.bf16.vlgmr.msra.gmra.mrb[92].mxu1 %v4553_v35  ;;  %v4561_v37 = vsel %vm949_vm2, %v4556_v57, %v4560_v8  ;;  %v5261_v35 = vsel %vm1667_vm1, %v5259_v25, %v5260_v36  ;;  %v9617_v57 = vld [vmem:[#allocation2 + $0x38] sm:$0xff] }
 0x2e8   : > { %7726 = vmatprep.mubr.msk.bf16.mxu1 %vm8117_vm0, %v10162_v13  ;;  %7838 = vmatprep.mubr.msk.bf16.mxu0 %vm8117_vm0, %v10162_v13  ;;  %v4574_v15 = vshll.u32 %v9617_v57, 16 }
 0x2ea   : > { %v2584_v27 = vpop.f32.mrb[244].mxu1  ;;  %v3300_v60 = vpop.f32.mrb[244].mxu0 }
 0x2eb   : > { %v2687_v46 = vadd.f32 %v2584_v27, %v9291_v7  ;;  %v9604_v42 = vadd.f32 %v3300_v60, %v2685_v16  ;;  %v7468_v19 = vpop.f32.mrb[245].mxu0  ;;  %v7356_v47 = vpop.f32.mrb[245].mxu1  ;;  %v4564_v7 = vor.u32 %v4562_v11, %v4560_v8  ;;  %v4568_v16 = vrot.slane %v4566_v52, 1 }
 0x2ec   : > { %v3303_v24 = vpop.f32.mrb[246].mxu0  ;;  %v2587_v28 = vpop.f32.mrb[246].mxu1  ;;  %v4570_v8 = vshrl.u32 %v9601_v34, 16 }
 0x2ed   : > { %v9610_v18 = vadd.f32 %v3303_v24, %v2686_v48  ;;  %v7469_v10 = vpop.f32.mrb[247].mxu0  ;;  %v7357_v63 = vpop.f32.mrb[247].mxu1  ;;  %v5263_v28 = vsel %vm1667_vm1, %v5260_v36, %v5262_v22  ;;  %v5264_v36 = vrot.slane %v9601_v34, 1 }
 0x2ee   : > { %v9632_v63 = vld [vmem:[#allocation2 + $0x40] sm:$0xff] }
 0x2ef   : > { %7727 = vmatmul.mubr.bf16.gmra.mrb[96].mxu1 %v4561_v37  ;;  %7839 = vmatmul.mubr.bf16.vlgmr.msra.gmra.mrb[96].mxu0 %v5261_v35  ;;  %v4569_v35 = vsel %vm949_vm2, %v4564_v7, %v4568_v16  ;;  %v4582_v34 = vshll.u32 %v9632_v63, 16 }
 0x2f0   : > { %7730 = vmatprep.mubr.msk.bf16.mxu1 %vm8117_vm0, %v10162_v13  ;;  %7842 = vmatprep.mubr.msk.bf16.mxu0 %vm8117_vm0, %v10162_v13 }
 0x2f2   : > { %v3308_v25 = vpop.f32.mrb[248].mxu0  ;;  %v3688_v27 = vpop.f32.mrb[248].mxu1 }
 0x2f3   : > { %v9619_v48 = vadd.f32 %v3308_v25, %v2687_v46  ;;  %v3935_v60 = vadd.f32 %v3688_v27, %v9316_v20  ;;  %v7472_v19 = vpop.f32.mrb[249].mxu0  ;;  %v7492_v47 = vpop.f32.mrb[249].mxu1  ;;  %v4572_v20 = vor.u32 %v4570_v8, %v4568_v16  ;;  %v4576_v46 = vrot.slane %v4574_v15, 1 }
 0x2f4   : > { %v3311_v24 = vpop.f32.mrb[250].mxu0  ;;  %v3691_v37 = vpop.f32.mrb[250].mxu1  ;;  %v4578_v16 = vshrl.u32 %v9617_v57, 16 }
 0x2f5   : > { %v3936_v11 = vadd.f32 %v3691_v37, %v9323_v53  ;;  %v7473_v52 = vpop.f32.mrb[251].mxu0  ;;  %v7493_v10 = vpop.f32.mrb[251].mxu1 }
 0x2f6   : > { %v5266_v10 = vrot.slane %v9617_v57, 1 }
 0x2f7   : > { %7731 = vmatmul.mubr.bf16.gmra.mrb[100].mxu1 %v4569_v35  ;;  %7843 = vmatmul.mubr.bf16.gmra.mrb[100].mxu0 %v5263_v28  ;;  %v4577_v35 = vsel %vm949_vm2, %v4572_v20, %v4576_v46  ;;  %v5265_v28 = vsel %vm1667_vm1, %v5262_v22, %v5264_v36  ;;  %v4584_v22 = vrot.slane %v4582_v34, 1  ;;  %v9649_v20 = vld [vmem:[#allocation2 + $0x48] sm:$0xff] }
 0x2f8   : > { %7734 = vmatprep.mubr.msk.bf16.mxu1 %vm8117_vm0, %v10162_v13  ;;  %7846 = vmatprep.mubr.msk.bf16.mxu0 %vm8117_vm0, %v10162_v13  ;;  %v4590_v57 = vshll.u32 %v9649_v20, 16 }
 0x2fa   : > { %v3696_v7 = vpop.f32.mrb[252].mxu1  ;;  %v4156_v25 = vpop.f32.mrb[252].mxu0 }
 0x2fb   : > { %v3937_v53 = vadd.f32 %v3696_v7, %v9336_v14  ;;  %v9635_v27 = vadd.f32 %v4156_v25, %v3935_v60  ;;  %v7496_v19 = vpop.f32.mrb[253].mxu1  ;;  %v7608_v47 = vpop.f32.mrb[253].mxu0  ;;  %v4580_v60 = vor.u32 %v4578_v16, %v4576_v46  ;;  %v4586_v46 = vshrl.u32 %v9632_v63, 16 }
 0x2fc   : > { %v3699_v24 = vpop.f32.mrb[254].mxu1  ;;  %v4159_v37 = vpop.f32.mrb[254].mxu0 }
 0x2fd   : > { %v3938_v8 = vadd.f32 %v3699_v24, %v9346_v49  ;;  %v9642_v15 = vadd.f32 %v4159_v37, %v3936_v11  ;;  %v7609_v52 = vpop.f32.mrb[255].mxu0  ;;  %v7497_v14 = vpop.f32.mrb[255].mxu1 }
 0x2fe   : > { %v5268_v14 = vrot.slane %v9632_v63, 1 }
 0x2ff   : > { %7735 = vmatmul.mubr.bf16.gmra.mrb[104].mxu1 %v4577_v35  ;;  %7847 = vmatmul.mubr.bf16.gmra.mrb[104].mxu0 %v5265_v28  ;;  %v4585_v35 = vsel %vm949_vm2, %v4580_v60, %v4584_v22  ;;  %v5267_v28 = vsel %vm1667_vm1, %v5264_v36, %v5266_v10  ;;  %v4592_v36 = vrot.slane %v4590_v57, 1  ;;  %v9666_v60 = vld [vmem:[#allocation2 + $0x50] sm:$0xff] }
 0x300   : > { %7738 = vmatprep.mubr.msk.bf16.mxu1 %vm8117_vm0, %v10162_v13  ;;  %7850 = vmatprep.mubr.msk.bf16.mxu0 %vm8117_vm0, %v10162_v13  ;;  %v4598_v63 = vshll.u32 %v9666_v60, 16 }
 0x302   : > { %v3704_v7 = vpop.f32.mrb[0].mxu1  ;;  %v4164_v49 = vpop.f32.mrb[0].mxu0 }
 0x303   : > { %v3939_v11 = vadd.f32 %v3704_v7, %v9356_v9  ;;  %v9652_v25 = vadd.f32 %v4164_v49, %v3937_v53  ;;  %v7500_v19 = vpop.f32.mrb[1].mxu1  ;;  %v7612_v47 = vpop.f32.mrb[1].mxu0  ;;  %v4588_v53 = vor.u32 %v4586_v46, %v4584_v22  ;;  %v4594_v22 = vshrl.u32 %v9649_v20, 16  ;;  %v10188_v46 = vld [vmem:[#allocation6_spill] sm:$0xff] }
 0x304   : > { %v3707_v24 = vpop.f32.mrb[2].mxu1  ;;  %v4167_v37 = vpop.f32.mrb[2].mxu0 }
 0x305   : > { %v3940_v16 = vadd.f32 %v3707_v24, %v9360_v58  ;;  %v9659_v34 = vadd.f32 %v4167_v37, %v3938_v8  ;;  %v7613_v52 = vpop.f32.mrb[3].mxu0  ;;  %v7501_v9 = vpop.f32.mrb[3].mxu1 }
 0x307   : > { %7739 = vmatmul.mubr.bf16.gmra.mrb[108].mxu1 %v4585_v35  ;;  %7851 = vmatmul.mubr.bf16.gmra.mrb[108].mxu0 %v5267_v28  ;;  %v4593_v35 = vsel %vm949_vm2, %v4588_v53, %v4592_v36  ;;  %v5269_v28 = vsel %vm1667_vm1, %v5266_v10, %v5268_v14  ;;  %v4600_v10 = vrot.slane %v4598_v63, 1  ;;  %v5270_v53 = vrot.slane %v9649_v20, 1 }
 0x308   : > { %7742 = vmatprep.mubr.msk.bf16.mxu1 %vm8117_vm0, %v10162_v13  ;;  %7854 = vmatprep.mubr.msk.bf16.mxu0 %vm8117_vm0, %v10162_v13 }
 0x30a   : > { %v3712_v7 = vpop.f32.mrb[4].mxu1  ;;  %v4172_v58 = vpop.f32.mrb[4].mxu0 }
 0x30b   : > { %v3941_v8 = vadd.f32 %v3712_v7, %v9367_v51  ;;  %v9669_v49 = vadd.f32 %v4172_v58, %v3939_v11  ;;  %v7504_v19 = vpop.f32.mrb[5].mxu1  ;;  %v7616_v47 = vpop.f32.mrb[5].mxu0  ;;  %v4596_v11 = vor.u32 %v4594_v22, %v4592_v36  ;;  %v9683_v7 = vld [vmem:[#allocation2 + $0x58] sm:$0xff]  ;;  %v4602_v36 = vshrl.u32 %v9666_v60, 16 }
 0x30c   : > { %v3715_v24 = vpop.f32.mrb[6].mxu1  ;;  %v4175_v37 = vpop.f32.mrb[6].mxu0  ;;  %v4606_v20 = vshll.u32 %v9683_v7, 16  ;;  %v10190_v22 = vld [vmem:[#allocation7_spill] sm:$0xff] }
 0x30d   : > { %v3942_v57 = vadd.f32 %v3715_v24, %v10188_v46  ;;  %v9676_v52 = vadd.f32 %v4175_v37, %v3940_v16  ;;  %v7617_v9 = vpop.f32.mrb[7].mxu0  ;;  %v7505_v51 = vpop.f32.mrb[7].mxu1  ;;  %v4601_v46 = vsel %vm949_vm2, %v4596_v11, %v4600_v10  ;;  %v5272_v11 = vrot.slane %v9666_v60, 1 }
 0x30e   : > { %v5271_v9 = vsel %vm1667_vm1, %v5268_v14, %v5270_v53  ;;  %v4608_v14 = vrot.slane %v4606_v20, 1 }
 0x30f   : > { %10189 = vst [vmem:[#allocation14_spill] sm:$0xff] %v9676_v52  ;;  %7743 = vmatmul.mubr.bf16.gmra.mrb[112].mxu1 %v4593_v35  ;;  %7855 = vmatmul.mubr.bf16.gmra.mrb[112].mxu0 %v5269_v28 }
 0x310   : > { %7746 = vmatprep.mubr.msk.bf16.mxu1 %vm8117_vm0, %v10162_v13  ;;  %7858 = vmatprep.mubr.msk.bf16.mxu0 %vm8117_vm0, %v10162_v13 }
 0x312   : > { %v3720_v58 = vpop.f32.mrb[8].mxu1  ;;  %v4180_v19 = vpop.f32.mrb[8].mxu0 }
 0x313   : > { %v3943_v16 = vadd.f32 %v3720_v58, %v9378_v39  ;;  %v9686_v47 = vadd.f32 %v4180_v19, %v3941_v8  ;;  %v7508_v24 = vpop.f32.mrb[9].mxu1  ;;  %v7620_v37 = vpop.f32.mrb[9].mxu0  ;;  %v4604_v8 = vor.u32 %v4602_v36, %v4600_v10  ;;  %v9700_v58 = vld [vmem:[#allocation2 + $0x60] sm:$0xff]  ;;  %v4610_v10 = vshrl.u32 %v9683_v7, 16 }
 0x314   : > { %v3723_v35 = vpop.f32.mrb[10].mxu1  ;;  %v4183_v28 = vpop.f32.mrb[10].mxu0  ;;  %v4614_v60 = vshll.u32 %v9700_v58, 16 }
 0x315   : > { %v3944_v63 = vadd.f32 %v3723_v35, %v10190_v22  ;;  %v9693_v51 = vadd.f32 %v4183_v28, %v3942_v57  ;;  %v7621_v52 = vpop.f32.mrb[11].mxu0  ;;  %v7509_v39 = vpop.f32.mrb[11].mxu1  ;;  %v5273_v22 = vsel %vm1667_vm1, %v5270_v53, %v5272_v11 }
 0x316   : > { %v4616_v53 = vrot.slane %v4614_v60, 1 }
 0x317   : > { %7747 = vmatmul.mubr.bf16.gmra.mrb[116].mxu1 %v4601_v46  ;;  %7859 = vmatmul.mubr.bf16.gmra.mrb[116].mxu0 %v5271_v9  ;;  %v4609_v9 = vsel %vm949_vm2, %v4604_v8, %v4608_v14  ;;  %v5274_v8 = vrot.slane %v9683_v7, 1 }
 0x318   : > { %7750 = vmatprep.mubr.msk.bf16.mxu1 %vm8117_vm0, %v10162_v13  ;;  %7862 = vmatprep.mubr.msk.bf16.mxu0 %vm8117_vm0, %v10162_v13 }
 0x31a   : > { %v3728_v19 = vpop.f32.mrb[12].mxu1  ;;  %v4188_v24 = vpop.f32.mrb[12].mxu0 }
 0x31b   : > { %v3945_v57 = vadd.f32 %v3728_v19, %v9395_v31  ;;  %v9703_v52 = vadd.f32 %v4188_v24, %v3943_v16  ;;  %v7512_v37 = vpop.f32.mrb[13].mxu1  ;;  %v7624_v35 = vpop.f32.mrb[13].mxu0  ;;  %v4612_v16 = vor.u32 %v4610_v10, %v4608_v14  ;;  %v9717_v19 = vld [vmem:[#allocation2 + $0x68] sm:$0xff]  ;;  %v4618_v14 = vshrl.u32 %v9700_v58, 16 }
 0x31c   : > { %v3731_v28 = vpop.f32.mrb[14].mxu1  ;;  %v4191_v46 = vpop.f32.mrb[14].mxu0  ;;  %v4622_v7 = vshll.u32 %v9717_v19, 16 }
 0x31d   : > { %v3946_v36 = vadd.f32 %v3731_v28, %v9400_v4  ;;  %v9710_v20 = vadd.f32 %v4191_v46, %v3944_v63  ;;  %v7625_v39 = vpop.f32.mrb[15].mxu0  ;;  %v7513_v31 = vpop.f32.mrb[15].mxu1 }
 0x31e   : > { %v5275_v39 = vsel %vm1667_vm1, %v5272_v11, %v5274_v8  ;;  %v4624_v11 = vrot.slane %v4622_v7, 1 }
 0x31f   : > { %7751 = vmatmul.mubr.bf16.gmra.mrb[120].mxu1 %v4609_v9  ;;  %7863 = vmatmul.mubr.bf16.gmra.mrb[120].mxu0 %v5273_v22  ;;  %v4617_v22 = vsel %vm949_vm2, %v4612_v16, %v4616_v53  ;;  %v5276_v16 = vrot.slane %v9700_v58, 1 }
 0x320   : > { %7754 = vmatprep.mubr.msk.bf16.mxu1 %vm8117_vm0, %v10162_v13  ;;  %7866 = vmatprep.mubr.msk.bf16.mxu0 %vm8117_vm0, %v10162_v13 }
 0x322   : > { %v3736_v24 = vpop.f32.mrb[16].mxu1  ;;  %v4196_v4 = vpop.f32.mrb[16].mxu0 }
 0x323   : > { %v3947_v63 = vadd.f32 %v3736_v24, %v9407_v5  ;;  %v9720_v37 = vadd.f32 %v4196_v4, %v3945_v57  ;;  %v7516_v35 = vpop.f32.mrb[17].mxu1  ;;  %v7628_v28 = vpop.f32.mrb[17].mxu0  ;;  %v4620_v57 = vor.u32 %v4618_v14, %v4616_v53  ;;  %v9734_v24 = vld [vmem:[#allocation2 + $0x70] sm:$0xff]  ;;  %v4626_v53 = vshrl.u32 %v9717_v19, 16 }
 0x324   : > { %v3739_v46 = vpop.f32.mrb[18].mxu1  ;;  %v4199_v9 = vpop.f32.mrb[18].mxu0  ;;  %v4630_v58 = vshll.u32 %v9734_v24, 16 }
 0x325   : > { %v3948_v10 = vadd.f32 %v3739_v46, %v9411_v26  ;;  %v9727_v60 = vadd.f32 %v4199_v9, %v3946_v36  ;;  %v7629_v31 = vpop.f32.mrb[19].mxu0  ;;  %v7517_v5 = vpop.f32.mrb[19].mxu1 }
 0x326   : > { %v5277_v31 = vsel %vm1667_vm1, %v5274_v8, %v5276_v16  ;;  %v4632_v8 = vrot.slane %v4630_v58, 1 }
 0x327   : > { %7755 = vmatmul.mubr.bf16.gmra.mrb[124].mxu1 %v4617_v22  ;;  %7867 = vmatmul.mubr.bf16.gmra.mrb[124].mxu0 %v5275_v39  ;;  %v4625_v39 = vsel %vm949_vm2, %v4620_v57, %v4624_v11  ;;  %v5278_v57 = vrot.slane %v9717_v19, 1 }
 0x328   : > { %7758 = vmatprep.mubr.msk.bf16.mxu1 %vm8117_vm0, %v10162_v13  ;;  %7870 = vmatprep.mubr.msk.bf16.mxu0 %vm8117_vm0, %v10162_v13 }
 0x32a   : > { %v3744_v4 = vpop.f32.mrb[20].mxu1  ;;  %v4204_v26 = vpop.f32.mrb[20].mxu0 }
 0x32b   : > { %v3949_v36 = vadd.f32 %v3744_v4, %v9418_v43  ;;  %v9737_v35 = vadd.f32 %v4204_v26, %v3947_v63  ;;  %v7520_v28 = vpop.f32.mrb[21].mxu1  ;;  %v7632_v46 = vpop.f32.mrb[21].mxu0  ;;  %v4628_v63 = vor.u32 %v4626_v53, %v4624_v11  ;;  %v9751_v4 = vld [vmem:[#allocation2 + $0x78] sm:$0xff]  ;;  %v4634_v11 = vshrl.u32 %v9734_v24, 16 }
 0x32c   : > { %v3747_v9 = vpop.f32.mrb[22].mxu1  ;;  %v4207_v22 = vpop.f32.mrb[22].mxu0  ;;  %v4638_v19 = vshll.u32 %v9751_v4, 16 }
 0x32d   : > { %v3950_v14 = vadd.f32 %v3747_v9, %v9422_v61  ;;  %v9744_v7 = vadd.f32 %v4207_v22, %v3948_v10  ;;  %v7633_v5 = vpop.f32.mrb[23].mxu0  ;;  %v7521_v43 = vpop.f32.mrb[23].mxu1 }
 0x32e   : > { %v5279_v5 = vsel %vm1667_vm1, %v5276_v16, %v5278_v57  ;;  %v4640_v16 = vrot.slane %v4638_v19, 1 }
 0x32f   : > { %7759 = vmatmul.mubr.bf16.gmra.mrb[128].mxu1 %v4625_v39  ;;  %7871 = vmatmul.mubr.bf16.gmra.mrb[128].mxu0 %v5277_v31  ;;  %v4633_v31 = vsel %vm949_vm2, %v4628_v63, %v4632_v8  ;;  %v5280_v63 = vrot.slane %v9734_v24, 1 }
 0x330   : > { %7762 = vmatprep.mubr.msk.bf16.mxu1 %vm8117_vm0, %v10162_v13  ;;  %7874 = vmatprep.mubr.msk.bf16.mxu0 %vm8117_vm0, %v10162_v13 }
 0x332   : > { %v3752_v26 = vpop.f32.mrb[24].mxu1  ;;  %v4212_v61 = vpop.f32.mrb[24].mxu0 }
 0x333   : > { %v3951_v10 = vadd.f32 %v3752_v26, %v9429_v3  ;;  %v9754_v28 = vadd.f32 %v4212_v61, %v3949_v36  ;;  %v7524_v46 = vpop.f32.mrb[25].mxu1  ;;  %v7636_v9 = vpop.f32.mrb[25].mxu0  ;;  %v4636_v36 = vor.u32 %v4634_v11, %v4632_v8  ;;  %v9768_v26 = vld [vmem:[#allocation2 + $0x80] sm:$0xff]  ;;  %v4642_v8 = vshrl.u32 %v9751_v4, 16 }
 0x334   : > { %v3755_v22 = vpop.f32.mrb[26].mxu1  ;;  %v4215_v39 = vpop.f32.mrb[26].mxu0  ;;  %v4646_v24 = vshll.u32 %v9768_v26, 16 }
 0x335   : > { %v3952_v53 = vadd.f32 %v3755_v22, %v9433_v50  ;;  %v9761_v58 = vadd.f32 %v4215_v39, %v3950_v14  ;;  %v7637_v43 = vpop.f32.mrb[27].mxu0  ;;  %v7525_v3 = vpop.f32.mrb[27].mxu1 }
 0x336   : > { %v5281_v43 = vsel %vm1667_vm1, %v5278_v57, %v5280_v63  ;;  %v4648_v57 = vrot.slane %v4646_v24, 1 }
 0x337   : > { %7763 = vmatmul.mubr.bf16.gmra.mrb[132].mxu1 %v4633_v31  ;;  %7875 = vmatmul.mubr.bf16.gmra.mrb[132].mxu0 %v5279_v5  ;;  %v4641_v5 = vsel %vm949_vm2, %v4636_v36, %v4640_v16  ;;  %v5282_v36 = vrot.slane %v9751_v4, 1 }
 0x338   : > { %7766 = vmatprep.mubr.msk.bf16.mxu1 %vm8117_vm0, %v10162_v13  ;;  %7878 = vmatprep.mubr.msk.bf16.mxu0 %vm8117_vm0, %v10162_v13 }
 0x33a   : > { %v3760_v61 = vpop.f32.mrb[28].mxu1  ;;  %v4220_v50 = vpop.f32.mrb[28].mxu0 }
 0x33b   : > { %v3953_v14 = vadd.f32 %v3760_v61, %v9440_v30  ;;  %v9771_v46 = vadd.f32 %v4220_v50, %v3951_v10  ;;  %v7528_v9 = vpop.f32.mrb[29].mxu1  ;;  %v7640_v22 = vpop.f32.mrb[29].mxu0  ;;  %v4644_v10 = vor.u32 %v4642_v8, %v4640_v16  ;;  %v9785_v61 = vld [vmem:[#allocation2 + $0x88] sm:$0xff]  ;;  %v4650_v16 = vshrl.u32 %v9768_v26, 16 }
 0x33c   : > { %v3763_v39 = vpop.f32.mrb[30].mxu1  ;;  %v4223_v31 = vpop.f32.mrb[30].mxu0  ;;  %v4654_v4 = vshll.u32 %v9785_v61, 16 }
 0x33d   : > { %v3954_v11 = vadd.f32 %v3763_v39, %v9444_v12  ;;  %v9778_v19 = vadd.f32 %v4223_v31, %v3952_v53  ;;  %v7641_v3 = vpop.f32.mrb[31].mxu0  ;;  %v7529_v30 = vpop.f32.mrb[31].mxu1 }
 0x33e   : > { %v5283_v3 = vsel %vm1667_vm1, %v5280_v63, %v5282_v36  ;;  %v4656_v63 = vrot.slane %v4654_v4, 1 }
 0x33f   : > { %7767 = vmatmul.mubr.bf16.gmra.mrb[136].mxu1 %v4641_v5  ;;  %7879 = vmatmul.mubr.bf16.gmra.mrb[136].mxu0 %v5281_v43  ;;  %v4649_v43 = vsel %vm949_vm2, %v4644_v10, %v4648_v57  ;;  %v5284_v10 = vrot.slane %v9768_v26, 1 }
 0x340   : > { %7770 = vmatprep.mubr.msk.bf16.mxu1 %vm8117_vm0, %v10162_v13  ;;  %7882 = vmatprep.mubr.msk.bf16.mxu0 %vm8117_vm0, %v10162_v13 }
 0x342   : > { %v3768_v50 = vpop.f32.mrb[32].mxu1  ;;  %v4228_v12 = vpop.f32.mrb[32].mxu0 }
 0x343   : > { %v3955_v53 = vadd.f32 %v3768_v50, %v9451_v6  ;;  %v9788_v9 = vadd.f32 %v4228_v12, %v3953_v14  ;;  %v7532_v22 = vpop.f32.mrb[33].mxu1  ;;  %v7644_v39 = vpop.f32.mrb[33].mxu0  ;;  %v4652_v14 = vor.u32 %v4650_v16, %v4648_v57  ;;  %v9802_v50 = vld [vmem:[#allocation2 + $0x90] sm:$0xff]  ;;  %v4658_v57 = vshrl.u32 %v9785_v61, 16 }
 0x344   : > { %v3771_v31 = vpop.f32.mrb[34].mxu1  ;;  %v4231_v5 = vpop.f32.mrb[34].mxu0  ;;  %v4662_v26 = vshll.u32 %v9802_v50, 16 }
 0x345   : > { %v3956_v8 = vadd.f32 %v3771_v31, %v9455_v2  ;;  %v9795_v24 = vadd.f32 %v4231_v5, %v3954_v11  ;;  %v7645_v30 = vpop.f32.mrb[35].mxu0  ;;  %v7533_v6 = vpop.f32.mrb[35].mxu1 }
 0x346   : > { %v5285_v30 = vsel %vm1667_vm1, %v5282_v36, %v5284_v10  ;;  %v4664_v36 = vrot.slane %v4662_v26, 1 }
 0x347   : > { %7771 = vmatmul.mubr.bf16.gmra.mrb[140].mxu1 %v4649_v43  ;;  %7883 = vmatmul.mubr.bf16.gmra.mrb[140].mxu0 %v5283_v3  ;;  %v4657_v3 = vsel %vm949_vm2, %v4652_v14, %v4656_v63  ;;  %v5286_v14 = vrot.slane %v9785_v61, 1 }
 0x348   : > { %7774 = vmatprep.mubr.msk.bf16.mxu1 %vm8117_vm0, %v10162_v13  ;;  %7886 = vmatprep.mubr.msk.bf16.mxu0 %vm8117_vm0, %v10162_v13 }
 0x34a   : > { %v3776_v12 = vpop.f32.mrb[36].mxu1  ;;  %v4236_v2 = vpop.f32.mrb[36].mxu0 }
 0x34b   : > { %v3957_v11 = vadd.f32 %v3776_v12, %v9462_v55  ;;  %v9805_v22 = vadd.f32 %v4236_v2, %v3955_v53  ;;  %v7536_v39 = vpop.f32.mrb[37].mxu1  ;;  %v7648_v31 = vpop.f32.mrb[37].mxu0  ;;  %v4660_v53 = vor.u32 %v4658_v57, %v4656_v63  ;;  %v9819_v12 = vld [vmem:[#allocation2 + $0x98] sm:$0xff]  ;;  %v4666_v63 = vshrl.u32 %v9802_v50, 16 }
 0x34c   : > { %v3779_v5 = vpop.f32.mrb[38].mxu1  ;;  %v4239_v43 = vpop.f32.mrb[38].mxu0  ;;  %v4670_v61 = vshll.u32 %v9819_v12, 16 }
 0x34d   : > { %v3958_v16 = vadd.f32 %v3779_v5, %v9466_v32  ;;  %v9812_v4 = vadd.f32 %v4239_v43, %v3956_v8  ;;  %v7649_v6 = vpop.f32.mrb[39].mxu0  ;;  %v7537_v55 = vpop.f32.mrb[39].mxu1 }
 0x34e   : > { %v5287_v6 = vsel %vm1667_vm1, %v5284_v10, %v5286_v14  ;;  %v4672_v10 = vrot.slane %v4670_v61, 1 }
 0x34f   : > { %7775 = vmatmul.mubr.bf16.gmra.mrb[144].mxu1 %v4657_v3  ;;  %7887 = vmatmul.mubr.bf16.gmra.mrb[144].mxu0 %v5285_v30  ;;  %v4665_v30 = vsel %vm949_vm2, %v4660_v53, %v4664_v36  ;;  %v5288_v53 = vrot.slane %v9802_v50, 1 }
 0x350   : > { %7778 = vmatprep.mubr.msk.bf16.mxu1 %vm8117_vm0, %v10162_v13  ;;  %7890 = vmatprep.mubr.msk.bf16.mxu0 %vm8117_vm0, %v10162_v13 }
 0x352   : > { %v3784_v2 = vpop.f32.mrb[40].mxu1  ;;  %v4244_v32 = vpop.f32.mrb[40].mxu0 }
 0x353   : > { %v3959_v8 = vadd.f32 %v3784_v2, %v9473_v40  ;;  %v9822_v39 = vadd.f32 %v4244_v32, %v3957_v11  ;;  %v7540_v31 = vpop.f32.mrb[41].mxu1  ;;  %v7652_v5 = vpop.f32.mrb[41].mxu0  ;;  %v4668_v11 = vor.u32 %v4666_v63, %v4664_v36  ;;  %v9836_v2 = vld [vmem:[#allocation2 + $0xa0] sm:$0xff]  ;;  %v4674_v36 = vshrl.u32 %v9819_v12, 16 }
 0x354   : > { %v3787_v43 = vpop.f32.mrb[42].mxu1  ;;  %v4247_v3 = vpop.f32.mrb[42].mxu0  ;;  %v4678_v50 = vshll.u32 %v9836_v2, 16 }
 0x355   : > { %v3960_v57 = vadd.f32 %v3787_v43, %v9477_v1  ;;  %v9829_v26 = vadd.f32 %v4247_v3, %v3958_v16  ;;  %v7653_v55 = vpop.f32.mrb[43].mxu0  ;;  %v7541_v40 = vpop.f32.mrb[43].mxu1 }
 0x356   : > { %v5289_v55 = vsel %vm1667_vm1, %v5286_v14, %v5288_v53  ;;  %v4680_v14 = vrot.slane %v4678_v50, 1 }
 0x357   : > { %7779 = vmatmul.mubr.bf16.gmra.mrb[148].mxu1 %v4665_v30  ;;  %7891 = vmatmul.mubr.bf16.gmra.mrb[148].mxu0 %v5287_v6  ;;  %v4673_v6 = vsel %vm949_vm2, %v4668_v11, %v4672_v10  ;;  %v5290_v11 = vrot.slane %v9819_v12, 1 }
 0x358   : > { %7782 = vmatprep.mubr.msk.bf16.mxu1 %vm8117_vm0, %v10162_v13  ;;  %7894 = vmatprep.mubr.msk.bf16.mxu0 %vm8117_vm0, %v10162_v13 }
 0x35a   : > { %v3792_v32 = vpop.f32.mrb[44].mxu1  ;;  %v4252_v1 = vpop.f32.mrb[44].mxu0 }
 0x35b   : > { %v3961_v16 = vadd.f32 %v3792_v32, %v9484_v54  ;;  %v9839_v31 = vadd.f32 %v4252_v1, %v3959_v8  ;;  %v7544_v5 = vpop.f32.mrb[45].mxu1  ;;  %v7656_v43 = vpop.f32.mrb[45].mxu0  ;;  %v4676_v8 = vor.u32 %v4674_v36, %v4672_v10  ;;  %v9853_v32 = vld [vmem:[#allocation2 + $0xa8] sm:$0xff]  ;;  %v4682_v10 = vshrl.u32 %v9836_v2, 16 }
 0x35c   : > { %v3795_v3 = vpop.f32.mrb[46].mxu1  ;;  %v4255_v30 = vpop.f32.mrb[46].mxu0  ;;  %v4686_v12 = vshll.u32 %v9853_v32, 16 }
 0x35d   : > { %v3962_v63 = vadd.f32 %v3795_v3, %v9488_v59  ;;  %v9846_v61 = vadd.f32 %v4255_v30, %v3960_v57  ;;  %v7657_v40 = vpop.f32.mrb[47].mxu0  ;;  %v7545_v54 = vpop.f32.mrb[47].mxu1 }
 0x35e   : > { %v5291_v40 = vsel %vm1667_vm1, %v5288_v53, %v5290_v11  ;;  %v4688_v53 = vrot.slane %v4686_v12, 1 }
 0x35f   : > { %7783 = vmatmul.mubr.bf16.gmra.mrb[152].mxu1 %v4673_v6  ;;  %7895 = vmatmul.mubr.bf16.gmra.mrb[152].mxu0 %v5289_v55  ;;  %v4681_v55 = vsel %vm949_vm2, %v4676_v8, %v4680_v14  ;;  %v5292_v8 = vrot.slane %v9836_v2, 1 }
 0x360   : > { %7786 = vmatprep.mubr.msk.bf16.mxu1 %vm8117_vm0, %v10162_v13  ;;  %7898 = vmatprep.mubr.msk.bf16.mxu0 %vm8117_vm0, %v10162_v13 }
 0x362   : > { %v3800_v1 = vpop.f32.mrb[48].mxu1  ;;  %v4260_v59 = vpop.f32.mrb[48].mxu0 }
 0x363   : > { %v3963_v57 = vadd.f32 %v3800_v1, %v9495_v17  ;;  %v9856_v5 = vadd.f32 %v4260_v59, %v3961_v16  ;;  %v7548_v43 = vpop.f32.mrb[49].mxu1  ;;  %v7660_v3 = vpop.f32.mrb[49].mxu0  ;;  %v4684_v16 = vor.u32 %v4682_v10, %v4680_v14  ;;  %v9870_v1 = vld [vmem:[#allocation2 + $0xb0] sm:$0xff]  ;;  %v4690_v14 = vshrl.u32 %v9853_v32, 16 }
 0x364   : > { %v3803_v30 = vpop.f32.mrb[50].mxu1  ;;  %v4263_v6 = vpop.f32.mrb[50].mxu0  ;;  %v4694_v2 = vshll.u32 %v9870_v1, 16 }
 0x365   : > { %v3964_v36 = vadd.f32 %v3803_v30, %v9499_v44  ;;  %v9863_v50 = vadd.f32 %v4263_v6, %v3962_v63  ;;  %v7661_v54 = vpop.f32.mrb[51].mxu0  ;;  %v7549_v17 = vpop.f32.mrb[51].mxu1 }
 0x366   : > { %v5293_v54 = vsel %vm1667_vm1, %v5290_v11, %v5292_v8  ;;  %v4696_v11 = vrot.slane %v4694_v2, 1 }
 0x367   : > { %7787 = vmatmul.mubr.bf16.gmra.mrb[156].mxu1 %v4681_v55  ;;  %7899 = vmatmul.mubr.bf16.gmra.mrb[156].mxu0 %v5291_v40  ;;  %v4689_v40 = vsel %vm949_vm2, %v4684_v16, %v4688_v53  ;;  %v5294_v16 = vrot.slane %v9853_v32, 1 }
 0x368   : > { %7790 = vmatprep.mubr.msk.bf16.mxu1 %vm8117_vm0, %v10162_v13  ;;  %7902 = vmatprep.mubr.msk.bf16.mxu0 %vm8117_vm0, %v10162_v13 }
 0x36a   : > { %v3808_v59 = vpop.f32.mrb[52].mxu1  ;;  %v4268_v44 = vpop.f32.mrb[52].mxu0 }
 0x36b   : > { %v3965_v63 = vadd.f32 %v3808_v59, %v9506_v41  ;;  %v9873_v43 = vadd.f32 %v4268_v44, %v3963_v57  ;;  %v7552_v3 = vpop.f32.mrb[53].mxu1  ;;  %v7664_v30 = vpop.f32.mrb[53].mxu0  ;;  %v4692_v57 = vor.u32 %v4690_v14, %v4688_v53  ;;  %v9887_v59 = vld [vmem:[#allocation2 + $0xb8] sm:$0xff]  ;;  %v4698_v53 = vshrl.u32 %v9870_v1, 16 }
 0x36c   : > { %v3811_v6 = vpop.f32.mrb[54].mxu1  ;;  %v4271_v55 = vpop.f32.mrb[54].mxu0  ;;  %v4702_v32 = vshll.u32 %v9887_v59, 16 }
 0x36d   : > { %v3966_v10 = vadd.f32 %v3811_v6, %v9510_v56  ;;  %v9880_v12 = vadd.f32 %v4271_v55, %v3964_v36  ;;  %v7665_v17 = vpop.f32.mrb[55].mxu0  ;;  %v7553_v41 = vpop.f32.mrb[55].mxu1 }
 0x36e   : > { %v5295_v17 = vsel %vm1667_vm1, %v5292_v8, %v5294_v16  ;;  %v4704_v8 = vrot.slane %v4702_v32, 1 }
 0x36f   : > { %7791 = vmatmul.mubr.bf16.gmra.mrb[160].mxu1 %v4689_v40  ;;  %7903 = vmatmul.mubr.bf16.gmra.mrb[160].mxu0 %v5293_v54  ;;  %v4697_v54 = vsel %vm949_vm2, %v4692_v57, %v4696_v11  ;;  %v5296_v57 = vrot.slane %v9870_v1, 1 }
 0x370   : > { %7794 = vmatprep.mubr.msk.bf16.mxu1 %vm8117_vm0, %v10162_v13  ;;  %7906 = vmatprep.mubr.msk.bf16.mxu0 %vm8117_vm0, %v10162_v13 }
 0x372   : > { %v3816_v44 = vpop.f32.mrb[56].mxu1  ;;  %v4276_v56 = vpop.f32.mrb[56].mxu0 }
 0x373   : > { %v3967_v36 = vadd.f32 %v3816_v44, %v9517_v33  ;;  %v9890_v3 = vadd.f32 %v4276_v56, %v3965_v63  ;;  %v7556_v30 = vpop.f32.mrb[57].mxu1  ;;  %v7668_v6 = vpop.f32.mrb[57].mxu0  ;;  %v4700_v63 = vor.u32 %v4698_v53, %v4696_v11  ;;  %v9904_v44 = vld [vmem:[#allocation2 + $0xc0] sm:$0xff]  ;;  %v4706_v11 = vshrl.u32 %v9887_v59, 16 }
 0x374   : > { %v3819_v55 = vpop.f32.mrb[58].mxu1  ;;  %v4279_v40 = vpop.f32.mrb[58].mxu0  ;;  %v4710_v1 = vshll.u32 %v9904_v44, 16 }
 0x375   : > { %v3968_v14 = vadd.f32 %v3819_v55, %v9521_v23  ;;  %v9897_v2 = vadd.f32 %v4279_v40, %v3966_v10  ;;  %v7669_v41 = vpop.f32.mrb[59].mxu0  ;;  %v7557_v33 = vpop.f32.mrb[59].mxu1 }
 0x376   : > { %v5297_v41 = vsel %vm1667_vm1, %v5294_v16, %v5296_v57  ;;  %v4712_v16 = vrot.slane %v4710_v1, 1 }
 0x377   : > { %10191 = vst [vmem:[#allocation4_spill] sm:$0xff] %v9897_v2  ;;  %7795 = vmatmul.mubr.bf16.gmra.mrb[164].mxu1 %v4697_v54  ;;  %7907 = vmatmul.mubr.bf16.gmra.mrb[164].mxu0 %v5295_v17  ;;  %v4705_v17 = vsel %vm949_vm2, %v4700_v63, %v4704_v8  ;;  %v5298_v63 = vrot.slane %v9887_v59, 1 }
 0x378   : > { %7798 = vmatprep.mubr.msk.bf16.mxu1 %vm8117_vm0, %v10162_v13  ;;  %7910 = vmatprep.mubr.msk.bf16.mxu0 %vm8117_vm0, %v10162_v13 }
 0x37a   : > { %v3824_v56 = vpop.f32.mrb[60].mxu1  ;;  %v4284_v23 = vpop.f32.mrb[60].mxu0 }
 0x37b   : > { %v3969_v10 = vadd.f32 %v3824_v56, %v9528_v0  ;;  %v9907_v30 = vadd.f32 %v4284_v23, %v3967_v36  ;;  %v7560_v6 = vpop.f32.mrb[61].mxu1  ;;  %v7672_v55 = vpop.f32.mrb[61].mxu0  ;;  %v4708_v36 = vor.u32 %v4706_v11, %v4704_v8  ;;  %v9921_v56 = vld [vmem:[#allocation2 + $0xc8] sm:$0xff]  ;;  %v4714_v8 = vshrl.u32 %v9904_v44, 16 }
 0x37c   : > { %v3827_v40 = vpop.f32.mrb[62].mxu1  ;;  %v4287_v54 = vpop.f32.mrb[62].mxu0  ;;  %v4718_v59 = vshll.u32 %v9921_v56, 16  ;;  %v10196_v11 = vld [vmem:[#allocation9_spill] sm:$0xff] }
 0x37d   : > { %10192 = vst [vmem:[#allocation5_spill] sm:$0xff] %v9907_v30  ;;  %v3970_v53 = vadd.f32 %v3827_v40, %v9532_v29  ;;  %v9914_v32 = vadd.f32 %v4287_v54, %v3968_v14  ;;  %v7673_v33 = vpop.f32.mrb[63].mxu0  ;;  %v7561_v0 = vpop.f32.mrb[63].mxu1  ;;  %v10194_v14 = vld [vmem:[#allocation8_spill] sm:$0xff] }
 0x37e   : > { %v4713_v33 = vsel %vm949_vm2, %v4708_v36, %v4712_v16  ;;  %v5299_v0 = vsel %vm1667_vm1, %v5296_v57, %v5298_v63  ;;  %v4720_v57 = vrot.slane %v4718_v59, 1  ;;  %v5300_v36 = vrot.slane %v9904_v44, 1 }
 0x37f   : > { %10193 = vst [vmem:[#allocation6_spill] sm:$0xff] %v9914_v32  ;;  %7799 = vmatmul.mubr.bf16.gmra.mrb[168].mxu1 %v4705_v17  ;;  %7911 = vmatmul.mubr.bf16.gmra.mrb[168].mxu0 %v5297_v41 }
 0x380   : > { %7802 = vmatprep.mubr.msk.bf16.mxu1 %vm8117_vm0, %v10162_v13  ;;  %7914 = vmatprep.mubr.msk.bf16.mxu0 %vm8117_vm0, %v10162_v13 }
 0x382   : > { %v3832_v23 = vpop.f32.mrb[64].mxu1  ;;  %v4292_v29 = vpop.f32.mrb[64].mxu0 }
 0x383   : > { %v3971_v6 = vadd.f32 %v3832_v23, %v10194_v14  ;;  %v9924_v55 = vadd.f32 %v4292_v29, %v3969_v10  ;;  %v7564_v40 = vpop.f32.mrb[65].mxu1  ;;  %v7676_v54 = vpop.f32.mrb[65].mxu0  ;;  %v4716_v10 = vor.u32 %v4714_v8, %v4712_v16  ;;  %v9938_v29 = vld [vmem:[#allocation2 + $0xd0] sm:$0xff]  ;;  %v4722_v16 = vshrl.u32 %v9921_v56, 16  ;;  %v10200_v8 = vld [vmem:[#allocation11_spill] sm:$0xff] }
 0x384   : > { %v3835_v17 = vpop.f32.mrb[66].mxu1  ;;  %v4295_v41 = vpop.f32.mrb[66].mxu0  ;;  %v4726_v44 = vshll.u32 %v9938_v29, 16 }
 0x385   : > { %10195 = vst [vmem:[#allocation7_spill] sm:$0xff] %v9924_v55  ;;  %v3972_v1 = vadd.f32 %v3835_v17, %v10196_v11  ;;  %v9931_v32 = vadd.f32 %v4295_v41, %v3970_v53  ;;  %v7677_v30 = vpop.f32.mrb[67].mxu0  ;;  %v7565_v23 = vpop.f32.mrb[67].mxu1  ;;  %v10198_v53 = vld [vmem:[#allocation10_spill] sm:$0xff]  ;;  %v4721_v11 = vsel %vm949_vm2, %v4716_v10, %v4720_v57  ;;  %v5302_v10 = vrot.slane %v9921_v56, 1 }
 0x386   : > { %v5301_v23 = vsel %vm1667_vm1, %v5298_v63, %v5300_v36  ;;  %v4728_v63 = vrot.slane %v4726_v44, 1  ;;  %v10203_v44 = vld [vmem:[#allocation13_spill] sm:$0xff] }
 0x387   : > { %10197 = vst [vmem:[#allocation8_spill] sm:$0xff] %v9931_v32  ;;  %7803 = vmatmul.mubr.bf16.gmra.mrb[172].mxu1 %v4713_v33  ;;  %7915 = vmatmul.mubr.bf16.gmra.mrb[172].mxu0 %v5299_v0 }
 0x388   : > { %7806 = vmatprep.mubr.msk.bf16.mxu1 %vm8117_vm0, %v10162_v13  ;;  %7918 = vmatprep.mubr.msk.bf16.mxu0 %vm8117_vm0, %v10162_v13 }
 0x38a   : > { %v3840_v14 = vpop.f32.mrb[68].mxu1  ;;  %v4300_v40 = vpop.f32.mrb[68].mxu0 }
 0x38b   : > { %v3973_v54 = vadd.f32 %v3840_v14, %v10198_v53  ;;  %v9941_v30 = vadd.f32 %v4300_v40, %v3971_v6  ;;  %v7568_v17 = vpop.f32.mrb[69].mxu1  ;;  %v7680_v41 = vpop.f32.mrb[69].mxu0  ;;  %v4724_v6 = vor.u32 %v4722_v16, %v4720_v57  ;;  %v4525_v40 = vld [vmem:[#allocation2 + $0xd8] sm:$0x1f]  ;;  %v4730_v57 = vshrl.u32 %v9938_v29, 16 }
 0x38c   : > { %v3843_v33 = vpop.f32.mrb[70].mxu1  ;;  %v4303_v0 = vpop.f32.mrb[70].mxu0  ;;  %v10202_v41 = vld [vmem:[#allocation12_spill] sm:$0xff]  ;;  %v4734_v16 = vshll.u32 %v4525_v40, 16 }
 0x38d   : > { %10199 = vst [vmem:[#allocation9_spill] sm:$0xff] %v9941_v30  ;;  %v3974_v59 = vadd.f32 %v3843_v33, %v10200_v8  ;;  %v9948_v32 = vadd.f32 %v4303_v0, %v3972_v1  ;;  %v7681_v55 = vpop.f32.mrb[71].mxu0  ;;  %v7569_v14 = vpop.f32.mrb[71].mxu1  ;;  %v4729_v8 = vsel %vm949_vm2, %v4724_v6, %v4728_v63 }
 0x38e   : > { %v5303_v14 = vsel %vm1667_vm1, %v5300_v36, %v5302_v10  ;;  %v4736_v6 = vrot.slane %v4734_v16, 1  ;;  %v5304_v36 = vrot.slane %v9938_v29, 1  ;;  %v4738_v16 = vshrl.u32 %v4525_v40, 16 }
 0x38f   : > { %10201 = vst [vmem:[#allocation10_spill] sm:$0xff] %v9948_v32  ;;  %7807 = vmatmul.mubr.bf16.gmra.mrb[176].mxu1 %v4721_v11  ;;  %7919 = vmatmul.mubr.bf16.gmra.mrb[176].mxu0 %v5301_v23 }
 0x390   : > { %7810 = vmatprep.mubr.msk.bf16.mxu1 %vm8117_vm0, %v10162_v13  ;;  %7922 = vmatprep.mubr.msk.bf16.mxu0 %vm8117_vm0, %v10162_v13 }
 0x392   : > { %v3848_v53 = vpop.f32.mrb[72].mxu1  ;;  %v4308_v17 = vpop.f32.mrb[72].mxu0 }
 0x393   : > { %v3975_v1 = vadd.f32 %v3848_v53, %v10202_v41  ;;  %v9956_v33 = vadd.f32 %v4308_v17, %v3973_v54  ;;  %v7572_v55 = vpop.f32.mrb[73].mxu1  ;;  %v7684_v0 = vpop.f32.mrb[73].mxu0  ;;  %v4732_v54 = vor.u32 %v4730_v57, %v4728_v63  ;;  %v5217_v57 = vld [vmem:[#allocation2 + $0xd8] sm:$0x1f] }
 0x394   : > { %v3851_v11 = vpop.f32.mrb[74].mxu1  ;;  %v4311_v23 = vpop.f32.mrb[74].mxu0 }
 0x395   : > { %v3976_v56 = vadd.f32 %v3851_v11, %v10203_v44  ;;  %v9962_v32 = vadd.f32 %v4311_v23, %v3974_v59  ;;  %v7685_v30 = vpop.f32.mrb[75].mxu0  ;;  %v7573_v2 = vpop.f32.mrb[75].mxu1  ;;  %v4737_v11 = vsel %vm949_vm2, %v4732_v54, %v4736_v6  ;;  %v5305_v23 = vsel %vm1667_vm1, %v5302_v10, %v5304_v36 }
 0x396   : > { %v4740_v10 = vor.u32 %v4738_v16, %v4736_v6 }
 0x397   : > { %7811 = vmatmul.mubr.bf16.gmra.mrb[180].mxu1 %v4729_v8  ;;  %7923 = vmatmul.mubr.bf16.gmra.mrb[180].mxu0 %v5303_v14 }
 0x398   : > { %7814 = vmatprep.mubr.msk.bf16.mxu1 %vm8117_vm0, %v10162_v13  ;;  %7926 = vmatprep.mubr.msk.bf16.mxu0 %vm8117_vm0, %v10162_v13 }
 0x39a   : > { %v3856_v53 = vpop.f32.mrb[76].mxu1  ;;  %v4316_v17 = vpop.f32.mrb[76].mxu0 }
 0x39b   : > { %v3977_v41 = vadd.f32 %v3856_v53, %v9574_v45  ;;  %v9970_v59 = vadd.f32 %v4316_v17, %v3975_v1  ;;  %v7576_v30 = vpop.f32.mrb[77].mxu1  ;;  %v7688_v2 = vpop.f32.mrb[77].mxu0  ;;  %v5306_v45 = vrot.slane %v5217_v57, 1 }
 0x39c   : > { %v3859_v55 = vpop.f32.mrb[78].mxu1  ;;  %v4319_v0 = vpop.f32.mrb[78].mxu0 }
 0x39d   : > { %v3978_v8 = vadd.f32 %v3859_v55, %v9579_v21  ;;  %v9975_v63 = vadd.f32 %v4319_v0, %v3976_v56  ;;  %v7689_v14 = vpop.f32.mrb[79].mxu0  ;;  %v7577_v29 = vpop.f32.mrb[79].mxu1  ;;  %v5307_v30 = vsel %vm1667_vm1, %v5304_v36, %v5306_v45 }
 0x39f   : > { %7815 = vmatmul.mubr.bf16.gmra.mrb[184].mxu1 %v4737_v11  ;;  %7927 = vmatmul.mubr.bf16.gmra.mrb[184].mxu0 %v5305_v23 }
 0x3a0   : > { %7818 = vmatprep.mubr.msk.bf16.mxu1 %vm8117_vm0, %v10162_v13  ;;  %7930 = vmatprep.mubr.msk.bf16.mxu0 %vm8117_vm0, %v10162_v13 }
 0x3a2   : > { %v3864_v1 = vpop.f32.mrb[80].mxu1  ;;  %v4324_v44 = vpop.f32.mrb[80].mxu0 }
 0x3a3   : > { %v3979_v21 = vadd.f32 %v3864_v1, %v9588_v38  ;;  %v9982_v56 = vadd.f32 %v4324_v44, %v3977_v41  ;;  %v7580_v54 = vpop.f32.mrb[81].mxu1  ;;  %v7692_v53 = vpop.f32.mrb[81].mxu0 }
 0x3a4   : > { %v3867_v17 = vpop.f32.mrb[82].mxu1  ;;  %v4327_v40 = vpop.f32.mrb[82].mxu0 }
 0x3a5   : > { %v3980_v2 = vadd.f32 %v3867_v17, %v9594_v62  ;;  %v9986_v55 = vadd.f32 %v4327_v40, %v3978_v8  ;;  %v7693_v0 = vpop.f32.mrb[83].mxu0  ;;  %v7581_v11 = vpop.f32.mrb[83].mxu1 }
 0x3a7   : > { %7819 = vmatmul.mubr.bf16.gmra.mrb[188].mxu1 %v4740_v10  ;;  %7931 = vmatmul.mubr.bf16.gmra.mrb[188].mxu0 %v5307_v30 }
 0x3a8   : > { %7934 = vmatprep.mubr.msk.bf16.mxu0 %vm8117_vm0, %v10162_v13 }
 0x3aa   : > { %v3872_v38 = vpop.f32.mrb[84].mxu1  ;;  %v4332_v6 = vpop.f32.mrb[84].mxu0 }
 0x3ab   : > { %v3981_v41 = vadd.f32 %v3872_v38, %v9604_v42  ;;  %v9991_v23 = vadd.f32 %v4332_v6, %v3979_v21  ;;  %v7584_v14 = vpop.f32.mrb[85].mxu1  ;;  %v7696_v29 = vpop.f32.mrb[85].mxu0 }
 0x3ac   : > { %v3875_v36 = vpop.f32.mrb[86].mxu1  ;;  %v4335_v57 = vpop.f32.mrb[86].mxu0 }
 0x3ad   : > { %v3982_v62 = vadd.f32 %v3875_v36, %v9610_v18  ;;  %v9994_v8 = vadd.f32 %v4335_v57, %v3980_v2  ;;  %v7697_v16 = vpop.f32.mrb[87].mxu0  ;;  %v7585_v1 = vpop.f32.mrb[87].mxu1 }
 0x3ae   : > { %v10009_v16 = vld [vmem:[%s10149_s3] ss:$0 sm:$0xff] }
 0x3af   : > { %7935 = vmatmul.mubr.bf16.gmra.mrb[192].mxu0 %v5306_v45 }
 0x3b2   : > { %v3880_v44 = vpop.f32.mrb[88].mxu1  ;;  %v4340_v10 = vpop.f32.mrb[88].mxu0 }
 0x3b3   : > { %v3983_v13 = vadd.f32 %v3880_v44, %v9619_v48  ;;  %v9997_v54 = vadd.f32 %v4340_v10, %v3981_v41  ;;  %v7700_v42 = vpop.f32.mrb[89].mxu0  ;;  %v7588_v21 = vpop.f32.mrb[89].mxu1 }
 0x3b4   : > { %v4343_v53 = vpop.f32.mrb[90].mxu0  ;;  %v3883_v17 = vpop.f32.mrb[90].mxu1 }
 0x3b5   : > { %v9999_v40 = vadd.f32 %v4343_v53, %v3982_v62  ;;  %v7701_v30 = vpop.f32.mrb[91].mxu0  ;;  %v7589_v18 = vpop.f32.mrb[91].mxu1 }
 0x3ba   : > { %v4348_v2 = vpop.f32.mrb[92].mxu0  ;;  %v4848_v0 = vpop.f32.mrb[92].mxu1 }
 0x3bb   : > { %v10001_v11 = vadd.f32 %v4348_v2, %v3983_v13  ;;  %v5095_v45 = vadd.f32 %v4848_v0, %v9635_v27  ;;  %v7704_v38 = vpop.f32.mrb[93].mxu0  ;;  %v7724_v6 = vpop.f32.mrb[93].mxu1 }
 0x3bc   : > { %v4351_v48 = vpop.f32.mrb[94].mxu0  ;;  %v4851_v41 = vpop.f32.mrb[94].mxu1 }
 0x3bd   : > { %v5096_v14 = vadd.f32 %v4851_v41, %v9642_v15  ;;  %v7705_v29 = vpop.f32.mrb[95].mxu0  ;;  %v7725_v36 = vpop.f32.mrb[95].mxu1 }
 0x3c2   : > { %v4856_v57 = vpop.f32.mrb[96].mxu1  ;;  %v5415_v62 = vpop.f32.mrb[96].mxu0 }
 0x3c3   : > { %v5097_v1 = vadd.f32 %v4856_v57, %v9652_v25  ;;  %v5662_v27 = vadd.f32 %v5415_v62, %v5095_v45  ;;  %v7728_v44 = vpop.f32.mrb[97].mxu1  ;;  %v7840_v10 = vpop.f32.mrb[97].mxu0  ;;  %v10204_v57 = vld [vmem:[#allocation14_spill] sm:$0xff] }
 0x3c4   : > { %v4859_v13 = vpop.f32.mrb[98].mxu1  ;;  %v5418_v42 = vpop.f32.mrb[98].mxu0 }
 0x3c5   : > { %v5816_v15 = vadd.f32 %v10009_v16, %v5662_v27  ;;  %v5098_v21 = vadd.f32 %v4859_v13, %v9659_v34  ;;  %v5663_v53 = vadd.f32 %v5418_v42, %v5096_v14  ;;  %v7841_v17 = vpop.f32.mrb[99].mxu0  ;;  %v7729_v30 = vpop.f32.mrb[99].mxu1 }
 0x3c7   : > { %v5817_v18 = vadd.f32 %v10009_v16, %v5663_v53  ;;  %v5865_v2 = vmax.f32 %v5816_v15, 0.0 }
 0x3c9   : > { %v5866_v0 = vmax.f32 %v5817_v18, 0.0 }
 0x3ca   : > { %v4864_v25 = vpop.f32.mrb[100].mxu1  ;;  %v5423_v45 = vpop.f32.mrb[100].mxu0 }
 0x3cb   : > { %v6457_v38 = vpack.c.bf16 %v5866_v0, %v5865_v2  ;;  %v5099_v6 = vadd.f32 %v4864_v25, %v9669_v49  ;;  %v5664_v34 = vadd.f32 %v5423_v45, %v5097_v1  ;;  %v7732_v48 = vpop.f32.mrb[101].mxu1  ;;  %v7844_v41 = vpop.f32.mrb[101].mxu0 }
 0x3cc   : > { %v4867_v14 = vpop.f32.mrb[102].mxu1  ;;  %v5426_v29 = vpop.f32.mrb[102].mxu0 }
 0x3cd   : > { %6458 = vst [vmem:[%s10018_s28] sm:$0xff] %v6457_v38   ;;  %v5818_v36 = vadd.f32 %v10009_v16, %v5664_v34  ;;  %v5100_v62 = vadd.f32 %v4867_v14, %v10204_v57  ;;  %v5665_v27 = vadd.f32 %v5426_v29, %v5098_v21  ;;  %v7845_v44 = vpop.f32.mrb[103].mxu0  ;;  %v7733_v10 = vpop.f32.mrb[103].mxu1 }
 0x3cf   : > { %v5819_v13 = vadd.f32 %v10009_v16, %v5665_v27  ;;  %v5867_v42 = vmax.f32 %v5818_v36, 0.0 }
 0x3d1   : > { %v5868_v15 = vmax.f32 %v5819_v13, 0.0 }
 0x3d2   : > { %v4872_v53 = vpop.f32.mrb[104].mxu1  ;;  %v5431_v49 = vpop.f32.mrb[104].mxu0 }
 0x3d3   : > { %v6462_v1 = vpack.c.bf16 %v5868_v15, %v5867_v42  ;;  %v5101_v17 = vadd.f32 %v4872_v53, %v9686_v47  ;;  %v5666_v30 = vadd.f32 %v5431_v49, %v5099_v6  ;;  %v7736_v18 = vpop.f32.mrb[105].mxu1  ;;  %v7848_v2 = vpop.f32.mrb[105].mxu0 }
 0x3d4   : > { %v4875_v0 = vpop.f32.mrb[106].mxu1  ;;  %v5434_v25 = vpop.f32.mrb[106].mxu0 }
 0x3d5   : > { %6574 = vst [vmem:[%s10018_s28 + $0x8] sm:$0xff] %v6462_v1   ;;  %v5820_v45 = vadd.f32 %v10009_v16, %v5666_v30  ;;  %v5102_v21 = vadd.f32 %v4875_v0, %v9693_v51  ;;  %v5667_v38 = vadd.f32 %v5434_v25, %v5100_v62  ;;  %v7849_v34 = vpop.f32.mrb[107].mxu0  ;;  %v7737_v48 = vpop.f32.mrb[107].mxu1 }
 0x3d7   : > { %v5821_v41 = vadd.f32 %v10009_v16, %v5667_v38  ;;  %v5869_v14 = vmax.f32 %v5820_v45, 0.0 }
 0x3d9   : > { %v5870_v29 = vmax.f32 %v5821_v41, 0.0 }
 0x3da   : > { %v4880_v36 = vpop.f32.mrb[108].mxu1  ;;  %v5439_v47 = vpop.f32.mrb[108].mxu0 }
 0x3db   : > { %v6467_v6 = vpack.c.bf16 %v5870_v29, %v5869_v14  ;;  %v5103_v57 = vadd.f32 %v4880_v36, %v9703_v52  ;;  %v5668_v27 = vadd.f32 %v5439_v47, %v5101_v17  ;;  %v7740_v44 = vpop.f32.mrb[109].mxu1  ;;  %v7852_v10 = vpop.f32.mrb[109].mxu0 }
 0x3dc   : > { %v4883_v13 = vpop.f32.mrb[110].mxu1  ;;  %v5442_v42 = vpop.f32.mrb[110].mxu0 }
 0x3dd   : > { %6575 = vst [vmem:[%s10018_s28 + $0x10] sm:$0xff] %v6467_v6   ;;  %v5822_v51 = vadd.f32 %v10009_v16, %v5668_v27  ;;  %v5104_v62 = vadd.f32 %v4883_v13, %v9710_v20  ;;  %v5669_v15 = vadd.f32 %v5442_v42, %v5102_v21  ;;  %v7853_v53 = vpop.f32.mrb[111].mxu0  ;;  %v7741_v49 = vpop.f32.mrb[111].mxu1 }
 0x3df   : > { %v5823_v1 = vadd.f32 %v10009_v16, %v5669_v15  ;;  %v5871_v30 = vmax.f32 %v5822_v51, 0.0 }
 0x3e1   : > { %v5872_v18 = vmax.f32 %v5823_v1, 0.0 }
 0x3e2   : > { %v4888_v2 = vpop.f32.mrb[112].mxu1  ;;  %v5447_v52 = vpop.f32.mrb[112].mxu0 }
 0x3e3   : > { %v6472_v17 = vpack.c.bf16 %v5872_v18, %v5871_v30  ;;  %v5105_v0 = vadd.f32 %v4888_v2, %v9720_v37  ;;  %v5670_v25 = vadd.f32 %v5447_v52, %v5103_v57  ;;  %v7744_v45 = vpop.f32.mrb[113].mxu1  ;;  %v7856_v38 = vpop.f32.mrb[113].mxu0 }
 0x3e4   : > { %v4891_v34 = vpop.f32.mrb[114].mxu1  ;;  %v5450_v48 = vpop.f32.mrb[114].mxu0 }
 0x3e5   : > { %6576 = vst [vmem:[%s10018_s28 + $0x18] sm:$0xff] %v6472_v17   ;;  %v5824_v20 = vadd.f32 %v10009_v16, %v5670_v25  ;;  %v5106_v21 = vadd.f32 %v4891_v34, %v9727_v60  ;;  %v5671_v41 = vadd.f32 %v5450_v48, %v5104_v62  ;;  %v7857_v14 = vpop.f32.mrb[115].mxu0  ;;  %v7745_v29 = vpop.f32.mrb[115].mxu1 }
 0x3e7   : > { %v5825_v36 = vadd.f32 %v10009_v16, %v5671_v41  ;;  %v5873_v47 = vmax.f32 %v5824_v20, 0.0 }
 0x3e9   : > { %v5874_v6 = vmax.f32 %v5825_v36, 0.0 }
 0x3ea   : > { %v4896_v27 = vpop.f32.mrb[116].mxu1  ;;  %v5455_v37 = vpop.f32.mrb[116].mxu0 }
 0x3eb   : > { %v6477_v57 = vpack.c.bf16 %v5874_v6, %v5873_v47  ;;  %v5107_v44 = vadd.f32 %v4896_v27, %v9737_v35  ;;  %v5672_v10 = vadd.f32 %v5455_v37, %v5105_v0  ;;  %v7748_v13 = vpop.f32.mrb[117].mxu1  ;;  %v7860_v42 = vpop.f32.mrb[117].mxu0 }
 0x3ec   : > { %v4899_v51 = vpop.f32.mrb[118].mxu1  ;;  %v5458_v15 = vpop.f32.mrb[118].mxu0 }
 0x3ed   : > { %6577 = vst [vmem:[%s10018_s28 + $0x20] sm:$0xff] %v6477_v57   ;;  %v5826_v60 = vadd.f32 %v10009_v16, %v5672_v10  ;;  %v5108_v62 = vadd.f32 %v4899_v51, %v9744_v7  ;;  %v5673_v53 = vadd.f32 %v5458_v15, %v5106_v21  ;;  %v7861_v49 = vpop.f32.mrb[119].mxu0  ;;  %v7749_v1 = vpop.f32.mrb[119].mxu1 }
 0x3ef   : > { %v5827_v30 = vadd.f32 %v10009_v16, %v5673_v53  ;;  %v5875_v18 = vmax.f32 %v5826_v60, 0.0 }
 0x3f1   : > { %v5876_v2 = vmax.f32 %v5827_v30, 0.0 }
 0x3f2   : > { %v4904_v52 = vpop.f32.mrb[120].mxu1  ;;  %v5463_v35 = vpop.f32.mrb[120].mxu0 }
 0x3f3   : > { %v6482_v17 = vpack.c.bf16 %v5876_v2, %v5875_v18  ;;  %v5109_v0 = vadd.f32 %v4904_v52, %v9754_v28  ;;  %v5674_v25 = vadd.f32 %v5463_v35, %v5107_v44  ;;  %v7752_v45 = vpop.f32.mrb[121].mxu1  ;;  %v7864_v38 = vpop.f32.mrb[121].mxu0 }
 0x3f4   : > { %v4907_v34 = vpop.f32.mrb[122].mxu1  ;;  %v5466_v48 = vpop.f32.mrb[122].mxu0 }
 0x3f5   : > { %6578 = vst [vmem:[%s10018_s28 + $0x28] sm:$0xff] %v6482_v17   ;;  %v5828_v7 = vadd.f32 %v10009_v16, %v5674_v25  ;;  %v5110_v20 = vadd.f32 %v4907_v34, %v9761_v58  ;;  %v5675_v21 = vadd.f32 %v5466_v48, %v5108_v62  ;;  %v7865_v41 = vpop.f32.mrb[123].mxu0  ;;  %v7753_v14 = vpop.f32.mrb[123].mxu1 }
 0x3f7   : > { %v5829_v29 = vadd.f32 %v10009_v16, %v5675_v21  ;;  %v5877_v36 = vmax.f32 %v5828_v7, 0.0 }
 0x3f9   : > { %v5878_v47 = vmax.f32 %v5829_v29, 0.0 }
 0x3fa   : > { %v4912_v6 = vpop.f32.mrb[124].mxu1  ;;  %v5471_v28 = vpop.f32.mrb[124].mxu0 }
 0x3fb   : > { %v6487_v27 = vpack.c.bf16 %v5878_v47, %v5877_v36  ;;  %v5111_v37 = vadd.f32 %v4912_v6, %v9771_v46  ;;  %v5676_v57 = vadd.f32 %v5471_v28, %v5109_v0  ;;  %v7756_v44 = vpop.f32.mrb[125].mxu1  ;;  %v7868_v10 = vpop.f32.mrb[125].mxu0 }
 0x3fc   : > { %v4915_v13 = vpop.f32.mrb[126].mxu1  ;;  %v5474_v42 = vpop.f32.mrb[126].mxu0 }
 0x3fd   : > { %6579 = vst [vmem:[%s10018_s28 + $0x30] sm:$0xff] %v6487_v27   ;;  %v5830_v58 = vadd.f32 %v10009_v16, %v5676_v57  ;;  %v5112_v51 = vadd.f32 %v4915_v13, %v9778_v19  ;;  %v5677_v15 = vadd.f32 %v5474_v42, %v5110_v20  ;;  %v7869_v60 = vpop.f32.mrb[127].mxu0  ;;  %v7757_v62 = vpop.f32.mrb[127].mxu1 }
 0x3ff   : > { %v5831_v53 = vadd.f32 %v10009_v16, %v5677_v15  ;;  %v5879_v49 = vmax.f32 %v5830_v58, 0.0 }
 0x401   : > { %v5880_v1 = vmax.f32 %v5831_v53, 0.0 }
 0x402   : > { %v4920_v30 = vpop.f32.mrb[128].mxu1  ;;  %v5479_v46 = vpop.f32.mrb[128].mxu0 }
 0x403   : > { %v6492_v18 = vpack.c.bf16 %v5880_v1, %v5879_v49  ;;  %v5113_v2 = vadd.f32 %v4920_v30, %v9788_v9  ;;  %v5678_v52 = vadd.f32 %v5479_v46, %v5111_v37  ;;  %v7760_v35 = vpop.f32.mrb[129].mxu1  ;;  %v7872_v17 = vpop.f32.mrb[129].mxu0 }
 0x404   : > { %v4923_v0 = vpop.f32.mrb[130].mxu1  ;;  %v5482_v25 = vpop.f32.mrb[130].mxu0 }
 0x405   : > { %6580 = vst [vmem:[%s10018_s28 + $0x38] sm:$0xff] %v6492_v18   ;;  %v5832_v19 = vadd.f32 %v10009_v16, %v5678_v52  ;;  %v5114_v45 = vadd.f32 %v4923_v0, %v9795_v24  ;;  %v5679_v38 = vadd.f32 %v5482_v25, %v5112_v51  ;;  %v7873_v34 = vpop.f32.mrb[131].mxu0  ;;  %v7761_v48 = vpop.f32.mrb[131].mxu1 }
 0x407   : > { %v5833_v7 = vadd.f32 %v10009_v16, %v5679_v38  ;;  %v5881_v20 = vmax.f32 %v5832_v19, 0.0 }
 0x409   : > { %v5882_v21 = vmax.f32 %v5833_v7, 0.0 }
 0x40a   : > { %v4928_v41 = vpop.f32.mrb[132].mxu1  ;;  %v5487_v9 = vpop.f32.mrb[132].mxu0 }
 0x40b   : > { %v6497_v14 = vpack.c.bf16 %v5882_v21, %v5881_v20  ;;  %v5115_v29 = vadd.f32 %v4928_v41, %v9805_v22  ;;  %v5680_v36 = vadd.f32 %v5487_v9, %v5113_v2  ;;  %v7764_v47 = vpop.f32.mrb[133].mxu1  ;;  %v7876_v6 = vpop.f32.mrb[133].mxu0 }
 0x40c   : > { %v4931_v28 = vpop.f32.mrb[134].mxu1  ;;  %v5490_v27 = vpop.f32.mrb[134].mxu0 }
 0x40d   : > { %6581 = vst [vmem:[%s10018_s28 + $0x40] sm:$0xff] %v6497_v14   ;;  %v5834_v24 = vadd.f32 %v10009_v16, %v5680_v36  ;;  %v5116_v37 = vadd.f32 %v4931_v28, %v9812_v4  ;;  %v5681_v57 = vadd.f32 %v5490_v27, %v5114_v45  ;;  %v7877_v44 = vpop.f32.mrb[135].mxu0  ;;  %v7765_v10 = vpop.f32.mrb[135].mxu1 }
 0x40f   : > { %v5835_v13 = vadd.f32 %v10009_v16, %v5681_v57  ;;  %v5883_v42 = vmax.f32 %v5834_v24, 0.0 }
 0x411   : > { %v5884_v58 = vmax.f32 %v5835_v13, 0.0 }
 0x412   : > { %v4936_v51 = vpop.f32.mrb[136].mxu1  ;;  %v5495_v22 = vpop.f32.mrb[136].mxu0 }
 0x413   : > { %v6502_v15 = vpack.c.bf16 %v5884_v58, %v5883_v42  ;;  %v5117_v60 = vadd.f32 %v4936_v51, %v9822_v39  ;;  %v5682_v62 = vadd.f32 %v5495_v22, %v5115_v29  ;;  %v7768_v53 = vpop.f32.mrb[137].mxu1  ;;  %v7880_v49 = vpop.f32.mrb[137].mxu0 }
 0x414   : > { %v4939_v1 = vpop.f32.mrb[138].mxu1  ;;  %v5498_v30 = vpop.f32.mrb[138].mxu0 }
 0x415   : > { %6582 = vst [vmem:[%s10018_s28 + $0x48] sm:$0xff] %v6502_v15   ;;  %v5836_v4 = vadd.f32 %v10009_v16, %v5682_v62  ;;  %v5118_v46 = vadd.f32 %v4939_v1, %v9829_v26  ;;  %v5683_v18 = vadd.f32 %v5498_v30, %v5116_v37  ;;  %v7881_v2 = vpop.f32.mrb[139].mxu0  ;;  %v7769_v52 = vpop.f32.mrb[139].mxu1 }
 0x417   : > { %v5837_v35 = vadd.f32 %v10009_v16, %v5683_v18  ;;  %v5885_v17 = vmax.f32 %v5836_v4, 0.0 }
 0x419   : > { %v5886_v0 = vmax.f32 %v5837_v35, 0.0 }
 0x41a   : > { %v4944_v25 = vpop.f32.mrb[140].mxu1  ;;  %v5503_v39 = vpop.f32.mrb[140].mxu0 }
 0x41b   : > { %v6507_v19 = vpack.c.bf16 %v5886_v0, %v5885_v17  ;;  %v5119_v45 = vadd.f32 %v4944_v25, %v9839_v31  ;;  %v5684_v38 = vadd.f32 %v5503_v39, %v5117_v60  ;;  %v7772_v34 = vpop.f32.mrb[141].mxu1  ;;  %v7884_v48 = vpop.f32.mrb[141].mxu0 }
 0x41c   : > { %v4947_v7 = vpop.f32.mrb[142].mxu1  ;;  %v5506_v20 = vpop.f32.mrb[142].mxu0 }
 0x41d   : > { %6583 = vst [vmem:[%s10018_s28 + $0x50] sm:$0xff] %v6507_v19   ;;  %v5838_v26 = vadd.f32 %v10009_v16, %v5684_v38  ;;  %v5120_v21 = vadd.f32 %v4947_v7, %v9846_v61  ;;  %v5685_v41 = vadd.f32 %v5506_v20, %v5118_v46  ;;  %v7885_v9 = vpop.f32.mrb[143].mxu0  ;;  %v7773_v14 = vpop.f32.mrb[143].mxu1 }
 0x41f   : > { %v5839_v29 = vadd.f32 %v10009_v16, %v5685_v41  ;;  %v5887_v36 = vmax.f32 %v5838_v26, 0.0 }
 0x421   : > { %v5888_v47 = vmax.f32 %v5839_v29, 0.0 }
 0x422   : > { %v4952_v6 = vpop.f32.mrb[144].mxu1  ;;  %v5511_v31 = vpop.f32.mrb[144].mxu0 }
 0x423   : > { %v6512_v28 = vpack.c.bf16 %v5888_v47, %v5887_v36  ;;  %v5121_v27 = vadd.f32 %v4952_v6, %v9856_v5  ;;  %v5686_v24 = vadd.f32 %v5511_v31, %v5119_v45  ;;  %v7776_v37 = vpop.f32.mrb[145].mxu1  ;;  %v7888_v57 = vpop.f32.mrb[145].mxu0 }
 0x424   : > { %v4955_v44 = vpop.f32.mrb[146].mxu1  ;;  %v5514_v10 = vpop.f32.mrb[146].mxu0 }
 0x425   : > { %6584 = vst [vmem:[%s10018_s28 + $0x58] sm:$0xff] %v6512_v28   ;;  %v5840_v61 = vadd.f32 %v10009_v16, %v5686_v24  ;;  %v5122_v13 = vadd.f32 %v4955_v44, %v9863_v50  ;;  %v5687_v42 = vadd.f32 %v5514_v10, %v5120_v21  ;;  %v7889_v58 = vpop.f32.mrb[147].mxu0  ;;  %v7777_v51 = vpop.f32.mrb[147].mxu1  ;;  %v10205_v21 = vld [vmem:[#allocation4_spill] sm:$0xff] }
 0x427   : > { %v5841_v22 = vadd.f32 %v10009_v16, %v5687_v42  ;;  %v5889_v15 = vmax.f32 %v5840_v61, 0.0  ;;  %v10207_v42 = vld [vmem:[#allocation6_spill] sm:$0xff] }
 0x429   : > { %v5890_v60 = vmax.f32 %v5841_v22, 0.0 }
 0x42a   : > { %v4960_v62 = vpop.f32.mrb[148].mxu1  ;;  %v5519_v5 = vpop.f32.mrb[148].mxu0 }
 0x42b   : > { %v6517_v53 = vpack.c.bf16 %v5890_v60, %v5889_v15  ;;  %v5123_v49 = vadd.f32 %v4960_v62, %v9873_v43  ;;  %v5688_v1 = vadd.f32 %v5519_v5, %v5121_v27  ;;  %v7780_v30 = vpop.f32.mrb[149].mxu1  ;;  %v7892_v4 = vpop.f32.mrb[149].mxu0  ;;  %v10206_v27 = vld [vmem:[#allocation5_spill] sm:$0xff] }
 0x42c   : > { %v4963_v46 = vpop.f32.mrb[150].mxu1  ;;  %v5522_v18 = vpop.f32.mrb[150].mxu0  ;;  %v10208_v30 = vld [vmem:[#allocation7_spill] sm:$0xff] }
 0x42d   : > { %6585 = vst [vmem:[%s10018_s28 + $0x60] sm:$0xff] %v6517_v53   ;;  %v5842_v50 = vadd.f32 %v10009_v16, %v5688_v1  ;;  %v5124_v2 = vadd.f32 %v4963_v46, %v9880_v12  ;;  %v5689_v52 = vadd.f32 %v5522_v18, %v5122_v13  ;;  %v7893_v35 = vpop.f32.mrb[151].mxu0  ;;  %v7781_v17 = vpop.f32.mrb[151].mxu1 }
 0x42e   : > { %v10209_v17 = vld [vmem:[#allocation8_spill] sm:$0xff] }
 0x42f   : > { %v5843_v0 = vadd.f32 %v10009_v16, %v5689_v52  ;;  %v5891_v25 = vmax.f32 %v5842_v50, 0.0 }
 0x431   : > { %v5892_v39 = vmax.f32 %v5843_v0, 0.0 }
 0x432   : > { %v4968_v19 = vpop.f32.mrb[152].mxu1  ;;  %v5527_v43 = vpop.f32.mrb[152].mxu0 }
 0x433   : > { %v6522_v45 = vpack.c.bf16 %v5892_v39, %v5891_v25  ;;  %v5125_v38 = vadd.f32 %v4968_v19, %v9890_v3  ;;  %v5690_v34 = vadd.f32 %v5527_v43, %v5123_v49  ;;  %v7784_v48 = vpop.f32.mrb[153].mxu1  ;;  %v7896_v7 = vpop.f32.mrb[153].mxu0 }
 0x434   : > { %v4971_v20 = vpop.f32.mrb[154].mxu1  ;;  %v5530_v26 = vpop.f32.mrb[154].mxu0 }
 0x435   : > { %6586 = vst [vmem:[%s10018_s28 + $0x68] sm:$0xff] %v6522_v45   ;;  %v5844_v12 = vadd.f32 %v10009_v16, %v5690_v34  ;;  %v5126_v41 = vadd.f32 %v4971_v20, %v10205_v21  ;;  %v5691_v9 = vadd.f32 %v5530_v26, %v5124_v2  ;;  %v7897_v14 = vpop.f32.mrb[155].mxu0  ;;  %v7785_v29 = vpop.f32.mrb[155].mxu1  ;;  %v10210_v20 = vld [vmem:[#allocation9_spill] sm:$0xff] }
 0x437   : > { %v5845_v36 = vadd.f32 %v10009_v16, %v5691_v9  ;;  %v5893_v47 = vmax.f32 %v5844_v12, 0.0 }
 0x439   : > { %v5894_v6 = vmax.f32 %v5845_v36, 0.0  ;;  %v10211_v36 = vld [vmem:[#allocation10_spill] sm:$0xff] }
 0x43a   : > { %v4976_v31 = vpop.f32.mrb[156].mxu1  ;;  %v5535_v3 = vpop.f32.mrb[156].mxu0 }
 0x43b   : > { %v6527_v28 = vpack.c.bf16 %v5894_v6, %v5893_v47  ;;  %v5127_v24 = vadd.f32 %v4976_v31, %v10206_v27  ;;  %v5692_v37 = vadd.f32 %v5535_v3, %v5125_v38  ;;  %v7788_v57 = vpop.f32.mrb[157].mxu1  ;;  %v7900_v44 = vpop.f32.mrb[157].mxu0 }
 0x43c   : > { %v4979_v10 = vpop.f32.mrb[158].mxu1  ;;  %v5538_v61 = vpop.f32.mrb[158].mxu0 }
 0x43d   : > { %6587 = vst [vmem:[%s10018_s28 + $0x70] sm:$0xff] %v6527_v28   ;;  %v5846_v13 = vadd.f32 %v10009_v16, %v5692_v37  ;;  %v5128_v58 = vadd.f32 %v4979_v10, %v10207_v42  ;;  %v5693_v51 = vadd.f32 %v5538_v61, %v5126_v41  ;;  %v7901_v22 = vpop.f32.mrb[159].mxu0  ;;  %v7789_v15 = vpop.f32.mrb[159].mxu1 }
 0x43f   : > { %v5847_v60 = vadd.f32 %v10009_v16, %v5693_v51  ;;  %v5895_v62 = vmax.f32 %v5846_v13, 0.0 }
 0x441   : > { %v5896_v5 = vmax.f32 %v5847_v60, 0.0 }
 0x442   : > { %v4984_v53 = vpop.f32.mrb[160].mxu1  ;;  %v5543_v49 = vpop.f32.mrb[160].mxu0 }
 0x443   : > { %v6532_v1 = vpack.c.bf16 %v5896_v5, %v5895_v62  ;;  %v5129_v4 = vadd.f32 %v4984_v53, %v10208_v30  ;;  %v5694_v46 = vadd.f32 %v5543_v49, %v5127_v24  ;;  %v7792_v18 = vpop.f32.mrb[161].mxu1  ;;  %v7904_v50 = vpop.f32.mrb[161].mxu0 }
 0x444   : > { %v4987_v2 = vpop.f32.mrb[162].mxu1  ;;  %v5546_v52 = vpop.f32.mrb[162].mxu0 }
 0x445   : > { %6588 = vst [vmem:[%s10018_s28 + $0x78] sm:$0xff] %v6532_v1   ;;  %v5848_v35 = vadd.f32 %v10009_v16, %v5694_v46  ;;  %v5130_v0 = vadd.f32 %v4987_v2, %v10209_v17  ;;  %v5695_v25 = vadd.f32 %v5546_v52, %v5128_v58  ;;  %v7905_v39 = vpop.f32.mrb[163].mxu0  ;;  %v7793_v19 = vpop.f32.mrb[163].mxu1 }
 0x447   : > { %v5849_v43 = vadd.f32 %v10009_v16, %v5695_v25  ;;  %v5897_v45 = vmax.f32 %v5848_v35, 0.0 }
 0x449   : > { %v5898_v38 = vmax.f32 %v5849_v43, 0.0 }
 0x44a   : > { %v4992_v34 = vpop.f32.mrb[164].mxu1  ;;  %v5551_v48 = vpop.f32.mrb[164].mxu0 }
 0x44b   : > { %v6537_v7 = vpack.c.bf16 %v5898_v38, %v5897_v45  ;;  %v5131_v26 = vadd.f32 %v4992_v34, %v10210_v20  ;;  %v5696_v12 = vadd.f32 %v5551_v48, %v5129_v4  ;;  %v7796_v21 = vpop.f32.mrb[165].mxu1  ;;  %v7908_v41 = vpop.f32.mrb[165].mxu0 }
 0x44c   : > { %v4995_v9 = vpop.f32.mrb[166].mxu1  ;;  %v5554_v14 = vpop.f32.mrb[166].mxu0 }
 0x44d   : > { %6589 = vst [vmem:[%s10018_s28 + $0x80] sm:$0xff] %v6537_v7   ;;  %v5850_v29 = vadd.f32 %v10009_v16, %v5696_v12  ;;  %v5132_v47 = vadd.f32 %v4995_v9, %v10211_v36  ;;  %v5697_v6 = vadd.f32 %v5554_v14, %v5130_v0  ;;  %v7909_v31 = vpop.f32.mrb[167].mxu0  ;;  %v7797_v3 = vpop.f32.mrb[167].mxu1 }
 0x44f   : > { %v5851_v28 = vadd.f32 %v10009_v16, %v5697_v6  ;;  %v5899_v27 = vmax.f32 %v5850_v29, 0.0 }
 0x451   : > { %v5900_v24 = vmax.f32 %v5851_v28, 0.0 }
 0x452   : > { %v5000_v37 = vpop.f32.mrb[168].mxu1  ;;  %v5559_v57 = vpop.f32.mrb[168].mxu0 }
 0x453   : > { %v6542_v44 = vpack.c.bf16 %v5900_v24, %v5899_v27  ;;  %v5133_v10 = vadd.f32 %v5000_v37, %v9956_v33  ;;  %v5698_v61 = vadd.f32 %v5559_v57, %v5131_v26  ;;  %v7800_v13 = vpop.f32.mrb[169].mxu1  ;;  %v7912_v42 = vpop.f32.mrb[169].mxu0 }
 0x454   : > { %v5003_v58 = vpop.f32.mrb[170].mxu1  ;;  %v5562_v51 = vpop.f32.mrb[170].mxu0 }
 0x455   : > { %6590 = vst [vmem:[%s10018_s28 + $0x88] sm:$0xff] %v6542_v44   ;;  %v5852_v22 = vadd.f32 %v10009_v16, %v5698_v61  ;;  %v5134_v15 = vadd.f32 %v5003_v58, %v9962_v32  ;;  %v5699_v60 = vadd.f32 %v5562_v51, %v5132_v47  ;;  %v7913_v62 = vpop.f32.mrb[171].mxu0  ;;  %v7801_v5 = vpop.f32.mrb[171].mxu1 }
 0x457   : > { %v5853_v53 = vadd.f32 %v10009_v16, %v5699_v60  ;;  %v5901_v49 = vmax.f32 %v5852_v22, 0.0 }
 0x459   : > { %v5902_v1 = vmax.f32 %v5853_v53, 0.0 }
 0x45a   : > { %v5008_v30 = vpop.f32.mrb[172].mxu1  ;;  %v5567_v33 = vpop.f32.mrb[172].mxu0 }
 0x45b   : > { %v6547_v4 = vpack.c.bf16 %v5902_v1, %v5901_v49  ;;  %v5135_v46 = vadd.f32 %v5008_v30, %v9970_v59  ;;  %v5700_v18 = vadd.f32 %v5567_v33, %v5133_v10  ;;  %v7804_v50 = vpop.f32.mrb[173].mxu1  ;;  %v7916_v2 = vpop.f32.mrb[173].mxu0 }
 0x45c   : > { %v5011_v52 = vpop.f32.mrb[174].mxu1  ;;  %v5570_v35 = vpop.f32.mrb[174].mxu0 }
 0x45d   : > { %6591 = vst [vmem:[%s10018_s28 + $0x90] sm:$0xff] %v6547_v4   ;;  %v5854_v32 = vadd.f32 %v10009_v16, %v5700_v18  ;;  %v5136_v17 = vadd.f32 %v5011_v52, %v9975_v63  ;;  %v5701_v0 = vadd.f32 %v5570_v35, %v5134_v15  ;;  %v7917_v25 = vpop.f32.mrb[175].mxu0  ;;  %v7805_v39 = vpop.f32.mrb[175].mxu1 }
 0x45f   : > { %v5855_v19 = vadd.f32 %v10009_v16, %v5701_v0  ;;  %v5903_v43 = vmax.f32 %v5854_v32, 0.0 }
 0x461   : > { %v5904_v45 = vmax.f32 %v5855_v19, 0.0 }
 0x462   : > { %v5016_v38 = vpop.f32.mrb[176].mxu1  ;;  %v5575_v59 = vpop.f32.mrb[176].mxu0 }
 0x463   : > { %v6552_v34 = vpack.c.bf16 %v5904_v45, %v5903_v43  ;;  %v5137_v48 = vadd.f32 %v5016_v38, %v9982_v56  ;;  %v5702_v7 = vadd.f32 %v5575_v59, %v5135_v46  ;;  %v7808_v20 = vpop.f32.mrb[177].mxu1  ;;  %v7920_v26 = vpop.f32.mrb[177].mxu0 }
 0x464   : > { %v5019_v12 = vpop.f32.mrb[178].mxu1  ;;  %v5578_v21 = vpop.f32.mrb[178].mxu0 }
 0x465   : > { %6592 = vst [vmem:[%s10018_s28 + $0x98] sm:$0xff] %v6552_v34   ;;  %v5856_v63 = vadd.f32 %v10009_v16, %v5702_v7  ;;  %v5138_v41 = vadd.f32 %v5019_v12, %v9986_v55  ;;  %v5703_v9 = vadd.f32 %v5578_v21, %v5136_v17  ;;  %v7921_v14 = vpop.f32.mrb[179].mxu0  ;;  %v7809_v29 = vpop.f32.mrb[179].mxu1 }
 0x467   : > { %v5857_v36 = vadd.f32 %v10009_v16, %v5703_v9  ;;  %v5905_v47 = vmax.f32 %v5856_v63, 0.0 }
 0x469   : > { %v5906_v6 = vmax.f32 %v5857_v36, 0.0 }
 0x46a   : > { %v5024_v31 = vpop.f32.mrb[180].mxu1  ;;  %v5583_v56 = vpop.f32.mrb[180].mxu0 }
 0x46b   : > { %v6557_v3 = vpack.c.bf16 %v5906_v6, %v5905_v47  ;;  %v5139_v28 = vadd.f32 %v5024_v31, %v9991_v23  ;;  %v5704_v27 = vadd.f32 %v5583_v56, %v5137_v48  ;;  %v7812_v24 = vpop.f32.mrb[181].mxu1  ;;  %v7924_v37 = vpop.f32.mrb[181].mxu0 }
 0x46c   : > { %v5027_v57 = vpop.f32.mrb[182].mxu1  ;;  %v5586_v44 = vpop.f32.mrb[182].mxu0 }
 0x46d   : > { %6593 = vst [vmem:[%s10018_s28 + $0xa0] sm:$0xff] %v6557_v3   ;;  %v5858_v55 = vadd.f32 %v10009_v16, %v5704_v27  ;;  %v5140_v10 = vadd.f32 %v5027_v57, %v9994_v8  ;;  %v5705_v61 = vadd.f32 %v5586_v44, %v5138_v41  ;;  %v7925_v13 = vpop.f32.mrb[183].mxu0  ;;  %v7813_v42 = vpop.f32.mrb[183].mxu1 }
 0x46f   : > { %v5859_v58 = vadd.f32 %v10009_v16, %v5705_v61  ;;  %v5907_v51 = vmax.f32 %v5858_v55, 0.0 }
 0x471   : > { %v5908_v22 = vmax.f32 %v5859_v58, 0.0 }
 0x472   : > { %v5032_v15 = vpop.f32.mrb[184].mxu1  ;;  %v5591_v23 = vpop.f32.mrb[184].mxu0 }
 0x473   : > { %v6562_v60 = vpack.c.bf16 %v5908_v22, %v5907_v51  ;;  %v5141_v62 = vadd.f32 %v5032_v15, %v9997_v54  ;;  %v5706_v5 = vadd.f32 %v5591_v23, %v5139_v28  ;;  %v7816_v53 = vpop.f32.mrb[185].mxu1  ;;  %v7928_v49 = vpop.f32.mrb[185].mxu0 }
 0x474   : > { %v5035_v1 = vpop.f32.mrb[186].mxu1  ;;  %v5594_v30 = vpop.f32.mrb[186].mxu0 }
 0x475   : > { %6594 = vst [vmem:[%s10018_s28 + $0xa8] sm:$0xff] %v6562_v60   ;;  %v5860_v8 = vadd.f32 %v10009_v16, %v5706_v5  ;;  %v5142_v33 = vadd.f32 %v5035_v1, %v9999_v40  ;;  %v5707_v4 = vadd.f32 %v5594_v30, %v5140_v10  ;;  %v7929_v46 = vpop.f32.mrb[187].mxu0  ;;  %v7817_v18 = vpop.f32.mrb[187].mxu1 }
 0x477   : > { %v5861_v50 = vadd.f32 %v10009_v16, %v5707_v4  ;;  %v5909_v2 = vmax.f32 %v5860_v8, 0.0 }
 0x479   : > { %v5910_v52 = vmax.f32 %v5861_v50, 0.0 }
 0x47a   : > { %v5040_v35 = vpop.f32.mrb[188].mxu1  ;;  %v5599_v54 = vpop.f32.mrb[188].mxu0 }
 0x47b   : > { %v6567_v32 = vpack.c.bf16 %v5910_v52, %v5909_v2  ;;  %v5143_v17 = vadd.f32 %v5040_v35, %v10001_v11  ;;  %v5708_v0 = vadd.f32 %v5599_v54, %v5141_v62  ;;  %v7932_v25 = vpop.f32.mrb[189].mxu0  ;;  %v7820_v39 = vpop.f32.mrb[189].mxu1 }
 0x47c   : > { %v5602_v19 = vpop.f32.mrb[190].mxu0  ;;  %v5043_v43 = vpop.f32.mrb[190].mxu1 }
 0x47d   : > { %6595 = vst [vmem:[%s10018_s28 + $0xb0] sm:$0xff] %v6567_v32   ;;  %v5862_v40 = vadd.f32 %v10009_v16, %v5708_v0  ;;  %v5709_v45 = vadd.f32 %v5602_v19, %v5142_v33  ;;  %v7933_v38 = vpop.f32.mrb[191].mxu0  ;;  %v7821_v59 = vpop.f32.mrb[191].mxu1 }
 0x47f   : > { %v5863_v34 = vadd.f32 %v10009_v16, %v5709_v45  ;;  %v5911_v48 = vmax.f32 %v5862_v40, 0.0 }
 0x481   : > { %v5912_v7 = vmax.f32 %v5863_v34, 0.0 }
 0x482   : > { %v5607_v20 = vpop.f32.mrb[192].mxu0 }
 0x483   : > { %v6572_v26 = vpack.c.bf16 %v5912_v7, %v5911_v48  ;;  %v5710_v11 = vadd.f32 %v5607_v20, %v5143_v17  ;;  %v7936_v12 = vpop.f32.mrb[193].mxu0 }
 0x484   : > { %v5610_v21 = vpop.f32.mrb[194].mxu0 }
 0x485   : > { %6596 = vst [vmem:[%s10018_s28 + $0xb8] sm:$0xff] %v6572_v26   ;;  %v5864_v63 = vadd.f32 %v10009_v16, %v5710_v11  ;;  %v7937_v41 = vpop.f32.mrb[195].mxu0 }
 0x487   : > { %v5913_v9 = vmax.f32 %v5864_v63, 0.0 }
 0x489   : > { %v6453_v14 = vpack.c.bf16 %v5913_v9, %v5913_v9 }
 0x48b   : > { %6159 = vst [vmem:[%s10018_s28 + $0xc0] sm:$0xf] %v6453_v14 }
 0x48c PF: > { %s14_s17 = sadd.s32 1, %s8114_s17   ;;  %s10212_s15 = smov %s8110_s16 }
 0x48d   : > { %p11_p7 = scmp.ge.s32.totalorder %s14_s17, 4   ;;  %s10213_s16 = smov %s10215_s18 }
 0x48f   :  { %13 = sbr.rel (!%p11_p7) target bundleno = 2 (0x2), region = 69 }

// kernel: _lambda_.7
= control target key start
LH: loop header
LB: loop body
LE: loop exit
PB: predicated region body
PF: predicated region fallthrough
CT: control target
= control target key end

     0   :  { %s3918_s15 = smov 0   ;;  %s3920_s16 = smov 0   ;;  %s4702_s0 = inlined_call_operand.vmem [shape: bf16[576,512], index: 0, kind: input, shape index: {}, may-alias: {0,1}]   ;;  %s4703_s1 = inlined_call_operand.vmem [shape: bf16[576,512], index: 1, kind: input, shape index: {}, may-alias: {0,1}]   ;;  %s4704_s2 = inlined_call_operand.vmem [shape: bf16[1408,128], index: 2, kind: input, shape index: {}]   ;;  %s4705_s3 = inlined_call_operand.vmem [shape: f32[1,128], index: 3, kind: input, shape index: {}]   ;;  %s4706_s4 = inlined_call_operand.vmem [shape: bf16[288,128], index: 4, kind: output, shape index: {}]  }
   0x1   :  { %s3922_s17 = smov 0  }
   0x2 LB: > { %s26_s18 = sadd.s32 1, %s3885_s16  ;;  %p2975_p0 = scmp.ge.s32.totalorder %s3889_s17, 1  ;;  %s3889_s17 = sphi %s3922_s17, %s14_s17   ;;  %s3885_s16 = sphi %s3920_s16, %s4708_s16   ;;  %s3881_s15 = sphi %s3918_s15, %s4707_s15  }
   0x3   : > { %p28_p1 = scmp.ge.s32.totalorder %s26_s18, 2  ;;  %p214_p2 = scmp.lt.s32.totalorder %s3889_s17, 3 }
   0x5   : > { %s4710_s18 = smov (%p28_p1, %s26_s18), 0  ;;  %p215_p3 = pnand %p2975_p0, %p214_p2 }
   0x6   : > { %v3712_v0 = vld [vmem:[%s4704_s2 + $0x40] sm:$0xff] (!%p215_p3)   ;;  %v3716_v4 = vld [vmem:[%s4704_s2 + $0x48] sm:$0xff] (!%p215_p3)   ;;  %v3720_v8 = vld [vmem:[%s4704_s2 + $0x50] sm:$0xff] (!%p215_p3)   ;;  %s2977_s27 = smul.u32 (!%p215_p3), 36, %s3881_s15  ;;  %vm1201_vm0 = vsmask.f32 (!%p215_p3), 7424 }
   0x7   : > { %218 = sbr.rel (%p215_p3) target bundleno = 478 (0x1de), region = 36  ;;  %v3713_v1 = vld [vmem:[%s4704_s2 + $0xc0] sm:$0xff] (!%p215_p3)   ;;  %3267 = vmatprep.subr.bf16.mxu0 (!%p215_p3), %v3712_v0  ;;  %v3717_v5 = vld [vmem:[%s4704_s2 + $0xc8] sm:$0xff] (!%p215_p3)   ;;  %v3721_v9 = vld [vmem:[%s4704_s2 + $0xd0] sm:$0xff] (!%p215_p3)   ;;  %vm3892_vm1 = vmmov (!%p215_p3), 0  }
   0x8   : > { %v3714_v2 = vld [vmem:[%s4704_s2] sm:$0xff] (!%p215_p3)   ;;  %3337 = vmatprep.subr.bf16.mxu1 (!%p215_p3), %v3713_v1  ;;  %v3718_v6 = vld [vmem:[%s4704_s2 + $0x8] sm:$0xff] (!%p215_p3)   ;;  %v3722_v10 = vld [vmem:[%s4704_s2 + $0x10] sm:$0xff] (!%p215_p3)   ;;  %p257_p4 = scmp.lt.s32.totalorder (!%p215_p3), %s2977_s27, 71  ;;  %s265_s13 = smul.u32 (!%p215_p3), 12, %s3881_s15 }
   0x9   : > { %v3715_v3 = vld [vmem:[%s4704_s2 + $0x80] sm:$0xff] (!%p215_p3)   ;;  %3268 = vmatpush3.bf16.msra.mxu0 (!%p215_p3), %v3714_v2  ;;  %v3719_v7 = vld [vmem:[%s4704_s2 + $0x88] sm:$0xff] (!%p215_p3)   ;;  %v3723_v11 = vld [vmem:[%s4704_s2 + $0x90] sm:$0xff] (!%p215_p3)   ;;  %s281_s9 = smul.u32 (!%p215_p3), 18, %s3881_s15 }
   0xa   : > { %3338 = vmatpush3.bf16.msra.mxu1 (!%p215_p3), %v3715_v3  ;;  %3269 = vmatprep.subr.bf16.mxu0 (!%p215_p3), %v3716_v4  ;;  %v3724_v12 = vld [vmem:[%s4704_s2 + $0x58] sm:$0xff] (!%p215_p3)   ;;  %v3728_v16 = vld [vmem:[%s4704_s2 + $0x60] sm:$0xff] (!%p215_p3)   ;;  %v3732_v20 = vld [vmem:[%s4704_s2 + $0x68] sm:$0xff] (!%p215_p3)   ;;  %s268_s25 = sadd.s32 (!%p215_p3), 6, %s265_s13 }
   0xb   : > { %3339 = vmatprep.subr.bf16.mxu1 (!%p215_p3), %v3717_v5  ;;  %v3725_v13 = vld [vmem:[%s4704_s2 + $0xd8] sm:$0xff] (!%p215_p3)   ;;  %v3729_v17 = vld [vmem:[%s4704_s2 + $0xe0] sm:$0xff] (!%p215_p3)   ;;  %v3733_v21 = vld [vmem:[%s4704_s2 + $0xe8] sm:$0xff] (!%p215_p3)   ;;  %s269_s26 = smul.u32 (!%p215_p3), 3, %s268_s25  ;;  %p282_p6 = scmp.lt.s32.totalorder (!%p215_p3), %s281_s9, 35 }
   0xc   : > { %v3726_v14 = vld [vmem:[%s4704_s2 + $0x18] sm:$0xff] (!%p215_p3)   ;;  %v3730_v18 = vld [vmem:[%s4704_s2 + $0x20] sm:$0xff] (!%p215_p3)   ;;  %v3734_v22 = vld [vmem:[%s4704_s2 + $0x28] sm:$0xff] (!%p215_p3)  }
   0xd   : > { %3270 = vmatpush3.bf16.msra.mxu0 (!%p215_p3), %v3718_v6  ;;  %v3727_v15 = vld [vmem:[%s4704_s2 + $0x98] sm:$0xff] (!%p215_p3)   ;;  %v3731_v19 = vld [vmem:[%s4704_s2 + $0xa0] sm:$0xff] (!%p215_p3)   ;;  %v3735_v23 = vld [vmem:[%s4704_s2 + $0xa8] sm:$0xff] (!%p215_p3)   ;;  %p270_p5 = scmp.lt.s32.totalorder (!%p215_p3), %s269_s26, 71 }
   0xe   : > { %3340 = vmatpush3.bf16.msra.mxu1 %v3719_v7  ;;  %3271 = vmatprep.subr.bf16.mxu0 %v3720_v8  ;;  %s4712_s27 = smov (!%p257_p4, %s2977_s27), 71  ;;  %v3736_v24 = vld [vmem:[%s4704_s2 + $0x70] sm:$0xff]   ;;  %v3740_v28 = vld [vmem:[%s4704_s2 + $0x78] sm:$0xff]   ;;  %v3748_v40 = vld [vmem:[%s4704_s2 + $0x140] sm:$0xff]   ;;  %s4716_s9 = smov (!%p282_p6, %s281_s9), 35 }
   0xf   : > { %3341 = vmatprep.subr.bf16.mxu1 %v3721_v9  ;;  %v3737_v25 = vld [vmem:[%s4704_s2 + $0xf0] sm:$0xff]   ;;  %s3194_s5 = sshll.u32 %s4712_s27, 4  ;;  %v3741_v29 = vld [vmem:[%s4704_s2 + $0xf8] sm:$0xff]   ;;  %v3749_v41 = vld [vmem:[%s4704_s2 + $0x100] sm:$0xff]   ;;  %s4714_s26 = smov (!%p270_p5, %s269_s26), 71 }
  0x10   : > { %v3738_v26 = vld [vmem:[%s4704_s2 + $0x30] sm:$0xff]   ;;  %s4032_s14 = scalar_lea.vmem %s4702_s0, %s3194_s5  ;;  %v3742_v30 = vld [vmem:[%s4704_s2 + $0x38] sm:$0xff]   ;;  %v3752_v48 = vld [vmem:[%s4704_s2 + $0x1c0] sm:$0xff]   ;;  %s3195_s28 = sshll.u32 %s4714_s26, 4 }
  0x11   : > { %3272 = vmatpush3.bf16.msra.mxu0 %v3722_v10  ;;  %v3739_v27 = vld [vmem:[%s4704_s2 + $0xb0] sm:$0xff]   ;;  %v3743_v31 = vld [vmem:[%s4704_s2 + $0xb8] sm:$0xff]   ;;  %v289_v32 = vld [vmem:[%s4032_s14] sm:$0xff]  ;;  %s4275_s5 = scalar_lea.vmem %s4703_s1, %s3195_s28  ;;  %s2982_s15 = sshll.u32 %s4716_s9, 2 }
  0x12   : > { %3342 = vmatpush3.bf16.msra.mxu1 %v3723_v11  ;;  %3273 = vmatprep.subr.bf16.mxu0 %v3724_v12  ;;  %v291_v33 = vld [vmem:[%s4032_s14 + $0x10] sm:$0xff]  ;;  %v290_v34 = vld [vmem:[%s4032_s14 + $0x8] sm:$0xff]  ;;  %v292_v37 = vld [vmem:[%s4032_s14 + $0x18] sm:$0xff] }
  0x13   : > { %3343 = vmatprep.subr.bf16.mxu1 %v3725_v13  ;;  %v4043_v35 = vcombine.low %v289_v32, %v291_v33  ;;  %v4045_v36 = vcombine.high %v289_v32, %v291_v33  ;;  %v2985_v38 = vcombine.low %v290_v34, %v292_v37  ;;  %v2986_v39 = vcombine.high %v290_v34, %v292_v37  ;;  %v293_v42 = vld [vmem:[%s4032_s14 + $0x20] sm:$0xff]  ;;  %v295_v43 = vld [vmem:[%s4032_s14 + $0x30] sm:$0xff]  ;;  %v294_v45 = vld [vmem:[%s4032_s14 + $0x28] sm:$0xff] }
  0x14   : > { %329 = vst [vmem:[#allocation2 + $0x20] sm:$0xff] %v293_v42  ;;  %331 = vst [vmem:[#allocation2 + $0x30] sm:$0xff] %v295_v43  ;;  %v4058_v44 = vcombine.high %v293_v42, %v295_v43  ;;  %v296_v46 = vld [vmem:[%s4032_s14 + $0x38] sm:$0xff]  ;;  %v3755_v49 = vld [vmem:[%s4704_s2 + $0x180] sm:$0xff]   ;;  %v4072_v51 = vcombine.low %v293_v42, %v295_v43 }
  0x15   : > { %3274 = vmatpush3.bf16.msra.mxu0 %v3726_v14  ;;  %877 = vmatprep.mubr.bf16.mxu0 %v4045_v36  ;;  %330 = vst [vmem:[#allocation2 + $0x28] sm:$0xff] %v294_v45  ;;  %332 = vst [vmem:[#allocation2 + $0x38] sm:$0xff] %v296_v46  ;;  %v2990_v47 = vcombine.high %v294_v45, %v296_v46  ;;  %v3756_v50 = vld [vmem:[%s4704_s2 + $0x148] sm:$0xff]   ;;  %v297_v53 = vld [vmem:[%s4032_s14 + $0x40] sm:$0xff]  ;;  %v2989_v54 = vcombine.low %v294_v45, %v296_v46 }
  0x16   : > { %3344 = vmatpush3.bf16.msra.mxu1 %v3727_v15  ;;  %3275 = vmatprep.subr.bf16.mxu0 %v3728_v16  ;;  %v3757_v52 = vld [vmem:[%s4704_s2 + $0x108] sm:$0xff]   ;;  %v299_v55 = vld [vmem:[%s4032_s14 + $0x50] sm:$0xff]  ;;  %333 = vst [vmem:[#allocation2 + $0x40] sm:$0xff] %v297_v53  ;;  %v300_v57 = vld [vmem:[%s4032_s14 + $0x58] sm:$0xff] }
  0x17   : > { %3345 = vmatprep.subr.bf16.mxu1 %v3729_v17  ;;  %982 = vmatprep.mubr.bf16.mxu1 %v2986_v39  ;;  %v298_v56 = vld [vmem:[%s4032_s14 + $0x48] sm:$0xff]  ;;  %335 = vst [vmem:[#allocation2 + $0x50] sm:$0xff] %v299_v55  ;;  %v4081_v58 = vcombine.high %v297_v53, %v299_v55  ;;  %336 = vst [vmem:[#allocation2 + $0x58] sm:$0xff] %v300_v57  ;;  %v3764_v62 = vld [vmem:[%s4704_s2 + $0x150] sm:$0xff]   ;;  %v4101_v4 = vcombine.low %v297_v53, %v299_v55 }
  0x18   : > { %334 = vst [vmem:[#allocation2 + $0x48] sm:$0xff] %v298_v56  ;;  %v2994_v59 = vcombine.high %v298_v56, %v300_v57  ;;  %v3762_v60 = vld [vmem:[%s4704_s2 + $0x1c8] sm:$0xff]   ;;  %v3765_v63 = vld [vmem:[%s4704_s2 + $0x110] sm:$0xff]   ;;  %v301_v0 = vld [vmem:[%s4032_s14 + $0x60] sm:$0xff]  ;;  %v2993_v6 = vcombine.low %v298_v56, %v300_v57 }
  0x19   : > { %3276 = vmatpush3.bf16.msra.mxu0 %v3730_v18  ;;  %v3763_v61 = vld [vmem:[%s4704_s2 + $0x188] sm:$0xff]   ;;  %v303_v1 = vld [vmem:[%s4032_s14 + $0x70] sm:$0xff]  ;;  %337 = vst [vmem:[#allocation2 + $0x60] sm:$0xff] %v301_v0  ;;  %v304_v3 = vld [vmem:[%s4032_s14 + $0x78] sm:$0xff] }
  0x1a   : > { %3346 = vmatpush3.bf16.msra.mxu1 %v3731_v19  ;;  %3277 = vmatprep.subr.bf16.mxu0 %v3732_v20  ;;  %v302_v2 = vld [vmem:[%s4032_s14 + $0x68] sm:$0xff]  ;;  %339 = vst [vmem:[#allocation2 + $0x70] sm:$0xff] %v303_v1  ;;  %340 = vst [vmem:[#allocation2 + $0x78] sm:$0xff] %v304_v3  ;;  %v3770_v5 = vld [vmem:[%s4704_s2 + $0x1d0] sm:$0xff]   ;;  %v4106_v7 = vcombine.high %v301_v0, %v303_v1  ;;  %v4138_v19 = vcombine.low %v301_v0, %v303_v1 }
  0x1b   : > { %3347 = vmatprep.subr.bf16.mxu1 %v3733_v21  ;;  %338 = vst [vmem:[#allocation2 + $0x68] sm:$0xff] %v302_v2  ;;  %v3771_v8 = vld [vmem:[%s4704_s2 + $0x190] sm:$0xff]   ;;  %v2998_v9 = vcombine.high %v302_v2, %v304_v3  ;;  %v3772_v10 = vld [vmem:[%s4704_s2 + $0x158] sm:$0xff]   ;;  %v305_v12 = vld [vmem:[%s4032_s14 + $0x80] sm:$0xff] }
  0x1c   : > { %v3773_v11 = vld [vmem:[%s4704_s2 + $0x118] sm:$0xff]   ;;  %v307_v13 = vld [vmem:[%s4032_s14 + $0x90] sm:$0xff]  ;;  %341 = vst [vmem:[#allocation2 + $0x80] sm:$0xff] %v305_v12  ;;  %v4121_v14 = vld [vmem:[%s4032_s14 + $0x88] sm:$0xff] }
  0x1d   : > { %3278 = vmatpush3.bf16.msra.mxu0 %v3734_v22  ;;  %343 = vst [vmem:[#allocation2 + $0x90] sm:$0xff] %v307_v13  ;;  %v4124_v15 = vld [vmem:[%s4032_s14 + $0x98] sm:$0xff]  ;;  %342 = vst [vmem:[#allocation2 + $0x88] sm:$0xff] %v4121_v14  ;;  %v3780_v18 = vld [vmem:[%s4704_s2 + $0x160] sm:$0xff]   ;;  %v2997_v22 = vcombine.low %v302_v2, %v304_v3 }
  0x1e   : > { %3348 = vmatpush3.bf16.msra.mxu1 %v3735_v23  ;;  %3279 = vmatprep.subr.bf16.mxu0 %v3736_v24  ;;  %344 = vst [vmem:[#allocation2 + $0x98] sm:$0xff] %v4124_v15  ;;  %v3778_v16 = vld [vmem:[%s4704_s2 + $0x1d8] sm:$0xff]   ;;  %v3781_v20 = vld [vmem:[%s4704_s2 + $0x120] sm:$0xff]   ;;  %v4144_v23 = vcombine.high %v305_v12, %v307_v13  ;;  %v311_v24 = vld [vmem:[%s4032_s14 + $0xb0] sm:$0xff] }
  0x1f   : > { %3349 = vmatprep.subr.bf16.mxu1 %v3737_v25  ;;  %v3779_v17 = vld [vmem:[%s4704_s2 + $0x198] sm:$0xff]   ;;  %v309_v21 = vld [vmem:[%s4032_s14 + $0xa0] sm:$0xff]  ;;  %v4148_v25 = vld [vmem:[%s4032_s14 + $0xa8] sm:$0xff]  ;;  %347 = vst [vmem:[#allocation2 + $0xb0] sm:$0xff] %v311_v24 }
  0x20   : > { %345 = vst [vmem:[#allocation2 + $0xa0] sm:$0xff] %v309_v21  ;;  %346 = vst [vmem:[#allocation2 + $0xa8] sm:$0xff] %v4148_v25  ;;  %v4172_v32 = vld [vmem:[%s4032_s14 + $0xc0] sm:$0xff]  ;;  %v315_v33 = vld [vmem:[%s4032_s14 + $0xd0] sm:$0xff] }
  0x21   : > { %3280 = vmatpush3.bf16.msra.mxu0 %v3738_v26  ;;  %v4151_v26 = vld [vmem:[%s4032_s14 + $0xb8] sm:$0xff]  ;;  %v314_v34 = vld [vmem:[%s4032_s14 + $0xc8] sm:$0xff]  ;;  %349 = vst [vmem:[#allocation2 + $0xc0] sm:$0xff] %v4172_v32  ;;  %351 = vst [vmem:[#allocation2 + $0xd0] sm:$0xff] %v315_v33 }
  0x22   : > { %3350 = vmatpush3.bf16.msra.mxu1 %v3739_v27  ;;  %3281 = vmatprep.subr.bf16.mxu0 %v3740_v28  ;;  %v3002_v27 = vcombine.high %v4121_v14, %v4124_v15  ;;  %348 = vst [vmem:[#allocation2 + $0xb8] sm:$0xff] %v4151_v26  ;;  %v3786_v28 = vld [vmem:[%s4704_s2 + $0x1e0] sm:$0xff]   ;;  %v316_v37 = vld [vmem:[%s4032_s14 + $0xd8] sm:$0xff]  ;;  %v3794_v39 = vld [vmem:[%s4704_s2 + $0x1e8] sm:$0xff]   ;;  %v3006_v43 = vcombine.high %v4148_v25, %v4151_v26 }
  0x23   : > { %3351 = vmatprep.subr.bf16.mxu1 %v3741_v29  ;;  %v3787_v29 = vld [vmem:[%s4704_s2 + $0x1a0] sm:$0xff]   ;;  %v3795_v42 = vld [vmem:[%s4704_s2 + $0x1a8] sm:$0xff]   ;;  %v3796_v45 = vld [vmem:[%s4704_s2 + $0x170] sm:$0xff]   ;;  %v4228_v0 = vcombine.high %v314_v34, %v316_v37 }
  0x24   : > { %v317_v46 = vld [vmem:[%s4032_s14 + $0xe0] sm:$0xff]  ;;  %v3803_v53 = vld [vmem:[%s4704_s2 + $0x1b0] sm:$0xff]   ;;  %v322_v56 = vld [vmem:[%s4032_s14 + $0x108] sm:$0xff] }
  0x25   : > { %3282 = vmatpush3.bf16.msra.mxu0 %v3742_v30  ;;  %v3788_v30 = vld [vmem:[%s4704_s2 + $0x168] sm:$0xff]   ;;  %353 = vst [vmem:[#allocation2 + $0xe0] sm:$0xff] %v317_v46  ;;  %v323_v55 = vld [vmem:[%s4032_s14 + $0x110] sm:$0xff]  ;;  %v324_v57 = vld [vmem:[%s4032_s14 + $0x118] sm:$0xff] }
  0x26   : > { %3352 = vmatpush3.bf16.msra.mxu1 %v3743_v31  ;;  %3407 = vmatprep.subr.bf16.mxu0 %v3748_v40  ;;  %v3789_v31 = vld [vmem:[%s4704_s2 + $0x128] sm:$0xff]   ;;  %v3001_v40 = vcombine.low %v4121_v14, %v4124_v15  ;;  %359 = vst [vmem:[#allocation2 + $0x110] sm:$0xff] %v323_v55  ;;  %v3810_v1 = vld [vmem:[%s4704_s2 + $0x1f8] sm:$0xff]   ;;  %v3812_v3 = vld [vmem:[%s4704_s2 + $0x240] sm:$0xff]   ;;  %v1215_v15 = vshrl.u32 %v4045_v36, 16 }
  0x27   : > { %3477 = vmatprep.subr.bf16.mxu1 %v3752_v48  ;;  %v318_v48 = vld [vmem:[%s4032_s14 + $0xe8] sm:$0xff]  ;;  %v3811_v2 = vld [vmem:[%s4704_s2 + $0x1b8] sm:$0xff]  }
  0x28   : > { %878 = vmatmul.mubr.bf16.vlgmr.msra.gmra.mrb[0].mxu0 %v4043_v35 }
  0x29   : > { %983 = vmatmul.mubr.bf16.vlgmr.msra.gmra.mrb[0].mxu1 %v2985_v38  ;;  %3408 = vmatpush3.bf16.msra.mxu0 %v3749_v41  ;;  %v4178_v38 = vcombine.low %v305_v12, %v307_v13  ;;  %v4185_v41 = vcombine.high %v309_v21, %v311_v24 }
  0x2a   : > { %885 = vmatprep.mubr.bf16.mxu0 %v4058_v44  ;;  %990 = vmatprep.mubr.bf16.mxu1 %v2990_v47  ;;  %v319_v47 = vld [vmem:[%s4032_s14 + $0xf0] sm:$0xff] }
  0x2b   : > { %3478 = vmatpush3.bf16.msra.mxu1 %v3755_v49  ;;  %3409 = vmatprep.subr.bf16.mxu0 %v3756_v50  ;;  %355 = vst [vmem:[#allocation2 + $0xf0] sm:$0xff] %v319_v47  ;;  %v320_v49 = vld [vmem:[%s4032_s14 + $0xf8] sm:$0xff]  ;;  %v3799_v50 = vld [vmem:[%s4704_s2 + $0x130] sm:$0xff]   ;;  %v4257_v12 = vcombine.low %v317_v46, %v319_v47 }
  0x2c   : > { %3479 = vmatprep.subr.bf16.mxu1 %v3762_v60  ;;  %v3806_v60 = vld [vmem:[%s4704_s2 + $0x178] sm:$0xff]   ;;  %v4259_v13 = vcombine.low %v318_v48, %v320_v49 }
  0x2d   : > { %3410 = vmatpush3.bf16.msra.mxu0 %v3757_v52  ;;  %v3802_v52 = vld [vmem:[%s4704_s2 + $0x1f0] sm:$0xff]  }
  0x2e   : > { %3411 = vmatprep.subr.bf16.mxu0 %v3764_v62  ;;  %v4223_v62 = vcombine.high %v4172_v32, %v315_v33 }
  0x2f   : > { %3480 = vmatpush3.bf16.msra.mxu1 %v3763_v61  ;;  %v3005_v61 = vcombine.low %v4148_v25, %v4151_v26  ;;  %v4280_v25 = vcombine.low %v322_v56, %v324_v57 }
  0x30   : > { %886 = vmatmul.mubr.bf16.gmra.mrb[4].mxu0 %v4072_v51  ;;  %3481 = vmatprep.subr.bf16.mxu1 %v3770_v5  ;;  %v3891_v5 = vmov 0.0  }
  0x31   : > { %991 = vmatmul.mubr.bf16.gmra.mrb[4].mxu1 %v2989_v54  ;;  %893 = vmatprep.mubr.bf16.mxu0 %v4081_v58  ;;  %v321_v54 = vld [vmem:[%s4032_s14 + $0x100] sm:$0xff] }
  0x32   : > { %998 = vmatprep.mubr.bf16.mxu1 %v2994_v59  ;;  %3412 = vmatpush3.bf16.msra.mxu0 %v3765_v63  ;;  %357 = vst [vmem:[#allocation2 + $0x100] sm:$0xff] %v321_v54  ;;  %v4214_v59 = vcombine.low %v309_v21, %v311_v24  ;;  %v3809_v63 = vld [vmem:[%s4704_s2 + $0x138] sm:$0xff]   ;;  %v4261_v14 = vcombine.high %v321_v54, %v323_v55  ;;  %v1203_v24 = vshrl.u32 %v4043_v35, 16 }
  0x33   : > { %3482 = vmatpush3.bf16.msra.mxu1 %v3771_v8  ;;  %3413 = vmatprep.subr.bf16.mxu0 %v3772_v10  ;;  %v4246_v8 = vcombine.low %v314_v34, %v316_v37  ;;  %v4250_v10 = vcombine.high %v318_v48, %v320_v49  ;;  %v1250_v48 = vshrl.u32 %v4081_v58, 16 }
  0x34   : > { %3483 = vmatprep.subr.bf16.mxu1 %v3778_v16  ;;  %v4264_v16 = vcombine.high %v322_v56, %v324_v57  ;;  %v3817_v57 = vld [vmem:[%s4704_s2 + $0x288] sm:$0xff]  }
  0x36   : > { %3414 = vmatpush3.bf16.msra.mxu0 %v3773_v11  ;;  %v1217_v11 = vshll.u32 %v4045_v36, 16  ;;  %v4277_v36 = vcombine.low %v321_v54, %v323_v55  ;;  %v3816_v54 = vld [vmem:[%s4704_s2 + $0x208] sm:$0xff]  }
  0x37   : > { %3484 = vmatpush3.bf16.msra.mxu1 %v3779_v17  ;;  %3415 = vmatprep.subr.bf16.mxu0 %v3780_v18  ;;  %v1222_v18 = vshll.u32 %v4058_v44, 16 }
  0x38   : > { %894 = vmatmul.mubr.bf16.gmra.mrb[8].mxu0 %v4101_v4  ;;  %3485 = vmatprep.subr.bf16.mxu1 %v3786_v28  ;;  %v1219_v17 = vrot.slane %v1217_v11, 1  ;;  %v4284_v28 = vld [vmem:[%s4275_s5] sm:$0xff]  ;;  %v3820_v11 = vld [vmem:[%s4704_s2 + $0x290] sm:$0xff]  }
  0x39   : > { %999 = vmatmul.mubr.bf16.gmra.mrb[8].mxu1 %v2993_v6  ;;  %901 = vmatprep.mubr.bf16.mxu0 %v4106_v7  ;;  %v4244_v6 = vcombine.low %v4172_v32, %v315_v33  ;;  %367 = vst [vmem:[#allocation2 + $0x120] sm:$0xff] %v4284_v28  ;;  %v4291_v32 = vld [vmem:[%s4275_s5 + $0x10] sm:$0xff] }
  0x3a   : > { %1006 = vmatprep.mubr.bf16.mxu1 %v2998_v9  ;;  %3416 = vmatpush3.bf16.msra.mxu0 %v3781_v20  ;;  %v4248_v9 = vcombine.high %v317_v46, %v319_v47  ;;  %v1205_v20 = vshll.u32 %v4043_v35, 16  ;;  %v1220_v21 = vor.u32 %v1219_v17, %v1215_v15  ;;  %369 = vst [vmem:[#allocation2 + $0x130] sm:$0xff] %v4291_v32  ;;  %v1230_v46 = vshll.u32 %v4101_v4, 16  ;;  %v3814_v47 = vld [vmem:[%s4704_s2 + $0x280] sm:$0xff]   ;;  %v3821_v15 = vld [vmem:[%s4704_s2 + $0x258] sm:$0xff]  }
  0x3b   : > { %3486 = vmatpush3.bf16.msra.mxu1 %v3787_v29  ;;  %3417 = vmatprep.subr.bf16.mxu0 %v3788_v30  ;;  %v1234_v30 = vshrl.u32 %v4058_v44, 16  ;;  %v3120_v35 = vcombine.high %v4284_v28, %v4291_v32  ;;  %v3119_v33 = vcombine.low %v4284_v28, %v4291_v32 }
  0x3c   : > { %3487 = vmatprep.subr.bf16.mxu1 %v3794_v39  ;;  %v1207_v26 = vrot.slane %v1205_v20, 1  ;;  %v4346_v20 = vld [vmem:[%s4275_s5 + $0x8] sm:$0xff] }
  0x3e   : > { %3418 = vmatpush3.bf16.msra.mxu0 %v3789_v31  ;;  %v1238_v31 = vshll.u32 %v4081_v58, 16  ;;  %v1208_v34 = vor.u32 %v1207_v26, %v1203_v24  ;;  %v3822_v24 = vld [vmem:[%s4704_s2 + $0x218] sm:$0xff]   ;;  %v3824_v26 = vld [vmem:[%s4704_s2 + $0x260] sm:$0xff]  }
  0x3f   : > { %3488 = vmatpush3.bf16.msra.mxu1 %v3795_v42  ;;  %3419 = vmatprep.subr.bf16.mxu0 %v3796_v45  ;;  %v1226_v45 = vshrl.u32 %v4072_v51, 16 }
  0x40   : > { %902 = vmatmul.mubr.bf16.gmra.mrb[12].mxu0 %v4138_v19  ;;  %3489 = vmatprep.subr.bf16.mxu1 %v3802_v52 }
  0x41   : > { %1007 = vmatmul.mubr.bf16.gmra.mrb[12].mxu1 %v2997_v22  ;;  %909 = vmatprep.mubr.bf16.mxu0 %v4144_v23  ;;  %v1224_v22 = vrot.slane %v1222_v18, 1 }
  0x42   : > { %1014 = vmatprep.mubr.bf16.mxu1 %v3002_v27  ;;  %3420 = vmatpush3.bf16.msra.mxu0 %v3799_v50  ;;  %v1210_v27 = vshll.u32 %v4072_v51, 16  ;;  %v3815_v50 = vld [vmem:[%s4704_s2 + $0x248] sm:$0xff]  }
  0x43   : > { %3490 = vmatpush3.bf16.msra.mxu1 %v3803_v53  ;;  %3421 = vmatprep.subr.bf16.mxu0 %v3806_v60  ;;  %v1225_v29 = vsel %vm1201_vm0, %v1220_v21, %v1224_v22  ;;  %v1236_v39 = vor.u32 %v1234_v30, %v1224_v22  ;;  %v1232_v53 = vrot.slane %v1230_v46, 1  ;;  %v3818_v60 = vld [vmem:[%s4704_s2 + $0x250] sm:$0xff]   ;;  %v1262_v30 = vshll.u32 %v4178_v38, 16  ;;  %v3827_v46 = vld [vmem:[%s4704_s2 + $0x268] sm:$0xff]  }
  0x44   : > { %3491 = vmatprep.subr.bf16.mxu1 %v3810_v1  ;;  %v1212_v37 = vrot.slane %v1210_v27, 1  ;;  %v1258_v27 = vshrl.u32 %v4138_v19, 16 }
  0x46   : > { %3422 = vmatpush3.bf16.msra.mxu0 %v3809_v63  ;;  %v1213_v42 = vsel %vm1201_vm0, %v1208_v34, %v1212_v37  ;;  %v1228_v52 = vor.u32 %v1226_v45, %v1212_v37  ;;  %v1246_v63 = vshll.u32 %v4138_v19, 16  ;;  %v365_v37 = vld [vmem:[%s4275_s5 + $0x20] sm:$0xff] }
  0x47   : > { %3492 = vmatpush3.bf16.msra.mxu1 %v3811_v2  ;;  %3547 = vmatprep.subr.bf16.mxu0 %v3812_v3  ;;  %v3819_v2 = vld [vmem:[%s4704_s2 + $0x210] sm:$0xff]   ;;  %v1270_v3 = vshll.u32 %v4144_v23, 16  ;;  %371 = vst [vmem:[#allocation2 + $0x140] sm:$0xff] %v365_v37  ;;  %v3826_v45 = vld [vmem:[%s4704_s2 + $0x2a0] sm:$0xff]  }
  0x48   : > { %910 = vmatmul.mubr.bf16.gmra.mrb[16].mxu0 %v4178_v38  ;;  %3634 = vmatprep.subr.bf16.mxu1 %v3891_v5  ;;  %v1248_v18 = vrot.slane %v1246_v63, 1 }
  0x49   : > { %1015 = vmatmul.mubr.bf16.gmra.mrb[16].mxu1 %v3001_v40  ;;  %917 = vmatprep.mubr.bf16.mxu0 %v4185_v41  ;;  %v1240_v40 = vrot.slane %v1238_v31, 1  ;;  %v1272_v22 = vrot.slane %v1270_v3, 1  ;;  %v3836_v3 = vld [vmem:[%s4704_s2 + $0x238] sm:$0xff]  }
  0x4a   : > { %1022 = vmatprep.mubr.bf16.mxu1 %v3006_v43  ;;  %v3813_v43 = vld [vmem:[%s4704_s2 + $0x200] sm:$0xff]  }
  0x4b   : > { %v1241_v49 = vsel %vm1201_vm0, %v1236_v39, %v1240_v40  ;;  %v1252_v55 = vor.u32 %v1250_v48, %v1240_v40  ;;  %v1282_v40 = vshrl.u32 %v4144_v23, 16  ;;  %v1264_v48 = vrot.slane %v1262_v30, 1 }
  0x4c   : > { %v1310_v30 = vshll.u32 %v4257_v12, 16 }
  0x50   : > { %918 = vmatmul.mubr.bf16.gmra.mrb[20].mxu0 %v4214_v59 }
  0x51   : > { %1023 = vmatmul.mubr.bf16.gmra.mrb[20].mxu1 %v3005_v61  ;;  %925 = vmatprep.mubr.bf16.mxu0 %v4223_v62  ;;  %v1242_v61 = vshrl.u32 %v4101_v4, 16 }
  0x52   : > { %1030 = vmatprep.mubr.bf16.mxu1 %v4228_v0 }
  0x53   : > { %v1244_v17 = vor.u32 %v1242_v61, %v1232_v53  ;;  %v3834_v61 = vld [vmem:[%s4704_s2 + $0x278] sm:$0xff]  }
  0x58   : > { %926 = vmatmul.mubr.bf16.gmra.mrb[24].mxu0 %v4244_v6 }
  0x59   : > { %1031 = vmatmul.mubr.bf16.gmra.mrb[24].mxu1 %v4246_v8  ;;  %933 = vmatprep.mubr.bf16.mxu0 %v4248_v9 }
  0x5a   : > { %1038 = vmatprep.mubr.bf16.mxu1 %v4250_v10 }
  0x60   : > { %934 = vmatmul.mubr.bf16.gmra.mrb[28].mxu0 %v4257_v12 }
  0x61   : > { %1039 = vmatmul.mubr.bf16.gmra.mrb[28].mxu1 %v4259_v13  ;;  %941 = vmatprep.mubr.bf16.mxu0 %v4261_v14 }
  0x62   : > { %1046 = vmatprep.mubr.bf16.mxu1 %v4264_v16 }
  0x68   : > { %942 = vmatmul.mubr.bf16.gmra.mrb[32].mxu0 %v4277_v36 }
  0x69   : > { %1047 = vmatmul.mubr.bf16.gmra.mrb[32].mxu1 %v4280_v25  ;;  %1500 = vmatprep.mubr.bf16.mxu0 %v1225_v29  ;;  %v1249_v29 = vsel %vm1201_vm0, %v1244_v17, %v1248_v18 }
  0x6a   : > { %2131 = vmatprep.mubr.bf16.mxu1 %v4058_v44  ;;  %v1254_v44 = vshll.u32 %v4106_v7, 16 }
  0x6c   : > { %v1256_v56 = vrot.slane %v1254_v44, 1  ;;  %v1284_v44 = vor.u32 %v1282_v40, %v1272_v22  ;;  %v1334_v40 = vshll.u32 %v4261_v14, 16 }
  0x6e   : > { %v1257_v1 = vsel %vm1201_vm0, %v1252_v55, %v1256_v56 }
  0x70   : > { %1501 = vmatmul.mubr.bf16.vlgmr.msra.gmra.mrb[36].mxu0 %v1213_v42  ;;  %v1286_v42 = vshll.u32 %v4185_v41, 16 }
  0x71   : > { %3548 = vmatpush3.bf16.msra.mxu0 %v3813_v43  ;;  %2132 = vmatmul.mubr.bf16.vlgmr.msra.gmra.mrb[36].mxu1 %v4072_v51  ;;  %v1233_v51 = vsel %vm1201_vm0, %v1228_v52, %v1232_v53  ;;  %v3825_v43 = vld [vmem:[%s4704_s2 + $0x220] sm:$0xff]   ;;  %v3829_v52 = vld [vmem:[%s4704_s2 + $0x2a8] sm:$0xff]   ;;  %v1274_v53 = vshrl.u32 %v4178_v38, 16 }
  0x72   : > { %1508 = vmatprep.mubr.bf16.mxu0 %v1241_v49  ;;  %3635 = vmatpush3.bf16.msra.mxu1 %v3814_v47  ;;  %v1260_v47 = vor.u32 %v1258_v27, %v1248_v18  ;;  %v1288_v49 = vrot.slane %v1286_v42, 1  ;;  %v1314_v18 = vshrl.u32 %v4223_v62, 16  ;;  %v1312_v42 = vrot.slane %v1310_v30, 1  ;;  %v3856_v30 = vld [vmem:[#allocation2 + $0xa0] ss:$16 sps:$4 sm:$0xff]  }
  0x73   : > { %3549 = vmatprep.subr.bf16.mxu0 %v3815_v50  ;;  %2139 = vmatprep.mubr.bf16.mxu1 %v4081_v58  ;;  %v1266_v58 = vshrl.u32 %v4106_v7, 16  ;;  %v3828_v50 = vld [vmem:[%s4704_s2 + $0x228] sm:$0xff]   ;;  %v1276_v63 = vor.u32 %v1274_v53, %v1264_v48 }
  0x74   : > { %3636 = vmatprep.subr.bf16.mxu1 %v3891_v5  ;;  %v1289_v55 = vsel %vm1201_vm0, %v1284_v44, %v1288_v49  ;;  %v1326_v44 = vshll.u32 %v4277_v36, 16 }
  0x75   : > { %3550 = vmatpush3.bf16.msra.mxu0 %v3816_v54  ;;  %v1268_v21 = vor.u32 %v1266_v58, %v1256_v56  ;;  %v1278_v54 = vshll.u32 %v4214_v59, 16  ;;  %v1298_v56 = vshrl.u32 %v4185_v41, 16 }
  0x76   : > { %3637 = vmatpush3.bf16.msra.mxu1 %v3817_v57  ;;  %3551 = vmatprep.subr.bf16.mxu0 %v3818_v60  ;;  %v1302_v57 = vshll.u32 %v4223_v62, 16  ;;  %v3831_v60 = vld [vmem:[%s4704_s2 + $0x230] sm:$0xff]  }
  0x77   : > { %3638 = vmatprep.subr.bf16.mxu1 %v3891_v5  ;;  %v1273_v39 = vsel %vm1201_vm0, %v1268_v21, %v1272_v22  ;;  %v1318_v21 = vshll.u32 %v4248_v9, 16 }
  0x78   : > { %1509 = vmatmul.mubr.bf16.gmra.mrb[40].mxu0 %v1233_v51  ;;  %v3832_v51 = vld [vmem:[%s4704_s2 + $0x2b0] sm:$0xff]   ;;  %v1304_v58 = vrot.slane %v1302_v57, 1 }
  0x79   : > { %2140 = vmatmul.mubr.bf16.gmra.mrb[40].mxu1 %v4101_v4  ;;  %1516 = vmatprep.mubr.bf16.mxu0 %v1257_v1  ;;  %v3823_v4 = vld [vmem:[%s4704_s2 + $0x298] sm:$0xff]   ;;  %v1280_v1 = vrot.slane %v1278_v54, 1 }
  0x7a   : > { %3552 = vmatpush3.bf16.msra.mxu0 %v3819_v2  ;;  %2147 = vmatprep.mubr.bf16.mxu1 %v4106_v7  ;;  %v4361_v7 = vld [vmem:[%s4275_s5 + $0x18] sm:$0xff]  ;;  %v1300_v2 = vor.u32 %v1298_v56, %v1288_v49  ;;  %s4637_s5 = scalar_lea.vmem %s4706_s4, %s2982_s15 }
  0x7b   : > { %3639 = vmatpush3.bf16.msra.mxu1 %v3820_v11  ;;  %3553 = vmatprep.subr.bf16.mxu0 %v3821_v15  ;;  %v3122_v31 = vcombine.high %v4346_v20, %v4361_v7  ;;  %v3121_v34 = vcombine.low %v4346_v20, %v4361_v7  ;;  %v3842_v11 = vld [vmem:[%s4704_s2 + $0x2b8] sm:$0xff]   ;;  %v1290_v15 = vshrl.u32 %v4214_v59, 16 }
  0x7c   : > { %3640 = vmatprep.subr.bf16.mxu1 %v3891_v5  ;;  %v1305_v17 = vsel %vm1201_vm0, %v1300_v2, %v1304_v58 }
  0x7d   : > { %v1292_v22 = vor.u32 %v1290_v15, %v1280_v1  ;;  %v3845_v15 = vld [vmem:[#allocation2 + $0x4c] ss:$16 sps:$4 sm:$0xff]  }
  0x7e   : > { %3554 = vmatpush3.bf16.msra.mxu0 %v3822_v24 }
  0x7f   : > { %3641 = vmatpush3.bf16.msra.mxu1 %v3823_v4  ;;  %3555 = vmatprep.subr.bf16.mxu0 %v3824_v26  ;;  %v1316_v4 = vor.u32 %v1314_v18, %v1304_v58  ;;  %v1320_v26 = vrot.slane %v1318_v21, 1  ;;  %v3847_v21 = vld [vmem:[#allocation2 + $0x48] ss:$16 sps:$4 sm:$0xff]  }
  0x80   : > { %1517 = vmatmul.mubr.bf16.gmra.mrb[44].mxu0 %v1249_v29  ;;  %3642 = vmatprep.subr.bf16.mxu1 %v3891_v5  ;;  %v1306_v29 = vshrl.u32 %v4244_v6, 16 }
  0x81   : > { %2148 = vmatmul.mubr.bf16.gmra.mrb[44].mxu1 %v4138_v19  ;;  %1524 = vmatprep.mubr.bf16.mxu0 %v1273_v39  ;;  %v3830_v19 = vld [vmem:[%s4704_s2 + $0x270] sm:$0xff]   ;;  %v1321_v37 = vsel %vm1201_vm0, %v1316_v4, %v1320_v26  ;;  %v1330_v39 = vshrl.u32 %v4248_v9, 16 }
  0x82   : > { %2155 = vmatprep.mubr.bf16.mxu1 %v4144_v23  ;;  %3556 = vmatpush3.bf16.msra.mxu0 %v3825_v43  ;;  %v1265_v23 = vsel %vm1201_vm0, %v1260_v47, %v1264_v48  ;;  %v1322_v48 = vshrl.u32 %v4257_v12, 16 }
  0x83   : > { %3643 = vmatpush3.bf16.msra.mxu1 %v3826_v45  ;;  %3557 = vmatprep.subr.bf16.mxu0 %v3827_v46  ;;  %v1332_v43 = vor.u32 %v1330_v39, %v1320_v26  ;;  %v1336_v45 = vrot.slane %v1334_v40, 1  ;;  %v3853_v39 = vld [vmem:[#allocation2 + $0x8c] ss:$16 sps:$4 sm:$0xff]  }
  0x84   : > { %3644 = vmatprep.subr.bf16.mxu1 %v3891_v5 }
  0x85   : > { %v1337_v49 = vsel %vm1201_vm0, %v1332_v43, %v1336_v45 }
  0x86   : > { %3558 = vmatpush3.bf16.msra.mxu0 %v3828_v50  ;;  %v1346_v50 = vshrl.u32 %v4261_v14, 16 }
  0x87   : > { %3645 = vmatpush3.bf16.msra.mxu1 %v3829_v52  ;;  %3559 = vmatprep.subr.bf16.mxu0 %v3830_v19 }
  0x88   : > { %1525 = vmatmul.mubr.bf16.gmra.mrb[48].mxu0 %v1265_v23  ;;  %3646 = vmatprep.subr.bf16.mxu1 %v3891_v5  ;;  %v1348_v23 = vor.u32 %v1346_v50, %v1336_v45  ;;  %v3860_v45 = vld [vmem:[#allocation2 + $0xc0] ss:$16 sps:$4 sm:$0xff]  }
  0x89   : > { %2156 = vmatmul.mubr.bf16.gmra.mrb[48].mxu1 %v4178_v38  ;;  %1532 = vmatprep.mubr.bf16.mxu0 %v1289_v55  ;;  %v1281_v38 = vsel %vm1201_vm0, %v1276_v63, %v1280_v1  ;;  %v1338_v55 = vshrl.u32 %v4277_v36, 16  ;;  %v3841_v1 = vld [vmem:[#allocation2 + $0x2c] ss:$16 sps:$4 sm:$0xff]  }
  0x8a   : > { %2163 = vmatprep.mubr.bf16.mxu1 %v4185_v41  ;;  %3560 = vmatpush3.bf16.msra.mxu0 %v3831_v60  ;;  %v1294_v41 = vshll.u32 %v4244_v6, 16  ;;  %v3843_v60 = vld [vmem:[#allocation2 + $0x20] ss:$16 sps:$4 sm:$0xff]  }
  0x8b   : > { %3647 = vmatpush3.bf16.msra.mxu1 %v3832_v51  ;;  %3561 = vmatprep.subr.bf16.mxu0 %v3834_v61  ;;  %v2449_v61 = vshll.u32 %v3843_v60, 16  ;;  %v2447_v2 = vshrl.u32 %v3843_v60, 16 }
  0x8c   : > { %3648 = vmatprep.subr.bf16.mxu1 %v3891_v5  ;;  %v1296_v24 = vrot.slane %v1294_v41, 1 }
  0x8d   : > { %v2451_v58 = vrot.slane %v2449_v61, 1 }
  0x8e   : > { %3562 = vmatpush3.bf16.msra.mxu0 %v3836_v3  ;;  %v1297_v27 = vsel %vm1201_vm0, %v1292_v22, %v1296_v24  ;;  %v3849_v22 = vld [vmem:[#allocation2 + $0x6c] ss:$16 sps:$4 sm:$0xff]  }
  0x8f   : > { %3649 = vmatpush3.bf16.msra.mxu1 %v3842_v11  ;;  %v3848_v11 = vld [vmem:[#allocation2 + $0x60] ss:$16 sps:$4 sm:$0xff]  }
  0x90   : > { %1533 = vmatmul.mubr.bf16.gmra.mrb[52].mxu0 %v1281_v38  ;;  %v3839_v38 = vld [vmem:[#allocation2 + $0x28] ss:$16 sps:$4 sm:$0xff]   ;;  %v2462_v18 = vshll.u32 %v3848_v11, 16  ;;  %v2466_v4 = vshrl.u32 %v3848_v11, 16 }
  0x91   : > { %2164 = vmatmul.mubr.bf16.gmra.mrb[52].mxu1 %v4214_v59  ;;  %1540 = vmatprep.mubr.bf16.mxu0 %v1305_v17  ;;  %v1091_v59 = vld [vmem:[#allocation2 + $0x120] sm:$0x11] }
  0x92   : > { %2171 = vmatprep.mubr.bf16.mxu1 %v4223_v62  ;;  %v1308_v62 = vor.u32 %v1306_v29, %v1296_v24  ;;  %v3070_v46 = vcombine.high %v1091_v59, %v1091_v59  ;;  %v3069_v19 = vcombine.low %v1091_v59, %v1091_v59  ;;  %v2464_v32 = vrot.slane %v2462_v18, 1 }
  0x94   : > { %v1313_v47 = vsel %vm1201_vm0, %v1308_v62, %v1312_v42  ;;  %v1350_v52 = vshll.u32 %v3070_v46, 16  ;;  %v1342_v56 = vshll.u32 %v3069_v19, 16  ;;  %v2478_v62 = vshll.u32 %v3856_v30, 16  ;;  %v3855_v46 = vld [vmem:[#allocation2 + $0x88] ss:$16 sps:$4 sm:$0xff]  }
  0x96   : > { %v1352_v53 = vrot.slane %v1350_v52, 1  ;;  %v1344_v51 = vrot.slane %v1342_v56, 1  ;;  %v2480_v43 = vrot.slane %v2478_v62, 1  ;;  %v3862_v56 = vld [vmem:[#allocation2 + $0x100] ss:$16 sps:$4 sm:$0xff]  }
  0x98   : > { %1541 = vmatmul.mubr.bf16.gmra.mrb[56].mxu0 %v1297_v27  ;;  %v1353_v57 = vsel %vm1201_vm0, %v1348_v23, %v1352_v53  ;;  %v2468_v27 = vor.u32 %v2466_v4, %v2464_v32  ;;  %v2490_v23 = vshrl.u32 %v3860_v45, 16 }
  0x99   : > { %2172 = vmatmul.mubr.bf16.gmra.mrb[56].mxu1 %v4244_v6  ;;  %1548 = vmatprep.mubr.bf16.mxu0 %v1321_v37  ;;  %v1324_v6 = vor.u32 %v1322_v48, %v1312_v42  ;;  %v3851_v37 = vld [vmem:[#allocation2 + $0x68] ss:$16 sps:$4 sm:$0xff]  }
  0x9a   : > { %2179 = vmatprep.mubr.bf16.mxu1 %v4248_v9  ;;  %v1328_v9 = vrot.slane %v1326_v44, 1  ;;  %v2482_v44 = vshrl.u32 %v3856_v30, 16 }
  0x9c   : > { %v1329_v54 = vsel %vm1201_vm0, %v1324_v6, %v1328_v9  ;;  %v2484_v50 = vor.u32 %v2482_v44, %v2480_v43  ;;  %v3861_v6 = vld [vmem:[#allocation2 + $0xe0] ss:$16 sps:$4 sm:$0xff]  }
  0x9d   : > { %v2494_v53 = vshll.u32 %v3861_v6, 16  ;;  %v2498_v60 = vshrl.u32 %v3861_v6, 16 }
  0xa0   : > { %1549 = vmatmul.mubr.bf16.gmra.mrb[60].mxu0 %v1313_v47  ;;  %v3857_v47 = vld [vmem:[#allocation2 + $0xac] ss:$16 sps:$4 sm:$0xff]  }
  0xa1   : > { %2180 = vmatmul.mubr.bf16.gmra.mrb[60].mxu1 %v4257_v12  ;;  %1556 = vmatprep.mubr.bf16.mxu0 %v1337_v49  ;;  %v1340_v12 = vor.u32 %v1338_v55, %v1328_v9  ;;  %v2486_v49 = vshll.u32 %v3860_v45, 16  ;;  %v3859_v9 = vld [vmem:[#allocation2 + $0xa8] ss:$16 sps:$4 sm:$0xff]   ;;  %v2496_v55 = vrot.slane %v2494_v53, 1 }
  0xa2   : > { %2187 = vmatprep.mubr.bf16.mxu1 %v4261_v14  ;;  %v3844_v14 = vld [vmem:[#allocation2 + $0x40] ss:$16 sps:$4 sm:$0xff]  }
  0xa3   : > { %v1345_v63 = vsel %vm1201_vm0, %v1340_v12, %v1344_v51  ;;  %v2454_v3 = vshll.u32 %v3844_v14, 16  ;;  %v2458_v17 = vshrl.u32 %v3844_v14, 16  ;;  %v2488_v52 = vrot.slane %v2486_v49, 1  ;;  %v3863_v14 = vld [vmem:[#allocation2 + $0x120] ss:$16 sps:$4 sm:$0xff]  }
  0xa4   : > { %v2502_v12 = vshll.u32 %v3862_v56, 16  ;;  %v2500_v51 = vor.u32 %v2498_v60, %v2496_v55 }
  0xa5   : > { %v2489_v19 = vsel %vm1201_vm0, %v2484_v50, %v2488_v52 }
  0xa8   : > { %1557 = vmatmul.mubr.bf16.gmra.mrb[64].mxu0 %v1329_v54  ;;  %v2492_v54 = vor.u32 %v2490_v23, %v2488_v52 }
  0xa9   : > { %2188 = vmatmul.mubr.bf16.gmra.mrb[64].mxu1 %v4277_v36  ;;  %1564 = vmatprep.mubr.bf16.mxu0 %v1353_v57  ;;  %v2452_v36 = vor.u32 %v2451_v58, %v2447_v2  ;;  %v3866_v2 = vld [vmem:[#allocation2 + $0x140] ss:$0 sps:$4 sm:$0x11]  }
  0xaa   : > { %2195 = vmatprep.mubr.bf16.mxu1 %v3120_v35  ;;  %v2456_v35 = vrot.slane %v2454_v3, 1  ;;  %v2497_v57 = vsel %vm1201_vm0, %v2492_v54, %v2496_v55  ;;  %v2514_v3 = vshrl.u32 %v3863_v14, 16 }
  0xac   : > { %v2457_v41 = vsel %vm1201_vm0, %v2452_v36, %v2456_v35  ;;  %v2460_v28 = vor.u32 %v2458_v17, %v2456_v35  ;;  %v2518_v36 = vshll.u32 %v3866_v2, 16 }
  0xae   : > { %v2465_v24 = vsel %vm1201_vm0, %v2460_v28, %v2464_v32 }
  0xb0   : > { %1565 = vmatmul.mubr.bf16.gmra.mrb[68].mxu0 %v1345_v63  ;;  %v2506_v63 = vshrl.u32 %v3862_v56, 16 }
  0xb1   : > { %2196 = vmatmul.mubr.bf16.gmra.mrb[68].mxu1 %v3119_v33  ;;  %2236 = vmatprep.mubr.bf16.mxu0 %v3841_v1  ;;  %v3852_v33 = vld [vmem:[#allocation2 + $0x80] ss:$16 sps:$4 sm:$0xff]   ;;  %v2510_v1 = vshll.u32 %v3863_v14, 16 }
  0xb2   : > { %3650 = vmatprep.mubr.msk.bf16.mxu1 %vm3892_vm1, %v3891_v5  ;;  %v2470_v26 = vshll.u32 %v3852_v33, 16  ;;  %v2474_v59 = vshrl.u32 %v3852_v33, 16 }
  0xb4   : > { %v2472_v29 = vrot.slane %v2470_v26, 1 }
  0xb6   : > { %v2473_v40 = vsel %vm1201_vm0, %v2468_v27, %v2472_v29  ;;  %v2476_v42 = vor.u32 %v2474_v59, %v2472_v29 }
  0xb8   : > { %2237 = vmatmul.mubr.bf16.vlgmr.msra.gmra.mrb[72].mxu0 %v3839_v38  ;;  %v2481_v48 = vsel %vm1201_vm0, %v2476_v42, %v2480_v43 }
  0xb9   : > { %3651 = vmatmul.mubr.bf16.vlgmr.msra.gmra.mrb[72].mxu1 %v2457_v41  ;;  %2244 = vmatprep.mubr.bf16.mxu0 %v3845_v15 }
  0xba   : > { %3654 = vmatprep.mubr.msk.bf16.mxu1 %vm3892_vm1, %v3891_v5 }
  0xc0   : > { %2245 = vmatmul.mubr.bf16.gmra.mrb[76].mxu0 %v3847_v21 }
  0xc1   : > { %3655 = vmatmul.mubr.bf16.gmra.mrb[76].mxu1 %v2465_v24  ;;  %2252 = vmatprep.mubr.bf16.mxu0 %v3849_v22 }
  0xc2   : > { %3658 = vmatprep.mubr.msk.bf16.mxu1 %vm3892_vm1, %v3891_v5 }
  0xc8   : > { %2253 = vmatmul.mubr.bf16.gmra.mrb[80].mxu0 %v3851_v37 }
  0xc9   : > { %3659 = vmatmul.mubr.bf16.gmra.mrb[80].mxu1 %v2473_v40  ;;  %2260 = vmatprep.mubr.bf16.mxu0 %v3853_v39 }
  0xca   : > { %3662 = vmatprep.mubr.msk.bf16.mxu1 %vm3892_vm1, %v3891_v5 }
  0xd0   : > { %2261 = vmatmul.mubr.bf16.gmra.mrb[84].mxu0 %v3855_v46 }
  0xd1   : > { %3663 = vmatmul.mubr.bf16.gmra.mrb[84].mxu1 %v2481_v48  ;;  %2268 = vmatprep.mubr.bf16.mxu0 %v3857_v47 }
  0xd2   : > { %3666 = vmatprep.mubr.msk.bf16.mxu1 %vm3892_vm1, %v3891_v5 }
  0xd8   : > { %2269 = vmatmul.mubr.bf16.gmra.mrb[88].mxu0 %v3859_v9 }
  0xd9   : > { %3667 = vmatmul.mubr.bf16.gmra.mrb[88].mxu1 %v2489_v19  ;;  %2276 = vmatprep.mubr.bf16.mxu0 %v4228_v0  ;;  %v2504_v0 = vrot.slane %v2502_v12, 1 }
  0xda   : > { %3670 = vmatprep.mubr.msk.bf16.mxu1 %vm3892_vm1, %v3891_v5 }
  0xdb   : > { %v2505_v61 = vsel %vm1201_vm0, %v2500_v51, %v2504_v0 }
  0xe0   : > { %2277 = vmatmul.mubr.bf16.gmra.mrb[92].mxu0 %v4246_v8  ;;  %v2508_v8 = vor.u32 %v2506_v63, %v2504_v0 }
  0xe1   : > { %3671 = vmatmul.mubr.bf16.gmra.mrb[92].mxu1 %v2497_v57  ;;  %2284 = vmatprep.mubr.bf16.mxu0 %v4250_v10  ;;  %v2512_v10 = vrot.slane %v2510_v1, 1 }
  0xe2   : > { %3674 = vmatprep.mubr.msk.bf16.mxu1 %vm3892_vm1, %v3891_v5 }
  0xe3   : > { %v2513_v58 = vsel %vm1201_vm0, %v2508_v8, %v2512_v10 }
  0xe8   : > { %2285 = vmatmul.mubr.bf16.gmra.mrb[96].mxu0 %v4259_v13  ;;  %v2516_v13 = vor.u32 %v2514_v3, %v2512_v10 }
  0xe9   : > { %3675 = vmatmul.mubr.bf16.gmra.mrb[96].mxu1 %v2505_v61  ;;  %2292 = vmatprep.mubr.bf16.mxu0 %v4264_v16  ;;  %v2520_v16 = vrot.slane %v2518_v36, 1 }
  0xea   : > { %3678 = vmatprep.mubr.msk.bf16.mxu1 %vm3892_vm1, %v3891_v5 }
  0xeb   : > { %v2521_v35 = vsel %vm1201_vm0, %v2516_v13, %v2520_v16 }
  0xf0   : > { %2293 = vmatmul.mubr.bf16.gmra.mrb[100].mxu0 %v4280_v25 }
  0xf1   : > { %3679 = vmatmul.mubr.bf16.gmra.mrb[100].mxu1 %v2513_v58  ;;  %2300 = vmatprep.mubr.bf16.mxu0 %v3122_v31 }
  0xf2   : > { %3682 = vmatprep.mubr.msk.bf16.mxu1 %vm3892_vm1, %v3891_v5 }
  0xf8   : > { %2301 = vmatmul.mubr.bf16.gmra.mrb[104].mxu0 %v3121_v34 }
  0xf9   : > { %3683 = vmatmul.mubr.bf16.gmra.mrb[104].mxu1 %v2521_v35 }
  0xfb   : > { %v3283_v11 = vpop.f32.mrb[0].mxu0 }
  0xfc   : > { %v3353_v38 = vpop.f32.mrb[0].mxu1  ;;  %v3284_v25 = vpop.f32.mrb[1].mxu0 }
  0xfd   : > { %v3285_v15 = vadd.f32 %v3284_v25, %v3283_v11  ;;  %v3354_v41 = vpop.f32.mrb[1].mxu1  ;;  %v3286_v17 = vpop.f32.mrb[2].mxu0 }
  0xfe   : > { %v3355_v18 = vadd.f32 %v3354_v41, %v3353_v38  ;;  %v3356_v31 = vpop.f32.mrb[2].mxu1  ;;  %v3287_v28 = vpop.f32.mrb[3].mxu0 }
  0xff   : > { %v3288_v32 = vadd.f32 %v3287_v28, %v3286_v17  ;;  %v3357_v5 = vpop.f32.mrb[3].mxu1 }
 0x100   : > { %v4493_v33 = vadd.f32 %v3355_v18, %v3285_v15  ;;  %v3358_v21 = vadd.f32 %v3357_v5, %v3356_v31 }
 0x102   : > { %v4495_v22 = vadd.f32 %v3358_v21, %v3288_v32 }
 0x103   : > { %v3289_v24 = vpop.f32.mrb[4].mxu0 }
 0x104   : > { %v3359_v20 = vpop.f32.mrb[4].mxu1  ;;  %v3290_v7 = vpop.f32.mrb[5].mxu0 }
 0x105   : > { %v3291_v34 = vadd.f32 %v3290_v7, %v3289_v24  ;;  %v3360_v4 = vpop.f32.mrb[5].mxu1  ;;  %v3292_v26 = vpop.f32.mrb[6].mxu0 }
 0x106   : > { %v3361_v27 = vadd.f32 %v3360_v4, %v3359_v20  ;;  %v3362_v29 = vpop.f32.mrb[6].mxu1  ;;  %v3293_v30 = vpop.f32.mrb[7].mxu0 }
 0x107   : > { %v3294_v37 = vadd.f32 %v3293_v30, %v3292_v26  ;;  %v3363_v39 = vpop.f32.mrb[7].mxu1 }
 0x108   : > { %v4497_v40 = vadd.f32 %v3361_v27, %v3291_v34  ;;  %v3364_v59 = vadd.f32 %v3363_v39, %v3362_v29 }
 0x10a   : > { %v4499_v62 = vadd.f32 %v3364_v59, %v3294_v37 }
 0x10b   : > { %v3295_v42 = vpop.f32.mrb[8].mxu0 }
 0x10c   : > { %v3365_v43 = vpop.f32.mrb[8].mxu1  ;;  %v3296_v45 = vpop.f32.mrb[9].mxu0 }
 0x10d   : > { %v3297_v46 = vadd.f32 %v3296_v45, %v3295_v42  ;;  %v3366_v47 = vpop.f32.mrb[9].mxu1  ;;  %v3298_v48 = vpop.f32.mrb[10].mxu0 }
 0x10e   : > { %v3367_v44 = vadd.f32 %v3366_v47, %v3365_v43  ;;  %v3368_v49 = vpop.f32.mrb[10].mxu1  ;;  %v3299_v50 = vpop.f32.mrb[11].mxu0 }
 0x10f   : > { %v3300_v52 = vadd.f32 %v3299_v50, %v3298_v48  ;;  %v3369_v6 = vpop.f32.mrb[11].mxu1 }
 0x110   : > { %v4501_v9 = vadd.f32 %v3367_v44, %v3297_v46  ;;  %v3370_v19 = vadd.f32 %v3369_v6, %v3368_v49 }
 0x112   : > { %v4503_v23 = vadd.f32 %v3370_v19, %v3300_v52 }
 0x113   : > { %v3301_v53 = vpop.f32.mrb[12].mxu0 }
 0x114   : > { %v3371_v54 = vpop.f32.mrb[12].mxu1  ;;  %v3302_v55 = vpop.f32.mrb[13].mxu0 }
 0x115   : > { %v3303_v56 = vadd.f32 %v3302_v55, %v3301_v53  ;;  %v3372_v57 = vpop.f32.mrb[13].mxu1  ;;  %v3304_v60 = vpop.f32.mrb[14].mxu0 }
 0x116   : > { %v3373_v12 = vadd.f32 %v3372_v57, %v3371_v54  ;;  %v3374_v51 = vpop.f32.mrb[14].mxu1  ;;  %v3305_v0 = vpop.f32.mrb[15].mxu0 }
 0x117   : > { %v3306_v14 = vadd.f32 %v3305_v0, %v3304_v60  ;;  %v3375_v61 = vpop.f32.mrb[15].mxu1 }
 0x118   : > { %v4505_v63 = vadd.f32 %v3373_v12, %v3303_v56  ;;  %v3376_v1 = vadd.f32 %v3375_v61, %v3374_v51 }
 0x11a   : > { %v4507_v8 = vadd.f32 %v3376_v1, %v3306_v14 }
 0x11b   : > { %v3307_v10 = vpop.f32.mrb[16].mxu0 }
 0x11c   : > { %v3377_v2 = vpop.f32.mrb[16].mxu1  ;;  %v3308_v58 = vpop.f32.mrb[17].mxu0 }
 0x11d   : > { %v3309_v3 = vadd.f32 %v3308_v58, %v3307_v10  ;;  %v3378_v36 = vpop.f32.mrb[17].mxu1  ;;  %v3310_v13 = vpop.f32.mrb[18].mxu0 }
 0x11e   : > { %v3379_v16 = vadd.f32 %v3378_v36, %v3377_v2  ;;  %v3380_v35 = vpop.f32.mrb[18].mxu1  ;;  %v3311_v11 = vpop.f32.mrb[19].mxu0 }
 0x11f   : > { %v3312_v38 = vadd.f32 %v3311_v11, %v3310_v13  ;;  %v3381_v25 = vpop.f32.mrb[19].mxu1 }
 0x120   : > { %v4509_v15 = vadd.f32 %v3379_v16, %v3309_v3  ;;  %v3382_v41 = vadd.f32 %v3381_v25, %v3380_v35 }
 0x122   : > { %v4511_v17 = vadd.f32 %v3382_v41, %v3312_v38 }
 0x123   : > { %v3313_v18 = vpop.f32.mrb[20].mxu0 }
 0x124   : > { %v3383_v31 = vpop.f32.mrb[20].mxu1  ;;  %v3314_v28 = vpop.f32.mrb[21].mxu0 }
 0x125   : > { %v3315_v32 = vadd.f32 %v3314_v28, %v3313_v18  ;;  %v3384_v5 = vpop.f32.mrb[21].mxu1  ;;  %v3316_v21 = vpop.f32.mrb[22].mxu0 }
 0x126   : > { %v3385_v24 = vadd.f32 %v3384_v5, %v3383_v31  ;;  %v3386_v20 = vpop.f32.mrb[22].mxu1  ;;  %v3317_v7 = vpop.f32.mrb[23].mxu0 }
 0x127   : > { %v3318_v34 = vadd.f32 %v3317_v7, %v3316_v21  ;;  %v3387_v4 = vpop.f32.mrb[23].mxu1 }
 0x128   : > { %v4513_v26 = vadd.f32 %v3385_v24, %v3315_v32  ;;  %v3388_v27 = vadd.f32 %v3387_v4, %v3386_v20 }
 0x12a   : > { %v4515_v29 = vadd.f32 %v3388_v27, %v3318_v34 }
 0x12b   : > { %v3319_v30 = vpop.f32.mrb[24].mxu0 }
 0x12c   : > { %v3389_v37 = vpop.f32.mrb[24].mxu1  ;;  %v3320_v39 = vpop.f32.mrb[25].mxu0 }
 0x12d   : > { %v3321_v59 = vadd.f32 %v3320_v39, %v3319_v30  ;;  %v3390_v42 = vpop.f32.mrb[25].mxu1  ;;  %v3322_v43 = vpop.f32.mrb[26].mxu0 }
 0x12e   : > { %v3391_v45 = vadd.f32 %v3390_v42, %v3389_v37  ;;  %v3392_v46 = vpop.f32.mrb[26].mxu1  ;;  %v3323_v47 = vpop.f32.mrb[27].mxu0 }
 0x12f   : > { %v3324_v48 = vadd.f32 %v3323_v47, %v3322_v43  ;;  %v3393_v44 = vpop.f32.mrb[27].mxu1 }
 0x130   : > { %v4517_v49 = vadd.f32 %v3391_v45, %v3321_v59  ;;  %v3394_v50 = vadd.f32 %v3393_v44, %v3392_v46 }
 0x132   : > { %v4519_v52 = vadd.f32 %v3394_v50, %v3324_v48 }
 0x133   : > { %v3325_v6 = vpop.f32.mrb[28].mxu0 }
 0x134   : > { %v3395_v19 = vpop.f32.mrb[28].mxu1  ;;  %v3326_v53 = vpop.f32.mrb[29].mxu0 }
 0x135   : > { %v3327_v54 = vadd.f32 %v3326_v53, %v3325_v6  ;;  %v3396_v55 = vpop.f32.mrb[29].mxu1  ;;  %v3328_v56 = vpop.f32.mrb[30].mxu0 }
 0x136   : > { %v3397_v57 = vadd.f32 %v3396_v55, %v3395_v19  ;;  %v3398_v60 = vpop.f32.mrb[30].mxu1  ;;  %v3329_v12 = vpop.f32.mrb[31].mxu0 }
 0x137   : > { %v3330_v51 = vadd.f32 %v3329_v12, %v3328_v56  ;;  %v3399_v0 = vpop.f32.mrb[31].mxu1 }
 0x138   : > { %v4521_v14 = vadd.f32 %v3397_v57, %v3327_v54  ;;  %v3400_v61 = vadd.f32 %v3399_v0, %v3398_v60 }
 0x13a   : > { %v4523_v1 = vadd.f32 %v3400_v61, %v3330_v51 }
 0x13b   : > { %v3331_v10 = vpop.f32.mrb[32].mxu0 }
 0x13c   : > { %v3401_v2 = vpop.f32.mrb[32].mxu1  ;;  %v3332_v58 = vpop.f32.mrb[33].mxu0 }
 0x13d   : > { %v3333_v3 = vadd.f32 %v3332_v58, %v3331_v10  ;;  %v3402_v36 = vpop.f32.mrb[33].mxu1  ;;  %v3334_v13 = vpop.f32.mrb[34].mxu0 }
 0x13e   : > { %v3403_v16 = vadd.f32 %v3402_v36, %v3401_v2  ;;  %v3404_v35 = vpop.f32.mrb[34].mxu1  ;;  %v3335_v11 = vpop.f32.mrb[35].mxu0 }
 0x13f   : > { %v3336_v38 = vadd.f32 %v3335_v11, %v3334_v13  ;;  %v3405_v25 = vpop.f32.mrb[35].mxu1 }
 0x140   : > { %v4525_v41 = vadd.f32 %v3403_v16, %v3333_v3  ;;  %v3406_v18 = vadd.f32 %v3405_v25, %v3404_v35 }
 0x142   : > { %v4527_v31 = vadd.f32 %v3406_v18, %v3336_v38 }
 0x143   : > { %v3423_v28 = vpop.f32.mrb[36].mxu0 }
 0x144   : > { %v3424_v32 = vpop.f32.mrb[37].mxu0  ;;  %v3493_v5 = vpop.f32.mrb[36].mxu1 }
 0x145   : > { %v3425_v21 = vadd.f32 %v3424_v32, %v3423_v28  ;;  %v3426_v24 = vpop.f32.mrb[38].mxu0  ;;  %v3494_v20 = vpop.f32.mrb[37].mxu1 }
 0x146   : > { %v3427_v7 = vpop.f32.mrb[39].mxu0  ;;  %v4529_v34 = vadd.f32 %v3494_v20, %v3493_v5  ;;  %v3496_v4 = vpop.f32.mrb[38].mxu1 }
 0x147   : > { %v4532_v27 = vadd.f32 %v3425_v21, %v4493_v33  ;;  %v3428_v30 = vadd.f32 %v3427_v7, %v3426_v24  ;;  %v3497_v37 = vpop.f32.mrb[39].mxu1 }
 0x148   : > { %v4534_v39 = vadd.f32 %v3497_v37, %v3496_v4 }
 0x149   : > { %v4537_v59 = vadd.f32 %v3428_v30, %v4495_v22 }
 0x14b   : > { %v3429_v42 = vpop.f32.mrb[40].mxu0 }
 0x14c   : > { %v3430_v43 = vpop.f32.mrb[41].mxu0  ;;  %v3499_v45 = vpop.f32.mrb[40].mxu1 }
 0x14d   : > { %v3431_v46 = vadd.f32 %v3430_v43, %v3429_v42  ;;  %v3432_v47 = vpop.f32.mrb[42].mxu0  ;;  %v3500_v48 = vpop.f32.mrb[41].mxu1 }
 0x14e   : > { %v3433_v44 = vpop.f32.mrb[43].mxu0  ;;  %v4539_v50 = vadd.f32 %v3500_v48, %v3499_v45  ;;  %v3502_v6 = vpop.f32.mrb[42].mxu1 }
 0x14f   : > { %v4542_v33 = vadd.f32 %v3431_v46, %v4497_v40  ;;  %v3434_v19 = vadd.f32 %v3433_v44, %v3432_v47  ;;  %v3503_v53 = vpop.f32.mrb[43].mxu1 }
 0x150   : > { %v4544_v54 = vadd.f32 %v3503_v53, %v3502_v6 }
 0x151   : > { %v4547_v22 = vadd.f32 %v3434_v19, %v4499_v62 }
 0x153   : > { %v3435_v55 = vpop.f32.mrb[44].mxu0 }
 0x154   : > { %v3436_v56 = vpop.f32.mrb[45].mxu0  ;;  %v3505_v57 = vpop.f32.mrb[44].mxu1 }
 0x155   : > { %v3437_v60 = vadd.f32 %v3436_v56, %v3435_v55  ;;  %v3438_v12 = vpop.f32.mrb[46].mxu0  ;;  %v3506_v51 = vpop.f32.mrb[45].mxu1 }
 0x156   : > { %v3439_v0 = vpop.f32.mrb[47].mxu0  ;;  %v4549_v61 = vadd.f32 %v3506_v51, %v3505_v57  ;;  %v3508_v10 = vpop.f32.mrb[46].mxu1 }
 0x157   : > { %v4552_v40 = vadd.f32 %v3437_v60, %v4501_v9  ;;  %v3440_v2 = vadd.f32 %v3439_v0, %v3438_v12  ;;  %v3509_v58 = vpop.f32.mrb[47].mxu1 }
 0x158   : > { %v4554_v3 = vadd.f32 %v3509_v58, %v3508_v10 }
 0x159   : > { %v4557_v62 = vadd.f32 %v3440_v2, %v4503_v23 }
 0x15b   : > { %v3441_v36 = vpop.f32.mrb[48].mxu0 }
 0x15c   : > { %v3442_v13 = vpop.f32.mrb[49].mxu0  ;;  %v3511_v16 = vpop.f32.mrb[48].mxu1 }
 0x15d   : > { %v3443_v35 = vadd.f32 %v3442_v13, %v3441_v36  ;;  %v3444_v11 = vpop.f32.mrb[50].mxu0  ;;  %v3512_v38 = vpop.f32.mrb[49].mxu1 }
 0x15e   : > { %v3445_v25 = vpop.f32.mrb[51].mxu0  ;;  %v4559_v18 = vadd.f32 %v3512_v38, %v3511_v16  ;;  %v3514_v28 = vpop.f32.mrb[50].mxu1 }
 0x15f   : > { %v4562_v9 = vadd.f32 %v3443_v35, %v4505_v63  ;;  %v3446_v32 = vadd.f32 %v3445_v25, %v3444_v11  ;;  %v3515_v5 = vpop.f32.mrb[51].mxu1 }
 0x160   : > { %v4564_v21 = vadd.f32 %v3515_v5, %v3514_v28 }
 0x161   : > { %v4567_v23 = vadd.f32 %v3446_v32, %v4507_v8 }
 0x163   : > { %v3447_v24 = vpop.f32.mrb[52].mxu0 }
 0x164   : > { %v3448_v20 = vpop.f32.mrb[53].mxu0  ;;  %v3517_v7 = vpop.f32.mrb[52].mxu1 }
 0x165   : > { %v3449_v4 = vadd.f32 %v3448_v20, %v3447_v24  ;;  %v3450_v30 = vpop.f32.mrb[54].mxu0  ;;  %v3518_v37 = vpop.f32.mrb[53].mxu1 }
 0x166   : > { %v3451_v42 = vpop.f32.mrb[55].mxu0  ;;  %v4569_v43 = vadd.f32 %v3518_v37, %v3517_v7  ;;  %v3520_v45 = vpop.f32.mrb[54].mxu1 }
 0x167   : > { %v4572_v63 = vadd.f32 %v3449_v4, %v4509_v15  ;;  %v3452_v46 = vadd.f32 %v3451_v42, %v3450_v30  ;;  %v3521_v47 = vpop.f32.mrb[55].mxu1 }
 0x168   : > { %v4574_v48 = vadd.f32 %v3521_v47, %v3520_v45 }
 0x169   : > { %v4577_v8 = vadd.f32 %v3452_v46, %v4511_v17 }
 0x16b   : > { %v3453_v44 = vpop.f32.mrb[56].mxu0 }
 0x16c   : > { %v3454_v6 = vpop.f32.mrb[57].mxu0  ;;  %v3523_v19 = vpop.f32.mrb[56].mxu1 }
 0x16d   : > { %v3455_v53 = vadd.f32 %v3454_v6, %v3453_v44  ;;  %v3456_v55 = vpop.f32.mrb[58].mxu0  ;;  %v3524_v56 = vpop.f32.mrb[57].mxu1 }
 0x16e   : > { %v3457_v57 = vpop.f32.mrb[59].mxu0  ;;  %v4579_v60 = vadd.f32 %v3524_v56, %v3523_v19  ;;  %v3526_v12 = vpop.f32.mrb[58].mxu1 }
 0x16f   : > { %v4582_v15 = vadd.f32 %v3455_v53, %v4513_v26  ;;  %v3458_v51 = vadd.f32 %v3457_v57, %v3456_v55  ;;  %v3527_v0 = vpop.f32.mrb[59].mxu1 }
 0x170   : > { %v4584_v10 = vadd.f32 %v3527_v0, %v3526_v12 }
 0x171   : > { %v4587_v17 = vadd.f32 %v3458_v51, %v4515_v29 }
 0x173   : > { %v3459_v2 = vpop.f32.mrb[60].mxu0 }
 0x174   : > { %v3460_v58 = vpop.f32.mrb[61].mxu0  ;;  %v3529_v36 = vpop.f32.mrb[60].mxu1 }
 0x175   : > { %v3461_v13 = vadd.f32 %v3460_v58, %v3459_v2  ;;  %v3462_v16 = vpop.f32.mrb[62].mxu0  ;;  %v3530_v35 = vpop.f32.mrb[61].mxu1 }
 0x176   : > { %v3463_v11 = vpop.f32.mrb[63].mxu0  ;;  %v4589_v38 = vadd.f32 %v3530_v35, %v3529_v36  ;;  %v3532_v25 = vpop.f32.mrb[62].mxu1 }
 0x177   : > { %v4592_v26 = vadd.f32 %v3461_v13, %v4517_v49  ;;  %v3464_v28 = vadd.f32 %v3463_v11, %v3462_v16  ;;  %v3533_v32 = vpop.f32.mrb[63].mxu1 }
 0x178   : > { %v4594_v5 = vadd.f32 %v3533_v32, %v3532_v25 }
 0x179   : > { %v4597_v29 = vadd.f32 %v3464_v28, %v4519_v52 }
 0x17b   : > { %v3465_v24 = vpop.f32.mrb[64].mxu0 }
 0x17c   : > { %v3466_v20 = vpop.f32.mrb[65].mxu0  ;;  %v3535_v7 = vpop.f32.mrb[64].mxu1 }
 0x17d   : > { %v3467_v4 = vadd.f32 %v3466_v20, %v3465_v24  ;;  %v3468_v30 = vpop.f32.mrb[66].mxu0  ;;  %v3536_v37 = vpop.f32.mrb[65].mxu1 }
 0x17e   : > { %v3469_v42 = vpop.f32.mrb[67].mxu0  ;;  %v4599_v45 = vadd.f32 %v3536_v37, %v3535_v7  ;;  %v3538_v46 = vpop.f32.mrb[66].mxu1 }
 0x17f   : > { %v4602_v49 = vadd.f32 %v3467_v4, %v4521_v14  ;;  %v3470_v47 = vadd.f32 %v3469_v42, %v3468_v30  ;;  %v3539_v44 = vpop.f32.mrb[67].mxu1 }
 0x180   : > { %v4604_v6 = vadd.f32 %v3539_v44, %v3538_v46 }
 0x181   : > { %v4607_v52 = vadd.f32 %v3470_v47, %v4523_v1 }
 0x183   : > { %v3471_v19 = vpop.f32.mrb[68].mxu0 }
 0x184   : > { %v3472_v53 = vpop.f32.mrb[69].mxu0  ;;  %v3541_v55 = vpop.f32.mrb[68].mxu1 }
 0x185   : > { %v3473_v56 = vadd.f32 %v3472_v53, %v3471_v19  ;;  %v3474_v57 = vpop.f32.mrb[70].mxu0  ;;  %v3542_v12 = vpop.f32.mrb[69].mxu1 }
 0x186   : > { %v3475_v51 = vpop.f32.mrb[71].mxu0  ;;  %v4609_v0 = vadd.f32 %v3542_v12, %v3541_v55  ;;  %v3544_v2 = vpop.f32.mrb[70].mxu1 }
 0x187   : > { %v4612_v14 = vadd.f32 %v3473_v56, %v4525_v41  ;;  %v3476_v58 = vadd.f32 %v3475_v51, %v3474_v57  ;;  %v3545_v36 = vpop.f32.mrb[71].mxu1 }
 0x188   : > { %v4614_v13 = vadd.f32 %v3545_v36, %v3544_v2 }
 0x189   : > { %v4617_v1 = vadd.f32 %v3476_v58, %v4527_v31  ;;  %v4626_v31 = vld [vmem:[%s4705_s3] ss:$0 sm:$0xff] }
 0x18b   : > { %v3563_v16 = vpop.f32.mrb[72].mxu0 }
 0x18c   : > { %v3564_v35 = vpop.f32.mrb[73].mxu0  ;;  %v2613_v11 = vpop.f32.mrb[72].mxu1 }
 0x18d   : > { %v3565_v25 = vadd.f32 %v3564_v35, %v3563_v16  ;;  %v3566_v28 = vpop.f32.mrb[74].mxu0  ;;  %v3652_v32 = vpop.f32.mrb[73].mxu1 }
 0x18e   : > { %v3567_v24 = vpop.f32.mrb[75].mxu0  ;;  %v2616_v20 = vpop.f32.mrb[74].mxu1 }
 0x18f   : > { %v2239_v7 = vadd.f32 %v3565_v25, %v4529_v34  ;;  %v3568_v41 = vadd.f32 %v3567_v24, %v3566_v28  ;;  %v3653_v4 = vpop.f32.mrb[75].mxu1 }
 0x191   : > { %v2242_v30 = vadd.f32 %v3568_v41, %v4534_v39  ;;  %v2327_v37 = vadd.f32 %v2239_v7, %v4532_v27 }
 0x193   : > { %v2702_v42 = vadd.f32 %v2613_v11, %v2327_v37  ;;  %v2328_v46 = vadd.f32 %v2242_v30, %v4537_v59  ;;  %v3569_v47 = vpop.f32.mrb[76].mxu0 }
 0x194   : > { %v3570_v44 = vpop.f32.mrb[77].mxu0  ;;  %v2621_v19 = vpop.f32.mrb[76].mxu1 }
 0x195   : > { %v2763_v34 = vadd.f32 %v4626_v31, %v2702_v42  ;;  %v2703_v53 = vadd.f32 %v2616_v20, %v2328_v46  ;;  %v3571_v55 = vadd.f32 %v3570_v44, %v3569_v47  ;;  %v3572_v56 = vpop.f32.mrb[78].mxu0  ;;  %v3656_v39 = vpop.f32.mrb[77].mxu1 }
 0x196   : > { %v3573_v57 = vpop.f32.mrb[79].mxu0  ;;  %v2624_v27 = vpop.f32.mrb[78].mxu1 }
 0x197   : > { %v2764_v12 = vadd.f32 %v4626_v31, %v2703_v53  ;;  %v2247_v51 = vadd.f32 %v3571_v55, %v4539_v50  ;;  %v3574_v2 = vadd.f32 %v3573_v57, %v3572_v56  ;;  %v3657_v58 = vpop.f32.mrb[79].mxu1  ;;  %v2781_v36 = vmax.f32 %v2763_v34, 0.0 }
 0x199   : > { %v2782_v59 = vmax.f32 %v2764_v12, 0.0  ;;  %v2250_v16 = vadd.f32 %v3574_v2, %v4544_v54  ;;  %v2329_v35 = vadd.f32 %v2247_v51, %v4542_v33 }
 0x19b   : > { %v3217_v11 = vpack.c.bf16 %v2782_v59, %v2781_v36  ;;  %v2704_v25 = vadd.f32 %v2621_v19, %v2329_v35  ;;  %v2330_v28 = vadd.f32 %v2250_v16, %v4547_v22  ;;  %v3575_v32 = vpop.f32.mrb[80].mxu0 }
 0x19c   : > { %v3576_v50 = vpop.f32.mrb[81].mxu0  ;;  %v2629_v24 = vpop.f32.mrb[80].mxu1 }
 0x19d   : > { %3218 = vst [vmem:[%s4637_s5] sm:$0xff] %v3217_v11   ;;  %v2765_v20 = vadd.f32 %v4626_v31, %v2704_v25  ;;  %v2705_v7 = vadd.f32 %v2624_v27, %v2330_v28  ;;  %v3577_v54 = vadd.f32 %v3576_v50, %v3575_v32  ;;  %v3578_v41 = vpop.f32.mrb[82].mxu0  ;;  %v3660_v33 = vpop.f32.mrb[81].mxu1 }
 0x19e   : > { %v3579_v4 = vpop.f32.mrb[83].mxu0  ;;  %v2632_v30 = vpop.f32.mrb[82].mxu1 }
 0x19f   : > { %v2766_v37 = vadd.f32 %v4626_v31, %v2705_v7  ;;  %v2255_v42 = vadd.f32 %v3577_v54, %v4549_v61  ;;  %v3580_v46 = vadd.f32 %v3579_v4, %v3578_v41  ;;  %v3661_v47 = vpop.f32.mrb[83].mxu1  ;;  %v2783_v22 = vmax.f32 %v2765_v20, 0.0 }
 0x1a1   : > { %v2784_v44 = vmax.f32 %v2766_v37, 0.0  ;;  %v2258_v19 = vadd.f32 %v3580_v46, %v4554_v3  ;;  %v2331_v34 = vadd.f32 %v2255_v42, %v4552_v40 }
 0x1a3   : > { %v3222_v53 = vpack.c.bf16 %v2784_v44, %v2783_v22  ;;  %v2706_v55 = vadd.f32 %v2629_v24, %v2331_v34  ;;  %v2332_v56 = vadd.f32 %v2258_v19, %v4557_v62  ;;  %v3581_v39 = vpop.f32.mrb[84].mxu0 }
 0x1a4   : > { %v3582_v57 = vpop.f32.mrb[85].mxu0  ;;  %v2637_v27 = vpop.f32.mrb[84].mxu1 }
 0x1a5   : > { %3259 = vst [vmem:[%s4637_s5 + $0x8] sm:$0xff] %v3222_v53   ;;  %v2767_v12 = vadd.f32 %v4626_v31, %v2706_v55  ;;  %v2707_v51 = vadd.f32 %v2632_v30, %v2332_v56  ;;  %v3583_v61 = vadd.f32 %v3582_v57, %v3581_v39  ;;  %v3584_v2 = vpop.f32.mrb[86].mxu0  ;;  %v3664_v58 = vpop.f32.mrb[85].mxu1 }
 0x1a6   : > { %v3585_v36 = vpop.f32.mrb[87].mxu0  ;;  %v2640_v59 = vpop.f32.mrb[86].mxu1 }
 0x1a7   : > { %v2768_v3 = vadd.f32 %v4626_v31, %v2707_v51  ;;  %v2263_v40 = vadd.f32 %v3583_v61, %v4559_v18  ;;  %v3586_v16 = vadd.f32 %v3585_v36, %v3584_v2  ;;  %v3665_v35 = vpop.f32.mrb[87].mxu1  ;;  %v2785_v62 = vmax.f32 %v2767_v12, 0.0 }
 0x1a9   : > { %v2786_v11 = vmax.f32 %v2768_v3, 0.0  ;;  %v2266_v25 = vadd.f32 %v3586_v16, %v4564_v21  ;;  %v2333_v28 = vadd.f32 %v2263_v40, %v4562_v9 }
 0x1ab   : > { %v3227_v32 = vpack.c.bf16 %v2786_v11, %v2785_v62  ;;  %v2708_v50 = vadd.f32 %v2637_v27, %v2333_v28  ;;  %v2334_v24 = vadd.f32 %v2266_v25, %v4567_v23  ;;  %v3587_v20 = vpop.f32.mrb[88].mxu0 }
 0x1ac   : > { %v3588_v7 = vpop.f32.mrb[89].mxu0  ;;  %v2645_v54 = vpop.f32.mrb[88].mxu1 }
 0x1ad   : > { %3260 = vst [vmem:[%s4637_s5 + $0x10] sm:$0xff] %v3227_v32   ;;  %v2769_v41 = vadd.f32 %v4626_v31, %v2708_v50  ;;  %v2709_v33 = vadd.f32 %v2640_v59, %v2334_v24  ;;  %v3589_v18 = vadd.f32 %v3588_v7, %v3587_v20  ;;  %v3590_v4 = vpop.f32.mrb[90].mxu0  ;;  %v3668_v30 = vpop.f32.mrb[89].mxu1 }
 0x1ae   : > { %v3591_v37 = vpop.f32.mrb[91].mxu0  ;;  %v2648_v42 = vpop.f32.mrb[90].mxu1 }
 0x1af   : > { %v2770_v21 = vadd.f32 %v4626_v31, %v2709_v33  ;;  %v2271_v9 = vadd.f32 %v3589_v18, %v4569_v43  ;;  %v3592_v46 = vadd.f32 %v3591_v37, %v3590_v4  ;;  %v3669_v47 = vpop.f32.mrb[91].mxu1  ;;  %v2787_v23 = vmax.f32 %v2769_v41, 0.0 }
 0x1b1   : > { %v2788_v22 = vmax.f32 %v2770_v21, 0.0  ;;  %v2274_v44 = vadd.f32 %v3592_v46, %v4574_v48  ;;  %v2335_v19 = vadd.f32 %v2271_v9, %v4572_v63 }
 0x1b3   : > { %v3232_v34 = vpack.c.bf16 %v2788_v22, %v2787_v23  ;;  %v2710_v53 = vadd.f32 %v2645_v54, %v2335_v19  ;;  %v2336_v55 = vadd.f32 %v2274_v44, %v4577_v8  ;;  %v3593_v56 = vpop.f32.mrb[92].mxu0 }
 0x1b4   : > { %v3594_v39 = vpop.f32.mrb[93].mxu0  ;;  %v2653_v57 = vpop.f32.mrb[92].mxu1 }
 0x1b5   : > { %3261 = vst [vmem:[%s4637_s5 + $0x18] sm:$0xff] %v3232_v34   ;;  %v2771_v27 = vadd.f32 %v4626_v31, %v2710_v53  ;;  %v2711_v12 = vadd.f32 %v2648_v42, %v2336_v55  ;;  %v3595_v43 = vadd.f32 %v3594_v39, %v3593_v56  ;;  %v3596_v51 = vpop.f32.mrb[94].mxu0  ;;  %v3672_v61 = vpop.f32.mrb[93].mxu1 }
 0x1b6   : > { %v3597_v2 = vpop.f32.mrb[95].mxu0  ;;  %v2656_v58 = vpop.f32.mrb[94].mxu1 }
 0x1b7   : > { %v2772_v48 = vadd.f32 %v4626_v31, %v2711_v12  ;;  %v2279_v63 = vadd.f32 %v3595_v43, %v4579_v60  ;;  %v3598_v36 = vadd.f32 %v3597_v2, %v3596_v51  ;;  %v3673_v59 = vpop.f32.mrb[95].mxu1  ;;  %v2789_v8 = vmax.f32 %v2771_v27, 0.0 }
 0x1b9   : > { %v2790_v3 = vmax.f32 %v2772_v48, 0.0  ;;  %v2282_v40 = vadd.f32 %v3598_v36, %v4584_v10  ;;  %v2337_v16 = vadd.f32 %v2279_v63, %v4582_v15 }
 0x1bb   : > { %v3237_v35 = vpack.c.bf16 %v2790_v3, %v2789_v8  ;;  %v2712_v62 = vadd.f32 %v2653_v57, %v2337_v16  ;;  %v2338_v11 = vadd.f32 %v2282_v40, %v4587_v17  ;;  %v3599_v25 = vpop.f32.mrb[96].mxu0 }
 0x1bc   : > { %v3600_v28 = vpop.f32.mrb[97].mxu0  ;;  %v2661_v32 = vpop.f32.mrb[96].mxu1 }
 0x1bd   : > { %3262 = vst [vmem:[%s4637_s5 + $0x20] sm:$0xff] %v3237_v35   ;;  %v2773_v50 = vadd.f32 %v4626_v31, %v2712_v62  ;;  %v2713_v24 = vadd.f32 %v2656_v58, %v2338_v11  ;;  %v3601_v60 = vadd.f32 %v3600_v28, %v3599_v25  ;;  %v3602_v20 = vpop.f32.mrb[98].mxu0  ;;  %v3676_v7 = vpop.f32.mrb[97].mxu1 }
 0x1be   : > { %v3603_v54 = vpop.f32.mrb[99].mxu0  ;;  %v2664_v41 = vpop.f32.mrb[98].mxu1 }
 0x1bf   : > { %v2774_v10 = vadd.f32 %v4626_v31, %v2713_v24  ;;  %v2287_v15 = vadd.f32 %v3601_v60, %v4589_v38  ;;  %v3604_v33 = vadd.f32 %v3603_v54, %v3602_v20  ;;  %v3677_v18 = vpop.f32.mrb[99].mxu1  ;;  %v2791_v17 = vmax.f32 %v2773_v50, 0.0 }
 0x1c1   : > { %v2792_v4 = vmax.f32 %v2774_v10, 0.0  ;;  %v2290_v30 = vadd.f32 %v3604_v33, %v4594_v5  ;;  %v2339_v37 = vadd.f32 %v2287_v15, %v4592_v26 }
 0x1c3   : > { %v3242_v42 = vpack.c.bf16 %v2792_v4, %v2791_v17  ;;  %v2714_v21 = vadd.f32 %v2661_v32, %v2339_v37  ;;  %v2340_v9 = vadd.f32 %v2290_v30, %v4597_v29  ;;  %v3605_v46 = vpop.f32.mrb[100].mxu0 }
 0x1c4   : > { %v3606_v47 = vpop.f32.mrb[101].mxu0  ;;  %v2669_v23 = vpop.f32.mrb[100].mxu1 }
 0x1c5   : > { %3263 = vst [vmem:[%s4637_s5 + $0x28] sm:$0xff] %v3242_v42   ;;  %v2775_v22 = vadd.f32 %v4626_v31, %v2714_v21  ;;  %v2715_v44 = vadd.f32 %v2664_v41, %v2340_v9  ;;  %v3607_v38 = vadd.f32 %v3606_v47, %v3605_v46  ;;  %v3608_v19 = vpop.f32.mrb[102].mxu0  ;;  %v3680_v34 = vpop.f32.mrb[101].mxu1 }
 0x1c6   : > { %v3609_v53 = vpop.f32.mrb[103].mxu0  ;;  %v2672_v55 = vpop.f32.mrb[102].mxu1 }
 0x1c7   : > { %v2776_v5 = vadd.f32 %v4626_v31, %v2715_v44  ;;  %v2295_v26 = vadd.f32 %v3607_v38, %v4599_v45  ;;  %v3610_v56 = vadd.f32 %v3609_v53, %v3608_v19  ;;  %v3681_v39 = vpop.f32.mrb[103].mxu1  ;;  %v2793_v29 = vmax.f32 %v2775_v22, 0.0 }
 0x1c9   : > { %v2794_v57 = vmax.f32 %v2776_v5, 0.0  ;;  %v2298_v27 = vadd.f32 %v3610_v56, %v4604_v6  ;;  %v2341_v12 = vadd.f32 %v2295_v26, %v4602_v49 }
 0x1cb   : > { %v3247_v43 = vpack.c.bf16 %v2794_v57, %v2793_v29  ;;  %v2716_v51 = vadd.f32 %v2669_v23, %v2341_v12  ;;  %v2342_v61 = vadd.f32 %v2298_v27, %v4607_v52  ;;  %v3611_v2 = vpop.f32.mrb[104].mxu0 }
 0x1cc   : > { %v3612_v58 = vpop.f32.mrb[105].mxu0  ;;  %v2677_v48 = vpop.f32.mrb[104].mxu1 }
 0x1cd   : > { %3264 = vst [vmem:[%s4637_s5 + $0x30] sm:$0xff] %v3247_v43   ;;  %v2777_v63 = vadd.f32 %v4626_v31, %v2716_v51  ;;  %v2717_v36 = vadd.f32 %v2672_v55, %v2342_v61  ;;  %v3613_v45 = vadd.f32 %v3612_v58, %v3611_v2  ;;  %v3614_v59 = vpop.f32.mrb[106].mxu0  ;;  %v3684_v8 = vpop.f32.mrb[105].mxu1 }
 0x1ce   : > { %v3615_v3 = vpop.f32.mrb[107].mxu0  ;;  %v2680_v40 = vpop.f32.mrb[106].mxu1 }
 0x1cf   : > { %v2778_v6 = vadd.f32 %v4626_v31, %v2717_v36  ;;  %v2303_v49 = vadd.f32 %v3613_v45, %v4609_v0  ;;  %v3616_v16 = vadd.f32 %v3615_v3, %v3614_v59  ;;  %v3685_v52 = vpop.f32.mrb[107].mxu1  ;;  %v2795_v35 = vmax.f32 %v2777_v63, 0.0 }
 0x1d1   : > { %v2796_v62 = vmax.f32 %v2778_v6, 0.0  ;;  %v2306_v11 = vadd.f32 %v3616_v16, %v4614_v13  ;;  %v2343_v25 = vadd.f32 %v2303_v49, %v4612_v14 }
 0x1d3   : > { %v3252_v28 = vpack.c.bf16 %v2796_v62, %v2795_v35  ;;  %v2718_v32 = vadd.f32 %v2677_v48, %v2343_v25  ;;  %v2344_v50 = vadd.f32 %v2306_v11, %v4617_v1 }
 0x1d5   : > { %3265 = vst [vmem:[%s4637_s5 + $0x38] sm:$0xff] %v3252_v28   ;;  %v2779_v24 = vadd.f32 %v4626_v31, %v2718_v32  ;;  %v2719_v60 = vadd.f32 %v2680_v40, %v2344_v50 }
 0x1d7   : > { %v2780_v20 = vadd.f32 %v4626_v31, %v2719_v60  ;;  %v2797_v0 = vmax.f32 %v2779_v24, 0.0 }
 0x1d9   : > { %v2798_v7 = vmax.f32 %v2780_v20, 0.0 }
 0x1db   : > { %v3257_v54 = vpack.c.bf16 %v2798_v7, %v2797_v0 }
 0x1dd   : > { %3266 = vst [vmem:[%s4637_s5 + $0x40] sm:$0xff] %v3257_v54  }
 0x1de PF: > { %s14_s17 = sadd.s32 1, %s3889_s17   ;;  %s4707_s15 = smov %s3885_s16 }
 0x1df   : > { %p11_p7 = scmp.ge.s32.totalorder %s14_s17, 4   ;;  %s4708_s16 = smov %s4710_s18 }
 0x1e1   :  { %13 = sbr.rel (!%p11_p7) target bundleno = 2 (0x2), region = 69 }

// kernel: _lambda_.8
= control target key start
LH: loop header
LB: loop body
LE: loop exit
PB: predicated region body
PF: predicated region fallthrough
CT: control target
= control target key end

     0   :  { %s2170_s15 = smov 0   ;;  %s2172_s16 = smov 0   ;;  %s2574_s0 = inlined_call_operand.vmem [shape: bf16[128,512], index: 0, kind: input, shape index: {}, may-alias: {0,1}]   ;;  %s2575_s1 = inlined_call_operand.vmem [shape: bf16[128,512], index: 1, kind: input, shape index: {}, may-alias: {0,1}]   ;;  %s2576_s2 = inlined_call_operand.vmem [shape: bf16[1408,128], index: 2, kind: input, shape index: {}]   ;;  %s2577_s3 = inlined_call_operand.vmem [shape: f32[1,128], index: 3, kind: input, shape index: {}]   ;;  %s2578_s4 = inlined_call_operand.vmem [shape: bf16[64,128], index: 4, kind: output, shape index: {}]  }
   0x1   :  { %s2174_s17 = smov 0  }
   0x2 LB: > { %s26_s18 = sadd.s32 1, %s2139_s16  ;;  %p1682_p0 = scmp.ge.s32.totalorder %s2143_s17, 1  ;;  %s2143_s17 = sphi %s2174_s17, %s14_s17   ;;  %s2139_s16 = sphi %s2172_s16, %s2580_s16   ;;  %s2135_s15 = sphi %s2170_s15, %s2579_s15  }
   0x3   : > { %p28_p1 = scmp.ge.s32.totalorder %s26_s18, 2  ;;  %p214_p2 = scmp.lt.s32.totalorder %s2143_s17, 3 }
   0x5   : > { %s2582_s18 = smov (%p28_p1, %s26_s18), 0  ;;  %p215_p3 = pnand %p1682_p0, %p214_p2 }
   0x6   : > { %v2015_v0 = vld [vmem:[%s2576_s2 + $0x40] sm:$0xff] (!%p215_p3)   ;;  %v2019_v4 = vld [vmem:[%s2576_s2 + $0x48] sm:$0xff] (!%p215_p3)   ;;  %v2023_v8 = vld [vmem:[%s2576_s2 + $0x50] sm:$0xff] (!%p215_p3)   ;;  %s2239_s29 = sshll.u32 (!%p215_p3), %s2135_s15, 3  ;;  %vm777_vm0 = vsmask.f32 (!%p215_p3), 7424 }
   0x7   : > { %218 = sbr.rel (%p215_p3) target bundleno = 342 (0x156), region = 36  ;;  %v2016_v1 = vld [vmem:[%s2576_s2 + $0xc0] sm:$0xff] (!%p215_p3)   ;;  %1821 = vmatprep.subr.bf16.mxu0 (!%p215_p3), %v2015_v0  ;;  %v2020_v5 = vld [vmem:[%s2576_s2 + $0xc8] sm:$0xff] (!%p215_p3)   ;;  %v2024_v9 = vld [vmem:[%s2576_s2 + $0xd0] sm:$0xff] (!%p215_p3)   ;;  %p257_p4 = scmp.lt.s32.totalorder (!%p215_p3), %s2239_s29, 15  ;;  %vm1067_vm1 = vcmask (!%p215_p3), 1043456  }
   0x8   : > { %v2017_v2 = vld [vmem:[%s2576_s2] sm:$0xff] (!%p215_p3)   ;;  %1849 = vmatprep.subr.bf16.mxu1 (!%p215_p3), %v2016_v1  ;;  %v2021_v6 = vld [vmem:[%s2576_s2 + $0x8] sm:$0xff] (!%p215_p3)   ;;  %v2025_v10 = vld [vmem:[%s2576_s2 + $0x10] sm:$0xff] (!%p215_p3)   ;;  %vm1417_vm2 = vsmask.f32 (!%p215_p3), 3328 }
   0x9   : > { %v2018_v3 = vld [vmem:[%s2576_s2 + $0x80] sm:$0xff] (!%p215_p3)   ;;  %1822 = vmatpush3.bf16.msra.mxu0 (!%p215_p3), %v2017_v2  ;;  %v2022_v7 = vld [vmem:[%s2576_s2 + $0x88] sm:$0xff] (!%p215_p3)   ;;  %v2026_v11 = vld [vmem:[%s2576_s2 + $0x90] sm:$0xff] (!%p215_p3)  }
   0xa   : > { %1850 = vmatpush3.bf16.msra.mxu1 (!%p215_p3), %v2018_v3  ;;  %1823 = vmatprep.subr.bf16.mxu0 (!%p215_p3), %v2019_v4  ;;  %v2027_v12 = vld [vmem:[%s2576_s2 + $0x58] sm:$0xff] (!%p215_p3)   ;;  %v2031_v16 = vld [vmem:[%s2576_s2 + $0x60] sm:$0xff] (!%p215_p3)   ;;  %v2035_v20 = vld [vmem:[%s2576_s2 + $0x68] sm:$0xff] (!%p215_p3)  }
   0xb   : > { %1851 = vmatprep.subr.bf16.mxu1 (!%p215_p3), %v2020_v5  ;;  %v2028_v13 = vld [vmem:[%s2576_s2 + $0xd8] sm:$0xff] (!%p215_p3)   ;;  %v2032_v17 = vld [vmem:[%s2576_s2 + $0xe0] sm:$0xff] (!%p215_p3)   ;;  %v2036_v21 = vld [vmem:[%s2576_s2 + $0xe8] sm:$0xff] (!%p215_p3)  }
   0xc   : > { %v2029_v14 = vld [vmem:[%s2576_s2 + $0x18] sm:$0xff] (!%p215_p3)   ;;  %v2033_v18 = vld [vmem:[%s2576_s2 + $0x20] sm:$0xff] (!%p215_p3)   ;;  %v2037_v22 = vld [vmem:[%s2576_s2 + $0x28] sm:$0xff] (!%p215_p3)  }
   0xd   : > { %1824 = vmatpush3.bf16.msra.mxu0 (!%p215_p3), %v2021_v6  ;;  %v2030_v15 = vld [vmem:[%s2576_s2 + $0x98] sm:$0xff] (!%p215_p3)   ;;  %v2034_v19 = vld [vmem:[%s2576_s2 + $0xa0] sm:$0xff] (!%p215_p3)   ;;  %v2038_v23 = vld [vmem:[%s2576_s2 + $0xa8] sm:$0xff] (!%p215_p3)  }
   0xe   : > { %1852 = vmatpush3.bf16.msra.mxu1 %v2022_v7  ;;  %1825 = vmatprep.subr.bf16.mxu0 %v2023_v8  ;;  %s258_s22 = scalar_select %p257_p4, %s2239_s29, 15  ;;  %v2039_v24 = vld [vmem:[%s2576_s2 + $0x70] sm:$0xff]   ;;  %v2043_v28 = vld [vmem:[%s2576_s2 + $0x78] sm:$0xff]   ;;  %v2053_v36 = vld [vmem:[%s2576_s2 + $0x140] sm:$0xff]  }
   0xf   : > { %1853 = vmatprep.subr.bf16.mxu1 %v2024_v9  ;;  %v2040_v25 = vld [vmem:[%s2576_s2 + $0xf0] sm:$0xff]   ;;  %v2044_v29 = vld [vmem:[%s2576_s2 + $0xf8] sm:$0xff]   ;;  %v2054_v37 = vld [vmem:[%s2576_s2 + $0x100] sm:$0xff]  }
  0x10   : > { %v2041_v26 = vld [vmem:[%s2576_s2 + $0x30] sm:$0xff]   ;;  %s1801_s6 = sshll.u32 %s258_s22, 4  ;;  %v2045_v30 = vld [vmem:[%s2576_s2 + $0x38] sm:$0xff]   ;;  %v2055_v38 = vld [vmem:[%s2576_s2 + $0x148] sm:$0xff]   ;;  %s1803_s22 = sadd.s32 4, %s2239_s29 }
  0x11   : > { %1826 = vmatpush3.bf16.msra.mxu0 %v2025_v10  ;;  %v2042_v27 = vld [vmem:[%s2576_s2 + $0xb0] sm:$0xff]   ;;  %s2288_s19 = scalar_lea.vmem %s2574_s0, %s1801_s6  ;;  %v2046_v31 = vld [vmem:[%s2576_s2 + $0xb8] sm:$0xff]   ;;  %v2056_v39 = vld [vmem:[%s2576_s2 + $0x108] sm:$0xff]   ;;  %p270_p5 = scmp.lt.s32.totalorder %s1803_s22, 15 }
  0x12   : > { %1854 = vmatpush3.bf16.msra.mxu1 %v2026_v11  ;;  %1827 = vmatprep.subr.bf16.mxu0 %v2027_v12  ;;  %v2297_v32 = vld [vmem:[%s2288_s19 + $0x4] ss:$16 sps:$4 sm:$0xff]   ;;  %v2049_v33 = vld [vmem:[%s2288_s19 + $0xc] ss:$16 sps:$4 sm:$0xff]   ;;  %v2303_v34 = vld [vmem:[%s2288_s19] ss:$16 sps:$4 sm:$0xff]  }
  0x13   : > { %1855 = vmatprep.subr.bf16.mxu1 %v2028_v13  ;;  %338 = vst [vmem:[#allocation2 + $0x8] sm:$0xff] %v2297_v32  ;;  %669 = vmatprep.mubr.bf16.mxu0 %v2297_v32  ;;  %v2052_v35 = vld [vmem:[%s2288_s19 + $0x8] ss:$16 sps:$4 sm:$0xff]   ;;  %340 = vst [vmem:[#allocation2 + $0x18] sm:$0xff] %v2049_v33  ;;  %v2057_v40 = vld [vmem:[%s2576_s2 + $0x1c0] sm:$0xff]   ;;  %v793_v50 = vshll.u32 %v2297_v32, 16 }
  0x14   : > { %718 = vmatprep.mubr.bf16.mxu1 %v2049_v33  ;;  %337 = vst [vmem:[#allocation2] sm:$0xff] %v2303_v34  ;;  %339 = vst [vmem:[#allocation2 + $0x10] sm:$0xff] %v2052_v35  ;;  %v2058_v41 = vld [vmem:[%s2576_s2 + $0x180] sm:$0xff]   ;;  %v2059_v42 = vld [vmem:[%s2576_s2 + $0x150] sm:$0xff]   ;;  %v791_v53 = vshrl.u32 %v2297_v32, 16  ;;  %v781_v55 = vshll.u32 %v2303_v34, 16 }
  0x15   : > { %1828 = vmatpush3.bf16.msra.mxu0 %v2029_v14  ;;  %v2060_v43 = vld [vmem:[%s2576_s2 + $0x110] sm:$0xff]   ;;  %v2061_v44 = vld [vmem:[%s2576_s2 + $0x1c8] sm:$0xff]   ;;  %v2063_v46 = vld [vmem:[%s2576_s2 + $0x158] sm:$0xff]   ;;  %v795_v57 = vrot.slane %v793_v50, 1  ;;  %v779_v60 = vshrl.u32 %v2303_v34, 16  ;;  %s2584_s22 = smov (!%p270_p5, %s1803_s22), 15 }
  0x16   : > { %1856 = vmatpush3.bf16.msra.mxu1 %v2030_v15  ;;  %1829 = vmatprep.subr.bf16.mxu0 %v2031_v16  ;;  %v2062_v45 = vld [vmem:[%s2576_s2 + $0x188] sm:$0xff]   ;;  %v2064_v47 = vld [vmem:[%s2576_s2 + $0x118] sm:$0xff]   ;;  %v2065_v48 = vld [vmem:[%s2576_s2 + $0x1d0] sm:$0xff]   ;;  %v783_v62 = vrot.slane %v781_v55, 1  ;;  %s1804_s28 = sshll.u32 %s2584_s22, 4 }
  0x17   : > { %1857 = vmatprep.subr.bf16.mxu1 %v2032_v17  ;;  %v2066_v49 = vld [vmem:[%s2576_s2 + $0x190] sm:$0xff]   ;;  %v2067_v51 = vld [vmem:[%s2576_s2 + $0x160] sm:$0xff]   ;;  %v2069_v54 = vld [vmem:[%s2576_s2 + $0x1d8] sm:$0xff]   ;;  %v796_v1 = vor.u32 %v795_v57, %v791_v53  ;;  %s2454_s10 = scalar_lea.vmem %s2575_s1, %s1804_s28 }
  0x18   : > { %v2068_v52 = vld [vmem:[%s2576_s2 + $0x120] sm:$0xff]   ;;  %v2070_v56 = vld [vmem:[%s2576_s2 + $0x198] sm:$0xff]   ;;  %v2071_v58 = vld [vmem:[%s2576_s2 + $0x168] sm:$0xff]   ;;  %v784_v13 = vor.u32 %v783_v62, %v779_v60 }
  0x19   : > { %1830 = vmatpush3.bf16.msra.mxu0 %v2033_v18  ;;  %v2369_v59 = vld [vmem:[%s2288_s19 + $0x24] ss:$16 sps:$4 sm:$0xff]   ;;  %v2374_v61 = vld [vmem:[%s2288_s19 + $0x2c] ss:$16 sps:$4 sm:$0xff]   ;;  %v2381_v0 = vld [vmem:[%s2288_s19 + $0x20] ss:$16 sps:$4 sm:$0xff]  }
  0x1a   : > { %1858 = vmatpush3.bf16.msra.mxu1 %v2034_v19  ;;  %1831 = vmatprep.subr.bf16.mxu0 %v2035_v20  ;;  %v2076_v63 = vld [vmem:[%s2576_s2 + $0x128] sm:$0xff]   ;;  %v798_v2 = vshll.u32 %v2369_v59, 16  ;;  %v2079_v4 = vld [vmem:[%s2576_s2 + $0x1e0] sm:$0xff]   ;;  %v786_v7 = vshll.u32 %v2381_v0, 16  ;;  %v2081_v8 = vld [vmem:[%s2576_s2 + $0x170] sm:$0xff]  }
  0x1b   : > { %1859 = vmatprep.subr.bf16.mxu1 %v2036_v21  ;;  %v2386_v3 = vld [vmem:[%s2288_s19 + $0x28] ss:$16 sps:$4 sm:$0xff]   ;;  %v2080_v6 = vld [vmem:[%s2576_s2 + $0x1a0] sm:$0xff]   ;;  %v2082_v10 = vld [vmem:[%s2576_s2 + $0x130] sm:$0xff]  }
  0x1c   : > { %v2391_v5 = vrot.slane %v798_v2, 1  ;;  %v2083_v11 = vld [vmem:[%s2576_s2 + $0x1e8] sm:$0xff]   ;;  %v2417_v14 = vrot.slane %v786_v7, 1  ;;  %v2085_v15 = vld [vmem:[%s2576_s2 + $0x178] sm:$0xff]   ;;  %v2087_v17 = vld [vmem:[%s2576_s2 + $0x1f0] sm:$0xff]   ;;  %v1078_v2 = vrot.slane %v2374_v61, 4 }
  0x1d   : > { %1832 = vmatpush3.bf16.msra.mxu0 %v2037_v22  ;;  %v2084_v12 = vld [vmem:[%s2576_s2 + $0x1a8] sm:$0xff]   ;;  %v2086_v16 = vld [vmem:[%s2576_s2 + $0x138] sm:$0xff]   ;;  %v2088_v18 = vld [vmem:[%s2576_s2 + $0x1b0] sm:$0xff]  }
  0x1e   : > { %1860 = vmatpush3.bf16.msra.mxu1 %v2038_v23  ;;  %1833 = vmatprep.subr.bf16.mxu0 %v2039_v24  ;;  %v801_v9 = vsel %vm777_vm0, %v796_v1, %v2391_v5  ;;  %v789_v19 = vsel %vm777_vm0, %v784_v13, %v2417_v14  ;;  %v2089_v20 = vld [vmem:[%s2576_s2 + $0x240] sm:$0xff]   ;;  %v2091_v22 = vld [vmem:[%s2576_s2 + $0x1f8] sm:$0xff]   ;;  %v2093_v24 = vld [vmem:[%s2576_s2 + $0x248] sm:$0xff]  }
  0x1f   : > { %1861 = vmatprep.subr.bf16.mxu1 %v2040_v25  ;;  %v2090_v21 = vld [vmem:[%s2576_s2 + $0x200] sm:$0xff]   ;;  %v2092_v23 = vld [vmem:[%s2576_s2 + $0x1b8] sm:$0xff]   ;;  %v1072_v25 = vrot.slane %v2369_v59, 4  ;;  %v2111_v62 = vld [vmem:[%s2576_s2 + $0x270] sm:$0xff]  }
  0x20   : > { %v979_v32 = vld [vmem:[#allocation2] sm:$0xf0]  ;;  %v2112_v1 = vld [vmem:[%s2576_s2 + $0x230] sm:$0xff]   ;;  %v2115_v13 = vld [vmem:[%s2576_s2 + $0x238] sm:$0xff]  }
  0x21   : > { %1834 = vmatpush3.bf16.msra.mxu0 %v2041_v26  ;;  %v2094_v26 = vld [vmem:[%s2576_s2 + $0x208] sm:$0xff]  }
  0x22   : > { %1862 = vmatpush3.bf16.msra.mxu1 %v2042_v27  ;;  %1835 = vmatprep.subr.bf16.mxu0 %v2043_v28  ;;  %v980_v27 = vld [vmem:[#allocation2 + $0x8] sm:$0xf0] }
  0x23   : > { %1863 = vmatprep.subr.bf16.mxu1 %v2044_v29  ;;  %v1071_v28 = vrot.slane %v980_v27, 4  ;;  %v2095_v29 = vld [vmem:[%s2576_s2 + $0x280] sm:$0xff]   ;;  %v2118_v27 = vld [vmem:[%s2454_s10 + $0xc] ss:$16 sps:$4 sm:$0xff]  }
  0x24   : > { %372 = vst [vmem:[#allocation2 + $0x58] sm:$0xff] %v2118_v27 }
  0x25   : > { %1836 = vmatpush3.bf16.msra.mxu0 %v2045_v30  ;;  %v1069_v30 = vrot.slane %v2381_v0, 4  ;;  %v1073_v33 = vsel %vm1067_vm1, %v1071_v28, %v1072_v25  ;;  %v2120_v28 = vld [vmem:[%s2454_s10 + $0x8] ss:$16 sps:$4 sm:$0xff]  }
  0x26   : > { %1864 = vmatpush3.bf16.msra.mxu1 %v2046_v31  ;;  %1877 = vmatprep.subr.bf16.mxu0 %v2053_v36  ;;  %v2096_v31 = vld [vmem:[%s2454_s10 + $0x4] ss:$16 sps:$4 sm:$0xff]   ;;  %371 = vst [vmem:[#allocation2 + $0x50] sm:$0xff] %v2120_v28 }
  0x27   : > { %1905 = vmatprep.subr.bf16.mxu1 %v2057_v40  ;;  %v2099_v36 = vld [vmem:[%s2576_s2 + $0x250] sm:$0xff]   ;;  %370 = vst [vmem:[#allocation2 + $0x48] sm:$0xff] %v2096_v31  ;;  %v2102_v40 = vld [vmem:[%s2576_s2 + $0x258] sm:$0xff]  }
  0x28   : > { %670 = vmatmul.mubr.bf16.vlgmr.msra.gmra.mrb[0].mxu0 %v2303_v34  ;;  %v1068_v34 = vrot.slane %v979_v32, 4  ;;  %v2117_v32 = vld [vmem:[%s2576_s2 + $0x2b8] sm:$0xff]  }
  0x29   : > { %719 = vmatmul.mubr.bf16.vlgmr.msra.gmra.mrb[0].mxu1 %v2052_v35  ;;  %1878 = vmatpush3.bf16.msra.mxu0 %v2054_v37  ;;  %v2098_v35 = vld [vmem:[%s2454_s10] ss:$16 sps:$4 sm:$0xff]   ;;  %s1691_s10 = sshll.u32 %s2135_s15, 2 }
  0x2a   : > { %1879 = vmatprep.subr.bf16.mxu0 %v2055_v38  ;;  %1906 = vmatpush3.bf16.msra.mxu1 %v2058_v41  ;;  %v1070_v37 = vsel %vm1067_vm1, %v1068_v34, %v1069_v30  ;;  %369 = vst [vmem:[#allocation2 + $0x40] sm:$0xff] %v2098_v35  ;;  %v2100_v38 = vld [vmem:[%s2576_s2 + $0x210] sm:$0xff]   ;;  %v810_v41 = vshrl.u32 %v2369_v59, 16  ;;  %p282_p6 = scmp.lt.s32.totalorder %s1691_s10, 7 }
  0x2b   : > { %1907 = vmatprep.subr.bf16.mxu1 %v2061_v44  ;;  %677 = vmatprep.mubr.bf16.mxu0 %v2369_v59  ;;  %v2104_v44 = vld [vmem:[%s2576_s2 + $0x290] sm:$0xff]  }
  0x2c   : > { %726 = vmatprep.mubr.bf16.mxu1 %v2374_v61  ;;  %s2586_s10 = smov (!%p282_p6, %s1691_s10), 7 }
  0x2d   : > { %1880 = vmatpush3.bf16.msra.mxu0 %v2056_v39  ;;  %v2101_v39 = vld [vmem:[%s2576_s2 + $0x288] sm:$0xff]   ;;  %s1692_s15 = sshll.u32 %s2586_s10, 2 }
  0x2e   : > { %1881 = vmatprep.subr.bf16.mxu0 %v2059_v42  ;;  %1908 = vmatpush3.bf16.msra.mxu1 %v2062_v45  ;;  %v2103_v42 = vld [vmem:[%s2576_s2 + $0x218] sm:$0xff]   ;;  %v2105_v45 = vld [vmem:[%s2576_s2 + $0x260] sm:$0xff]   ;;  %s285_s20 = scalar_lea.vmem %s2578_s4, %s1692_s15 }
  0x2f   : > { %1909 = vmatprep.subr.bf16.mxu1 %v2065_v48  ;;  %v812_v48 = vor.u32 %v810_v41, %v2391_v5  ;;  %v1075_v5 = vrot.slane %v2386_v3, 4 }
  0x30   : > { %678 = vmatmul.mubr.bf16.gmra.mrb[4].mxu0 %v2381_v0 }
  0x31   : > { %1882 = vmatpush3.bf16.msra.mxu0 %v2060_v43  ;;  %727 = vmatmul.mubr.bf16.gmra.mrb[4].mxu1 %v2386_v3  ;;  %v802_v43 = vshrl.u32 %v2381_v0, 16  ;;  %v743_v50 = vld [vmem:[#allocation2 + $0x40] sm:$0x1] }
  0x32   : > { %1883 = vmatprep.subr.bf16.mxu0 %v2063_v46  ;;  %1910 = vmatpush3.bf16.msra.mxu1 %v2066_v49  ;;  %v744_v46 = vld [vmem:[#allocation2 + $0x48] sm:$0x1]  ;;  %v806_v53 = vshll.u32 %v743_v50, 16 }
  0x33   : > { %1911 = vmatprep.subr.bf16.mxu1 %v2069_v54  ;;  %950 = vmatprep.mubr.bf16.mxu0 %v801_v9  ;;  %v814_v49 = vshll.u32 %v744_v46, 16  ;;  %v2108_v54 = vld [vmem:[%s2576_s2 + $0x268] sm:$0xff]  }
  0x34   : > { %1320 = vmatprep.mubr.bf16.mxu1 %v1073_v33  ;;  %v808_v57 = vrot.slane %v806_v53, 1  ;;  %v988_v9 = vld [vmem:[#allocation2 + $0x48] sm:$0xf] }
  0x35   : > { %1884 = vmatpush3.bf16.msra.mxu0 %v2064_v47  ;;  %v2106_v47 = vld [vmem:[%s2576_s2 + $0x220] sm:$0xff]   ;;  %v816_v55 = vrot.slane %v814_v49, 1 }
  0x36   : > { %1885 = vmatprep.subr.bf16.mxu0 %v2067_v51  ;;  %1912 = vmatpush3.bf16.msra.mxu1 %v2070_v56  ;;  %v2107_v51 = vld [vmem:[%s2576_s2 + $0x298] sm:$0xff]   ;;  %v2109_v56 = vld [vmem:[%s2576_s2 + $0x228] sm:$0xff]  }
  0x37   : > { %1913 = vmatprep.subr.bf16.mxu1 %v2079_v4  ;;  %v817_v60 = vsel %vm777_vm0, %v812_v48, %v816_v55  ;;  %v2113_v4 = vld [vmem:[%s2576_s2 + $0x2a8] sm:$0xff]  }
  0x39   : > { %1886 = vmatpush3.bf16.msra.mxu0 %v2068_v52  ;;  %v804_v52 = vor.u32 %v802_v43, %v2417_v14 }
  0x3a   : > { %1887 = vmatprep.subr.bf16.mxu0 %v2071_v58  ;;  %1914 = vmatpush3.bf16.msra.mxu1 %v2080_v6  ;;  %v2110_v58 = vld [vmem:[%s2576_s2 + $0x2a0] sm:$0xff]   ;;  %v2114_v6 = vld [vmem:[%s2576_s2 + $0x278] sm:$0xff]  }
  0x3b   : > { %1915 = vmatprep.subr.bf16.mxu1 %v2083_v11  ;;  %v987_v11 = vld [vmem:[#allocation2 + $0x40] sm:$0xf] }
  0x3c   : > { %v1080_v14 = vrot.slane %v987_v11, 4 }
  0x3d   : > { %1888 = vmatpush3.bf16.msra.mxu0 %v2076_v63  ;;  %v809_v63 = vsel %vm777_vm0, %v804_v52, %v808_v57 }
  0x3e   : > { %1889 = vmatprep.subr.bf16.mxu0 %v2081_v8  ;;  %1916 = vmatpush3.bf16.msra.mxu1 %v2084_v12  ;;  %v1429_v8 = vrot.slane %v802_v43, 4  ;;  %v1432_v12 = vrot.slane %v786_v7, 5  ;;  %v1081_v7 = vsel %vm1067_vm1, %v1069_v30, %v1080_v14 }
  0x3f   : > { %1917 = vmatprep.subr.bf16.mxu1 %v2087_v17  ;;  %v2116_v17 = vld [vmem:[%s2576_s2 + $0x2b0] sm:$0xff]  }
  0x40   : > { %v1433_v31 = vor.u32 %v1432_v12, %v1429_v8 }
  0x41   : > { %1890 = vmatpush3.bf16.msra.mxu0 %v2082_v10  ;;  %v1082_v10 = vrot.slane %v988_v9, 4 }
  0x42   : > { %1891 = vmatprep.subr.bf16.mxu0 %v2085_v15  ;;  %1918 = vmatpush3.bf16.msra.mxu1 %v2088_v18  ;;  %v982_v15 = vld [vmem:[#allocation2 + $0x18] sm:$0xf0] }
  0x43   : > { %1919 = vmatprep.subr.bf16.mxu1 %v2091_v22  ;;  %v1077_v18 = vrot.slane %v982_v15, 4 }
  0x45   : > { %1892 = vmatpush3.bf16.msra.mxu0 %v2086_v16  ;;  %v1083_v16 = vsel %vm1067_vm1, %v1072_v25, %v1082_v10  ;;  %v1079_v59 = vsel %vm1067_vm1, %v1077_v18, %v1078_v2 }
  0x46   : > { %1933 = vmatprep.subr.bf16.mxu0 %v2089_v20  ;;  %1920 = vmatpush3.bf16.msra.mxu1 %v2092_v23 }
  0x47   : > { %1971 = vmatprep.subr.bf16.mxu1 %v2095_v29 }
  0x48   : > { %951 = vmatmul.mubr.bf16.vlgmr.msra.gmra.mrb[8].mxu0 %v789_v19  ;;  %v981_v19 = vld [vmem:[#allocation2 + $0x10] sm:$0xf0] }
  0x49   : > { %1934 = vmatpush3.bf16.msra.mxu0 %v2090_v21  ;;  %1321 = vmatmul.mubr.bf16.vlgmr.msra.gmra.mrb[8].mxu1 %v1070_v37  ;;  %v1074_v20 = vrot.slane %v981_v19, 4  ;;  %v1398_v21 = vld [vmem:[#allocation2] sm:$0xf0] }
  0x4a   : > { %1935 = vmatprep.subr.bf16.mxu0 %v2093_v24  ;;  %1972 = vmatpush3.bf16.msra.mxu1 %v2095_v29  ;;  %v1419_v22 = vshrl.u32 %v1398_v21, 16  ;;  %v1422_v23 = vshll.u32 %v1398_v21, 16  ;;  %v1400_v24 = vld [vmem:[#allocation2 + $0x40] sm:$0x1f] }
  0x4b   : > { %1973 = vmatprep.subr.bf16.mxu1 %v2101_v39  ;;  %958 = vmatprep.mubr.bf16.mxu0 %v817_v60  ;;  %v1436_v25 = vshrl.u32 %v1400_v24, 16  ;;  %v1076_v0 = vsel %vm1067_vm1, %v1074_v20, %v1075_v5 }
  0x4c   : > { %1328 = vmatprep.mubr.bf16.mxu1 %v1083_v16  ;;  %v1421_v29 = vrot.slane %v1419_v22, 4  ;;  %v1424_v30 = vrot.slane %v1422_v23, 5 }
  0x4d   : > { %1936 = vmatpush3.bf16.msra.mxu0 %v2094_v26  ;;  %v1439_v26 = vshll.u32 %v1400_v24, 16  ;;  %v1438_v33 = vrot.slane %v1436_v25, 4 }
  0x4e   : > { %1937 = vmatprep.subr.bf16.mxu0 %v2099_v36  ;;  %1974 = vmatpush3.bf16.msra.mxu1 %v2101_v39  ;;  %v1425_v35 = vor.u32 %v1424_v30, %v1421_v29  ;;  %v990_v39 = vld [vmem:[#allocation2 + $0x58] sm:$0xf] }
  0x4f   : > { %1975 = vmatprep.subr.bf16.mxu1 %v2104_v44  ;;  %v1441_v34 = vrot.slane %v1439_v26, 5  ;;  %v1086_v41 = vrot.slane %v990_v39, 4 }
  0x50   : > { %959 = vmatmul.mubr.bf16.gmra.mrb[12].mxu0 %v809_v63  ;;  %v1434_v36 = vsel %vm1417_vm2, %v1425_v35, %v1433_v31 }
  0x51   : > { %1938 = vmatpush3.bf16.msra.mxu0 %v2100_v38  ;;  %1329 = vmatmul.mubr.bf16.gmra.mrb[12].mxu1 %v1081_v7  ;;  %v1442_v37 = vor.u32 %v1441_v34, %v1438_v33  ;;  %v1087_v43 = vsel %vm1067_vm1, %v1078_v2, %v1086_v41 }
  0x52   : > { %1939 = vmatprep.subr.bf16.mxu0 %v2102_v40  ;;  %1976 = vmatpush3.bf16.msra.mxu1 %v2104_v44  ;;  %v989_v40 = vld [vmem:[#allocation2 + $0x50] sm:$0xf] }
  0x53   : > { %1977 = vmatprep.subr.bf16.mxu1 %v2107_v51  ;;  %1369 = vmatprep.mubr.bf16.mxu0 %v1079_v59  ;;  %v1443_v38 = vsel %vm1417_vm2, %v1433_v31, %v1442_v37 }
  0x54   : > { %1987 = vmatprep.mubr.bf16.mxu1 %v1434_v36 }
  0x55   : > { %1940 = vmatpush3.bf16.msra.mxu0 %v2103_v42  ;;  %v1084_v42 = vrot.slane %v989_v40, 4 }
  0x56   : > { %1941 = vmatprep.subr.bf16.mxu0 %v2105_v45  ;;  %1978 = vmatpush3.bf16.msra.mxu1 %v2107_v51 }
  0x57   : > { %1979 = vmatprep.subr.bf16.mxu1 %v2110_v58  ;;  %v1085_v44 = vsel %vm1067_vm1, %v1075_v5, %v1084_v42 }
  0x59   : > { %1942 = vmatpush3.bf16.msra.mxu0 %v2106_v47 }
  0x5a   : > { %1943 = vmatprep.subr.bf16.mxu0 %v2108_v54  ;;  %1980 = vmatpush3.bf16.msra.mxu1 %v2110_v58 }
  0x5b   : > { %1981 = vmatprep.subr.bf16.mxu1 %v2113_v4 }
  0x5d   : > { %1944 = vmatpush3.bf16.msra.mxu0 %v2109_v56 }
  0x5e   : > { %1945 = vmatprep.subr.bf16.mxu0 %v2111_v62  ;;  %1982 = vmatpush3.bf16.msra.mxu1 %v2113_v4 }
  0x5f   : > { %1983 = vmatprep.subr.bf16.mxu1 %v2116_v17 }
  0x61   : > { %1946 = vmatpush3.bf16.msra.mxu0 %v2112_v1 }
  0x62   : > { %1947 = vmatprep.subr.bf16.mxu0 %v2114_v6  ;;  %1984 = vmatpush3.bf16.msra.mxu1 %v2116_v17 }
  0x63   : > { %1985 = vmatprep.subr.bf16.mxu1 %v2117_v32 }
  0x65   : > { %1948 = vmatpush3.bf16.msra.mxu0 %v2115_v13 }
  0x66   : > { %1986 = vmatpush3.bf16.msra.mxu1 %v2117_v32 }
  0x68   : > { %1370 = vmatmul.mubr.bf16.vlgmr.msra.gmra.mrb[16].mxu0 %v1076_v0 }
  0x69   : > { %1988 = vmatmul.mubr.bf16.vlgmr.msra.gmra.mrb[16].mxu1 %v1443_v38  ;;  %1377 = vmatprep.mubr.bf16.mxu0 %v1087_v43 }
  0x70   : > { %1378 = vmatmul.mubr.bf16.gmra.mrb[20].mxu0 %v1085_v44 }
  0xfb   : > { %v1837_v45 = vpop.f32.mrb[0].mxu0 }
  0xfc   : > { %v1865_v46 = vpop.f32.mrb[0].mxu1  ;;  %v1838_v47 = vpop.f32.mrb[1].mxu0 }
  0xfd   : > { %v1866_v48 = vpop.f32.mrb[1].mxu1  ;;  %v1839_v49 = vadd.f32 %v1838_v47, %v1837_v45  ;;  %v1840_v51 = vpop.f32.mrb[2].mxu0 }
  0xfe   : > { %v1867_v50 = vadd.f32 %v1866_v48, %v1865_v46  ;;  %v1868_v52 = vpop.f32.mrb[2].mxu1  ;;  %v1841_v53 = vpop.f32.mrb[3].mxu0 }
  0xff   : > { %v1869_v54 = vpop.f32.mrb[3].mxu1  ;;  %v1842_v61 = vadd.f32 %v1841_v53, %v1840_v51 }
 0x100   : > { %v721_v55 = vadd.f32 %v1867_v50, %v1839_v49  ;;  %v1870_v56 = vadd.f32 %v1869_v54, %v1868_v52  ;;  %v1793_v49 = vld [vmem:[%s2577_s3] ss:$0 sm:$0xff] }
 0x102   : > { %v724_v57 = vadd.f32 %v1870_v56, %v1842_v61 }
 0x103   : > { %v1843_v58 = vpop.f32.mrb[4].mxu0 }
 0x104   : > { %v1871_v3 = vpop.f32.mrb[4].mxu1  ;;  %v1844_v60 = vpop.f32.mrb[5].mxu0 }
 0x105   : > { %v1872_v62 = vpop.f32.mrb[5].mxu1  ;;  %v1845_v63 = vadd.f32 %v1844_v60, %v1843_v58  ;;  %v1846_v2 = vpop.f32.mrb[6].mxu0 }
 0x106   : > { %v1873_v1 = vadd.f32 %v1872_v62, %v1871_v3  ;;  %v1874_v4 = vpop.f32.mrb[6].mxu1  ;;  %v1847_v5 = vpop.f32.mrb[7].mxu0 }
 0x107   : > { %v1875_v6 = vpop.f32.mrb[7].mxu1  ;;  %v1848_v9 = vadd.f32 %v1847_v5, %v1846_v2 }
 0x108   : > { %v729_v8 = vadd.f32 %v1873_v1, %v1845_v63  ;;  %v1876_v10 = vadd.f32 %v1875_v6, %v1874_v4 }
 0x10a   : > { %v732_v11 = vadd.f32 %v1876_v10, %v1848_v9 }
 0x11b   : > { %v1893_v12 = vpop.f32.mrb[8].mxu0 }
 0x11c   : > { %v1894_v13 = vpop.f32.mrb[9].mxu0  ;;  %v1921_v7 = vpop.f32.mrb[8].mxu1 }
 0x11d   : > { %v1895_v14 = vadd.f32 %v1894_v13, %v1893_v12  ;;  %v1896_v15 = vpop.f32.mrb[10].mxu0  ;;  %v1922_v20 = vpop.f32.mrb[9].mxu1 }
 0x11e   : > { %v1897_v16 = vpop.f32.mrb[11].mxu0  ;;  %v1923_v21 = vadd.f32 %v1922_v20, %v1921_v7  ;;  %v1924_v59 = vpop.f32.mrb[10].mxu1 }
 0x11f   : > { %v971_v17 = vadd.f32 %v1895_v14, %v721_v55  ;;  %v1898_v18 = vadd.f32 %v1897_v16, %v1896_v15  ;;  %v1925_v22 = vpop.f32.mrb[11].mxu1 }
 0x120   : > { %v1926_v23 = vadd.f32 %v1925_v22, %v1924_v59 }
 0x121   : > { %v972_v19 = vadd.f32 %v1898_v18, %v724_v57 }
 0x123   : > { %v1899_v24 = vpop.f32.mrb[12].mxu0 }
 0x124   : > { %v1900_v25 = vpop.f32.mrb[13].mxu0  ;;  %v1927_v31 = vpop.f32.mrb[12].mxu1 }
 0x125   : > { %v1901_v26 = vadd.f32 %v1900_v25, %v1899_v24  ;;  %v1902_v27 = vpop.f32.mrb[14].mxu0  ;;  %v1928_v32 = vpop.f32.mrb[13].mxu1 }
 0x126   : > { %v1903_v28 = vpop.f32.mrb[15].mxu0  ;;  %v1929_v33 = vadd.f32 %v1928_v32, %v1927_v31  ;;  %v1930_v34 = vpop.f32.mrb[14].mxu1 }
 0x127   : > { %v973_v0 = vadd.f32 %v1901_v26, %v729_v8  ;;  %v1904_v29 = vadd.f32 %v1903_v28, %v1902_v27  ;;  %v1931_v35 = vpop.f32.mrb[15].mxu1 }
 0x128   : > { %v1932_v37 = vadd.f32 %v1931_v35, %v1930_v34 }
 0x129   : > { %v974_v30 = vadd.f32 %v1904_v29, %v732_v11 }
 0x13b   : > { %v1949_v36 = vpop.f32.mrb[16].mxu0 }
 0x13c   : > { %v1950_v38 = vpop.f32.mrb[17].mxu0  ;;  %v1989_v46 = vpop.f32.mrb[16].mxu1 }
 0x13d   : > { %v1951_v39 = vadd.f32 %v1950_v38, %v1949_v36  ;;  %v1952_v40 = vpop.f32.mrb[18].mxu0  ;;  %v1528_v48 = vpop.f32.mrb[17].mxu1 }
 0x13e   : > { %v1953_v41 = vpop.f32.mrb[19].mxu0  ;;  %v1990_v52 = vpop.f32.mrb[18].mxu1 }
 0x13f   : > { %v1372_v42 = vadd.f32 %v1951_v39, %v1923_v21  ;;  %v1954_v43 = vadd.f32 %v1953_v41, %v1952_v40  ;;  %v1531_v54 = vpop.f32.mrb[19].mxu1 }
 0x141   : > { %v1375_v44 = vadd.f32 %v1954_v43, %v1926_v23  ;;  %v1390_v45 = vadd.f32 %v1372_v42, %v971_v17 }
 0x143   : > { %v1391_v47 = vadd.f32 %v1375_v44, %v972_v19  ;;  %v1547_v50 = vadd.f32 %v1528_v48, %v1390_v45  ;;  %v1955_v51 = vpop.f32.mrb[20].mxu0 }
 0x144   : > { %v1956_v53 = vpop.f32.mrb[21].mxu0 }
 0x145   : > { %v1566_v55 = vadd.f32 %v1793_v49, %v1547_v50  ;;  %v1957_v61 = vadd.f32 %v1956_v53, %v1955_v51  ;;  %v1548_v56 = vadd.f32 %v1531_v54, %v1391_v47  ;;  %v1958_v57 = vpop.f32.mrb[22].mxu0 }
 0x146   : > { %v1959_v58 = vpop.f32.mrb[23].mxu0 }
 0x147   : > { %v1380_v3 = vadd.f32 %v1957_v61, %v1929_v33  ;;  %v1567_v60 = vadd.f32 %v1793_v49, %v1548_v56  ;;  %v1960_v62 = vadd.f32 %v1959_v58, %v1958_v57  ;;  %v1570_v63 = vmax.f32 %v1566_v55, 0.0 }
 0x149   : > { %v1392_v1 = vadd.f32 %v1380_v3, %v973_v0  ;;  %v1571_v2 = vmax.f32 %v1567_v60, 0.0  ;;  %v1383_v4 = vadd.f32 %v1960_v62, %v1932_v37 }
 0x14b   : > { %v1549_v5 = vadd.f32 %v1989_v46, %v1392_v1  ;;  %v1812_v6 = vpack.c.bf16 %v1571_v2, %v1570_v63  ;;  %v1393_v8 = vadd.f32 %v1383_v4, %v974_v30 }
 0x14d   : > { %v1568_v9 = vadd.f32 %v1793_v49, %v1549_v5  ;;  %1813 = vst [vmem:[%s285_s20] sm:$0xff] %v1812_v6   ;;  %v1550_v10 = vadd.f32 %v1990_v52, %v1393_v8 }
 0x14f   : > { %v1569_v11 = vadd.f32 %v1793_v49, %v1550_v10  ;;  %v1572_v12 = vmax.f32 %v1568_v9, 0.0 }
 0x151   : > { %v1573_v13 = vmax.f32 %v1569_v11, 0.0 }
 0x153   : > { %v1817_v14 = vpack.c.bf16 %v1573_v13, %v1572_v12 }
 0x155   : > { %1820 = vst [vmem:[%s285_s20 + $0x8] sm:$0xff] %v1817_v14  }
 0x156 PF: > { %s14_s17 = sadd.s32 1, %s2143_s17   ;;  %s2579_s15 = smov %s2139_s16 }
 0x157   : > { %p11_p7 = scmp.ge.s32.totalorder %s14_s17, 4   ;;  %s2580_s16 = smov %s2582_s18 }
 0x159   :  { %13 = sbr.rel (!%p11_p7) target bundleno = 2 (0x2), region = 69 }

// kernel: _lambda_.9
= control target key start
LH: loop header
LB: loop body
LE: loop exit
PB: predicated region body
PF: predicated region fallthrough
CT: control target
= control target key end

     0   :  { %s1949_s15 = smov 0   ;;  %s1951_s16 = smov 0   ;;  %s2294_s0 = inlined_call_operand.vmem [shape: bf16[64,512], index: 0, kind: input, shape index: {}, may-alias: {0,1}]   ;;  %s2295_s1 = inlined_call_operand.vmem [shape: bf16[64,512], index: 1, kind: input, shape index: {}, may-alias: {0,1}]   ;;  %s2296_s2 = inlined_call_operand.vmem [shape: bf16[1408,128], index: 2, kind: input, shape index: {}]   ;;  %s2297_s3 = inlined_call_operand.vmem [shape: f32[1,128], index: 3, kind: input, shape index: {}]   ;;  %s2298_s4 = inlined_call_operand.vmem [shape: bf16[32,128], index: 4, kind: output, shape index: {}]  }
   0x1   :  { %s1953_s17 = smov 0  }
   0x2 LB: > { %s26_s18 = sadd.s32 1, %s1916_s16  ;;  %p1508_p0 = scmp.ge.s32.totalorder %s1920_s17, 1  ;;  %s1920_s17 = sphi %s1953_s17, %s14_s17   ;;  %s1916_s16 = sphi %s1951_s16, %s2300_s16   ;;  %s1912_s15 = sphi %s1949_s15, %s2299_s15  }
   0x3   : > { %p28_p1 = scmp.ge.s32.totalorder %s26_s18, 2  ;;  %p210_p2 = scmp.lt.s32.totalorder %s1920_s17, 3 }
   0x5   : > { %s2302_s18 = smov (%p28_p1, %s26_s18), 0  ;;  %p211_p3 = pnand %p1508_p0, %p210_p2 }
   0x6   : > { %v1798_v0 = vld [vmem:[%s2296_s2 + $0x40] sm:$0xff] (!%p211_p3)   ;;  %v1802_v4 = vld [vmem:[%s2296_s2 + $0x48] sm:$0xff] (!%p211_p3)   ;;  %v1806_v8 = vld [vmem:[%s2296_s2 + $0x50] sm:$0xff] (!%p211_p3)   ;;  %s2018_s29 = sshll.u32 (!%p211_p3), %s1912_s15, 2  ;;  %vm968_vm0 = vcmask (!%p211_p3), 1043456   ;;  %vm1923_vm2 = vmmov (!%p211_p3), 0  }
   0x7   : > { %214 = sbr.rel (%p211_p3) target bundleno = 334 (0x14e), region = 36  ;;  %v1799_v1 = vld [vmem:[%s2296_s2 + $0xc0] sm:$0xff] (!%p211_p3)   ;;  %1633 = vmatprep.subr.bf16.mxu0 (!%p211_p3), %v1798_v0  ;;  %v1803_v5 = vld [vmem:[%s2296_s2 + $0xc8] sm:$0xff] (!%p211_p3)   ;;  %v1807_v9 = vld [vmem:[%s2296_s2 + $0xd0] sm:$0xff] (!%p211_p3)   ;;  %p252_p4 = scmp.lt.s32.totalorder (!%p211_p3), %s2018_s29, 7 }
   0x8   : > { %v1800_v2 = vld [vmem:[%s2296_s2] sm:$0xff] (!%p211_p3)   ;;  %1655 = vmatprep.subr.bf16.mxu1 (!%p211_p3), %v1799_v1  ;;  %v1804_v6 = vld [vmem:[%s2296_s2 + $0x8] sm:$0xff] (!%p211_p3)   ;;  %v1808_v10 = vld [vmem:[%s2296_s2 + $0x10] sm:$0xff] (!%p211_p3)   ;;  %s1623_s30 = sadd.s32 (!%p211_p3), 2, %s2018_s29  ;;  %vm718_vm1 = vsmask.f32 (!%p211_p3), 7424 }
   0x9   : > { %v1801_v3 = vld [vmem:[%s2296_s2 + $0x80] sm:$0xff] (!%p211_p3)   ;;  %1634 = vmatpush3.bf16.msra.mxu0 (!%p211_p3), %v1800_v2  ;;  %v1805_v7 = vld [vmem:[%s2296_s2 + $0x88] sm:$0xff] (!%p211_p3)   ;;  %v1809_v11 = vld [vmem:[%s2296_s2 + $0x90] sm:$0xff] (!%p211_p3)   ;;  %p264_p5 = scmp.lt.s32.totalorder (!%p211_p3), %s1623_s30, 7  ;;  %vm1283_vm3 = vsmask.f32 (!%p211_p3), 3328 }
   0xa   : > { %1656 = vmatpush3.bf16.msra.mxu1 (!%p211_p3), %v1801_v3  ;;  %1635 = vmatprep.subr.bf16.mxu0 (!%p211_p3), %v1802_v4  ;;  %v1810_v12 = vld [vmem:[%s2296_s2 + $0x58] sm:$0xff] (!%p211_p3)   ;;  %v1814_v16 = vld [vmem:[%s2296_s2 + $0x60] sm:$0xff] (!%p211_p3)   ;;  %v1818_v20 = vld [vmem:[%s2296_s2 + $0x68] sm:$0xff] (!%p211_p3)   ;;  %s1517_s9 = sshll.u32 (!%p211_p3), %s1912_s15, 1 }
   0xb   : > { %1657 = vmatprep.subr.bf16.mxu1 (!%p211_p3), %v1803_v5  ;;  %v1811_v13 = vld [vmem:[%s2296_s2 + $0xd8] sm:$0xff] (!%p211_p3)   ;;  %v1815_v17 = vld [vmem:[%s2296_s2 + $0xe0] sm:$0xff] (!%p211_p3)   ;;  %v1819_v21 = vld [vmem:[%s2296_s2 + $0xe8] sm:$0xff] (!%p211_p3)   ;;  %p275_p6 = scmp.lt.s32.totalorder (!%p211_p3), %s1517_s9, 3 }
   0xc   : > { %v1812_v14 = vld [vmem:[%s2296_s2 + $0x18] sm:$0xff] (!%p211_p3)   ;;  %v1816_v18 = vld [vmem:[%s2296_s2 + $0x20] sm:$0xff] (!%p211_p3)   ;;  %v1820_v22 = vld [vmem:[%s2296_s2 + $0x28] sm:$0xff] (!%p211_p3)  }
   0xd   : > { %1636 = vmatpush3.bf16.msra.mxu0 (!%p211_p3), %v1804_v6  ;;  %v1813_v15 = vld [vmem:[%s2296_s2 + $0x98] sm:$0xff] (!%p211_p3)   ;;  %v1817_v19 = vld [vmem:[%s2296_s2 + $0xa0] sm:$0xff] (!%p211_p3)   ;;  %v1821_v23 = vld [vmem:[%s2296_s2 + $0xa8] sm:$0xff] (!%p211_p3)  }
   0xe   : > { %1658 = vmatpush3.bf16.msra.mxu1 %v1805_v7  ;;  %1637 = vmatprep.subr.bf16.mxu0 %v1806_v8  ;;  %s253_s22 = scalar_select %p252_p4, %s2018_s29, 7  ;;  %v1822_v24 = vld [vmem:[%s2296_s2 + $0x70] sm:$0xff]   ;;  %v1826_v28 = vld [vmem:[%s2296_s2 + $0x78] sm:$0xff]   ;;  %v1836_v36 = vld [vmem:[%s2296_s2 + $0x140] sm:$0xff]  }
   0xf   : > { %1659 = vmatprep.subr.bf16.mxu1 %v1807_v9  ;;  %v1823_v25 = vld [vmem:[%s2296_s2 + $0xf0] sm:$0xff]   ;;  %v1827_v29 = vld [vmem:[%s2296_s2 + $0xf8] sm:$0xff]   ;;  %v1837_v37 = vld [vmem:[%s2296_s2 + $0x100] sm:$0xff]   ;;  %s2304_s30 = smov (!%p264_p5, %s1623_s30), 7  ;;  %s2306_s9 = smov (!%p275_p6, %s1517_s9), 3 }
  0x10   : > { %v1824_v26 = vld [vmem:[%s2296_s2 + $0x30] sm:$0xff]   ;;  %s1621_s6 = sshll.u32 %s253_s22, 4  ;;  %v1828_v30 = vld [vmem:[%s2296_s2 + $0x38] sm:$0xff]   ;;  %v1838_v38 = vld [vmem:[%s2296_s2 + $0x148] sm:$0xff]   ;;  %s1518_s12 = sshll.u32 %s2306_s9, 2 }
  0x11   : > { %1638 = vmatpush3.bf16.msra.mxu0 %v1808_v10  ;;  %v1825_v27 = vld [vmem:[%s2296_s2 + $0xb0] sm:$0xff]   ;;  %s256_s19 = scalar_lea.vmem %s2294_s0, %s1621_s6  ;;  %v1829_v31 = vld [vmem:[%s2296_s2 + $0xb8] sm:$0xff]   ;;  %v1839_v39 = vld [vmem:[%s2296_s2 + $0x1c0] sm:$0xff]   ;;  %s1624_s6 = sshll.u32 %s2304_s30, 4 }
  0x12   : > { %1660 = vmatpush3.bf16.msra.mxu1 %v1809_v11  ;;  %1639 = vmatprep.subr.bf16.mxu0 %v1810_v12  ;;  %v2073_v32 = vld [vmem:[%s256_s19 + $0x4] ss:$16 sps:$4 sm:$0xff]   ;;  %v1832_v33 = vld [vmem:[%s256_s19 + $0xc] ss:$16 sps:$4 sm:$0xff]   ;;  %v2077_v34 = vld [vmem:[%s256_s19] ss:$16 sps:$4 sm:$0xff]   ;;  %s2166_s14 = scalar_lea.vmem %s2295_s1, %s1624_s6  ;;  %s278_s13 = scalar_lea.vmem %s2298_s4, %s1518_s12 }
  0x13   : > { %1661 = vmatprep.subr.bf16.mxu1 %v1811_v13  ;;  %307 = vst [vmem:[#allocation2 + $0x8] sm:$0xff] %v2073_v32  ;;  %630 = vmatprep.mubr.bf16.mxu0 %v2073_v32  ;;  %v1835_v35 = vld [vmem:[%s256_s19 + $0x8] ss:$16 sps:$4 sm:$0xff]   ;;  %309 = vst [vmem:[#allocation2 + $0x18] sm:$0xff] %v1832_v33  ;;  %v1841_v41 = vld [vmem:[%s2296_s2 + $0x180] sm:$0xff]   ;;  %v734_v3 = vshll.u32 %v2073_v32, 16 }
  0x14   : > { %671 = vmatprep.mubr.bf16.mxu1 %v1832_v33  ;;  %306 = vst [vmem:[#allocation2] sm:$0xff] %v2077_v34  ;;  %308 = vst [vmem:[#allocation2 + $0x10] sm:$0xff] %v1835_v35  ;;  %v1840_v40 = vld [vmem:[%s2296_s2 + $0x108] sm:$0xff]   ;;  %v1842_v42 = vld [vmem:[%s2296_s2 + $0x150] sm:$0xff]   ;;  %v722_v6 = vshll.u32 %v2077_v34, 16  ;;  %v732_v9 = vshrl.u32 %v2073_v32, 16 }
  0x15   : > { %1640 = vmatpush3.bf16.msra.mxu0 %v1812_v14  ;;  %v1843_v43 = vld [vmem:[%s2296_s2 + $0x1c8] sm:$0xff]   ;;  %v1844_v44 = vld [vmem:[%s2296_s2 + $0x110] sm:$0xff]   ;;  %v1846_v46 = vld [vmem:[%s2296_s2 + $0x158] sm:$0xff]   ;;  %v736_v10 = vrot.slane %v734_v3, 1  ;;  %v720_v12 = vshrl.u32 %v2077_v34, 16  ;;  %v1922_v14 = vmov 0.0  }
  0x16   : > { %1662 = vmatpush3.bf16.msra.mxu1 %v1813_v15  ;;  %1641 = vmatprep.subr.bf16.mxu0 %v1814_v16  ;;  %v1845_v45 = vld [vmem:[%s2296_s2 + $0x188] sm:$0xff]   ;;  %v1847_v47 = vld [vmem:[%s2296_s2 + $0x1d0] sm:$0xff]   ;;  %v1848_v48 = vld [vmem:[%s2296_s2 + $0x118] sm:$0xff]   ;;  %v724_v13 = vrot.slane %v722_v6, 1 }
  0x17   : > { %1663 = vmatprep.subr.bf16.mxu1 %v1815_v17  ;;  %v1849_v49 = vld [vmem:[%s2296_s2 + $0x190] sm:$0xff]   ;;  %v1850_v50 = vld [vmem:[%s2296_s2 + $0x160] sm:$0xff]   ;;  %v1851_v51 = vld [vmem:[%s2296_s2 + $0x1d8] sm:$0xff]  }
  0x18   : > { %v1852_v52 = vld [vmem:[%s2296_s2 + $0x120] sm:$0xff]   ;;  %v1853_v53 = vld [vmem:[%s2296_s2 + $0x198] sm:$0xff]   ;;  %v1854_v54 = vld [vmem:[%s2296_s2 + $0x168] sm:$0xff]  }
  0x19   : > { %1642 = vmatpush3.bf16.msra.mxu0 %v1816_v18  ;;  %v1855_v55 = vld [vmem:[%s2296_s2 + $0x1e0] sm:$0xff]   ;;  %v1856_v56 = vld [vmem:[%s2296_s2 + $0x128] sm:$0xff]   ;;  %v1858_v58 = vld [vmem:[%s2296_s2 + $0x170] sm:$0xff]  }
  0x1a   : > { %1664 = vmatpush3.bf16.msra.mxu1 %v1817_v19  ;;  %1643 = vmatprep.subr.bf16.mxu0 %v1818_v20  ;;  %v1857_v57 = vld [vmem:[%s2296_s2 + $0x1a0] sm:$0xff]   ;;  %v1859_v59 = vld [vmem:[%s2296_s2 + $0x1e8] sm:$0xff]   ;;  %v1860_v60 = vld [vmem:[%s2296_s2 + $0x130] sm:$0xff]   ;;  %v737_v19 = vor.u32 %v736_v10, %v732_v9 }
  0x1b   : > { %1665 = vmatprep.subr.bf16.mxu1 %v1819_v21  ;;  %v1861_v61 = vld [vmem:[%s2296_s2 + $0x1a8] sm:$0xff]   ;;  %v1862_v62 = vld [vmem:[%s2296_s2 + $0x178] sm:$0xff]   ;;  %v1863_v63 = vld [vmem:[%s2296_s2 + $0x1f0] sm:$0xff]  }
  0x1c   : > { %v1864_v0 = vld [vmem:[%s2296_s2 + $0x138] sm:$0xff]   ;;  %v1865_v1 = vld [vmem:[%s2296_s2 + $0x1b0] sm:$0xff]   ;;  %v1870_v7 = vld [vmem:[%s2296_s2 + $0x240] sm:$0xff]  }
  0x1d   : > { %1644 = vmatpush3.bf16.msra.mxu0 %v1820_v22  ;;  %v1866_v2 = vld [vmem:[%s2166_s14 + $0x4] ss:$16 sps:$4 sm:$0xff]   ;;  %v1868_v4 = vld [vmem:[%s2166_s14] ss:$16 sps:$4 sm:$0xff]   ;;  %v1869_v5 = vld [vmem:[%s2296_s2 + $0x1f8] sm:$0xff]  }
  0x1e   : > { %1666 = vmatpush3.bf16.msra.mxu1 %v1821_v23  ;;  %1645 = vmatprep.subr.bf16.mxu0 %v1822_v24  ;;  %335 = vst [vmem:[#allocation2 + $0x28] sm:$0xff] %v1866_v2  ;;  %334 = vst [vmem:[#allocation2 + $0x20] sm:$0xff] %v1868_v4  ;;  %v1871_v8 = vld [vmem:[%s2296_s2 + $0x1b8] sm:$0xff]   ;;  %v889_v11 = vld [vmem:[#allocation2 + $0x8] sm:$0xf0]  ;;  %v725_v23 = vor.u32 %v724_v13, %v720_v12 }
  0x1f   : > { %1667 = vmatprep.subr.bf16.mxu1 %v1823_v25  ;;  %v888_v15 = vld [vmem:[#allocation2] sm:$0xf0]  ;;  %v972_v16 = vrot.slane %v889_v11, 4  ;;  %v1889_v2 = vld [vmem:[%s2296_s2 + $0x230] sm:$0xff]   ;;  %v1891_v4 = vld [vmem:[%s2296_s2 + $0x278] sm:$0xff]  }
  0x20   : > { %v969_v17 = vrot.slane %v888_v15, 4  ;;  %v1872_v32 = vld [vmem:[%s2296_s2 + $0x200] sm:$0xff]   ;;  %v890_v6 = vld [vmem:[#allocation2 + $0x10] sm:$0xf0]  ;;  %v1897_v9 = vld [vmem:[%s2296_s2 + $0x2b8] sm:$0xff]  }
  0x21   : > { %1646 = vmatpush3.bf16.msra.mxu0 %v1824_v26  ;;  %v1892_v12 = vld [vmem:[%s2296_s2 + $0x238] sm:$0xff]   ;;  %v975_v15 = vrot.slane %v890_v6, 4 }
  0x22   : > { %1668 = vmatpush3.bf16.msra.mxu1 %v1825_v27  ;;  %1647 = vmatprep.subr.bf16.mxu0 %v1826_v28  ;;  %v1875_v28 = vld [vmem:[%s2296_s2 + $0x280] sm:$0xff]  }
  0x23   : > { %1669 = vmatprep.subr.bf16.mxu1 %v1827_v29 }
  0x25   : > { %1648 = vmatpush3.bf16.msra.mxu0 %v1828_v30  ;;  %v685_v18 = vld [vmem:[#allocation2 + $0x28] sm:$0x1]  ;;  %v684_v20 = vld [vmem:[#allocation2 + $0x20] sm:$0x1] }
  0x26   : > { %1670 = vmatpush3.bf16.msra.mxu1 %v1829_v31  ;;  %1677 = vmatprep.subr.bf16.mxu0 %v1836_v36  ;;  %v893_v21 = vld [vmem:[#allocation2 + $0x28] sm:$0xf]  ;;  %v739_v22 = vshll.u32 %v685_v18, 16  ;;  %v727_v24 = vshll.u32 %v684_v20, 16  ;;  %v892_v26 = vld [vmem:[#allocation2 + $0x20] sm:$0xf] }
  0x27   : > { %1699 = vmatprep.subr.bf16.mxu1 %v1839_v39  ;;  %v973_v25 = vrot.slane %v893_v21, 4  ;;  %v970_v27 = vrot.slane %v892_v26, 4  ;;  %v1873_v36 = vld [vmem:[%s2296_s2 + $0x248] sm:$0xff]   ;;  %v1876_v39 = vld [vmem:[%s2296_s2 + $0x250] sm:$0xff]  }
  0x28   : > { %631 = vmatmul.mubr.bf16.vlgmr.msra.gmra.mrb[0].mxu0 %v2077_v34  ;;  %v741_v29 = vrot.slane %v739_v22, 1  ;;  %v729_v30 = vrot.slane %v727_v24, 1 }
  0x29   : > { %672 = vmatmul.mubr.bf16.vlgmr.msra.gmra.mrb[0].mxu1 %v1835_v35  ;;  %1678 = vmatpush3.bf16.msra.mxu0 %v1837_v37  ;;  %v974_v31 = vsel %vm968_vm0, %v972_v16, %v973_v25  ;;  %v971_v33 = vsel %vm968_vm0, %v969_v17, %v970_v27  ;;  %v1878_v37 = vld [vmem:[%s2296_s2 + $0x288] sm:$0xff]  }
  0x2a   : > { %1679 = vmatprep.subr.bf16.mxu0 %v1838_v38  ;;  %1700 = vmatpush3.bf16.msra.mxu1 %v1841_v41  ;;  %v742_v34 = vsel %vm718_vm1, %v737_v19, %v741_v29  ;;  %v730_v35 = vsel %vm718_vm1, %v725_v23, %v729_v30  ;;  %v1874_v38 = vld [vmem:[%s2296_s2 + $0x208] sm:$0xff]   ;;  %v1877_v41 = vld [vmem:[%s2296_s2 + $0x210] sm:$0xff]  }
  0x2b   : > { %1701 = vmatprep.subr.bf16.mxu1 %v1843_v43  ;;  %1209 = vmatprep.mubr.bf16.mxu1 %v974_v31  ;;  %v1884_v43 = vld [vmem:[%s2296_s2 + $0x298] sm:$0xff]  }
  0x2c   : > { %873 = vmatprep.mubr.bf16.mxu0 %v742_v34 }
  0x2d   : > { %1680 = vmatpush3.bf16.msra.mxu0 %v1840_v40  ;;  %v1881_v40 = vld [vmem:[%s2296_s2 + $0x290] sm:$0xff]  }
  0x2e   : > { %1681 = vmatprep.subr.bf16.mxu0 %v1842_v42  ;;  %1702 = vmatpush3.bf16.msra.mxu1 %v1845_v45  ;;  %v1879_v42 = vld [vmem:[%s2296_s2 + $0x258] sm:$0xff]   ;;  %v1882_v45 = vld [vmem:[%s2296_s2 + $0x260] sm:$0xff]  }
  0x2f   : > { %1703 = vmatprep.subr.bf16.mxu1 %v1847_v47  ;;  %v1883_v47 = vld [vmem:[%s2296_s2 + $0x220] sm:$0xff]  }
  0x31   : > { %1682 = vmatpush3.bf16.msra.mxu0 %v1844_v44  ;;  %v1880_v44 = vld [vmem:[%s2296_s2 + $0x218] sm:$0xff]  }
  0x32   : > { %1683 = vmatprep.subr.bf16.mxu0 %v1846_v46  ;;  %1704 = vmatpush3.bf16.msra.mxu1 %v1849_v49  ;;  %v1887_v46 = vld [vmem:[%s2296_s2 + $0x2a0] sm:$0xff]   ;;  %v1885_v49 = vld [vmem:[%s2296_s2 + $0x268] sm:$0xff]  }
  0x33   : > { %1705 = vmatprep.subr.bf16.mxu1 %v1851_v51  ;;  %v1890_v51 = vld [vmem:[%s2296_s2 + $0x2a8] sm:$0xff]  }
  0x35   : > { %1684 = vmatpush3.bf16.msra.mxu0 %v1848_v48  ;;  %v1894_v48 = vld [vmem:[%s2166_s14 + $0xc] ss:$16 sps:$4 sm:$0xff]  }
  0x36   : > { %1685 = vmatprep.subr.bf16.mxu0 %v1850_v50  ;;  %1706 = vmatpush3.bf16.msra.mxu1 %v1853_v53  ;;  %v1896_v50 = vld [vmem:[%s2166_s14 + $0x8] ss:$16 sps:$4 sm:$0xff]   ;;  %337 = vst [vmem:[#allocation2 + $0x38] sm:$0xff] %v1894_v48  ;;  %v1266_v53 = vld [vmem:[#allocation2 + $0x20] sm:$0x1f] }
  0x37   : > { %1707 = vmatprep.subr.bf16.mxu1 %v1855_v55  ;;  %336 = vst [vmem:[#allocation2 + $0x30] sm:$0xff] %v1896_v50 }
  0x39   : > { %1686 = vmatpush3.bf16.msra.mxu0 %v1852_v52  ;;  %v1265_v52 = vld [vmem:[#allocation2] sm:$0xf0] }
  0x3a   : > { %1687 = vmatprep.subr.bf16.mxu0 %v1854_v54  ;;  %1708 = vmatpush3.bf16.msra.mxu1 %v1857_v57  ;;  %v1886_v54 = vld [vmem:[%s2296_s2 + $0x228] sm:$0xff]   ;;  %v1285_v55 = vshrl.u32 %v1265_v52, 16  ;;  %v1293_v57 = vshrl.u32 %v1266_v53, 16 }
  0x3b   : > { %1709 = vmatprep.subr.bf16.mxu1 %v1859_v59  ;;  %v1888_v59 = vld [vmem:[%s2296_s2 + $0x270] sm:$0xff]  }
  0x3d   : > { %1688 = vmatpush3.bf16.msra.mxu0 %v1856_v56  ;;  %v1288_v56 = vshll.u32 %v1265_v52, 16 }
  0x3e   : > { %1689 = vmatprep.subr.bf16.mxu0 %v1858_v58  ;;  %1710 = vmatpush3.bf16.msra.mxu1 %v1861_v61  ;;  %v1296_v58 = vshll.u32 %v1266_v53, 16  ;;  %v1893_v61 = vld [vmem:[%s2296_s2 + $0x2b0] sm:$0xff]  }
  0x3f   : > { %1711 = vmatprep.subr.bf16.mxu1 %v1863_v63  ;;  %v1290_v63 = vrot.slane %v1288_v56, 5 }
  0x41   : > { %1690 = vmatpush3.bf16.msra.mxu0 %v1860_v60  ;;  %v891_v60 = vld [vmem:[#allocation2 + $0x18] sm:$0xf0] }
  0x42   : > { %1691 = vmatprep.subr.bf16.mxu0 %v1862_v62  ;;  %1712 = vmatpush3.bf16.msra.mxu1 %v1865_v1  ;;  %v1287_v62 = vrot.slane %v1285_v55, 4  ;;  %v1298_v1 = vrot.slane %v1296_v58, 5  ;;  %v978_v3 = vrot.slane %v891_v60, 4 }
  0x43   : > { %1713 = vmatprep.subr.bf16.mxu1 %v1869_v5  ;;  %v895_v5 = vld [vmem:[#allocation2 + $0x38] sm:$0xf] }
  0x44   : > { %v1291_v10 = vor.u32 %v1290_v63, %v1287_v62 }
  0x45   : > { %1692 = vmatpush3.bf16.msra.mxu0 %v1864_v0  ;;  %v1295_v0 = vrot.slane %v1293_v57, 4 }
  0x46   : > { %1721 = vmatprep.subr.bf16.mxu0 %v1870_v7  ;;  %1714 = vmatpush3.bf16.msra.mxu1 %v1871_v8  ;;  %v979_v7 = vrot.slane %v895_v5, 4  ;;  %v894_v8 = vld [vmem:[#allocation2 + $0x30] sm:$0xf] }
  0x47   : > { %1752 = vmatprep.subr.bf16.mxu1 %v1922_v14  ;;  %v1299_v11 = vor.u32 %v1298_v1, %v1295_v0  ;;  %v976_v16 = vrot.slane %v894_v8, 4 }
  0x48   : > { %874 = vmatmul.mubr.bf16.vlgmr.msra.gmra.mrb[4].mxu0 %v730_v35  ;;  %v980_v13 = vsel %vm968_vm0, %v978_v3, %v979_v7 }
  0x49   : > { %1210 = vmatmul.mubr.bf16.vlgmr.msra.gmra.mrb[4].mxu1 %v971_v33  ;;  %1722 = vmatpush3.bf16.msra.mxu0 %v1872_v32  ;;  %v1300_v17 = vsel %vm1283_vm3, %v1291_v10, %v1299_v11  ;;  %v977_v18 = vsel %vm968_vm0, %v975_v15, %v976_v16 }
  0x4a   : > { %1753 = vmatpush3.bf16.msra.mxu1 %v1875_v28  ;;  %1768 = vmatprep.mubr.msk.bf16.mxu1 %vm1923_vm2, %v1922_v14 }
  0x4b   : > { %1754 = vmatprep.subr.bf16.mxu1 %v1922_v14  ;;  %1723 = vmatprep.subr.bf16.mxu0 %v1873_v36 }
  0x4c   : > { %1250 = vmatprep.mubr.bf16.mxu0 %v980_v13 }
  0x4d   : > { %1724 = vmatpush3.bf16.msra.mxu0 %v1874_v38 }
  0x4e   : > { %1755 = vmatpush3.bf16.msra.mxu1 %v1878_v37  ;;  %1725 = vmatprep.subr.bf16.mxu0 %v1876_v39 }
  0x4f   : > { %1756 = vmatprep.subr.bf16.mxu1 %v1922_v14 }
  0x51   : > { %1726 = vmatpush3.bf16.msra.mxu0 %v1877_v41 }
  0x52   : > { %1757 = vmatpush3.bf16.msra.mxu1 %v1881_v40  ;;  %1727 = vmatprep.subr.bf16.mxu0 %v1879_v42 }
  0x53   : > { %1758 = vmatprep.subr.bf16.mxu1 %v1922_v14 }
  0x55   : > { %1728 = vmatpush3.bf16.msra.mxu0 %v1880_v44 }
  0x56   : > { %1759 = vmatpush3.bf16.msra.mxu1 %v1884_v43  ;;  %1729 = vmatprep.subr.bf16.mxu0 %v1882_v45 }
  0x57   : > { %1760 = vmatprep.subr.bf16.mxu1 %v1922_v14 }
  0x59   : > { %1730 = vmatpush3.bf16.msra.mxu0 %v1883_v47 }
  0x5a   : > { %1761 = vmatpush3.bf16.msra.mxu1 %v1887_v46  ;;  %1731 = vmatprep.subr.bf16.mxu0 %v1885_v49 }
  0x5b   : > { %1762 = vmatprep.subr.bf16.mxu1 %v1922_v14 }
  0x5d   : > { %1732 = vmatpush3.bf16.msra.mxu0 %v1886_v54 }
  0x5e   : > { %1763 = vmatpush3.bf16.msra.mxu1 %v1890_v51  ;;  %1733 = vmatprep.subr.bf16.mxu0 %v1888_v59  ;;  %v1615_v59 = vld [vmem:[%s2297_s3] ss:$0 sm:$0xff] }
  0x5f   : > { %1764 = vmatprep.subr.bf16.mxu1 %v1922_v14 }
  0x61   : > { %1734 = vmatpush3.bf16.msra.mxu0 %v1889_v2 }
  0x62   : > { %1765 = vmatpush3.bf16.msra.mxu1 %v1893_v61  ;;  %1735 = vmatprep.subr.bf16.mxu0 %v1891_v4 }
  0x63   : > { %1766 = vmatprep.subr.bf16.mxu1 %v1922_v14 }
  0x65   : > { %1736 = vmatpush3.bf16.msra.mxu0 %v1892_v12 }
  0x66   : > { %1767 = vmatpush3.bf16.msra.mxu1 %v1897_v9 }
  0x68   : > { %1251 = vmatmul.mubr.bf16.vlgmr.msra.gmra.mrb[8].mxu0 %v977_v18 }
  0x69   : > { %1769 = vmatmul.mubr.bf16.vlgmr.msra.gmra.mrb[8].mxu1 %v1300_v17 }
  0xfb   : > { %v1649_v14 = vpop.f32.mrb[0].mxu0 }
  0xfc   : > { %v1671_v19 = vpop.f32.mrb[0].mxu1  ;;  %v1650_v20 = vpop.f32.mrb[1].mxu0 }
  0xfd   : > { %v1672_v21 = vpop.f32.mrb[1].mxu1  ;;  %v1651_v22 = vadd.f32 %v1650_v20, %v1649_v14  ;;  %v1652_v24 = vpop.f32.mrb[2].mxu0 }
  0xfe   : > { %v1673_v23 = vadd.f32 %v1672_v21, %v1671_v19  ;;  %v1674_v25 = vpop.f32.mrb[2].mxu1  ;;  %v1653_v26 = vpop.f32.mrb[3].mxu0 }
  0xff   : > { %v1675_v27 = vpop.f32.mrb[3].mxu1  ;;  %v1654_v29 = vadd.f32 %v1653_v26, %v1652_v24 }
 0x100   : > { %v674_v28 = vadd.f32 %v1673_v23, %v1651_v22  ;;  %v1676_v30 = vadd.f32 %v1675_v27, %v1674_v25 }
 0x102   : > { %v677_v31 = vadd.f32 %v1676_v30, %v1654_v29 }
 0x11b   : > { %v1693_v34 = vpop.f32.mrb[4].mxu0 }
 0x11c   : > { %v1715_v32 = vpop.f32.mrb[4].mxu1  ;;  %v1694_v37 = vpop.f32.mrb[5].mxu0 }
 0x11d   : > { %v1716_v33 = vpop.f32.mrb[5].mxu1  ;;  %v1695_v39 = vadd.f32 %v1694_v37, %v1693_v34  ;;  %v1696_v40 = vpop.f32.mrb[6].mxu0 }
 0x11e   : > { %v1717_v35 = vadd.f32 %v1716_v33, %v1715_v32  ;;  %v1718_v36 = vpop.f32.mrb[6].mxu1  ;;  %v1697_v42 = vpop.f32.mrb[7].mxu0 }
 0x11f   : > { %v1719_v38 = vpop.f32.mrb[7].mxu1  ;;  %v884_v43 = vadd.f32 %v1695_v39, %v674_v28  ;;  %v1698_v44 = vadd.f32 %v1697_v42, %v1696_v40 }
 0x120   : > { %v1720_v41 = vadd.f32 %v1719_v38, %v1718_v36 }
 0x121   : > { %v885_v45 = vadd.f32 %v1698_v44, %v677_v31 }
 0x13b   : > { %v1737_v48 = vpop.f32.mrb[8].mxu0 }
 0x13c   : > { %v1384_v46 = vpop.f32.mrb[8].mxu1  ;;  %v1738_v50 = vpop.f32.mrb[9].mxu0 }
 0x13d   : > { %v1770_v47 = vpop.f32.mrb[9].mxu1  ;;  %v1739_v52 = vadd.f32 %v1738_v50, %v1737_v48  ;;  %v1740_v53 = vpop.f32.mrb[10].mxu0 }
 0x13e   : > { %v1387_v49 = vpop.f32.mrb[10].mxu1  ;;  %v1741_v54 = vpop.f32.mrb[11].mxu0 }
 0x13f   : > { %v1771_v51 = vpop.f32.mrb[11].mxu1  ;;  %v1253_v55 = vadd.f32 %v1739_v52, %v1717_v35  ;;  %v1742_v56 = vadd.f32 %v1741_v54, %v1740_v53 }
 0x141   : > { %v1256_v57 = vadd.f32 %v1742_v56, %v1720_v41  ;;  %v1261_v58 = vadd.f32 %v1253_v55, %v884_v43 }
 0x143   : > { %v1393_v60 = vadd.f32 %v1384_v46, %v1261_v58  ;;  %v1262_v61 = vadd.f32 %v1256_v57, %v885_v45 }
 0x145   : > { %v1406_v62 = vadd.f32 %v1615_v59, %v1393_v60  ;;  %v1394_v63 = vadd.f32 %v1387_v49, %v1262_v61 }
 0x147   : > { %v1407_v0 = vadd.f32 %v1615_v59, %v1394_v63  ;;  %v1408_v1 = vmax.f32 %v1406_v62, 0.0 }
 0x149   : > { %v1409_v2 = vmax.f32 %v1407_v0, 0.0 }
 0x14b   : > { %v1630_v3 = vpack.c.bf16 %v1409_v2, %v1408_v1 }
 0x14d   : > { %1631 = vst [vmem:[%s278_s13] sm:$0xff] %v1630_v3  }
 0x14e PF: > { %s14_s17 = sadd.s32 1, %s1920_s17   ;;  %s2299_s15 = smov %s1916_s16 }
 0x14f   : > { %p11_p7 = scmp.ge.s32.totalorder %s14_s17, 4   ;;  %s2300_s16 = smov %s2302_s18 }
 0x151   :  { %13 = sbr.rel (!%p11_p7) target bundleno = 2 (0x2), region = 69 }

</bundles_post_ra>
